<compile_context>
chip_gen: v7x
topology: tpu7x:2x2x1
jax: 0.10.0
libtpu: 0.0.40
codegen_flags: <defaults>
</compile_context>

<pallas_src>
import math
import functools

import jax
import jax.numpy as jnp
from jax.experimental import pallas as pl
from jax.experimental.pallas import tpu as pltpu

_LANE = 128          # TPU lane width; Cout (and stored activations) padded to this
_BN_EPS = 1e-5


# ----------------------------------------------------------------------------
# Pallas kernels: fused matmul + bias (+ residual) (+ ReLU).
# bf16 MXU inputs, f32 accumulate, f32 epilogue, bf16 store.
# ----------------------------------------------------------------------------
def _mm_bias_kernel(x_ref, w_ref, b_ref, o_ref, *, relu):
    acc = jnp.dot(x_ref[...], w_ref[...], preferred_element_type=jnp.float32)
    acc = acc + b_ref[...]
    if relu:
        acc = jnp.maximum(acc, 0.0)
    o_ref[...] = acc.astype(o_ref.dtype)


def _mm_bias_res_kernel(x_ref, w_ref, b_ref, r_ref, o_ref, *, relu):
    acc = jnp.dot(x_ref[...], w_ref[...], preferred_element_type=jnp.float32)
    acc = acc + b_ref[...] + r_ref[...].astype(jnp.float32)
    if relu:
        acc = jnp.maximum(acc, 0.0)
    o_ref[...] = acc.astype(o_ref.dtype)


def _round_up(x, m):
    return (x + m - 1) // m * m


def _pick_tile_m(m_pad):
    # Target 256-512 row tiles (~85% of HBM roofline per measured data) while
    # keeping >=2 grid steps so DMA pipelines and both v7x TCs get work.
    for tm in (512, 256, 128, 64, 32, 16):
        if m_pad % tm == 0 and m_pad // tm >= 2:
            return tm
    return m_pad


def fused_matmul(x, w, bias, residual=None, relu=True):
    """out = relu?(x @ w + bias [+ residual])

    x: (M, K) bf16 (K a multiple of 128), w: (K, 128) bf16 (BN scale folded in),
    bias: (1, 128) f32, residual: optional (M, 128) bf16.  Returns (M, 128) bf16.
    """
    M, K = x.shape
    Cout = w.shape[1]

    M_pad = _round_up(M, 16)                 # 16: bf16 sublane packing
    if M_pad != M:
        x = jnp.pad(x, ((0, M_pad - M), (0, 0)))
        if residual is not None:
            residual = jnp.pad(residual, ((0, M_pad - M), (0, 0)))

    tm = _pick_tile_m(M_pad)
    grid = (M_pad // tm,)

    in_specs = [
        pl.BlockSpec((tm, K), lambda i: (i, 0)),
        pl.BlockSpec((K, Cout), lambda i: (0, 0)),
        pl.BlockSpec((1, Cout), lambda i: (0, 0)),
    ]
    args = [x, w, bias]
    if residual is not None:
        in_specs.append(pl.BlockSpec((tm, Cout), lambda i: (i, 0)))
        args.append(residual)
        kernel = functools.partial(_mm_bias_res_kernel, relu=relu)
    else:
        kernel = functools.partial(_mm_bias_kernel, relu=relu)

    out = pl.pallas_call(
        kernel,
        out_shape=jax.ShapeDtypeStruct((M_pad, Cout), jnp.bfloat16),
        grid=grid,
        in_specs=in_specs,
        out_specs=pl.BlockSpec((tm, Cout), lambda i: (i, 0)),
        compiler_params=pltpu.CompilerParams(
            dimension_semantics=("parallel",),
            vmem_limit_bytes=48 * 1024 * 1024),   # v7x-safe (64 MiB physical)
    )(*args)
    return out if M_pad == M else out[:M]


# ----------------------------------------------------------------------------
# Conv2d 3x3 (+ folded BN, optional residual / fused 1x1 downsample, ReLU)
# via trimmed-K bf16 im2col + one fused Pallas matmul call.
# ----------------------------------------------------------------------------
def conv_bn(x_nhwc, w_km, bias, cin, stride=1, relu=True,
            residual=None, downsample=None):
    """x_nhwc: (N,H,W,128) bf16 activation; real channels = cin, lanes >= cin
               are guaranteed zero.
    w_km: (K_pad, 128) bf16 matmul weight, rows = [9 taps x cin | ds cin_d | 0].
    bias: (1, 128) f32 (combined conv+downsample BN bias).
    residual: optional (N,Ho,Wo,128) bf16 identity to add.
    downsample: optional (xd, cin_d, stride_d) -- input of the fused 1x1
                downsample conv whose (scale-folded) weight rows are already
                stacked into w_km.
    """
    N, H, W, _ = x_nhwc.shape
    Ho = (H + 2 - 3) // stride + 1
    Wo = (W + 2 - 3) // stride + 1
    M = N * Ho * Wo

    xb = jnp.pad(x_nhwc, ((0, 0), (1, 1), (1, 1), (0, 0)))      # spatial pad=1
    he = stride * (Ho - 1) + 1
    we = stride * (Wo - 1) + 1

    # im2col, trimmed to real channels (K = 9*cin, not 9*128).
    chunks = []
    for dh in range(3):
        for dw in range(3):
            chunks.append(xb[:, dh:dh + he:stride, dw:dw + we:stride, :cin])
    k_real = 9 * cin

    if downsample is not None:
        xd, cin_d, s_d = downsample
        chunks.append(xd[:, ::s_d, ::s_d, :cin_d])
        k_real += cin_d

    k_pad = _round_up(k_real, _LANE)
    pad = k_pad - k_real
    if pad and cin + pad <= _LANE:
        # Source the K zero-padding from the activation's guaranteed-zero lanes
        # so no separate jnp.pad pass over the patch matrix is emitted.
        chunks.append(xb[:, 0:he:stride, 0:we:stride, cin:cin + pad])
        pad = 0
    patches = jnp.concatenate(chunks, axis=-1).reshape(M, -1)
    if pad:
        patches = jnp.pad(patches, ((0, 0), (0, pad)))          # fallback path
    assert patches.shape[1] == w_km.shape[0]

    res = residual.reshape(M, _LANE) if residual is not None else None
    out = fused_matmul(patches, w_km, bias, residual=res, relu=relu)
    return out.reshape(N, Ho, Wo, _LANE)


# ----------------------------------------------------------------------------
# Parameter construction (deterministic, mirrors the PyTorch __init__).
# BN scale is folded into the weight columns; weights are stored in matmul
# layout (K_real rows padded to 128-multiple, 128 lane-padded Cout), bf16.
# ----------------------------------------------------------------------------
def _kaiming_fanout(key, shape):
    # nn.init.kaiming_normal_(mode='fan_out', nonlinearity='relu')
    cout, _, kh, kw = shape
    std = math.sqrt(2.0 / (cout * kh * kw))
    return std * jax.random.normal(key, shape, dtype=jnp.float32)


def _fold_conv_bn(w_oihw):
    """Fold inference-mode BN of a fresh nn.BatchNorm2d (gamma=1, beta=0,
    mean=0, var=1) into the conv weight.  Returns matmul rows
    (kh*kw*Cin, 128) f32 (Cout lane-padded; padded columns zero) and the
    (1, 128) f32 bias (zero here, kept for generality)."""
    cout, cin, kh, kw = w_oihw.shape
    scale = 1.0 / math.sqrt(1.0 + _BN_EPS)
    w = jnp.transpose(w_oihw, (2, 3, 1, 0)) * scale              # (kh,kw,Cin,Cout)
    w = w.reshape(kh * kw * cin, cout)
    w = jnp.pad(w, ((0, 0), (0, _LANE - cout)))
    bias = jnp.zeros((1, _LANE), jnp.float32)                    # beta - mean*scale
    return w, bias


def _finalize_weight(row_blocks):
    """Stack matmul-row blocks along K, zero-pad K to a 128-multiple, cast bf16."""
    w = jnp.concatenate(row_blocks, axis=0)
    k_pad = _round_up(w.shape[0], _LANE)
    w = jnp.pad(w, ((0, k_pad - w.shape[0]), (0, 0)))
    return w.astype(jnp.bfloat16)


def make_resnet_params(key, layers=(2, 2, 2), num_classes=10):
    keys = iter(jax.random.split(key, 64))
    params = {}

    w1, b1 = _fold_conv_bn(_kaiming_fanout(next(keys), (16, 3, 3, 3)))
    params["conv1"] = {"w": _finalize_weight([w1]), "b": b1, "cin": 3}

    inplanes = 16
    stages = []
    for planes, nblocks, stage_stride in zip((16, 32, 64), layers, (1, 2, 2)):
        blocks = []
        for bidx in range(nblocks):
            s = stage_stride if bidx == 0 else 1
            has_ds = (s != 1 or inplanes != planes)      # BasicBlock.expansion == 1
            wc1, bc1 = _fold_conv_bn(_kaiming_fanout(next(keys), (planes, inplanes, 3, 3)))
            wc2, bc2 = _fold_conv_bn(_kaiming_fanout(next(keys), (planes, planes, 3, 3)))
            blk = {"stride": s, "has_ds": has_ds,
                   "c1": {"w": _finalize_weight([wc1]), "b": bc1, "cin": inplanes}}
            if has_ds:
                # Fuse the 1x1 downsample conv+BN into the conv2 matmul along K.
                wd, bd = _fold_conv_bn(_kaiming_fanout(next(keys), (planes, inplanes, 1, 1)))
                blk["c2"] = {"w": _finalize_weight([wc2, wd]), "b": bc2 + bd,
                             "cin": planes, "cin_d": inplanes}
            else:
                blk["c2"] = {"w": _finalize_weight([wc2]), "b": bc2, "cin": planes}
            inplanes = planes
            blocks.append(blk)
        stages.append(blocks)
    params["stages"] = stages

    # nn.Linear default init: U(-1/sqrt(fan_in), 1/sqrt(fan_in))
    k1, k2 = jax.random.split(next(keys))
    bound = 1.0 / math.sqrt(64)
    params["fc_w"] = jax.random.uniform(k1, (num_classes, 64),
                                        minval=-bound, maxval=bound, dtype=jnp.float32)
    params["fc_b"] = jax.random.uniform(k2, (num_classes,),
                                        minval=-bound, maxval=bound, dtype=jnp.float32)
    return params


# ----------------------------------------------------------------------------
# Forward pass (mirrors Resnet.forward with BasicBlock).
# ----------------------------------------------------------------------------
def basic_block(x, blk):
    s = blk["stride"]
    c1, c2 = blk["c1"], blk["c2"]
    out = conv_bn(x, c1["w"], c1["b"], cin=c1["cin"], stride=s, relu=True)
    if blk["has_ds"]:
        # conv2+bn2 + (1x1 downsample conv+bn on x, K-concatenated) + relu:
        # a single Pallas matmul call.
        out = conv_bn(out, c2["w"], c2["b"], cin=c2["cin"], stride=1, relu=True,
                      downsample=(x, c2["cin_d"], s))
    else:
        # conv2+bn2 + identity residual + relu, one Pallas call.
        out = conv_bn(out, c2["w"], c2["b"], cin=c2["cin"], stride=1, relu=True,
                      residual=x)
    return out


def resnet_forward(params, x_nchw):
    x = jnp.transpose(x_nchw, (0, 2, 3, 1)).astype(jnp.bfloat16)   # NCHW -> NHWC bf16
    # Lane-pad channels (3 -> 128); padded lanes stay exactly zero through the net.
    x = jnp.pad(x, ((0, 0), (0, 0), (0, 0), (0, _LANE - x.shape[-1])))
    c1 = params["conv1"]
    x = conv_bn(x, c1["w"], c1["b"], cin=c1["cin"], stride=1, relu=True)
    for blocks in params["stages"]:
        for blk in blocks:
            x = basic_block(x, blk)
    # AvgPool2d(8, stride=1) on an 8x8 map == global spatial mean (tiny; glue).
    pooled = jnp.mean(x[..., :64].astype(jnp.float32), axis=(1, 2))  # (N, 64)
    # Final Linear: degenerate (M=batch, Cout=10) matmul -> plain jnp.dot.
    logits = jnp.dot(pooled, params["fc_w"].T) + params["fc_b"]
    return logits                                                    # (N, num_classes)


if __name__ == "__main__":
    key = jax.random.PRNGKey(0)
    pkey, xkey = jax.random.split(key)
    params = make_resnet_params(pkey, layers=(2, 2, 2), num_classes=10)
    x = jax.random.normal(xkey, (2, 3, 32, 32), dtype=jnp.float32)   # CIFAR-sized NCHW

    fwd = jax.jit(functools.partial(resnet_forward, params))
    out = jax.block_until_ready(fwd(x))
    assert out.shape == (2, 10) and out.dtype == jnp.float32
    print("KERNEL_OK")
</pallas_src>

<mosaic_0001>
module attributes {stable_mosaic.version = 11 : i64} {
  func.func @_mm_bias_kernel(%arg0: i32, %arg1: memref<512x128xbf16, #tpu.memory_space<vmem>>, %arg2: memref<128x128xbf16, #tpu.memory_space<vmem>>, %arg3: memref<1x128xf32, #tpu.memory_space<vmem>>, %arg4: memref<512x128xbf16, #tpu.memory_space<vmem>>) attributes {dimension_semantics = [#tpu.dimension_semantics<parallel>], iteration_bounds = array<i64: 4>, scalar_prefetch = 0 : i64, scratch_operands = 0 : i64, tpu.core_type = #tpu.core_type<tc>, window_params = [{transform_indices = @transform_0, window_bounds = array<i64: 512, 128>}, {pipeline_mode = #tpu.pipeline_mode<synchronous>, transform_indices = @transform_1, window_bounds = array<i64: 128, 128>}, {pipeline_mode = #tpu.pipeline_mode<synchronous>, transform_indices = @transform_2, window_bounds = array<i64: 1, 128>}, {transform_indices = @transform_3, window_bounds = array<i64: 512, 128>}]} {
    %c0 = arith.constant 0 : index
    %c0_0 = arith.constant 0 : index
    %0 = vector.load %arg1[%c0, %c0_0] : memref<512x128xbf16, #tpu.memory_space<vmem>>, vector<512x128xbf16>
    %c0_1 = arith.constant 0 : index
    %c0_2 = arith.constant 0 : index
    %1 = vector.load %arg2[%c0_1, %c0_2] : memref<128x128xbf16, #tpu.memory_space<vmem>>, vector<128x128xbf16>
    %cst = arith.constant dense<0.000000e+00> : vector<512x128xf32>
    %2 = tpu.matmul %0, %1, %cst {dimension_numbers = #tpu.dot_dimension_numbers<[1], [0], [0], [1], [0, 0, 1, 1], [], []>} : vector<512x128xbf16>, vector<128x128xbf16>, vector<512x128xf32> -> vector<512x128xf32>
    %c0_3 = arith.constant 0 : index
    %c0_4 = arith.constant 0 : index
    %3 = vector.load %arg3[%c0_3, %c0_4] : memref<1x128xf32, #tpu.memory_space<vmem>>, vector<1x128xf32>
    %4 = vector.broadcast %3 : vector<1x128xf32> to vector<512x128xf32>
    %5 = arith.addf %2, %4 : vector<512x128xf32>
    %cst_5 = arith.constant 0.000000e+00 : f32
    %6 = vector.broadcast %cst_5 : f32 to vector<512x128xf32>
    %7 = arith.maximumf %5, %6 : vector<512x128xf32>
    %8 = arith.truncf %7 : vector<512x128xf32> to vector<512x128xbf16>
    %c0_6 = arith.constant 0 : index
    %c0_7 = arith.constant 0 : index
    %9 = vector.load %arg4[%c0_6, %c0_7] : memref<512x128xbf16, #tpu.memory_space<vmem>>, vector<512x128xbf16>
    tpu.vector_store %arg4[%c0_6, %c0_7], %8 {strides = array<i32>} : memref<512x128xbf16, #tpu.memory_space<vmem>>, vector<512x128xbf16>,
    return
  }
  func.func @transform_0(%arg0: i32) -> (i32, i32) {
    %c0_i32 = arith.constant 0 : i32
    %c0_i32_0 = arith.constant 0 : i32
    return %arg0, %c0_i32 : i32, i32
  }
  func.func @transform_1(%arg0: i32) -> (i32, i32) {
    %c0_i32 = arith.constant 0 : i32
    %c0_i32_0 = arith.constant 0 : i32
    %c0_i32_1 = arith.constant 0 : i32
    return %c0_i32, %c0_i32_0 : i32, i32
  }
  func.func @transform_2(%arg0: i32) -> (i32, i32) {
    %c0_i32 = arith.constant 0 : i32
    %c0_i32_0 = arith.constant 0 : i32
    %c0_i32_1 = arith.constant 0 : i32
    return %c0_i32, %c0_i32_0 : i32, i32
  }
  func.func @transform_3(%arg0: i32) -> (i32, i32) {
    %c0_i32 = arith.constant 0 : i32
    %c0_i32_0 = arith.constant 0 : i32
    return %arg0, %c0_i32 : i32, i32
  }
}

module attributes {stable_mosaic.version = 11 : i64} {
  func.func @_mm_bias_kernel(%arg0: i32, %arg1: memref<512x256xbf16, #tpu.memory_space<vmem>>, %arg2: memref<256x128xbf16, #tpu.memory_space<vmem>>, %arg3: memref<1x128xf32, #tpu.memory_space<vmem>>, %arg4: memref<512x128xbf16, #tpu.memory_space<vmem>>) attributes {dimension_semantics = [#tpu.dimension_semantics<parallel>], iteration_bounds = array<i64: 4>, scalar_prefetch = 0 : i64, scratch_operands = 0 : i64, tpu.core_type = #tpu.core_type<tc>, window_params = [{transform_indices = @transform_0, window_bounds = array<i64: 512, 256>}, {pipeline_mode = #tpu.pipeline_mode<synchronous>, transform_indices = @transform_1, window_bounds = array<i64: 256, 128>}, {pipeline_mode = #tpu.pipeline_mode<synchronous>, transform_indices = @transform_2, window_bounds = array<i64: 1, 128>}, {transform_indices = @transform_3, window_bounds = array<i64: 512, 128>}]} {
    %c0 = arith.constant 0 : index
    %c0_0 = arith.constant 0 : index
    %0 = vector.load %arg1[%c0, %c0_0] : memref<512x256xbf16, #tpu.memory_space<vmem>>, vector<512x256xbf16>
    %c0_1 = arith.constant 0 : index
    %c0_2 = arith.constant 0 : index
    %1 = vector.load %arg2[%c0_1, %c0_2] : memref<256x128xbf16, #tpu.memory_space<vmem>>, vector<256x128xbf16>
    %cst = arith.constant dense<0.000000e+00> : vector<512x128xf32>
    %2 = tpu.matmul %0, %1, %cst {dimension_numbers = #tpu.dot_dimension_numbers<[1], [0], [0], [1], [0, 0, 1, 1], [], []>} : vector<512x256xbf16>, vector<256x128xbf16>, vector<512x128xf32> -> vector<512x128xf32>
    %c0_3 = arith.constant 0 : index
    %c0_4 = arith.constant 0 : index
    %3 = vector.load %arg3[%c0_3, %c0_4] : memref<1x128xf32, #tpu.memory_space<vmem>>, vector<1x128xf32>
    %4 = vector.broadcast %3 : vector<1x128xf32> to vector<512x128xf32>
    %5 = arith.addf %2, %4 : vector<512x128xf32>
    %cst_5 = arith.constant 0.000000e+00 : f32
    %6 = vector.broadcast %cst_5 : f32 to vector<512x128xf32>
    %7 = arith.maximumf %5, %6 : vector<512x128xf32>
    %8 = arith.truncf %7 : vector<512x128xf32> to vector<512x128xbf16>
    %c0_6 = arith.constant 0 : index
    %c0_7 = arith.constant 0 : index
    %9 = vector.load %arg4[%c0_6, %c0_7] : memref<512x128xbf16, #tpu.memory_space<vmem>>, vector<512x128xbf16>
    tpu.vector_store %arg4[%c0_6, %c0_7], %8 {strides = array<i32>} : memref<512x128xbf16, #tpu.memory_space<vmem>>, vector<512x128xbf16>,
    return
  }
  func.func @transform_0(%arg0: i32) -> (i32, i32) {
    %c0_i32 = arith.constant 0 : i32
    %c0_i32_0 = arith.constant 0 : i32
    return %arg0, %c0_i32 : i32, i32
  }
  func.func @transform_1(%arg0: i32) -> (i32, i32) {
    %c0_i32 = arith.constant 0 : i32
    %c0_i32_0 = arith.constant 0 : i32
    %c0_i32_1 = arith.constant 0 : i32
    return %c0_i32, %c0_i32_0 : i32, i32
  }
  func.func @transform_2(%arg0: i32) -> (i32, i32) {
    %c0_i32 = arith.constant 0 : i32
    %c0_i32_0 = arith.constant 0 : i32
    %c0_i32_1 = arith.constant 0 : i32
    return %c0_i32, %c0_i32_0 : i32, i32
  }
  func.func @transform_3(%arg0: i32) -> (i32, i32) {
    %c0_i32 = arith.constant 0 : i32
    %c0_i32_0 = arith.constant 0 : i32
    return %arg0, %c0_i32 : i32, i32
  }
}

module attributes {stable_mosaic.version = 11 : i64} {
  func.func @_mm_bias_res_kernel(%arg0: i32, %arg1: memref<512x256xbf16, #tpu.memory_space<vmem>>, %arg2: memref<256x128xbf16, #tpu.memory_space<vmem>>, %arg3: memref<1x128xf32, #tpu.memory_space<vmem>>, %arg4: memref<512x128xbf16, #tpu.memory_space<vmem>>, %arg5: memref<512x128xbf16, #tpu.memory_space<vmem>>) attributes {dimension_semantics = [#tpu.dimension_semantics<parallel>], iteration_bounds = array<i64: 4>, scalar_prefetch = 0 : i64, scratch_operands = 0 : i64, tpu.core_type = #tpu.core_type<tc>, window_params = [{transform_indices = @transform_0, window_bounds = array<i64: 512, 256>}, {pipeline_mode = #tpu.pipeline_mode<synchronous>, transform_indices = @transform_1, window_bounds = array<i64: 256, 128>}, {pipeline_mode = #tpu.pipeline_mode<synchronous>, transform_indices = @transform_2, window_bounds = array<i64: 1, 128>}, {transform_indices = @transform_3, window_bounds = array<i64: 512, 128>}, {transform_indices = @transform_4, window_bounds = array<i64: 512, 128>}]} {
    %c0 = arith.constant 0 : index
    %c0_0 = arith.constant 0 : index
    %0 = vector.load %arg1[%c0, %c0_0] : memref<512x256xbf16, #tpu.memory_space<vmem>>, vector<512x256xbf16>
    %c0_1 = arith.constant 0 : index
    %c0_2 = arith.constant 0 : index
    %1 = vector.load %arg2[%c0_1, %c0_2] : memref<256x128xbf16, #tpu.memory_space<vmem>>, vector<256x128xbf16>
    %cst = arith.constant dense<0.000000e+00> : vector<512x128xf32>
    %2 = tpu.matmul %0, %1, %cst {dimension_numbers = #tpu.dot_dimension_numbers<[1], [0], [0], [1], [0, 0, 1, 1], [], []>} : vector<512x256xbf16>, vector<256x128xbf16>, vector<512x128xf32> -> vector<512x128xf32>
    %c0_3 = arith.constant 0 : index
    %c0_4 = arith.constant 0 : index
    %3 = vector.load %arg3[%c0_3, %c0_4] : memref<1x128xf32, #tpu.memory_space<vmem>>, vector<1x128xf32>
    %4 = vector.broadcast %3 : vector<1x128xf32> to vector<512x128xf32>
    %5 = arith.addf %2, %4 : vector<512x128xf32>
    %c0_5 = arith.constant 0 : index
    %c0_6 = arith.constant 0 : index
    %6 = vector.load %arg4[%c0_5, %c0_6] : memref<512x128xbf16, #tpu.memory_space<vmem>>, vector<512x128xbf16>
    %7 = arith.extf %6 : vector<512x128xbf16> to vector<512x128xf32>
    %8 = arith.addf %5, %7 : vector<512x128xf32>
    %cst_7 = arith.constant 0.000000e+00 : f32
    %9 = vector.broadcast %cst_7 : f32 to vector<512x128xf32>
    %10 = arith.maximumf %8, %9 : vector<512x128xf32>
    %11 = arith.truncf %10 : vector<512x128xf32> to vector<512x128xbf16>
    %c0_8 = arith.constant 0 : index
    %c0_9 = arith.constant 0 : index
    %12 = vector.load %arg5[%c0_8, %c0_9] : memref<512x128xbf16, #tpu.memory_space<vmem>>, vector<512x128xbf16>
    tpu.vector_store %arg5[%c0_8, %c0_9], %11 {strides = array<i32>} : memref<512x128xbf16, #tpu.memory_space<vmem>>, vector<512x128xbf16>,
    return
  }
  func.func @transform_0(%arg0: i32) -> (i32, i32) {
    %c0_i32 = arith.constant 0 : i32
    %c0_i32_0 = arith.constant 0 : i32
    return %arg0, %c0_i32 : i32, i32
  }
  func.func @transform_1(%arg0: i32) -> (i32, i32) {
    %c0_i32 = arith.constant 0 : i32
    %c0_i32_0 = arith.constant 0 : i32
    %c0_i32_1 = arith.constant 0 : i32
    return %c0_i32, %c0_i32_0 : i32, i32
  }
  func.func @transform_2(%arg0: i32) -> (i32, i32) {
    %c0_i32 = arith.constant 0 : i32
    %c0_i32_0 = arith.constant 0 : i32
    %c0_i32_1 = arith.constant 0 : i32
    return %c0_i32, %c0_i32_0 : i32, i32
  }
  func.func @transform_3(%arg0: i32) -> (i32, i32) {
    %c0_i32 = arith.constant 0 : i32
    %c0_i32_0 = arith.constant 0 : i32
    return %arg0, %c0_i32 : i32, i32
  }
  func.func @transform_4(%arg0: i32) -> (i32, i32) {
    %c0_i32 = arith.constant 0 : i32
    %c0_i32_0 = arith.constant 0 : i32
    return %arg0, %c0_i32 : i32, i32
  }
}

module attributes {stable_mosaic.version = 11 : i64} {
  func.func @_mm_bias_kernel(%arg0: i32, %arg1: memref<256x256xbf16, #tpu.memory_space<vmem>>, %arg2: memref<256x128xbf16, #tpu.memory_space<vmem>>, %arg3: memref<1x128xf32, #tpu.memory_space<vmem>>, %arg4: memref<256x128xbf16, #tpu.memory_space<vmem>>) attributes {dimension_semantics = [#tpu.dimension_semantics<parallel>], iteration_bounds = array<i64: 2>, scalar_prefetch = 0 : i64, scratch_operands = 0 : i64, tpu.core_type = #tpu.core_type<tc>, window_params = [{transform_indices = @transform_0, window_bounds = array<i64: 256, 256>}, {pipeline_mode = #tpu.pipeline_mode<synchronous>, transform_indices = @transform_1, window_bounds = array<i64: 256, 128>}, {pipeline_mode = #tpu.pipeline_mode<synchronous>, transform_indices = @transform_2, window_bounds = array<i64: 1, 128>}, {transform_indices = @transform_3, window_bounds = array<i64: 256, 128>}]} {
    %c0 = arith.constant 0 : index
    %c0_0 = arith.constant 0 : index
    %0 = vector.load %arg1[%c0, %c0_0] : memref<256x256xbf16, #tpu.memory_space<vmem>>, vector<256x256xbf16>
    %c0_1 = arith.constant 0 : index
    %c0_2 = arith.constant 0 : index
    %1 = vector.load %arg2[%c0_1, %c0_2] : memref<256x128xbf16, #tpu.memory_space<vmem>>, vector<256x128xbf16>
    %cst = arith.constant dense<0.000000e+00> : vector<256x128xf32>
    %2 = tpu.matmul %0, %1, %cst {dimension_numbers = #tpu.dot_dimension_numbers<[1], [0], [0], [1], [0, 0, 1, 1], [], []>} : vector<256x256xbf16>, vector<256x128xbf16>, vector<256x128xf32> -> vector<256x128xf32>
    %c0_3 = arith.constant 0 : index
    %c0_4 = arith.constant 0 : index
    %3 = vector.load %arg3[%c0_3, %c0_4] : memref<1x128xf32, #tpu.memory_space<vmem>>, vector<1x128xf32>
    %4 = vector.broadcast %3 : vector<1x128xf32> to vector<256x128xf32>
    %5 = arith.addf %2, %4 : vector<256x128xf32>
    %cst_5 = arith.constant 0.000000e+00 : f32
    %6 = vector.broadcast %cst_5 : f32 to vector<256x128xf32>
    %7 = arith.maximumf %5, %6 : vector<256x128xf32>
    %8 = arith.truncf %7 : vector<256x128xf32> to vector<256x128xbf16>
    %c0_6 = arith.constant 0 : index
    %c0_7 = arith.constant 0 : index
    %9 = vector.load %arg4[%c0_6, %c0_7] : memref<256x128xbf16, #tpu.memory_space<vmem>>, vector<256x128xbf16>
    tpu.vector_store %arg4[%c0_6, %c0_7], %8 {strides = array<i32>} : memref<256x128xbf16, #tpu.memory_space<vmem>>, vector<256x128xbf16>,
    return
  }
  func.func @transform_0(%arg0: i32) -> (i32, i32) {
    %c0_i32 = arith.constant 0 : i32
    %c0_i32_0 = arith.constant 0 : i32
    return %arg0, %c0_i32 : i32, i32
  }
  func.func @transform_1(%arg0: i32) -> (i32, i32) {
    %c0_i32 = arith.constant 0 : i32
    %c0_i32_0 = arith.constant 0 : i32
    %c0_i32_1 = arith.constant 0 : i32
    return %c0_i32, %c0_i32_0 : i32, i32
  }
  func.func @transform_2(%arg0: i32) -> (i32, i32) {
    %c0_i32 = arith.constant 0 : i32
    %c0_i32_0 = arith.constant 0 : i32
    %c0_i32_1 = arith.constant 0 : i32
    return %c0_i32, %c0_i32_0 : i32, i32
  }
  func.func @transform_3(%arg0: i32) -> (i32, i32) {
    %c0_i32 = arith.constant 0 : i32
    %c0_i32_0 = arith.constant 0 : i32
    return %arg0, %c0_i32 : i32, i32
  }
}

module attributes {stable_mosaic.version = 11 : i64} {
  func.func @_mm_bias_kernel(%arg0: i32, %arg1: memref<256x384xbf16, #tpu.memory_space<vmem>>, %arg2: memref<384x128xbf16, #tpu.memory_space<vmem>>, %arg3: memref<1x128xf32, #tpu.memory_space<vmem>>, %arg4: memref<256x128xbf16, #tpu.memory_space<vmem>>) attributes {dimension_semantics = [#tpu.dimension_semantics<parallel>], iteration_bounds = array<i64: 2>, scalar_prefetch = 0 : i64, scratch_operands = 0 : i64, tpu.core_type = #tpu.core_type<tc>, window_params = [{transform_indices = @transform_0, window_bounds = array<i64: 256, 384>}, {pipeline_mode = #tpu.pipeline_mode<synchronous>, transform_indices = @transform_1, window_bounds = array<i64: 384, 128>}, {pipeline_mode = #tpu.pipeline_mode<synchronous>, transform_indices = @transform_2, window_bounds = array<i64: 1, 128>}, {transform_indices = @transform_3, window_bounds = array<i64: 256, 128>}]} {
    %c0 = arith.constant 0 : index
    %c0_0 = arith.constant 0 : index
    %0 = vector.load %arg1[%c0, %c0_0] : memref<256x384xbf16, #tpu.memory_space<vmem>>, vector<256x384xbf16>
    %c0_1 = arith.constant 0 : index
    %c0_2 = arith.constant 0 : index
    %1 = vector.load %arg2[%c0_1, %c0_2] : memref<384x128xbf16, #tpu.memory_space<vmem>>, vector<384x128xbf16>
    %cst = arith.constant dense<0.000000e+00> : vector<256x128xf32>
    %2 = tpu.matmul %0, %1, %cst {dimension_numbers = #tpu.dot_dimension_numbers<[1], [0], [0], [1], [0, 0, 1, 1], [], []>} : vector<256x384xbf16>, vector<384x128xbf16>, vector<256x128xf32> -> vector<256x128xf32>
    %c0_3 = arith.constant 0 : index
    %c0_4 = arith.constant 0 : index
    %3 = vector.load %arg3[%c0_3, %c0_4] : memref<1x128xf32, #tpu.memory_space<vmem>>, vector<1x128xf32>
    %4 = vector.broadcast %3 : vector<1x128xf32> to vector<256x128xf32>
    %5 = arith.addf %2, %4 : vector<256x128xf32>
    %cst_5 = arith.constant 0.000000e+00 : f32
    %6 = vector.broadcast %cst_5 : f32 to vector<256x128xf32>
    %7 = arith.maximumf %5, %6 : vector<256x128xf32>
    %8 = arith.truncf %7 : vector<256x128xf32> to vector<256x128xbf16>
    %c0_6 = arith.constant 0 : index
    %c0_7 = arith.constant 0 : index
    %9 = vector.load %arg4[%c0_6, %c0_7] : memref<256x128xbf16, #tpu.memory_space<vmem>>, vector<256x128xbf16>
    tpu.vector_store %arg4[%c0_6, %c0_7], %8 {strides = array<i32>} : memref<256x128xbf16, #tpu.memory_space<vmem>>, vector<256x128xbf16>,
    return
  }
  func.func @transform_0(%arg0: i32) -> (i32, i32) {
    %c0_i32 = arith.constant 0 : i32
    %c0_i32_0 = arith.constant 0 : i32
    return %arg0, %c0_i32 : i32, i32
  }
  func.func @transform_1(%arg0: i32) -> (i32, i32) {
    %c0_i32 = arith.constant 0 : i32
    %c0_i32_0 = arith.constant 0 : i32
    %c0_i32_1 = arith.constant 0 : i32
    return %c0_i32, %c0_i32_0 : i32, i32
  }
  func.func @transform_2(%arg0: i32) -> (i32, i32) {
    %c0_i32 = arith.constant 0 : i32
    %c0_i32_0 = arith.constant 0 : i32
    %c0_i32_1 = arith.constant 0 : i32
    return %c0_i32, %c0_i32_0 : i32, i32
  }
  func.func @transform_3(%arg0: i32) -> (i32, i32) {
    %c0_i32 = arith.constant 0 : i32
    %c0_i32_0 = arith.constant 0 : i32
    return %arg0, %c0_i32 : i32, i32
  }
}

module attributes {stable_mosaic.version = 11 : i64} {
  func.func @_mm_bias_res_kernel(%arg0: i32, %arg1: memref<256x384xbf16, #tpu.memory_space<vmem>>, %arg2: memref<384x128xbf16, #tpu.memory_space<vmem>>, %arg3: memref<1x128xf32, #tpu.memory_space<vmem>>, %arg4: memref<256x128xbf16, #tpu.memory_space<vmem>>, %arg5: memref<256x128xbf16, #tpu.memory_space<vmem>>) attributes {dimension_semantics = [#tpu.dimension_semantics<parallel>], iteration_bounds = array<i64: 2>, scalar_prefetch = 0 : i64, scratch_operands = 0 : i64, tpu.core_type = #tpu.core_type<tc>, window_params = [{transform_indices = @transform_0, window_bounds = array<i64: 256, 384>}, {pipeline_mode = #tpu.pipeline_mode<synchronous>, transform_indices = @transform_1, window_bounds = array<i64: 384, 128>}, {pipeline_mode = #tpu.pipeline_mode<synchronous>, transform_indices = @transform_2, window_bounds = array<i64: 1, 128>}, {transform_indices = @transform_3, window_bounds = array<i64: 256, 128>}, {transform_indices = @transform_4, window_bounds = array<i64: 256, 128>}]} {
    %c0 = arith.constant 0 : index
    %c0_0 = arith.constant 0 : index
    %0 = vector.load %arg1[%c0, %c0_0] : memref<256x384xbf16, #tpu.memory_space<vmem>>, vector<256x384xbf16>
    %c0_1 = arith.constant 0 : index
    %c0_2 = arith.constant 0 : index
    %1 = vector.load %arg2[%c0_1, %c0_2] : memref<384x128xbf16, #tpu.memory_space<vmem>>, vector<384x128xbf16>
    %cst = arith.constant dense<0.000000e+00> : vector<256x128xf32>
    %2 = tpu.matmul %0, %1, %cst {dimension_numbers = #tpu.dot_dimension_numbers<[1], [0], [0], [1], [0, 0, 1, 1], [], []>} : vector<256x384xbf16>, vector<384x128xbf16>, vector<256x128xf32> -> vector<256x128xf32>
    %c0_3 = arith.constant 0 : index
    %c0_4 = arith.constant 0 : index
    %3 = vector.load %arg3[%c0_3, %c0_4] : memref<1x128xf32, #tpu.memory_space<vmem>>, vector<1x128xf32>
    %4 = vector.broadcast %3 : vector<1x128xf32> to vector<256x128xf32>
    %5 = arith.addf %2, %4 : vector<256x128xf32>
    %c0_5 = arith.constant 0 : index
    %c0_6 = arith.constant 0 : index
    %6 = vector.load %arg4[%c0_5, %c0_6] : memref<256x128xbf16, #tpu.memory_space<vmem>>, vector<256x128xbf16>
    %7 = arith.extf %6 : vector<256x128xbf16> to vector<256x128xf32>
    %8 = arith.addf %5, %7 : vector<256x128xf32>
    %cst_7 = arith.constant 0.000000e+00 : f32
    %9 = vector.broadcast %cst_7 : f32 to vector<256x128xf32>
    %10 = arith.maximumf %8, %9 : vector<256x128xf32>
    %11 = arith.truncf %10 : vector<256x128xf32> to vector<256x128xbf16>
    %c0_8 = arith.constant 0 : index
    %c0_9 = arith.constant 0 : index
    %12 = vector.load %arg5[%c0_8, %c0_9] : memref<256x128xbf16, #tpu.memory_space<vmem>>, vector<256x128xbf16>
    tpu.vector_store %arg5[%c0_8, %c0_9], %11 {strides = array<i32>} : memref<256x128xbf16, #tpu.memory_space<vmem>>, vector<256x128xbf16>,
    return
  }
  func.func @transform_0(%arg0: i32) -> (i32, i32) {
    %c0_i32 = arith.constant 0 : i32
    %c0_i32_0 = arith.constant 0 : i32
    return %arg0, %c0_i32 : i32, i32
  }
  func.func @transform_1(%arg0: i32) -> (i32, i32) {
    %c0_i32 = arith.constant 0 : i32
    %c0_i32_0 = arith.constant 0 : i32
    %c0_i32_1 = arith.constant 0 : i32
    return %c0_i32, %c0_i32_0 : i32, i32
  }
  func.func @transform_2(%arg0: i32) -> (i32, i32) {
    %c0_i32 = arith.constant 0 : i32
    %c0_i32_0 = arith.constant 0 : i32
    %c0_i32_1 = arith.constant 0 : i32
    return %c0_i32, %c0_i32_0 : i32, i32
  }
  func.func @transform_3(%arg0: i32) -> (i32, i32) {
    %c0_i32 = arith.constant 0 : i32
    %c0_i32_0 = arith.constant 0 : i32
    return %arg0, %c0_i32 : i32, i32
  }
  func.func @transform_4(%arg0: i32) -> (i32, i32) {
    %c0_i32 = arith.constant 0 : i32
    %c0_i32_0 = arith.constant 0 : i32
    return %arg0, %c0_i32 : i32, i32
  }
}

module attributes {stable_mosaic.version = 11 : i64} {
  func.func @_mm_bias_kernel(%arg0: i32, %arg1: memref<64x384xbf16, #tpu.memory_space<vmem>>, %arg2: memref<384x128xbf16, #tpu.memory_space<vmem>>, %arg3: memref<1x128xf32, #tpu.memory_space<vmem>>, %arg4: memref<64x128xbf16, #tpu.memory_space<vmem>>) attributes {dimension_semantics = [#tpu.dimension_semantics<parallel>], iteration_bounds = array<i64: 2>, scalar_prefetch = 0 : i64, scratch_operands = 0 : i64, tpu.core_type = #tpu.core_type<tc>, window_params = [{transform_indices = @transform_0, window_bounds = array<i64: 64, 384>}, {pipeline_mode = #tpu.pipeline_mode<synchronous>, transform_indices = @transform_1, window_bounds = array<i64: 384, 128>}, {pipeline_mode = #tpu.pipeline_mode<synchronous>, transform_indices = @transform_2, window_bounds = array<i64: 1, 128>}, {transform_indices = @transform_3, window_bounds = array<i64: 64, 128>}]} {
    %c0 = arith.constant 0 : index
    %c0_0 = arith.constant 0 : index
    %0 = vector.load %arg1[%c0, %c0_0] : memref<64x384xbf16, #tpu.memory_space<vmem>>, vector<64x384xbf16>
    %c0_1 = arith.constant 0 : index
    %c0_2 = arith.constant 0 : index
    %1 = vector.load %arg2[%c0_1, %c0_2] : memref<384x128xbf16, #tpu.memory_space<vmem>>, vector<384x128xbf16>
    %cst = arith.constant dense<0.000000e+00> : vector<64x128xf32>
    %2 = tpu.matmul %0, %1, %cst {dimension_numbers = #tpu.dot_dimension_numbers<[1], [0], [0], [1], [0, 0, 1, 1], [], []>} : vector<64x384xbf16>, vector<384x128xbf16>, vector<64x128xf32> -> vector<64x128xf32>
    %c0_3 = arith.constant 0 : index
    %c0_4 = arith.constant 0 : index
    %3 = vector.load %arg3[%c0_3, %c0_4] : memref<1x128xf32, #tpu.memory_space<vmem>>, vector<1x128xf32>
    %4 = vector.broadcast %3 : vector<1x128xf32> to vector<64x128xf32>
    %5 = arith.addf %2, %4 : vector<64x128xf32>
    %cst_5 = arith.constant 0.000000e+00 : f32
    %6 = vector.broadcast %cst_5 : f32 to vector<64x128xf32>
    %7 = arith.maximumf %5, %6 : vector<64x128xf32>
    %8 = arith.truncf %7 : vector<64x128xf32> to vector<64x128xbf16>
    %c0_6 = arith.constant 0 : index
    %c0_7 = arith.constant 0 : index
    %9 = vector.load %arg4[%c0_6, %c0_7] : memref<64x128xbf16, #tpu.memory_space<vmem>>, vector<64x128xbf16>
    tpu.vector_store %arg4[%c0_6, %c0_7], %8 {strides = array<i32>} : memref<64x128xbf16, #tpu.memory_space<vmem>>, vector<64x128xbf16>,
    return
  }
  func.func @transform_0(%arg0: i32) -> (i32, i32) {
    %c0_i32 = arith.constant 0 : i32
    %c0_i32_0 = arith.constant 0 : i32
    return %arg0, %c0_i32 : i32, i32
  }
  func.func @transform_1(%arg0: i32) -> (i32, i32) {
    %c0_i32 = arith.constant 0 : i32
    %c0_i32_0 = arith.constant 0 : i32
    %c0_i32_1 = arith.constant 0 : i32
    return %c0_i32, %c0_i32_0 : i32, i32
  }
  func.func @transform_2(%arg0: i32) -> (i32, i32) {
    %c0_i32 = arith.constant 0 : i32
    %c0_i32_0 = arith.constant 0 : i32
    %c0_i32_1 = arith.constant 0 : i32
    return %c0_i32, %c0_i32_0 : i32, i32
  }
  func.func @transform_3(%arg0: i32) -> (i32, i32) {
    %c0_i32 = arith.constant 0 : i32
    %c0_i32_0 = arith.constant 0 : i32
    return %arg0, %c0_i32 : i32, i32
  }
}

module attributes {stable_mosaic.version = 11 : i64} {
  func.func @_mm_bias_kernel(%arg0: i32, %arg1: memref<64x640xbf16, #tpu.memory_space<vmem>>, %arg2: memref<640x128xbf16, #tpu.memory_space<vmem>>, %arg3: memref<1x128xf32, #tpu.memory_space<vmem>>, %arg4: memref<64x128xbf16, #tpu.memory_space<vmem>>) attributes {dimension_semantics = [#tpu.dimension_semantics<parallel>], iteration_bounds = array<i64: 2>, scalar_prefetch = 0 : i64, scratch_operands = 0 : i64, tpu.core_type = #tpu.core_type<tc>, window_params = [{transform_indices = @transform_0, window_bounds = array<i64: 64, 640>}, {pipeline_mode = #tpu.pipeline_mode<synchronous>, transform_indices = @transform_1, window_bounds = array<i64: 640, 128>}, {pipeline_mode = #tpu.pipeline_mode<synchronous>, transform_indices = @transform_2, window_bounds = array<i64: 1, 128>}, {transform_indices = @transform_3, window_bounds = array<i64: 64, 128>}]} {
    %c0 = arith.constant 0 : index
    %c0_0 = arith.constant 0 : index
    %0 = vector.load %arg1[%c0, %c0_0] : memref<64x640xbf16, #tpu.memory_space<vmem>>, vector<64x640xbf16>
    %c0_1 = arith.constant 0 : index
    %c0_2 = arith.constant 0 : index
    %1 = vector.load %arg2[%c0_1, %c0_2] : memref<640x128xbf16, #tpu.memory_space<vmem>>, vector<640x128xbf16>
    %cst = arith.constant dense<0.000000e+00> : vector<64x128xf32>
    %2 = tpu.matmul %0, %1, %cst {dimension_numbers = #tpu.dot_dimension_numbers<[1], [0], [0], [1], [0, 0, 1, 1], [], []>} : vector<64x640xbf16>, vector<640x128xbf16>, vector<64x128xf32> -> vector<64x128xf32>
    %c0_3 = arith.constant 0 : index
    %c0_4 = arith.constant 0 : index
    %3 = vector.load %arg3[%c0_3, %c0_4] : memref<1x128xf32, #tpu.memory_space<vmem>>, vector<1x128xf32>
    %4 = vector.broadcast %3 : vector<1x128xf32> to vector<64x128xf32>
    %5 = arith.addf %2, %4 : vector<64x128xf32>
    %cst_5 = arith.constant 0.000000e+00 : f32
    %6 = vector.broadcast %cst_5 : f32 to vector<64x128xf32>
    %7 = arith.maximumf %5, %6 : vector<64x128xf32>
    %8 = arith.truncf %7 : vector<64x128xf32> to vector<64x128xbf16>
    %c0_6 = arith.constant 0 : index
    %c0_7 = arith.constant 0 : index
    %9 = vector.load %arg4[%c0_6, %c0_7] : memref<64x128xbf16, #tpu.memory_space<vmem>>, vector<64x128xbf16>
    tpu.vector_store %arg4[%c0_6, %c0_7], %8 {strides = array<i32>} : memref<64x128xbf16, #tpu.memory_space<vmem>>, vector<64x128xbf16>,
    return
  }
  func.func @transform_0(%arg0: i32) -> (i32, i32) {
    %c0_i32 = arith.constant 0 : i32
    %c0_i32_0 = arith.constant 0 : i32
    return %arg0, %c0_i32 : i32, i32
  }
  func.func @transform_1(%arg0: i32) -> (i32, i32) {
    %c0_i32 = arith.constant 0 : i32
    %c0_i32_0 = arith.constant 0 : i32
    %c0_i32_1 = arith.constant 0 : i32
    return %c0_i32, %c0_i32_0 : i32, i32
  }
  func.func @transform_2(%arg0: i32) -> (i32, i32) {
    %c0_i32 = arith.constant 0 : i32
    %c0_i32_0 = arith.constant 0 : i32
    %c0_i32_1 = arith.constant 0 : i32
    return %c0_i32, %c0_i32_0 : i32, i32
  }
  func.func @transform_3(%arg0: i32) -> (i32, i32) {
    %c0_i32 = arith.constant 0 : i32
    %c0_i32_0 = arith.constant 0 : i32
    return %arg0, %c0_i32 : i32, i32
  }
}

module attributes {stable_mosaic.version = 11 : i64} {
  func.func @_mm_bias_res_kernel(%arg0: i32, %arg1: memref<64x640xbf16, #tpu.memory_space<vmem>>, %arg2: memref<640x128xbf16, #tpu.memory_space<vmem>>, %arg3: memref<1x128xf32, #tpu.memory_space<vmem>>, %arg4: memref<64x128xbf16, #tpu.memory_space<vmem>>, %arg5: memref<64x128xbf16, #tpu.memory_space<vmem>>) attributes {dimension_semantics = [#tpu.dimension_semantics<parallel>], iteration_bounds = array<i64: 2>, scalar_prefetch = 0 : i64, scratch_operands = 0 : i64, tpu.core_type = #tpu.core_type<tc>, window_params = [{transform_indices = @transform_0, window_bounds = array<i64: 64, 640>}, {pipeline_mode = #tpu.pipeline_mode<synchronous>, transform_indices = @transform_1, window_bounds = array<i64: 640, 128>}, {pipeline_mode = #tpu.pipeline_mode<synchronous>, transform_indices = @transform_2, window_bounds = array<i64: 1, 128>}, {transform_indices = @transform_3, window_bounds = array<i64: 64, 128>}, {transform_indices = @transform_4, window_bounds = array<i64: 64, 128>}]} {
    %c0 = arith.constant 0 : index
    %c0_0 = arith.constant 0 : index
    %0 = vector.load %arg1[%c0, %c0_0] : memref<64x640xbf16, #tpu.memory_space<vmem>>, vector<64x640xbf16>
    %c0_1 = arith.constant 0 : index
    %c0_2 = arith.constant 0 : index
    %1 = vector.load %arg2[%c0_1, %c0_2] : memref<640x128xbf16, #tpu.memory_space<vmem>>, vector<640x128xbf16>
    %cst = arith.constant dense<0.000000e+00> : vector<64x128xf32>
    %2 = tpu.matmul %0, %1, %cst {dimension_numbers = #tpu.dot_dimension_numbers<[1], [0], [0], [1], [0, 0, 1, 1], [], []>} : vector<64x640xbf16>, vector<640x128xbf16>, vector<64x128xf32> -> vector<64x128xf32>
    %c0_3 = arith.constant 0 : index
    %c0_4 = arith.constant 0 : index
    %3 = vector.load %arg3[%c0_3, %c0_4] : memref<1x128xf32, #tpu.memory_space<vmem>>, vector<1x128xf32>
    %4 = vector.broadcast %3 : vector<1x128xf32> to vector<64x128xf32>
    %5 = arith.addf %2, %4 : vector<64x128xf32>
    %c0_5 = arith.constant 0 : index
    %c0_6 = arith.constant 0 : index
    %6 = vector.load %arg4[%c0_5, %c0_6] : memref<64x128xbf16, #tpu.memory_space<vmem>>, vector<64x128xbf16>
    %7 = arith.extf %6 : vector<64x128xbf16> to vector<64x128xf32>
    %8 = arith.addf %5, %7 : vector<64x128xf32>
    %cst_7 = arith.constant 0.000000e+00 : f32
    %9 = vector.broadcast %cst_7 : f32 to vector<64x128xf32>
    %10 = arith.maximumf %8, %9 : vector<64x128xf32>
    %11 = arith.truncf %10 : vector<64x128xf32> to vector<64x128xbf16>
    %c0_8 = arith.constant 0 : index
    %c0_9 = arith.constant 0 : index
    %12 = vector.load %arg5[%c0_8, %c0_9] : memref<64x128xbf16, #tpu.memory_space<vmem>>, vector<64x128xbf16>
    tpu.vector_store %arg5[%c0_8, %c0_9], %11 {strides = array<i32>} : memref<64x128xbf16, #tpu.memory_space<vmem>>, vector<64x128xbf16>,
    return
  }
  func.func @transform_0(%arg0: i32) -> (i32, i32) {
    %c0_i32 = arith.constant 0 : i32
    %c0_i32_0 = arith.constant 0 : i32
    return %arg0, %c0_i32 : i32, i32
  }
  func.func @transform_1(%arg0: i32) -> (i32, i32) {
    %c0_i32 = arith.constant 0 : i32
    %c0_i32_0 = arith.constant 0 : i32
    %c0_i32_1 = arith.constant 0 : i32
    return %c0_i32, %c0_i32_0 : i32, i32
  }
  func.func @transform_2(%arg0: i32) -> (i32, i32) {
    %c0_i32 = arith.constant 0 : i32
    %c0_i32_0 = arith.constant 0 : i32
    %c0_i32_1 = arith.constant 0 : i32
    return %c0_i32, %c0_i32_0 : i32, i32
  }
  func.func @transform_3(%arg0: i32) -> (i32, i32) {
    %c0_i32 = arith.constant 0 : i32
    %c0_i32_0 = arith.constant 0 : i32
    return %arg0, %c0_i32 : i32, i32
  }
  func.func @transform_4(%arg0: i32) -> (i32, i32) {
    %c0_i32 = arith.constant 0 : i32
    %c0_i32_0 = arith.constant 0 : i32
    return %arg0, %c0_i32 : i32, i32
  }
}

</mosaic_0001>

<bundles_post_ra>
// kernel: resnet_forward.13
= control target key start
LH: loop header
LB: loop body
LE: loop exit
PB: predicated region body
PF: predicated region fallthrough
CT: control target
= control target key end

     0   :  { %s1814_s12 = smov 0   ;;  %s1999_s0 = inlined_call_operand.vmem [shape: bf16[2048,128], index: 0, kind: input, shape index: {}]   ;;  %s2000_s1 = inlined_call_operand.vmem [shape: bf16[128,128], index: 1, kind: input, shape index: {}]   ;;  %s2001_s2 = inlined_call_operand.vmem [shape: f32[1,128], index: 2, kind: input, shape index: {}]   ;;  %s2002_s3 = inlined_call_operand.vmem [shape: bf16[2048,128], index: 3, kind: output, shape index: {}]  }
   0x1 LB: > { %s1231_s13 = sadd.s32 4294967295, %s1792_s12   ;;  %p1235_p0 = scmp.ge.s32.totalorder %s1792_s12, 1  ;;  %s1792_s12 = sphi %s1814_s12, %s13_s12  }
   0x2   : > { %p138_p1 = scmp.lt.s32.totalorder %s1792_s12, 5 }
   0x4   : > { %p139_p2 = pnand %p1235_p0, %p138_p1 }
   0x5   : > { %v1746_v0 = vld [vmem:[%s2000_s1] sm:$0xff] (!%p139_p2)   ;;  %s1236_s16 = sshll.u32 (!%p139_p2), %s1231_s13, 6  ;;  %v1747_v1 = vld [vmem:[%s2000_s1 + $0x8] sm:$0xff] (!%p139_p2)   ;;  %v1748_v2 = vld [vmem:[%s2000_s1 + $0x10] sm:$0xff] (!%p139_p2)  }
   0x6   : > { %142 = sbr.rel (%p139_p2) target bundleno = 316 (0x13c), region = 32  ;;  %p163_p3 = scmp.lt.s32.totalorder (!%p139_p2), %s1236_s16, 255  ;;  %1642 = vmatprep.subr.bf16.mxu0 (!%p139_p2), %v1746_v0  ;;  %1722 = vmatprep.subr.bf16.mxu1 (!%p139_p2), %v1746_v0  ;;  %v1749_v3 = vld [vmem:[%s2000_s1 + $0x18] sm:$0xff] (!%p139_p2)   ;;  %v1750_v6 = vld [vmem:[%s2000_s1 + $0x20] sm:$0xff] (!%p139_p2)   ;;  %v1751_v7 = vld [vmem:[%s2000_s1 + $0x28] sm:$0xff] (!%p139_p2)  }
   0x7   : > { %1643 = vmatpush3.bf16.msra.mxu0 (!%p139_p2), %v1746_v0  ;;  %1730 = vmatpush3.bf16.msra.mxu1 (!%p139_p2), %v1746_v0  ;;  %v1752_v8 = vld [vmem:[%s2000_s1 + $0x30] sm:$0xff] (!%p139_p2)   ;;  %v1753_v9 = vld [vmem:[%s2000_s1 + $0x38] sm:$0xff] (!%p139_p2)   ;;  %v1891_v40 = vld [vmem:[%s2001_s2] ss:$0 sm:$0xff] (!%p139_p2) }
   0x8   : > { %1644 = vmatprep.subr.bf16.mxu0 (!%p139_p2), %v1747_v1  ;;  %1723 = vmatprep.subr.bf16.mxu1 (!%p139_p2), %v1747_v1 }
   0xb   : > { %1645 = vmatpush3.bf16.msra.mxu0 (!%p139_p2), %v1747_v1  ;;  %1731 = vmatpush3.bf16.msra.mxu1 (!%p139_p2), %v1747_v1 }
   0xc   : > { %1646 = vmatprep.subr.bf16.mxu0 (!%p139_p2), %v1748_v2  ;;  %1724 = vmatprep.subr.bf16.mxu1 (!%p139_p2), %v1748_v2 }
   0xd   : > { %s2004_s16 = smov (!%p163_p3, %s1236_s16), 255 }
   0xe   : > { %s1237_s21 = sshll.u32 %s2004_s16, 2 }
   0xf   : > { %s1839_s24 = scalar_lea.vmem %s1999_s0, %s1237_s21  ;;  %1647 = vmatpush3.bf16.msra.mxu0 %v1748_v2  ;;  %1732 = vmatpush3.bf16.msra.mxu1 %v1748_v2  ;;  %s1906_s13 = scalar_lea.vmem %s2002_s3, %s1237_s21 }
  0x10   : > { %v1754_v4 = vld [vmem:[%s1839_s24] sm:$0xff]   ;;  %1648 = vmatprep.subr.bf16.mxu0 %v1749_v3  ;;  %1725 = vmatprep.subr.bf16.mxu1 %v1749_v3  ;;  %v1756_v10 = vld [vmem:[%s1839_s24 + $0x8] sm:$0xff]   ;;  %v1758_v12 = vld [vmem:[%s1839_s24 + $0x10] sm:$0xff]  }
  0x11   : > { %v1755_v5 = vld [vmem:[%s1839_s24 + $0x80] sm:$0xff]   ;;  %1658 = vmatprep.mubr.bf16.mxu0 %v1754_v4  ;;  %v1757_v11 = vld [vmem:[%s1839_s24 + $0x88] sm:$0xff]   ;;  %v1759_v13 = vld [vmem:[%s1839_s24 + $0x90] sm:$0xff]  }
  0x12   : > { %1690 = vmatprep.mubr.bf16.mxu1 %v1755_v5  ;;  %v1760_v14 = vld [vmem:[%s1839_s24 + $0x18] sm:$0xff]   ;;  %v1762_v16 = vld [vmem:[%s1839_s24 + $0x20] sm:$0xff]   ;;  %v1764_v18 = vld [vmem:[%s1839_s24 + $0x28] sm:$0xff]  }
  0x13   : > { %1649 = vmatpush3.bf16.msra.mxu0 %v1749_v3  ;;  %1733 = vmatpush3.bf16.msra.mxu1 %v1749_v3  ;;  %v1761_v15 = vld [vmem:[%s1839_s24 + $0x98] sm:$0xff]   ;;  %v1763_v17 = vld [vmem:[%s1839_s24 + $0xa0] sm:$0xff]   ;;  %v1765_v19 = vld [vmem:[%s1839_s24 + $0xa8] sm:$0xff]  }
  0x14   : > { %1650 = vmatprep.subr.bf16.mxu0 %v1750_v6  ;;  %1726 = vmatprep.subr.bf16.mxu1 %v1750_v6  ;;  %v1766_v20 = vld [vmem:[%s1839_s24 + $0x30] sm:$0xff]   ;;  %v1768_v22 = vld [vmem:[%s1839_s24 + $0x38] sm:$0xff]   ;;  %v1770_v24 = vld [vmem:[%s1839_s24 + $0x40] sm:$0xff]  }
  0x15   : > { %v1767_v21 = vld [vmem:[%s1839_s24 + $0xb0] sm:$0xff]   ;;  %v1769_v23 = vld [vmem:[%s1839_s24 + $0xb8] sm:$0xff]   ;;  %v1771_v25 = vld [vmem:[%s1839_s24 + $0xc0] sm:$0xff]  }
  0x16   : > { %v1772_v26 = vld [vmem:[%s1839_s24 + $0x48] sm:$0xff]   ;;  %v1774_v28 = vld [vmem:[%s1839_s24 + $0x50] sm:$0xff]   ;;  %v1776_v30 = vld [vmem:[%s1839_s24 + $0x58] sm:$0xff]  }
  0x17   : > { %1651 = vmatpush3.bf16.msra.mxu0 %v1750_v6  ;;  %1734 = vmatpush3.bf16.msra.mxu1 %v1750_v6  ;;  %v1773_v27 = vld [vmem:[%s1839_s24 + $0xc8] sm:$0xff]   ;;  %v1775_v29 = vld [vmem:[%s1839_s24 + $0xd0] sm:$0xff]   ;;  %v1777_v31 = vld [vmem:[%s1839_s24 + $0xd8] sm:$0xff]  }
  0x18   : > { %1652 = vmatprep.subr.bf16.mxu0 %v1751_v7  ;;  %1727 = vmatprep.subr.bf16.mxu1 %v1751_v7  ;;  %v1778_v32 = vld [vmem:[%s1839_s24 + $0x60] sm:$0xff]   ;;  %v1780_v34 = vld [vmem:[%s1839_s24 + $0x68] sm:$0xff]   ;;  %v1782_v36 = vld [vmem:[%s1839_s24 + $0x70] sm:$0xff]  }
  0x19   : > { %v1779_v33 = vld [vmem:[%s1839_s24 + $0xe0] sm:$0xff]   ;;  %v1781_v35 = vld [vmem:[%s1839_s24 + $0xe8] sm:$0xff]   ;;  %v1783_v37 = vld [vmem:[%s1839_s24 + $0xf0] sm:$0xff]  }
  0x1a   : > { %v1784_v38 = vld [vmem:[%s1839_s24 + $0x78] sm:$0xff]  }
  0x1b   : > { %1653 = vmatpush3.bf16.msra.mxu0 %v1751_v7  ;;  %1735 = vmatpush3.bf16.msra.mxu1 %v1751_v7  ;;  %v1785_v39 = vld [vmem:[%s1839_s24 + $0xf8] sm:$0xff]  }
  0x1c   : > { %1654 = vmatprep.subr.bf16.mxu0 %v1752_v8  ;;  %1728 = vmatprep.subr.bf16.mxu1 %v1752_v8 }
  0x1f   : > { %1655 = vmatpush3.bf16.msra.mxu0 %v1752_v8  ;;  %1736 = vmatpush3.bf16.msra.mxu1 %v1752_v8 }
  0x20   : > { %1656 = vmatprep.subr.bf16.mxu0 %v1753_v9  ;;  %1729 = vmatprep.subr.bf16.mxu1 %v1753_v9 }
  0x23   : > { %1657 = vmatpush3.bf16.msra.mxu0 %v1753_v9  ;;  %1737 = vmatpush3.bf16.msra.mxu1 %v1753_v9 }
  0x26   : > { %1659 = vmatmul.mubr.bf16.vlgmr.msra.gmra.mrb[0].mxu0 %v1756_v10  ;;  %1691 = vmatmul.mubr.bf16.vlgmr.msra.gmra.mrb[0].mxu1 %v1757_v11 }
  0x27   : > { %1662 = vmatprep.mubr.bf16.mxu0 %v1758_v12  ;;  %1694 = vmatprep.mubr.bf16.mxu1 %v1759_v13 }
  0x2e   : > { %1663 = vmatmul.mubr.bf16.gmra.mrb[4].mxu0 %v1760_v14  ;;  %1695 = vmatmul.mubr.bf16.gmra.mrb[4].mxu1 %v1761_v15 }
  0x2f   : > { %1666 = vmatprep.mubr.bf16.mxu0 %v1762_v16  ;;  %1698 = vmatprep.mubr.bf16.mxu1 %v1763_v17 }
  0x36   : > { %1667 = vmatmul.mubr.bf16.gmra.mrb[8].mxu0 %v1764_v18  ;;  %1699 = vmatmul.mubr.bf16.gmra.mrb[8].mxu1 %v1765_v19 }
  0x37   : > { %1670 = vmatprep.mubr.bf16.mxu0 %v1766_v20  ;;  %1702 = vmatprep.mubr.bf16.mxu1 %v1767_v21 }
  0x3e   : > { %1671 = vmatmul.mubr.bf16.gmra.mrb[12].mxu0 %v1768_v22  ;;  %1703 = vmatmul.mubr.bf16.gmra.mrb[12].mxu1 %v1769_v23 }
  0x3f   : > { %1674 = vmatprep.mubr.bf16.mxu0 %v1770_v24  ;;  %1706 = vmatprep.mubr.bf16.mxu1 %v1771_v25 }
  0x46   : > { %1675 = vmatmul.mubr.bf16.gmra.mrb[16].mxu0 %v1772_v26  ;;  %1707 = vmatmul.mubr.bf16.gmra.mrb[16].mxu1 %v1773_v27 }
  0x47   : > { %1678 = vmatprep.mubr.bf16.mxu0 %v1774_v28  ;;  %1710 = vmatprep.mubr.bf16.mxu1 %v1775_v29 }
  0x4e   : > { %1679 = vmatmul.mubr.bf16.gmra.mrb[20].mxu0 %v1776_v30  ;;  %1711 = vmatmul.mubr.bf16.gmra.mrb[20].mxu1 %v1777_v31 }
  0x4f   : > { %1682 = vmatprep.mubr.bf16.mxu0 %v1778_v32  ;;  %1714 = vmatprep.mubr.bf16.mxu1 %v1779_v33 }
  0x56   : > { %1683 = vmatmul.mubr.bf16.gmra.mrb[24].mxu0 %v1780_v34  ;;  %1715 = vmatmul.mubr.bf16.gmra.mrb[24].mxu1 %v1781_v35 }
  0x57   : > { %1686 = vmatprep.mubr.bf16.mxu0 %v1782_v36  ;;  %1718 = vmatprep.mubr.bf16.mxu1 %v1783_v37 }
  0x5e   : > { %1687 = vmatmul.mubr.bf16.gmra.mrb[28].mxu0 %v1784_v38  ;;  %1719 = vmatmul.mubr.bf16.gmra.mrb[28].mxu1 %v1785_v39 }
  0xf9   : > { %v1660_v41 = vpop.f32.mrb[0].mxu0  ;;  %v1692_v42 = vpop.f32.mrb[0].mxu1 }
  0xfa   : > { %v545_v43 = vadd.f32 %v1660_v41, %v1891_v40  ;;  %v673_v44 = vadd.f32 %v1692_v42, %v1891_v40  ;;  %v536_v45 = vpop.f32.mrb[1].mxu0  ;;  %v664_v46 = vpop.f32.mrb[1].mxu1 }
  0xfb   : > { %v537_v47 = vadd.f32 %v1891_v40, %v536_v45  ;;  %v665_v48 = vadd.f32 %v1891_v40, %v664_v46  ;;  %v1661_v49 = vpop.f32.mrb[2].mxu0  ;;  %v1693_v50 = vpop.f32.mrb[2].mxu1 }
  0xfc   : > { %v548_v51 = vadd.f32 %v1661_v49, %v1891_v40  ;;  %v676_v52 = vadd.f32 %v1693_v50, %v1891_v40  ;;  %v539_v53 = vpop.f32.mrb[3].mxu0  ;;  %v667_v54 = vpop.f32.mrb[3].mxu1  ;;  %v793_v57 = vmax.f32 %v545_v43, 0.0  ;;  %v825_v58 = vmax.f32 %v673_v44, 0.0 }
  0xfd   : > { %v540_v55 = vadd.f32 %v1891_v40, %v539_v53  ;;  %v668_v56 = vadd.f32 %v1891_v40, %v667_v54  ;;  %v791_v61 = vmax.f32 %v537_v47, 0.0  ;;  %v823_v62 = vmax.f32 %v665_v48, 0.0 }
  0xfe   : > { %v794_v59 = vmax.f32 %v548_v51, 0.0  ;;  %v826_v60 = vmax.f32 %v676_v52, 0.0 }
  0xff   : > { %v792_v63 = vmax.f32 %v540_v55, 0.0  ;;  %v824_v0 = vmax.f32 %v668_v56, 0.0 }
 0x100   : > { %v1419_v1 = vpack.c.bf16 %v794_v59, %v793_v57  ;;  %v1499_v2 = vpack.c.bf16 %v826_v60, %v825_v58 }
 0x101   : > { %v1414_v3 = vpack.c.bf16 %v792_v63, %v791_v61  ;;  %v1494_v4 = vpack.c.bf16 %v824_v0, %v823_v62  ;;  %v1664_v5 = vpop.f32.mrb[4].mxu0  ;;  %v1696_v6 = vpop.f32.mrb[4].mxu1 }
 0x102   : > { %1571 = vst [vmem:[%s1906_s13 + $0x8] sm:$0xff] %v1419_v1   ;;  %1587 = vst [vmem:[%s1906_s13 + $0x88] sm:$0xff] %v1499_v2   ;;  %v561_v7 = vadd.f32 %v1664_v5, %v1891_v40  ;;  %v689_v8 = vadd.f32 %v1696_v6, %v1891_v40  ;;  %v552_v9 = vpop.f32.mrb[5].mxu0  ;;  %v680_v10 = vpop.f32.mrb[5].mxu1 }
 0x103   : > { %1415 = vst [vmem:[%s1906_s13] sm:$0xff] %v1414_v3   ;;  %1586 = vst [vmem:[%s1906_s13 + $0x80] sm:$0xff] %v1494_v4   ;;  %v553_v11 = vadd.f32 %v1891_v40, %v552_v9  ;;  %v681_v12 = vadd.f32 %v1891_v40, %v680_v10  ;;  %v1665_v13 = vpop.f32.mrb[6].mxu0  ;;  %v1697_v14 = vpop.f32.mrb[6].mxu1 }
 0x104   : > { %v564_v15 = vadd.f32 %v1665_v13, %v1891_v40  ;;  %v692_v16 = vadd.f32 %v1697_v14, %v1891_v40  ;;  %v555_v17 = vpop.f32.mrb[7].mxu0  ;;  %v683_v18 = vpop.f32.mrb[7].mxu1  ;;  %v797_v21 = vmax.f32 %v561_v7, 0.0  ;;  %v829_v22 = vmax.f32 %v689_v8, 0.0 }
 0x105   : > { %v556_v19 = vadd.f32 %v1891_v40, %v555_v17  ;;  %v684_v20 = vadd.f32 %v1891_v40, %v683_v18  ;;  %v795_v25 = vmax.f32 %v553_v11, 0.0  ;;  %v827_v26 = vmax.f32 %v681_v12, 0.0 }
 0x106   : > { %v798_v23 = vmax.f32 %v564_v15, 0.0  ;;  %v830_v24 = vmax.f32 %v692_v16, 0.0 }
 0x107   : > { %v796_v27 = vmax.f32 %v556_v19, 0.0  ;;  %v828_v28 = vmax.f32 %v684_v20, 0.0 }
 0x108   : > { %v1429_v29 = vpack.c.bf16 %v798_v23, %v797_v21  ;;  %v1509_v30 = vpack.c.bf16 %v830_v24, %v829_v22 }
 0x109   : > { %v1424_v31 = vpack.c.bf16 %v796_v27, %v795_v25  ;;  %v1504_v32 = vpack.c.bf16 %v828_v28, %v827_v26  ;;  %v1668_v33 = vpop.f32.mrb[8].mxu0  ;;  %v1700_v34 = vpop.f32.mrb[8].mxu1 }
 0x10a   : > { %1573 = vst [vmem:[%s1906_s13 + $0x18] sm:$0xff] %v1429_v29   ;;  %1589 = vst [vmem:[%s1906_s13 + $0x98] sm:$0xff] %v1509_v30   ;;  %v577_v35 = vadd.f32 %v1668_v33, %v1891_v40  ;;  %v705_v36 = vadd.f32 %v1700_v34, %v1891_v40  ;;  %v568_v37 = vpop.f32.mrb[9].mxu0  ;;  %v696_v38 = vpop.f32.mrb[9].mxu1 }
 0x10b   : > { %1572 = vst [vmem:[%s1906_s13 + $0x10] sm:$0xff] %v1424_v31   ;;  %1588 = vst [vmem:[%s1906_s13 + $0x90] sm:$0xff] %v1504_v32   ;;  %v569_v39 = vadd.f32 %v1891_v40, %v568_v37  ;;  %v697_v41 = vadd.f32 %v1891_v40, %v696_v38  ;;  %v1669_v42 = vpop.f32.mrb[10].mxu0  ;;  %v1701_v43 = vpop.f32.mrb[10].mxu1 }
 0x10c   : > { %v580_v44 = vadd.f32 %v1669_v42, %v1891_v40  ;;  %v708_v45 = vadd.f32 %v1701_v43, %v1891_v40  ;;  %v571_v46 = vpop.f32.mrb[11].mxu0  ;;  %v699_v47 = vpop.f32.mrb[11].mxu1  ;;  %v801_v50 = vmax.f32 %v577_v35, 0.0  ;;  %v833_v51 = vmax.f32 %v705_v36, 0.0 }
 0x10d   : > { %v572_v48 = vadd.f32 %v1891_v40, %v571_v46  ;;  %v700_v49 = vadd.f32 %v1891_v40, %v699_v47  ;;  %v799_v54 = vmax.f32 %v569_v39, 0.0  ;;  %v831_v55 = vmax.f32 %v697_v41, 0.0 }
 0x10e   : > { %v802_v52 = vmax.f32 %v580_v44, 0.0  ;;  %v834_v53 = vmax.f32 %v708_v45, 0.0 }
 0x10f   : > { %v800_v56 = vmax.f32 %v572_v48, 0.0  ;;  %v832_v57 = vmax.f32 %v700_v49, 0.0 }
 0x110   : > { %v1439_v58 = vpack.c.bf16 %v802_v52, %v801_v50  ;;  %v1519_v59 = vpack.c.bf16 %v834_v53, %v833_v51 }
 0x111   : > { %v1434_v60 = vpack.c.bf16 %v800_v56, %v799_v54  ;;  %v1514_v61 = vpack.c.bf16 %v832_v57, %v831_v55  ;;  %v1672_v62 = vpop.f32.mrb[12].mxu0  ;;  %v1704_v63 = vpop.f32.mrb[12].mxu1 }
 0x112   : > { %1575 = vst [vmem:[%s1906_s13 + $0x28] sm:$0xff] %v1439_v58   ;;  %1591 = vst [vmem:[%s1906_s13 + $0xa8] sm:$0xff] %v1519_v59   ;;  %v593_v0 = vadd.f32 %v1672_v62, %v1891_v40  ;;  %v721_v1 = vadd.f32 %v1704_v63, %v1891_v40  ;;  %v584_v2 = vpop.f32.mrb[13].mxu0  ;;  %v712_v3 = vpop.f32.mrb[13].mxu1 }
 0x113   : > { %1574 = vst [vmem:[%s1906_s13 + $0x20] sm:$0xff] %v1434_v60   ;;  %1590 = vst [vmem:[%s1906_s13 + $0xa0] sm:$0xff] %v1514_v61   ;;  %v585_v4 = vadd.f32 %v1891_v40, %v584_v2  ;;  %v713_v5 = vadd.f32 %v1891_v40, %v712_v3  ;;  %v1673_v6 = vpop.f32.mrb[14].mxu0  ;;  %v1705_v7 = vpop.f32.mrb[14].mxu1 }
 0x114   : > { %v596_v8 = vadd.f32 %v1673_v6, %v1891_v40  ;;  %v724_v9 = vadd.f32 %v1705_v7, %v1891_v40  ;;  %v587_v10 = vpop.f32.mrb[15].mxu0  ;;  %v715_v11 = vpop.f32.mrb[15].mxu1  ;;  %v805_v14 = vmax.f32 %v593_v0, 0.0  ;;  %v837_v15 = vmax.f32 %v721_v1, 0.0 }
 0x115   : > { %v588_v12 = vadd.f32 %v1891_v40, %v587_v10  ;;  %v716_v13 = vadd.f32 %v1891_v40, %v715_v11  ;;  %v803_v18 = vmax.f32 %v585_v4, 0.0  ;;  %v835_v19 = vmax.f32 %v713_v5, 0.0 }
 0x116   : > { %v806_v16 = vmax.f32 %v596_v8, 0.0  ;;  %v838_v17 = vmax.f32 %v724_v9, 0.0 }
 0x117   : > { %v804_v20 = vmax.f32 %v588_v12, 0.0  ;;  %v836_v21 = vmax.f32 %v716_v13, 0.0 }
 0x118   : > { %v1449_v22 = vpack.c.bf16 %v806_v16, %v805_v14  ;;  %v1529_v23 = vpack.c.bf16 %v838_v17, %v837_v15 }
 0x119   : > { %v1444_v24 = vpack.c.bf16 %v804_v20, %v803_v18  ;;  %v1524_v25 = vpack.c.bf16 %v836_v21, %v835_v19  ;;  %v1676_v26 = vpop.f32.mrb[16].mxu0  ;;  %v1708_v27 = vpop.f32.mrb[16].mxu1 }
 0x11a   : > { %1577 = vst [vmem:[%s1906_s13 + $0x38] sm:$0xff] %v1449_v22   ;;  %1593 = vst [vmem:[%s1906_s13 + $0xb8] sm:$0xff] %v1529_v23   ;;  %v609_v28 = vadd.f32 %v1676_v26, %v1891_v40  ;;  %v737_v29 = vadd.f32 %v1708_v27, %v1891_v40  ;;  %v600_v30 = vpop.f32.mrb[17].mxu0  ;;  %v728_v31 = vpop.f32.mrb[17].mxu1 }
 0x11b   : > { %1576 = vst [vmem:[%s1906_s13 + $0x30] sm:$0xff] %v1444_v24   ;;  %1592 = vst [vmem:[%s1906_s13 + $0xb0] sm:$0xff] %v1524_v25   ;;  %v601_v32 = vadd.f32 %v1891_v40, %v600_v30  ;;  %v729_v33 = vadd.f32 %v1891_v40, %v728_v31  ;;  %v1677_v34 = vpop.f32.mrb[18].mxu0  ;;  %v1709_v35 = vpop.f32.mrb[18].mxu1 }
 0x11c   : > { %v612_v36 = vadd.f32 %v1677_v34, %v1891_v40  ;;  %v740_v37 = vadd.f32 %v1709_v35, %v1891_v40  ;;  %v603_v38 = vpop.f32.mrb[19].mxu0  ;;  %v731_v39 = vpop.f32.mrb[19].mxu1  ;;  %v809_v43 = vmax.f32 %v609_v28, 0.0  ;;  %v841_v44 = vmax.f32 %v737_v29, 0.0 }
 0x11d   : > { %v604_v41 = vadd.f32 %v1891_v40, %v603_v38  ;;  %v732_v42 = vadd.f32 %v1891_v40, %v731_v39  ;;  %v807_v47 = vmax.f32 %v601_v32, 0.0  ;;  %v839_v48 = vmax.f32 %v729_v33, 0.0 }
 0x11e   : > { %v810_v45 = vmax.f32 %v612_v36, 0.0  ;;  %v842_v46 = vmax.f32 %v740_v37, 0.0 }
 0x11f   : > { %v808_v49 = vmax.f32 %v604_v41, 0.0  ;;  %v840_v50 = vmax.f32 %v732_v42, 0.0 }
 0x120   : > { %v1459_v51 = vpack.c.bf16 %v810_v45, %v809_v43  ;;  %v1539_v52 = vpack.c.bf16 %v842_v46, %v841_v44 }
 0x121   : > { %v1454_v53 = vpack.c.bf16 %v808_v49, %v807_v47  ;;  %v1534_v54 = vpack.c.bf16 %v840_v50, %v839_v48  ;;  %v1680_v55 = vpop.f32.mrb[20].mxu0  ;;  %v1712_v56 = vpop.f32.mrb[20].mxu1 }
 0x122   : > { %1579 = vst [vmem:[%s1906_s13 + $0x48] sm:$0xff] %v1459_v51   ;;  %1595 = vst [vmem:[%s1906_s13 + $0xc8] sm:$0xff] %v1539_v52   ;;  %v625_v57 = vadd.f32 %v1680_v55, %v1891_v40  ;;  %v753_v58 = vadd.f32 %v1712_v56, %v1891_v40  ;;  %v616_v59 = vpop.f32.mrb[21].mxu0  ;;  %v744_v60 = vpop.f32.mrb[21].mxu1 }
 0x123   : > { %1578 = vst [vmem:[%s1906_s13 + $0x40] sm:$0xff] %v1454_v53   ;;  %1594 = vst [vmem:[%s1906_s13 + $0xc0] sm:$0xff] %v1534_v54   ;;  %v617_v61 = vadd.f32 %v1891_v40, %v616_v59  ;;  %v745_v62 = vadd.f32 %v1891_v40, %v744_v60  ;;  %v1681_v63 = vpop.f32.mrb[22].mxu0  ;;  %v1713_v0 = vpop.f32.mrb[22].mxu1 }
 0x124   : > { %v628_v1 = vadd.f32 %v1681_v63, %v1891_v40  ;;  %v756_v2 = vadd.f32 %v1713_v0, %v1891_v40  ;;  %v619_v3 = vpop.f32.mrb[23].mxu0  ;;  %v747_v4 = vpop.f32.mrb[23].mxu1  ;;  %v813_v7 = vmax.f32 %v625_v57, 0.0  ;;  %v845_v8 = vmax.f32 %v753_v58, 0.0 }
 0x125   : > { %v620_v5 = vadd.f32 %v1891_v40, %v619_v3  ;;  %v748_v6 = vadd.f32 %v1891_v40, %v747_v4  ;;  %v811_v11 = vmax.f32 %v617_v61, 0.0  ;;  %v843_v12 = vmax.f32 %v745_v62, 0.0 }
 0x126   : > { %v814_v9 = vmax.f32 %v628_v1, 0.0  ;;  %v846_v10 = vmax.f32 %v756_v2, 0.0 }
 0x127   : > { %v812_v13 = vmax.f32 %v620_v5, 0.0  ;;  %v844_v14 = vmax.f32 %v748_v6, 0.0 }
 0x128   : > { %v1469_v15 = vpack.c.bf16 %v814_v9, %v813_v7  ;;  %v1549_v16 = vpack.c.bf16 %v846_v10, %v845_v8 }
 0x129   : > { %v1464_v17 = vpack.c.bf16 %v812_v13, %v811_v11  ;;  %v1544_v18 = vpack.c.bf16 %v844_v14, %v843_v12  ;;  %v1684_v19 = vpop.f32.mrb[24].mxu0  ;;  %v1716_v20 = vpop.f32.mrb[24].mxu1 }
 0x12a   : > { %1581 = vst [vmem:[%s1906_s13 + $0x58] sm:$0xff] %v1469_v15   ;;  %1597 = vst [vmem:[%s1906_s13 + $0xd8] sm:$0xff] %v1549_v16   ;;  %v641_v21 = vadd.f32 %v1684_v19, %v1891_v40  ;;  %v769_v22 = vadd.f32 %v1716_v20, %v1891_v40  ;;  %v632_v23 = vpop.f32.mrb[25].mxu0  ;;  %v760_v24 = vpop.f32.mrb[25].mxu1 }
 0x12b   : > { %1580 = vst [vmem:[%s1906_s13 + $0x50] sm:$0xff] %v1464_v17   ;;  %1596 = vst [vmem:[%s1906_s13 + $0xd0] sm:$0xff] %v1544_v18   ;;  %v633_v25 = vadd.f32 %v1891_v40, %v632_v23  ;;  %v761_v26 = vadd.f32 %v1891_v40, %v760_v24  ;;  %v1685_v27 = vpop.f32.mrb[26].mxu0  ;;  %v1717_v28 = vpop.f32.mrb[26].mxu1 }
 0x12c   : > { %v644_v29 = vadd.f32 %v1685_v27, %v1891_v40  ;;  %v772_v30 = vadd.f32 %v1717_v28, %v1891_v40  ;;  %v635_v31 = vpop.f32.mrb[27].mxu0  ;;  %v763_v32 = vpop.f32.mrb[27].mxu1  ;;  %v817_v35 = vmax.f32 %v641_v21, 0.0  ;;  %v849_v36 = vmax.f32 %v769_v22, 0.0 }
 0x12d   : > { %v636_v33 = vadd.f32 %v1891_v40, %v635_v31  ;;  %v764_v34 = vadd.f32 %v1891_v40, %v763_v32  ;;  %v815_v39 = vmax.f32 %v633_v25, 0.0  ;;  %v847_v41 = vmax.f32 %v761_v26, 0.0 }
 0x12e   : > { %v818_v37 = vmax.f32 %v644_v29, 0.0  ;;  %v850_v38 = vmax.f32 %v772_v30, 0.0 }
 0x12f   : > { %v816_v42 = vmax.f32 %v636_v33, 0.0  ;;  %v848_v43 = vmax.f32 %v764_v34, 0.0 }
 0x130   : > { %v1479_v44 = vpack.c.bf16 %v818_v37, %v817_v35  ;;  %v1559_v45 = vpack.c.bf16 %v850_v38, %v849_v36 }
 0x131   : > { %v1474_v46 = vpack.c.bf16 %v816_v42, %v815_v39  ;;  %v1554_v47 = vpack.c.bf16 %v848_v43, %v847_v41  ;;  %v1688_v48 = vpop.f32.mrb[28].mxu0  ;;  %v1720_v49 = vpop.f32.mrb[28].mxu1 }
 0x132   : > { %1583 = vst [vmem:[%s1906_s13 + $0x68] sm:$0xff] %v1479_v44   ;;  %1599 = vst [vmem:[%s1906_s13 + $0xe8] sm:$0xff] %v1559_v45   ;;  %v657_v50 = vadd.f32 %v1688_v48, %v1891_v40  ;;  %v785_v51 = vadd.f32 %v1720_v49, %v1891_v40  ;;  %v648_v52 = vpop.f32.mrb[29].mxu0  ;;  %v776_v53 = vpop.f32.mrb[29].mxu1 }
 0x133   : > { %1582 = vst [vmem:[%s1906_s13 + $0x60] sm:$0xff] %v1474_v46   ;;  %1598 = vst [vmem:[%s1906_s13 + $0xe0] sm:$0xff] %v1554_v47   ;;  %v649_v54 = vadd.f32 %v1891_v40, %v648_v52  ;;  %v777_v55 = vadd.f32 %v1891_v40, %v776_v53  ;;  %v1689_v56 = vpop.f32.mrb[30].mxu0  ;;  %v1721_v57 = vpop.f32.mrb[30].mxu1 }
 0x134   : > { %v660_v58 = vadd.f32 %v1689_v56, %v1891_v40  ;;  %v788_v59 = vadd.f32 %v1721_v57, %v1891_v40  ;;  %v651_v60 = vpop.f32.mrb[31].mxu0  ;;  %v779_v61 = vpop.f32.mrb[31].mxu1  ;;  %v821_v0 = vmax.f32 %v657_v50, 0.0  ;;  %v853_v1 = vmax.f32 %v785_v51, 0.0 }
 0x135   : > { %v652_v62 = vadd.f32 %v1891_v40, %v651_v60  ;;  %v780_v63 = vadd.f32 %v1891_v40, %v779_v61  ;;  %v819_v4 = vmax.f32 %v649_v54, 0.0  ;;  %v851_v5 = vmax.f32 %v777_v55, 0.0 }
 0x136   : > { %v822_v2 = vmax.f32 %v660_v58, 0.0  ;;  %v854_v3 = vmax.f32 %v788_v59, 0.0 }
 0x137   : > { %v820_v6 = vmax.f32 %v652_v62, 0.0  ;;  %v852_v7 = vmax.f32 %v780_v63, 0.0 }
 0x138   : > { %v1489_v8 = vpack.c.bf16 %v822_v2, %v821_v0  ;;  %v1569_v9 = vpack.c.bf16 %v854_v3, %v853_v1 }
 0x139   : > { %v1484_v10 = vpack.c.bf16 %v820_v6, %v819_v4  ;;  %v1564_v11 = vpack.c.bf16 %v852_v7, %v851_v5 }
 0x13a   : > { %1585 = vst [vmem:[%s1906_s13 + $0x78] sm:$0xff] %v1489_v8   ;;  %1601 = vst [vmem:[%s1906_s13 + $0xf8] sm:$0xff] %v1569_v9  }
 0x13b   : > { %1584 = vst [vmem:[%s1906_s13 + $0x70] sm:$0xff] %v1484_v10   ;;  %1600 = vst [vmem:[%s1906_s13 + $0xf0] sm:$0xff] %v1564_v11  }
 0x13c PF: > { %s13_s12 = sadd.s32 1, %s1792_s12  }
 0x13d   : > { %p10_p4 = scmp.ge.s32.totalorder %s13_s12, 6  }
 0x13f   :  { %12 = sbr.rel (!%p10_p4) target bundleno = 1 (0x1), region = 62 }

// kernel: resnet_forward.14
= control target key start
LH: loop header
LB: loop body
LE: loop exit
PB: predicated region body
PF: predicated region fallthrough
CT: control target
= control target key end

     0   :  { %s2021_s12 = smov 0   ;;  %s2291_s0 = inlined_call_operand.vmem [shape: bf16[2048,256], index: 0, kind: input, shape index: {}]   ;;  %s2292_s1 = inlined_call_operand.vmem [shape: bf16[256,128], index: 1, kind: input, shape index: {}]   ;;  %s2293_s2 = inlined_call_operand.vmem [shape: f32[1,128], index: 2, kind: input, shape index: {}]   ;;  %s2294_s3 = inlined_call_operand.vmem [shape: bf16[2048,128], index: 3, kind: output, shape index: {}]  }
   0x1 LB: > { %s1426_s13 = sadd.s32 4294967295, %s1998_s12   ;;  %p1430_p0 = scmp.ge.s32.totalorder %s1998_s12, 1  ;;  %s1998_s12 = sphi %s2021_s12, %s13_s12  }
   0x2   : > { %p139_p1 = scmp.lt.s32.totalorder %s1998_s12, 5 }
   0x4   : > { %p140_p2 = pnand %p1430_p0, %p139_p1 }
   0x5   : > { %v1880_v0 = vld [vmem:[%s2292_s1] sm:$0xff] (!%p140_p2)   ;;  %v2000_v1 = vmov (!%p140_p2), 0   ;;  %s1431_s16 = sshll.u32 (!%p140_p2), %s1426_s13, 6  ;;  %v1881_v2 = vld [vmem:[%s2292_s1 + $0x8] sm:$0xff] (!%p140_p2)   ;;  %v1882_v3 = vld [vmem:[%s2292_s1 + $0x10] sm:$0xff] (!%p140_p2)  }
   0x6   : > { %143 = sbr.rel (%p140_p2) target bundleno = 411 (0x19b), region = 32  ;;  %697 = vmatprep.subr.bf16.mxu0 (!%p140_p2), %v2000_v1  ;;  %1839 = vmatprep.subr.bf16.mxu1 (!%p140_p2), %v2000_v1  ;;  %p165_p3 = scmp.lt.s32.totalorder (!%p140_p2), %s1431_s16, 255  ;;  %v1883_v4 = vld [vmem:[%s2292_s1 + $0x18] sm:$0xff] (!%p140_p2)   ;;  %v1884_v5 = vld [vmem:[%s2292_s1 + $0x20] sm:$0xff] (!%p140_p2)   ;;  %v1885_v7 = vld [vmem:[%s2292_s1 + $0x28] sm:$0xff] (!%p140_p2)  }
   0x7   : > { %698 = vmatpush1.bf16.msra.mxu0 (!%p140_p2), %v1880_v0  ;;  %1855 = vmatpush1.bf16.msra.mxu1 (!%p140_p2), %v1880_v0  ;;  %v1886_v9 = vld [vmem:[%s2292_s1 + $0x30] sm:$0xff] (!%p140_p2)   ;;  %v1887_v10 = vld [vmem:[%s2292_s1 + $0x38] sm:$0xff] (!%p140_p2)   ;;  %v1888_v11 = vld [vmem:[%s2292_s1 + $0x40] sm:$0xff] (!%p140_p2)  }
   0x8   : > { %699 = vmatprep.subr.bf16.mxu0 (!%p140_p2), %v2000_v1  ;;  %1840 = vmatprep.subr.bf16.mxu1 (!%p140_p2), %v2000_v1  ;;  %v1889_v12 = vld [vmem:[%s2292_s1 + $0x48] sm:$0xff] (!%p140_p2)   ;;  %v1890_v13 = vld [vmem:[%s2292_s1 + $0x50] sm:$0xff] (!%p140_p2)   ;;  %v1891_v14 = vld [vmem:[%s2292_s1 + $0x58] sm:$0xff] (!%p140_p2)  }
   0x9   : > { %v1892_v15 = vld [vmem:[%s2292_s1 + $0x60] sm:$0xff] (!%p140_p2)   ;;  %v1893_v16 = vld [vmem:[%s2292_s1 + $0x68] sm:$0xff] (!%p140_p2)   ;;  %v1894_v17 = vld [vmem:[%s2292_s1 + $0x70] sm:$0xff] (!%p140_p2)  }
   0xa   : > { %v1895_v18 = vld [vmem:[%s2292_s1 + $0x78] sm:$0xff] (!%p140_p2)  }
   0xb   : > { %700 = vmatpush1.bf16.msra.mxu0 (!%p140_p2), %v1881_v2  ;;  %1856 = vmatpush1.bf16.msra.mxu1 (!%p140_p2), %v1881_v2 }
   0xc   : > { %701 = vmatprep.subr.bf16.mxu0 (!%p140_p2), %v2000_v1  ;;  %1841 = vmatprep.subr.bf16.mxu1 (!%p140_p2), %v2000_v1 }
   0xd   : > { %s2296_s16 = smov (!%p165_p3, %s1431_s16), 255 }
   0xe   : > { %s1583_s23 = sshll.u32 %s2296_s16, 3  ;;  %s1435_s29 = sshll.u32 %s2296_s16, 2 }
   0xf   : > { %702 = vmatpush1.bf16.msra.mxu0 %v1882_v3  ;;  %1857 = vmatpush1.bf16.msra.mxu1 %v1882_v3  ;;  %s2058_s28 = scalar_lea.vmem %s2291_s0, %s1583_s23  ;;  %s2194_s4 = scalar_lea.vmem %s2294_s3, %s1435_s29 }
  0x10   : > { %703 = vmatprep.subr.bf16.mxu0 %v2000_v1  ;;  %1842 = vmatprep.subr.bf16.mxu1 %v2000_v1  ;;  %v1898_v6 = vld [vmem:[%s2058_s28 + $0x4] ss:$8 sps:$4 sm:$0xff]   ;;  %v1896_v19 = vld [vmem:[%s2058_s28] ss:$8 sps:$4 sm:$0xff]   ;;  %v1902_v21 = vld [vmem:[%s2058_s28 + $0x14] ss:$8 sps:$4 sm:$0xff]  }
  0x11   : > { %v1901_v8 = vld [vmem:[%s2058_s28 + $0x104] ss:$8 sps:$4 sm:$0xff]   ;;  %729 = vmatprep.mubr.bf16.mxu0 %v1898_v6  ;;  %v1899_v20 = vld [vmem:[%s2058_s28 + $0x100] ss:$8 sps:$4 sm:$0xff]   ;;  %v1904_v22 = vld [vmem:[%s2058_s28 + $0x114] ss:$8 sps:$4 sm:$0xff]  }
  0x12   : > { %857 = vmatprep.mubr.bf16.mxu1 %v1901_v8  ;;  %v1906_v23 = vld [vmem:[%s2058_s28 + $0x10] ss:$8 sps:$4 sm:$0xff]   ;;  %v1908_v25 = vld [vmem:[%s2058_s28 + $0x24] ss:$8 sps:$4 sm:$0xff]   ;;  %v1912_v27 = vld [vmem:[%s2058_s28 + $0x20] ss:$8 sps:$4 sm:$0xff]  }
  0x13   : > { %704 = vmatpush1.bf16.msra.mxu0 %v1883_v4  ;;  %1858 = vmatpush1.bf16.msra.mxu1 %v1883_v4  ;;  %v1907_v24 = vld [vmem:[%s2058_s28 + $0x110] ss:$8 sps:$4 sm:$0xff]   ;;  %v1910_v26 = vld [vmem:[%s2058_s28 + $0x124] ss:$8 sps:$4 sm:$0xff]   ;;  %v1913_v28 = vld [vmem:[%s2058_s28 + $0x120] ss:$8 sps:$4 sm:$0xff]  }
  0x14   : > { %705 = vmatprep.subr.bf16.mxu0 %v2000_v1  ;;  %1843 = vmatprep.subr.bf16.mxu1 %v2000_v1  ;;  %v1914_v29 = vld [vmem:[%s2058_s28 + $0x34] ss:$8 sps:$4 sm:$0xff]   ;;  %v1918_v31 = vld [vmem:[%s2058_s28 + $0x30] ss:$8 sps:$4 sm:$0xff]   ;;  %v1920_v33 = vld [vmem:[%s2058_s28 + $0x44] ss:$8 sps:$4 sm:$0xff]  }
  0x15   : > { %v1916_v30 = vld [vmem:[%s2058_s28 + $0x134] ss:$8 sps:$4 sm:$0xff]   ;;  %v1919_v32 = vld [vmem:[%s2058_s28 + $0x130] ss:$8 sps:$4 sm:$0xff]   ;;  %v1922_v34 = vld [vmem:[%s2058_s28 + $0x144] ss:$8 sps:$4 sm:$0xff]  }
  0x16   : > { %v1924_v35 = vld [vmem:[%s2058_s28 + $0x40] ss:$8 sps:$4 sm:$0xff]   ;;  %v1926_v37 = vld [vmem:[%s2058_s28 + $0x54] ss:$8 sps:$4 sm:$0xff]   ;;  %v1930_v39 = vld [vmem:[%s2058_s28 + $0x50] ss:$8 sps:$4 sm:$0xff]  }
  0x17   : > { %706 = vmatpush1.bf16.msra.mxu0 %v1884_v5  ;;  %1859 = vmatpush1.bf16.msra.mxu1 %v1884_v5  ;;  %v1925_v36 = vld [vmem:[%s2058_s28 + $0x140] ss:$8 sps:$4 sm:$0xff]   ;;  %v1928_v38 = vld [vmem:[%s2058_s28 + $0x154] ss:$8 sps:$4 sm:$0xff]   ;;  %v1931_v40 = vld [vmem:[%s2058_s28 + $0x150] ss:$8 sps:$4 sm:$0xff]  }
  0x18   : > { %707 = vmatprep.subr.bf16.mxu0 %v2000_v1  ;;  %1844 = vmatprep.subr.bf16.mxu1 %v2000_v1  ;;  %v1932_v41 = vld [vmem:[%s2058_s28 + $0x64] ss:$8 sps:$4 sm:$0xff]   ;;  %v1936_v43 = vld [vmem:[%s2058_s28 + $0x60] ss:$8 sps:$4 sm:$0xff]   ;;  %v1938_v45 = vld [vmem:[%s2058_s28 + $0x74] ss:$8 sps:$4 sm:$0xff]  }
  0x19   : > { %v1934_v42 = vld [vmem:[%s2058_s28 + $0x164] ss:$8 sps:$4 sm:$0xff]   ;;  %v1937_v44 = vld [vmem:[%s2058_s28 + $0x160] ss:$8 sps:$4 sm:$0xff]   ;;  %v1940_v46 = vld [vmem:[%s2058_s28 + $0x174] ss:$8 sps:$4 sm:$0xff]  }
  0x1a   : > { %v1942_v47 = vld [vmem:[%s2058_s28 + $0x70] ss:$8 sps:$4 sm:$0xff]   ;;  %v1944_v49 = vld [vmem:[%s2058_s28 + $0x84] ss:$8 sps:$4 sm:$0xff]   ;;  %v1948_v51 = vld [vmem:[%s2058_s28 + $0x80] ss:$8 sps:$4 sm:$0xff]  }
  0x1b   : > { %708 = vmatpush1.bf16.msra.mxu0 %v1885_v7  ;;  %1860 = vmatpush1.bf16.msra.mxu1 %v1885_v7  ;;  %v1943_v48 = vld [vmem:[%s2058_s28 + $0x170] ss:$8 sps:$4 sm:$0xff]   ;;  %v1946_v50 = vld [vmem:[%s2058_s28 + $0x184] ss:$8 sps:$4 sm:$0xff]   ;;  %v1949_v52 = vld [vmem:[%s2058_s28 + $0x180] ss:$8 sps:$4 sm:$0xff]  }
  0x1c   : > { %709 = vmatprep.subr.bf16.mxu0 %v2000_v1  ;;  %1845 = vmatprep.subr.bf16.mxu1 %v2000_v1  ;;  %v1950_v53 = vld [vmem:[%s2058_s28 + $0x94] ss:$8 sps:$4 sm:$0xff]   ;;  %v1954_v55 = vld [vmem:[%s2058_s28 + $0x90] ss:$8 sps:$4 sm:$0xff]   ;;  %v1956_v57 = vld [vmem:[%s2058_s28 + $0xa4] ss:$8 sps:$4 sm:$0xff]  }
  0x1d   : > { %v1952_v54 = vld [vmem:[%s2058_s28 + $0x194] ss:$8 sps:$4 sm:$0xff]   ;;  %v1955_v56 = vld [vmem:[%s2058_s28 + $0x190] ss:$8 sps:$4 sm:$0xff]   ;;  %v1958_v58 = vld [vmem:[%s2058_s28 + $0x1a4] ss:$8 sps:$4 sm:$0xff]  }
  0x1e   : > { %v1960_v59 = vld [vmem:[%s2058_s28 + $0xa0] ss:$8 sps:$4 sm:$0xff]   ;;  %v1962_v61 = vld [vmem:[%s2058_s28 + $0xb4] ss:$8 sps:$4 sm:$0xff]   ;;  %v1966_v63 = vld [vmem:[%s2058_s28 + $0xb0] ss:$8 sps:$4 sm:$0xff]  }
  0x1f   : > { %710 = vmatpush1.bf16.msra.mxu0 %v1886_v9  ;;  %1861 = vmatpush1.bf16.msra.mxu1 %v1886_v9  ;;  %v1961_v60 = vld [vmem:[%s2058_s28 + $0x1a0] ss:$8 sps:$4 sm:$0xff]   ;;  %v1964_v62 = vld [vmem:[%s2058_s28 + $0x1b4] ss:$8 sps:$4 sm:$0xff]   ;;  %v1967_v0 = vld [vmem:[%s2058_s28 + $0x1b0] ss:$8 sps:$4 sm:$0xff]  }
  0x20   : > { %711 = vmatprep.subr.bf16.mxu0 %v2000_v1  ;;  %1846 = vmatprep.subr.bf16.mxu1 %v2000_v1  ;;  %v1970_v2 = vld [vmem:[%s2058_s28 + $0x1c4] ss:$8 sps:$4 sm:$0xff]   ;;  %v1972_v3 = vld [vmem:[%s2058_s28 + $0xc0] ss:$8 sps:$4 sm:$0xff]   ;;  %v1974_v5 = vld [vmem:[%s2058_s28 + $0xd4] ss:$8 sps:$4 sm:$0xff]  }
  0x21   : > { %v1973_v4 = vld [vmem:[%s2058_s28 + $0x1c0] ss:$8 sps:$4 sm:$0xff]   ;;  %v1976_v6 = vld [vmem:[%s2058_s28 + $0x1d4] ss:$8 sps:$4 sm:$0xff]   ;;  %v1978_v7 = vld [vmem:[%s2058_s28 + $0xd0] ss:$8 sps:$4 sm:$0xff]  }
  0x22   : > { %v1979_v8 = vld [vmem:[%s2058_s28 + $0x1d0] ss:$8 sps:$4 sm:$0xff]   ;;  %v1980_v9 = vld [vmem:[%s2058_s28 + $0xe4] ss:$8 sps:$4 sm:$0xff]  }
  0x23   : > { %712 = vmatpush1.bf16.msra.mxu0 %v1887_v10  ;;  %1862 = vmatpush1.bf16.msra.mxu1 %v1887_v10  ;;  %v1982_v10 = vld [vmem:[%s2058_s28 + $0x1e4] ss:$8 sps:$4 sm:$0xff]  }
  0x24   : > { %713 = vmatprep.subr.bf16.mxu0 %v2000_v1  ;;  %1847 = vmatprep.subr.bf16.mxu1 %v2000_v1 }
  0x27   : > { %714 = vmatpush1.bf16.msra.mxu0 %v1888_v11  ;;  %1863 = vmatpush1.bf16.msra.mxu1 %v1888_v11  ;;  %v1984_v11 = vld [vmem:[%s2058_s28 + $0xe0] ss:$8 sps:$4 sm:$0xff]  }
  0x28   : > { %715 = vmatprep.subr.bf16.mxu0 %v2000_v1  ;;  %1848 = vmatprep.subr.bf16.mxu1 %v2000_v1 }
  0x2b   : > { %716 = vmatpush1.bf16.msra.mxu0 %v1889_v12  ;;  %1864 = vmatpush1.bf16.msra.mxu1 %v1889_v12  ;;  %v1985_v12 = vld [vmem:[%s2058_s28 + $0x1e0] ss:$8 sps:$4 sm:$0xff]  }
  0x2c   : > { %717 = vmatprep.subr.bf16.mxu0 %v2000_v1  ;;  %1849 = vmatprep.subr.bf16.mxu1 %v2000_v1 }
  0x2f   : > { %718 = vmatpush1.bf16.msra.mxu0 %v1890_v13  ;;  %1865 = vmatpush1.bf16.msra.mxu1 %v1890_v13  ;;  %v1986_v13 = vld [vmem:[%s2058_s28 + $0xf4] ss:$8 sps:$4 sm:$0xff]  }
  0x30   : > { %719 = vmatprep.subr.bf16.mxu0 %v2000_v1  ;;  %1850 = vmatprep.subr.bf16.mxu1 %v2000_v1 }
  0x33   : > { %720 = vmatpush1.bf16.msra.mxu0 %v1891_v14  ;;  %1866 = vmatpush1.bf16.msra.mxu1 %v1891_v14  ;;  %v1988_v14 = vld [vmem:[%s2058_s28 + $0x1f4] ss:$8 sps:$4 sm:$0xff]  }
  0x34   : > { %721 = vmatprep.subr.bf16.mxu0 %v2000_v1  ;;  %1851 = vmatprep.subr.bf16.mxu1 %v2000_v1 }
  0x37   : > { %722 = vmatpush1.bf16.msra.mxu0 %v1892_v15  ;;  %1867 = vmatpush1.bf16.msra.mxu1 %v1892_v15  ;;  %v1990_v15 = vld [vmem:[%s2058_s28 + $0xf0] ss:$8 sps:$4 sm:$0xff]  }
  0x38   : > { %723 = vmatprep.subr.bf16.mxu0 %v2000_v1  ;;  %1852 = vmatprep.subr.bf16.mxu1 %v2000_v1 }
  0x3b   : > { %724 = vmatpush1.bf16.msra.mxu0 %v1893_v16  ;;  %1868 = vmatpush1.bf16.msra.mxu1 %v1893_v16  ;;  %v1991_v16 = vld [vmem:[%s2058_s28 + $0x1f0] ss:$8 sps:$4 sm:$0xff]  }
  0x3c   : > { %725 = vmatprep.subr.bf16.mxu0 %v2000_v1  ;;  %1853 = vmatprep.subr.bf16.mxu1 %v2000_v1 }
  0x3f   : > { %726 = vmatpush1.bf16.msra.mxu0 %v1894_v17  ;;  %1869 = vmatpush1.bf16.msra.mxu1 %v1894_v17  ;;  %v2184_v17 = vld [vmem:[%s2293_s2] ss:$0 sm:$0xff] }
  0x40   : > { %727 = vmatprep.subr.bf16.mxu0 %v2000_v1  ;;  %1854 = vmatprep.subr.bf16.mxu1 %v2000_v1  ;;  %v1968_v1 = vld [vmem:[%s2058_s28 + $0xc4] ss:$8 sps:$4 sm:$0xff]  }
  0x43   : > { %728 = vmatpush1.bf16.msra.mxu0 %v1895_v18  ;;  %1870 = vmatpush1.bf16.msra.mxu1 %v1895_v18 }
  0x46   : > { %730 = vmatmul.mubr.bf16.vlgmr.msra.gmra.mrb[0].mxu0 %v1896_v19  ;;  %858 = vmatmul.mubr.bf16.vlgmr.msra.gmra.mrb[0].mxu1 %v1899_v20 }
  0x47   : > { %737 = vmatprep.mubr.bf16.mxu0 %v1902_v21  ;;  %865 = vmatprep.mubr.bf16.mxu1 %v1904_v22 }
  0x4e   : > { %738 = vmatmul.mubr.bf16.gmra.mrb[4].mxu0 %v1906_v23  ;;  %866 = vmatmul.mubr.bf16.gmra.mrb[4].mxu1 %v1907_v24 }
  0x4f   : > { %745 = vmatprep.mubr.bf16.mxu0 %v1908_v25  ;;  %873 = vmatprep.mubr.bf16.mxu1 %v1910_v26 }
  0x56   : > { %746 = vmatmul.mubr.bf16.gmra.mrb[8].mxu0 %v1912_v27  ;;  %874 = vmatmul.mubr.bf16.gmra.mrb[8].mxu1 %v1913_v28 }
  0x57   : > { %753 = vmatprep.mubr.bf16.mxu0 %v1914_v29  ;;  %881 = vmatprep.mubr.bf16.mxu1 %v1916_v30 }
  0x5e   : > { %754 = vmatmul.mubr.bf16.gmra.mrb[12].mxu0 %v1918_v31  ;;  %882 = vmatmul.mubr.bf16.gmra.mrb[12].mxu1 %v1919_v32 }
  0x5f   : > { %761 = vmatprep.mubr.bf16.mxu0 %v1920_v33  ;;  %889 = vmatprep.mubr.bf16.mxu1 %v1922_v34 }
  0x66   : > { %762 = vmatmul.mubr.bf16.gmra.mrb[16].mxu0 %v1924_v35  ;;  %890 = vmatmul.mubr.bf16.gmra.mrb[16].mxu1 %v1925_v36 }
  0x67   : > { %769 = vmatprep.mubr.bf16.mxu0 %v1926_v37  ;;  %897 = vmatprep.mubr.bf16.mxu1 %v1928_v38 }
  0x6e   : > { %770 = vmatmul.mubr.bf16.gmra.mrb[20].mxu0 %v1930_v39  ;;  %898 = vmatmul.mubr.bf16.gmra.mrb[20].mxu1 %v1931_v40 }
  0x6f   : > { %777 = vmatprep.mubr.bf16.mxu0 %v1932_v41  ;;  %905 = vmatprep.mubr.bf16.mxu1 %v1934_v42 }
  0x76   : > { %778 = vmatmul.mubr.bf16.gmra.mrb[24].mxu0 %v1936_v43  ;;  %906 = vmatmul.mubr.bf16.gmra.mrb[24].mxu1 %v1937_v44 }
  0x77   : > { %785 = vmatprep.mubr.bf16.mxu0 %v1938_v45  ;;  %913 = vmatprep.mubr.bf16.mxu1 %v1940_v46 }
  0x7e   : > { %786 = vmatmul.mubr.bf16.gmra.mrb[28].mxu0 %v1942_v47  ;;  %914 = vmatmul.mubr.bf16.gmra.mrb[28].mxu1 %v1943_v48 }
  0x7f   : > { %793 = vmatprep.mubr.bf16.mxu0 %v1944_v49  ;;  %921 = vmatprep.mubr.bf16.mxu1 %v1946_v50 }
  0x86   : > { %794 = vmatmul.mubr.bf16.gmra.mrb[32].mxu0 %v1948_v51  ;;  %922 = vmatmul.mubr.bf16.gmra.mrb[32].mxu1 %v1949_v52 }
  0x87   : > { %801 = vmatprep.mubr.bf16.mxu0 %v1950_v53  ;;  %929 = vmatprep.mubr.bf16.mxu1 %v1952_v54 }
  0x8e   : > { %802 = vmatmul.mubr.bf16.gmra.mrb[36].mxu0 %v1954_v55  ;;  %930 = vmatmul.mubr.bf16.gmra.mrb[36].mxu1 %v1955_v56 }
  0x8f   : > { %809 = vmatprep.mubr.bf16.mxu0 %v1956_v57  ;;  %937 = vmatprep.mubr.bf16.mxu1 %v1958_v58 }
  0x96   : > { %810 = vmatmul.mubr.bf16.gmra.mrb[40].mxu0 %v1960_v59  ;;  %938 = vmatmul.mubr.bf16.gmra.mrb[40].mxu1 %v1961_v60 }
  0x97   : > { %817 = vmatprep.mubr.bf16.mxu0 %v1962_v61  ;;  %945 = vmatprep.mubr.bf16.mxu1 %v1964_v62 }
  0x9e   : > { %818 = vmatmul.mubr.bf16.gmra.mrb[44].mxu0 %v1966_v63  ;;  %946 = vmatmul.mubr.bf16.gmra.mrb[44].mxu1 %v1967_v0 }
  0x9f   : > { %825 = vmatprep.mubr.bf16.mxu0 %v1968_v1  ;;  %953 = vmatprep.mubr.bf16.mxu1 %v1970_v2 }
  0xa6   : > { %826 = vmatmul.mubr.bf16.gmra.mrb[48].mxu0 %v1972_v3  ;;  %954 = vmatmul.mubr.bf16.gmra.mrb[48].mxu1 %v1973_v4 }
  0xa7   : > { %833 = vmatprep.mubr.bf16.mxu0 %v1974_v5  ;;  %961 = vmatprep.mubr.bf16.mxu1 %v1976_v6 }
  0xae   : > { %834 = vmatmul.mubr.bf16.gmra.mrb[52].mxu0 %v1978_v7  ;;  %962 = vmatmul.mubr.bf16.gmra.mrb[52].mxu1 %v1979_v8 }
  0xaf   : > { %841 = vmatprep.mubr.bf16.mxu0 %v1980_v9  ;;  %969 = vmatprep.mubr.bf16.mxu1 %v1982_v10 }
  0xb6   : > { %842 = vmatmul.mubr.bf16.gmra.mrb[56].mxu0 %v1984_v11  ;;  %970 = vmatmul.mubr.bf16.gmra.mrb[56].mxu1 %v1985_v12 }
  0xb7   : > { %849 = vmatprep.mubr.bf16.mxu0 %v1986_v13  ;;  %977 = vmatprep.mubr.bf16.mxu1 %v1988_v14 }
  0xbe   : > { %850 = vmatmul.mubr.bf16.gmra.mrb[60].mxu0 %v1990_v15  ;;  %978 = vmatmul.mubr.bf16.gmra.mrb[60].mxu1 %v1991_v16 }
 0x119   : > { %v731_v18 = vpop.f32.mrb[0].mxu0  ;;  %v859_v19 = vpop.f32.mrb[0].mxu1 }
 0x11a   : > { %v732_v20 = vadd.f32 %v2184_v17, %v731_v18  ;;  %v860_v21 = vadd.f32 %v2184_v17, %v859_v19  ;;  %v733_v22 = vpop.f32.mrb[1].mxu0  ;;  %v861_v23 = vpop.f32.mrb[1].mxu1 }
 0x11b   : > { %v734_v24 = vpop.f32.mrb[2].mxu0  ;;  %v862_v25 = vpop.f32.mrb[2].mxu1 }
 0x11c   : > { %v735_v26 = vadd.f32 %v2184_v17, %v734_v24  ;;  %v863_v27 = vadd.f32 %v2184_v17, %v862_v25  ;;  %v736_v28 = vpop.f32.mrb[3].mxu0  ;;  %v864_v29 = vpop.f32.mrb[3].mxu1  ;;  %v986_v30 = vmax.f32 %v732_v20, 0.0  ;;  %v1018_v31 = vmax.f32 %v860_v21, 0.0 }
 0x11e   : > { %v987_v32 = vmax.f32 %v735_v26, 0.0  ;;  %v1019_v33 = vmax.f32 %v863_v27, 0.0 }
 0x120   : > { %v1651_v34 = vpack.c.bf16 %v987_v32, %v986_v30  ;;  %v1731_v35 = vpack.c.bf16 %v1019_v33, %v1018_v31 }
 0x121   : > { %v739_v36 = vpop.f32.mrb[4].mxu0  ;;  %v867_v37 = vpop.f32.mrb[4].mxu1 }
 0x122   : > { %1652 = vst [vmem:[%s2194_s4] sm:$0xff] %v1651_v34   ;;  %1823 = vst [vmem:[%s2194_s4 + $0x80] sm:$0xff] %v1731_v35   ;;  %v740_v38 = vadd.f32 %v2184_v17, %v739_v36  ;;  %v868_v39 = vadd.f32 %v2184_v17, %v867_v37  ;;  %v741_v40 = vpop.f32.mrb[5].mxu0  ;;  %v869_v41 = vpop.f32.mrb[5].mxu1 }
 0x123   : > { %v742_v42 = vpop.f32.mrb[6].mxu0  ;;  %v870_v43 = vpop.f32.mrb[6].mxu1 }
 0x124   : > { %v743_v44 = vadd.f32 %v2184_v17, %v742_v42  ;;  %v871_v45 = vadd.f32 %v2184_v17, %v870_v43  ;;  %v744_v46 = vpop.f32.mrb[7].mxu0  ;;  %v872_v47 = vpop.f32.mrb[7].mxu1  ;;  %v988_v48 = vmax.f32 %v740_v38, 0.0  ;;  %v1020_v49 = vmax.f32 %v868_v39, 0.0 }
 0x126   : > { %v989_v50 = vmax.f32 %v743_v44, 0.0  ;;  %v1021_v51 = vmax.f32 %v871_v45, 0.0 }
 0x128   : > { %v1656_v52 = vpack.c.bf16 %v989_v50, %v988_v48  ;;  %v1736_v53 = vpack.c.bf16 %v1021_v51, %v1020_v49 }
 0x129   : > { %v747_v54 = vpop.f32.mrb[8].mxu0  ;;  %v875_v55 = vpop.f32.mrb[8].mxu1 }
 0x12a   : > { %1808 = vst [vmem:[%s2194_s4 + $0x8] sm:$0xff] %v1656_v52   ;;  %1824 = vst [vmem:[%s2194_s4 + $0x88] sm:$0xff] %v1736_v53   ;;  %v748_v56 = vadd.f32 %v2184_v17, %v747_v54  ;;  %v876_v57 = vadd.f32 %v2184_v17, %v875_v55  ;;  %v749_v58 = vpop.f32.mrb[9].mxu0  ;;  %v877_v59 = vpop.f32.mrb[9].mxu1 }
 0x12b   : > { %v750_v60 = vpop.f32.mrb[10].mxu0  ;;  %v878_v61 = vpop.f32.mrb[10].mxu1 }
 0x12c   : > { %v751_v62 = vadd.f32 %v2184_v17, %v750_v60  ;;  %v879_v63 = vadd.f32 %v2184_v17, %v878_v61  ;;  %v752_v0 = vpop.f32.mrb[11].mxu0  ;;  %v880_v1 = vpop.f32.mrb[11].mxu1  ;;  %v990_v2 = vmax.f32 %v748_v56, 0.0  ;;  %v1022_v3 = vmax.f32 %v876_v57, 0.0 }
 0x12e   : > { %v991_v4 = vmax.f32 %v751_v62, 0.0  ;;  %v1023_v5 = vmax.f32 %v879_v63, 0.0 }
 0x130   : > { %v1661_v6 = vpack.c.bf16 %v991_v4, %v990_v2  ;;  %v1741_v7 = vpack.c.bf16 %v1023_v5, %v1022_v3 }
 0x131   : > { %v755_v8 = vpop.f32.mrb[12].mxu0  ;;  %v883_v9 = vpop.f32.mrb[12].mxu1 }
 0x132   : > { %1809 = vst [vmem:[%s2194_s4 + $0x10] sm:$0xff] %v1661_v6   ;;  %1825 = vst [vmem:[%s2194_s4 + $0x90] sm:$0xff] %v1741_v7   ;;  %v756_v10 = vadd.f32 %v2184_v17, %v755_v8  ;;  %v884_v11 = vadd.f32 %v2184_v17, %v883_v9  ;;  %v757_v12 = vpop.f32.mrb[13].mxu0  ;;  %v885_v13 = vpop.f32.mrb[13].mxu1 }
 0x133   : > { %v758_v14 = vpop.f32.mrb[14].mxu0  ;;  %v886_v15 = vpop.f32.mrb[14].mxu1 }
 0x134   : > { %v759_v16 = vadd.f32 %v2184_v17, %v758_v14  ;;  %v887_v18 = vadd.f32 %v2184_v17, %v886_v15  ;;  %v760_v19 = vpop.f32.mrb[15].mxu0  ;;  %v888_v20 = vpop.f32.mrb[15].mxu1  ;;  %v992_v21 = vmax.f32 %v756_v10, 0.0  ;;  %v1024_v22 = vmax.f32 %v884_v11, 0.0 }
 0x136   : > { %v993_v23 = vmax.f32 %v759_v16, 0.0  ;;  %v1025_v24 = vmax.f32 %v887_v18, 0.0 }
 0x138   : > { %v1666_v25 = vpack.c.bf16 %v993_v23, %v992_v21  ;;  %v1746_v26 = vpack.c.bf16 %v1025_v24, %v1024_v22 }
 0x139   : > { %v763_v27 = vpop.f32.mrb[16].mxu0  ;;  %v891_v28 = vpop.f32.mrb[16].mxu1 }
 0x13a   : > { %1810 = vst [vmem:[%s2194_s4 + $0x18] sm:$0xff] %v1666_v25   ;;  %1826 = vst [vmem:[%s2194_s4 + $0x98] sm:$0xff] %v1746_v26   ;;  %v764_v29 = vadd.f32 %v2184_v17, %v763_v27  ;;  %v892_v30 = vadd.f32 %v2184_v17, %v891_v28  ;;  %v765_v31 = vpop.f32.mrb[17].mxu0  ;;  %v893_v32 = vpop.f32.mrb[17].mxu1 }
 0x13b   : > { %v766_v33 = vpop.f32.mrb[18].mxu0  ;;  %v894_v34 = vpop.f32.mrb[18].mxu1 }
 0x13c   : > { %v767_v35 = vadd.f32 %v2184_v17, %v766_v33  ;;  %v895_v36 = vadd.f32 %v2184_v17, %v894_v34  ;;  %v768_v37 = vpop.f32.mrb[19].mxu0  ;;  %v896_v38 = vpop.f32.mrb[19].mxu1  ;;  %v994_v39 = vmax.f32 %v764_v29, 0.0  ;;  %v1026_v40 = vmax.f32 %v892_v30, 0.0 }
 0x13e   : > { %v995_v41 = vmax.f32 %v767_v35, 0.0  ;;  %v1027_v42 = vmax.f32 %v895_v36, 0.0 }
 0x140   : > { %v1671_v43 = vpack.c.bf16 %v995_v41, %v994_v39  ;;  %v1751_v44 = vpack.c.bf16 %v1027_v42, %v1026_v40 }
 0x141   : > { %v771_v45 = vpop.f32.mrb[20].mxu0  ;;  %v899_v46 = vpop.f32.mrb[20].mxu1 }
 0x142   : > { %1811 = vst [vmem:[%s2194_s4 + $0x20] sm:$0xff] %v1671_v43   ;;  %1827 = vst [vmem:[%s2194_s4 + $0xa0] sm:$0xff] %v1751_v44   ;;  %v772_v47 = vadd.f32 %v2184_v17, %v771_v45  ;;  %v900_v48 = vadd.f32 %v2184_v17, %v899_v46  ;;  %v773_v49 = vpop.f32.mrb[21].mxu0  ;;  %v901_v50 = vpop.f32.mrb[21].mxu1 }
 0x143   : > { %v774_v51 = vpop.f32.mrb[22].mxu0  ;;  %v902_v52 = vpop.f32.mrb[22].mxu1 }
 0x144   : > { %v775_v53 = vadd.f32 %v2184_v17, %v774_v51  ;;  %v903_v54 = vadd.f32 %v2184_v17, %v902_v52  ;;  %v776_v55 = vpop.f32.mrb[23].mxu0  ;;  %v904_v56 = vpop.f32.mrb[23].mxu1  ;;  %v996_v57 = vmax.f32 %v772_v47, 0.0  ;;  %v1028_v58 = vmax.f32 %v900_v48, 0.0 }
 0x146   : > { %v997_v59 = vmax.f32 %v775_v53, 0.0  ;;  %v1029_v60 = vmax.f32 %v903_v54, 0.0 }
 0x148   : > { %v1676_v61 = vpack.c.bf16 %v997_v59, %v996_v57  ;;  %v1756_v62 = vpack.c.bf16 %v1029_v60, %v1028_v58 }
 0x149   : > { %v779_v63 = vpop.f32.mrb[24].mxu0  ;;  %v907_v0 = vpop.f32.mrb[24].mxu1 }
 0x14a   : > { %1812 = vst [vmem:[%s2194_s4 + $0x28] sm:$0xff] %v1676_v61   ;;  %1828 = vst [vmem:[%s2194_s4 + $0xa8] sm:$0xff] %v1756_v62   ;;  %v780_v1 = vadd.f32 %v2184_v17, %v779_v63  ;;  %v908_v2 = vadd.f32 %v2184_v17, %v907_v0  ;;  %v781_v3 = vpop.f32.mrb[25].mxu0  ;;  %v909_v4 = vpop.f32.mrb[25].mxu1 }
 0x14b   : > { %v782_v5 = vpop.f32.mrb[26].mxu0  ;;  %v910_v6 = vpop.f32.mrb[26].mxu1 }
 0x14c   : > { %v783_v7 = vadd.f32 %v2184_v17, %v782_v5  ;;  %v911_v8 = vadd.f32 %v2184_v17, %v910_v6  ;;  %v784_v9 = vpop.f32.mrb[27].mxu0  ;;  %v912_v10 = vpop.f32.mrb[27].mxu1  ;;  %v998_v11 = vmax.f32 %v780_v1, 0.0  ;;  %v1030_v12 = vmax.f32 %v908_v2, 0.0 }
 0x14e   : > { %v999_v13 = vmax.f32 %v783_v7, 0.0  ;;  %v1031_v14 = vmax.f32 %v911_v8, 0.0 }
 0x150   : > { %v1681_v15 = vpack.c.bf16 %v999_v13, %v998_v11  ;;  %v1761_v16 = vpack.c.bf16 %v1031_v14, %v1030_v12 }
 0x151   : > { %v787_v18 = vpop.f32.mrb[28].mxu0  ;;  %v915_v19 = vpop.f32.mrb[28].mxu1 }
 0x152   : > { %1813 = vst [vmem:[%s2194_s4 + $0x30] sm:$0xff] %v1681_v15   ;;  %1829 = vst [vmem:[%s2194_s4 + $0xb0] sm:$0xff] %v1761_v16   ;;  %v788_v20 = vadd.f32 %v2184_v17, %v787_v18  ;;  %v916_v21 = vadd.f32 %v2184_v17, %v915_v19  ;;  %v789_v22 = vpop.f32.mrb[29].mxu0  ;;  %v917_v23 = vpop.f32.mrb[29].mxu1 }
 0x153   : > { %v790_v24 = vpop.f32.mrb[30].mxu0  ;;  %v918_v25 = vpop.f32.mrb[30].mxu1 }
 0x154   : > { %v791_v26 = vadd.f32 %v2184_v17, %v790_v24  ;;  %v919_v27 = vadd.f32 %v2184_v17, %v918_v25  ;;  %v792_v28 = vpop.f32.mrb[31].mxu0  ;;  %v920_v29 = vpop.f32.mrb[31].mxu1  ;;  %v1000_v30 = vmax.f32 %v788_v20, 0.0  ;;  %v1032_v31 = vmax.f32 %v916_v21, 0.0 }
 0x156   : > { %v1001_v32 = vmax.f32 %v791_v26, 0.0  ;;  %v1033_v33 = vmax.f32 %v919_v27, 0.0 }
 0x158   : > { %v1686_v34 = vpack.c.bf16 %v1001_v32, %v1000_v30  ;;  %v1766_v35 = vpack.c.bf16 %v1033_v33, %v1032_v31 }
 0x159   : > { %v795_v36 = vpop.f32.mrb[32].mxu0  ;;  %v923_v37 = vpop.f32.mrb[32].mxu1 }
 0x15a   : > { %1814 = vst [vmem:[%s2194_s4 + $0x38] sm:$0xff] %v1686_v34   ;;  %1830 = vst [vmem:[%s2194_s4 + $0xb8] sm:$0xff] %v1766_v35   ;;  %v796_v38 = vadd.f32 %v2184_v17, %v795_v36  ;;  %v924_v39 = vadd.f32 %v2184_v17, %v923_v37  ;;  %v797_v40 = vpop.f32.mrb[33].mxu0  ;;  %v925_v41 = vpop.f32.mrb[33].mxu1 }
 0x15b   : > { %v798_v42 = vpop.f32.mrb[34].mxu0  ;;  %v926_v43 = vpop.f32.mrb[34].mxu1 }
 0x15c   : > { %v799_v44 = vadd.f32 %v2184_v17, %v798_v42  ;;  %v927_v45 = vadd.f32 %v2184_v17, %v926_v43  ;;  %v800_v46 = vpop.f32.mrb[35].mxu0  ;;  %v928_v47 = vpop.f32.mrb[35].mxu1  ;;  %v1002_v48 = vmax.f32 %v796_v38, 0.0  ;;  %v1034_v49 = vmax.f32 %v924_v39, 0.0 }
 0x15e   : > { %v1003_v50 = vmax.f32 %v799_v44, 0.0  ;;  %v1035_v51 = vmax.f32 %v927_v45, 0.0 }
 0x160   : > { %v1691_v52 = vpack.c.bf16 %v1003_v50, %v1002_v48  ;;  %v1771_v53 = vpack.c.bf16 %v1035_v51, %v1034_v49 }
 0x161   : > { %v803_v54 = vpop.f32.mrb[36].mxu0  ;;  %v931_v55 = vpop.f32.mrb[36].mxu1 }
 0x162   : > { %1815 = vst [vmem:[%s2194_s4 + $0x40] sm:$0xff] %v1691_v52   ;;  %1831 = vst [vmem:[%s2194_s4 + $0xc0] sm:$0xff] %v1771_v53   ;;  %v804_v56 = vadd.f32 %v2184_v17, %v803_v54  ;;  %v932_v57 = vadd.f32 %v2184_v17, %v931_v55  ;;  %v805_v58 = vpop.f32.mrb[37].mxu0  ;;  %v933_v59 = vpop.f32.mrb[37].mxu1 }
 0x163   : > { %v806_v60 = vpop.f32.mrb[38].mxu0  ;;  %v934_v61 = vpop.f32.mrb[38].mxu1 }
 0x164   : > { %v807_v62 = vadd.f32 %v2184_v17, %v806_v60  ;;  %v935_v63 = vadd.f32 %v2184_v17, %v934_v61  ;;  %v808_v0 = vpop.f32.mrb[39].mxu0  ;;  %v936_v1 = vpop.f32.mrb[39].mxu1  ;;  %v1004_v2 = vmax.f32 %v804_v56, 0.0  ;;  %v1036_v3 = vmax.f32 %v932_v57, 0.0 }
 0x166   : > { %v1005_v4 = vmax.f32 %v807_v62, 0.0  ;;  %v1037_v5 = vmax.f32 %v935_v63, 0.0 }
 0x168   : > { %v1696_v6 = vpack.c.bf16 %v1005_v4, %v1004_v2  ;;  %v1776_v7 = vpack.c.bf16 %v1037_v5, %v1036_v3 }
 0x169   : > { %v811_v8 = vpop.f32.mrb[40].mxu0  ;;  %v939_v9 = vpop.f32.mrb[40].mxu1 }
 0x16a   : > { %1816 = vst [vmem:[%s2194_s4 + $0x48] sm:$0xff] %v1696_v6   ;;  %1832 = vst [vmem:[%s2194_s4 + $0xc8] sm:$0xff] %v1776_v7   ;;  %v812_v10 = vadd.f32 %v2184_v17, %v811_v8  ;;  %v940_v11 = vadd.f32 %v2184_v17, %v939_v9  ;;  %v813_v12 = vpop.f32.mrb[41].mxu0  ;;  %v941_v13 = vpop.f32.mrb[41].mxu1 }
 0x16b   : > { %v814_v14 = vpop.f32.mrb[42].mxu0  ;;  %v942_v15 = vpop.f32.mrb[42].mxu1 }
 0x16c   : > { %v815_v16 = vadd.f32 %v2184_v17, %v814_v14  ;;  %v943_v18 = vadd.f32 %v2184_v17, %v942_v15  ;;  %v816_v19 = vpop.f32.mrb[43].mxu0  ;;  %v944_v20 = vpop.f32.mrb[43].mxu1  ;;  %v1006_v21 = vmax.f32 %v812_v10, 0.0  ;;  %v1038_v22 = vmax.f32 %v940_v11, 0.0 }
 0x16e   : > { %v1007_v23 = vmax.f32 %v815_v16, 0.0  ;;  %v1039_v24 = vmax.f32 %v943_v18, 0.0 }
 0x170   : > { %v1701_v25 = vpack.c.bf16 %v1007_v23, %v1006_v21  ;;  %v1781_v26 = vpack.c.bf16 %v1039_v24, %v1038_v22 }
 0x171   : > { %v819_v27 = vpop.f32.mrb[44].mxu0  ;;  %v947_v28 = vpop.f32.mrb[44].mxu1 }
 0x172   : > { %1817 = vst [vmem:[%s2194_s4 + $0x50] sm:$0xff] %v1701_v25   ;;  %1833 = vst [vmem:[%s2194_s4 + $0xd0] sm:$0xff] %v1781_v26   ;;  %v820_v29 = vadd.f32 %v2184_v17, %v819_v27  ;;  %v948_v30 = vadd.f32 %v2184_v17, %v947_v28  ;;  %v821_v31 = vpop.f32.mrb[45].mxu0  ;;  %v949_v32 = vpop.f32.mrb[45].mxu1 }
 0x173   : > { %v822_v33 = vpop.f32.mrb[46].mxu0  ;;  %v950_v34 = vpop.f32.mrb[46].mxu1 }
 0x174   : > { %v823_v35 = vadd.f32 %v2184_v17, %v822_v33  ;;  %v951_v36 = vadd.f32 %v2184_v17, %v950_v34  ;;  %v824_v37 = vpop.f32.mrb[47].mxu0  ;;  %v952_v38 = vpop.f32.mrb[47].mxu1  ;;  %v1008_v39 = vmax.f32 %v820_v29, 0.0  ;;  %v1040_v40 = vmax.f32 %v948_v30, 0.0 }
 0x176   : > { %v1009_v41 = vmax.f32 %v823_v35, 0.0  ;;  %v1041_v42 = vmax.f32 %v951_v36, 0.0 }
 0x178   : > { %v1706_v43 = vpack.c.bf16 %v1009_v41, %v1008_v39  ;;  %v1786_v44 = vpack.c.bf16 %v1041_v42, %v1040_v40 }
 0x179   : > { %v827_v45 = vpop.f32.mrb[48].mxu0  ;;  %v955_v46 = vpop.f32.mrb[48].mxu1 }
 0x17a   : > { %1818 = vst [vmem:[%s2194_s4 + $0x58] sm:$0xff] %v1706_v43   ;;  %1834 = vst [vmem:[%s2194_s4 + $0xd8] sm:$0xff] %v1786_v44   ;;  %v828_v47 = vadd.f32 %v2184_v17, %v827_v45  ;;  %v956_v48 = vadd.f32 %v2184_v17, %v955_v46  ;;  %v829_v49 = vpop.f32.mrb[49].mxu0  ;;  %v957_v50 = vpop.f32.mrb[49].mxu1 }
 0x17b   : > { %v830_v51 = vpop.f32.mrb[50].mxu0  ;;  %v958_v52 = vpop.f32.mrb[50].mxu1 }
 0x17c   : > { %v831_v53 = vadd.f32 %v2184_v17, %v830_v51  ;;  %v959_v54 = vadd.f32 %v2184_v17, %v958_v52  ;;  %v832_v55 = vpop.f32.mrb[51].mxu0  ;;  %v960_v56 = vpop.f32.mrb[51].mxu1  ;;  %v1010_v57 = vmax.f32 %v828_v47, 0.0  ;;  %v1042_v58 = vmax.f32 %v956_v48, 0.0 }
 0x17e   : > { %v1011_v59 = vmax.f32 %v831_v53, 0.0  ;;  %v1043_v60 = vmax.f32 %v959_v54, 0.0 }
 0x180   : > { %v1711_v61 = vpack.c.bf16 %v1011_v59, %v1010_v57  ;;  %v1791_v62 = vpack.c.bf16 %v1043_v60, %v1042_v58 }
 0x181   : > { %v835_v63 = vpop.f32.mrb[52].mxu0  ;;  %v963_v0 = vpop.f32.mrb[52].mxu1 }
 0x182   : > { %1819 = vst [vmem:[%s2194_s4 + $0x60] sm:$0xff] %v1711_v61   ;;  %1835 = vst [vmem:[%s2194_s4 + $0xe0] sm:$0xff] %v1791_v62   ;;  %v836_v1 = vadd.f32 %v2184_v17, %v835_v63  ;;  %v964_v2 = vadd.f32 %v2184_v17, %v963_v0  ;;  %v837_v3 = vpop.f32.mrb[53].mxu0  ;;  %v965_v4 = vpop.f32.mrb[53].mxu1 }
 0x183   : > { %v838_v5 = vpop.f32.mrb[54].mxu0  ;;  %v966_v6 = vpop.f32.mrb[54].mxu1 }
 0x184   : > { %v839_v7 = vadd.f32 %v2184_v17, %v838_v5  ;;  %v967_v8 = vadd.f32 %v2184_v17, %v966_v6  ;;  %v840_v9 = vpop.f32.mrb[55].mxu0  ;;  %v968_v10 = vpop.f32.mrb[55].mxu1  ;;  %v1012_v11 = vmax.f32 %v836_v1, 0.0  ;;  %v1044_v12 = vmax.f32 %v964_v2, 0.0 }
 0x186   : > { %v1013_v13 = vmax.f32 %v839_v7, 0.0  ;;  %v1045_v14 = vmax.f32 %v967_v8, 0.0 }
 0x188   : > { %v1716_v15 = vpack.c.bf16 %v1013_v13, %v1012_v11  ;;  %v1796_v16 = vpack.c.bf16 %v1045_v14, %v1044_v12 }
 0x189   : > { %v843_v18 = vpop.f32.mrb[56].mxu0  ;;  %v971_v19 = vpop.f32.mrb[56].mxu1 }
 0x18a   : > { %1820 = vst [vmem:[%s2194_s4 + $0x68] sm:$0xff] %v1716_v15   ;;  %1836 = vst [vmem:[%s2194_s4 + $0xe8] sm:$0xff] %v1796_v16   ;;  %v844_v20 = vadd.f32 %v2184_v17, %v843_v18  ;;  %v972_v21 = vadd.f32 %v2184_v17, %v971_v19  ;;  %v845_v22 = vpop.f32.mrb[57].mxu0  ;;  %v973_v23 = vpop.f32.mrb[57].mxu1 }
 0x18b   : > { %v846_v24 = vpop.f32.mrb[58].mxu0  ;;  %v974_v25 = vpop.f32.mrb[58].mxu1 }
 0x18c   : > { %v847_v26 = vadd.f32 %v2184_v17, %v846_v24  ;;  %v975_v27 = vadd.f32 %v2184_v17, %v974_v25  ;;  %v848_v28 = vpop.f32.mrb[59].mxu0  ;;  %v976_v29 = vpop.f32.mrb[59].mxu1  ;;  %v1014_v30 = vmax.f32 %v844_v20, 0.0  ;;  %v1046_v31 = vmax.f32 %v972_v21, 0.0 }
 0x18e   : > { %v1015_v32 = vmax.f32 %v847_v26, 0.0  ;;  %v1047_v33 = vmax.f32 %v975_v27, 0.0 }
 0x190   : > { %v1721_v34 = vpack.c.bf16 %v1015_v32, %v1014_v30  ;;  %v1801_v35 = vpack.c.bf16 %v1047_v33, %v1046_v31 }
 0x191   : > { %v851_v36 = vpop.f32.mrb[60].mxu0  ;;  %v979_v37 = vpop.f32.mrb[60].mxu1 }
 0x192   : > { %1821 = vst [vmem:[%s2194_s4 + $0x70] sm:$0xff] %v1721_v34   ;;  %1837 = vst [vmem:[%s2194_s4 + $0xf0] sm:$0xff] %v1801_v35   ;;  %v852_v38 = vadd.f32 %v2184_v17, %v851_v36  ;;  %v980_v39 = vadd.f32 %v2184_v17, %v979_v37  ;;  %v853_v40 = vpop.f32.mrb[61].mxu0  ;;  %v981_v41 = vpop.f32.mrb[61].mxu1 }
 0x193   : > { %v854_v42 = vpop.f32.mrb[62].mxu0  ;;  %v982_v43 = vpop.f32.mrb[62].mxu1 }
 0x194   : > { %v855_v44 = vadd.f32 %v2184_v17, %v854_v42  ;;  %v983_v45 = vadd.f32 %v2184_v17, %v982_v43  ;;  %v856_v46 = vpop.f32.mrb[63].mxu0  ;;  %v984_v47 = vpop.f32.mrb[63].mxu1  ;;  %v1016_v48 = vmax.f32 %v852_v38, 0.0  ;;  %v1048_v49 = vmax.f32 %v980_v39, 0.0 }
 0x196   : > { %v1017_v50 = vmax.f32 %v855_v44, 0.0  ;;  %v1049_v51 = vmax.f32 %v983_v45, 0.0 }
 0x198   : > { %v1726_v52 = vpack.c.bf16 %v1017_v50, %v1016_v48  ;;  %v1806_v53 = vpack.c.bf16 %v1049_v51, %v1048_v49 }
 0x19a   : > { %1822 = vst [vmem:[%s2194_s4 + $0x78] sm:$0xff] %v1726_v52   ;;  %1838 = vst [vmem:[%s2194_s4 + $0xf8] sm:$0xff] %v1806_v53  }
 0x19b PF: > { %s13_s12 = sadd.s32 1, %s1998_s12  }
 0x19c   : > { %p10_p4 = scmp.ge.s32.totalorder %s13_s12, 6  }
 0x19e   :  { %12 = sbr.rel (!%p10_p4) target bundleno = 1 (0x1), region = 62 }

// kernel: resnet_forward.15
= control target key start
LH: loop header
LB: loop body
LE: loop exit
PB: predicated region body
PF: predicated region fallthrough
CT: control target
= control target key end

     0   :  { %s2440_s15 = smov 0   ;;  %s2751_s0 = inlined_call_operand.vmem [shape: bf16[2048,256], index: 0, kind: input, shape index: {}]   ;;  %s2752_s1 = inlined_call_operand.vmem [shape: bf16[256,128], index: 1, kind: input, shape index: {}]   ;;  %s2753_s2 = inlined_call_operand.vmem [shape: f32[1,128], index: 2, kind: input, shape index: {}]   ;;  %s2754_s3 = inlined_call_operand.vmem [shape: bf16[2048,128], index: 3, kind: input, shape index: {}]   ;;  %s2755_s4 = inlined_call_operand.vmem [shape: bf16[2048,128], index: 4, kind: output, shape index: {}]  }
   0x1 LB: > { %s1679_s16 = sadd.s32 4294967295, %s2412_s15   ;;  %p1683_p0 = scmp.ge.s32.totalorder %s2412_s15, 1  ;;  %s2412_s15 = sphi %s2440_s15, %s14_s15  }
   0x2   : > { %p175_p1 = scmp.lt.s32.totalorder %s2412_s15, 5 }
   0x4   : > { %p176_p2 = pnand %p1683_p0, %p175_p1 }
   0x5   : > { %v2294_v0 = vld [vmem:[%s2752_s1] sm:$0xff] (!%p176_p2)   ;;  %v2414_v1 = vmov (!%p176_p2), 0   ;;  %s1684_s19 = sshll.u32 (!%p176_p2), %s1679_s16, 6  ;;  %v2295_v2 = vld [vmem:[%s2752_s1 + $0x8] sm:$0xff] (!%p176_p2)   ;;  %v2296_v3 = vld [vmem:[%s2752_s1 + $0x10] sm:$0xff] (!%p176_p2)  }
   0x6   : > { %179 = sbr.rel (%p176_p2) target bundleno = 414 (0x19e), region = 36  ;;  %746 = vmatprep.subr.bf16.mxu0 (!%p176_p2), %v2414_v1  ;;  %2253 = vmatprep.subr.bf16.mxu1 (!%p176_p2), %v2414_v1  ;;  %p208_p3 = scmp.lt.s32.totalorder (!%p176_p2), %s1684_s19, 255  ;;  %v2297_v4 = vld [vmem:[%s2752_s1 + $0x18] sm:$0xff] (!%p176_p2)   ;;  %v2298_v5 = vld [vmem:[%s2752_s1 + $0x20] sm:$0xff] (!%p176_p2)   ;;  %v2299_v7 = vld [vmem:[%s2752_s1 + $0x28] sm:$0xff] (!%p176_p2)  }
   0x7   : > { %747 = vmatpush1.bf16.msra.mxu0 (!%p176_p2), %v2294_v0  ;;  %2269 = vmatpush1.bf16.msra.mxu1 (!%p176_p2), %v2294_v0  ;;  %v2300_v9 = vld [vmem:[%s2752_s1 + $0x30] sm:$0xff] (!%p176_p2)   ;;  %v2301_v10 = vld [vmem:[%s2752_s1 + $0x38] sm:$0xff] (!%p176_p2)   ;;  %v2302_v11 = vld [vmem:[%s2752_s1 + $0x40] sm:$0xff] (!%p176_p2)  }
   0x8   : > { %748 = vmatprep.subr.bf16.mxu0 (!%p176_p2), %v2414_v1  ;;  %2254 = vmatprep.subr.bf16.mxu1 (!%p176_p2), %v2414_v1  ;;  %v2303_v12 = vld [vmem:[%s2752_s1 + $0x48] sm:$0xff] (!%p176_p2)   ;;  %v2304_v13 = vld [vmem:[%s2752_s1 + $0x50] sm:$0xff] (!%p176_p2)   ;;  %v2305_v14 = vld [vmem:[%s2752_s1 + $0x58] sm:$0xff] (!%p176_p2)  }
   0x9   : > { %v2306_v15 = vld [vmem:[%s2752_s1 + $0x60] sm:$0xff] (!%p176_p2)   ;;  %v2307_v16 = vld [vmem:[%s2752_s1 + $0x68] sm:$0xff] (!%p176_p2)   ;;  %v2308_v17 = vld [vmem:[%s2752_s1 + $0x70] sm:$0xff] (!%p176_p2)  }
   0xa   : > { %v2309_v18 = vld [vmem:[%s2752_s1 + $0x78] sm:$0xff] (!%p176_p2)  }
   0xb   : > { %749 = vmatpush1.bf16.msra.mxu0 (!%p176_p2), %v2295_v2  ;;  %2270 = vmatpush1.bf16.msra.mxu1 (!%p176_p2), %v2295_v2 }
   0xc   : > { %750 = vmatprep.subr.bf16.mxu0 (!%p176_p2), %v2414_v1  ;;  %2255 = vmatprep.subr.bf16.mxu1 (!%p176_p2), %v2414_v1 }
   0xd   : > { %s2757_s19 = smov (!%p208_p3, %s1684_s19), 255 }
   0xe   : > { %s1838_s26 = sshll.u32 %s2757_s19, 3  ;;  %s1688_s30 = sshll.u32 %s2757_s19, 2 }
   0xf   : > { %751 = vmatpush1.bf16.msra.mxu0 %v2296_v3  ;;  %2271 = vmatpush1.bf16.msra.mxu1 %v2296_v3  ;;  %s2477_s5 = scalar_lea.vmem %s2751_s0, %s1838_s26  ;;  %s2606_s8 = scalar_lea.vmem %s2754_s3, %s1688_s30 }
  0x10   : > { %752 = vmatprep.subr.bf16.mxu0 %v2414_v1  ;;  %2256 = vmatprep.subr.bf16.mxu1 %v2414_v1  ;;  %v2312_v6 = vld [vmem:[%s2477_s5 + $0x4] ss:$8 sps:$4 sm:$0xff]   ;;  %v2310_v19 = vld [vmem:[%s2477_s5] ss:$8 sps:$4 sm:$0xff]   ;;  %v2316_v21 = vld [vmem:[%s2477_s5 + $0x14] ss:$8 sps:$4 sm:$0xff]   ;;  %s2626_s12 = scalar_lea.vmem %s2755_s4, %s1688_s30 }
  0x11   : > { %v2315_v8 = vld [vmem:[%s2477_s5 + $0x104] ss:$8 sps:$4 sm:$0xff]   ;;  %778 = vmatprep.mubr.bf16.mxu0 %v2312_v6  ;;  %v2313_v20 = vld [vmem:[%s2477_s5 + $0x100] ss:$8 sps:$4 sm:$0xff]   ;;  %v2318_v22 = vld [vmem:[%s2477_s5 + $0x114] ss:$8 sps:$4 sm:$0xff]  }
  0x12   : > { %906 = vmatprep.mubr.bf16.mxu1 %v2315_v8  ;;  %v2320_v23 = vld [vmem:[%s2477_s5 + $0x10] ss:$8 sps:$4 sm:$0xff]   ;;  %v2322_v25 = vld [vmem:[%s2477_s5 + $0x24] ss:$8 sps:$4 sm:$0xff]   ;;  %v2326_v27 = vld [vmem:[%s2477_s5 + $0x20] ss:$8 sps:$4 sm:$0xff]  }
  0x13   : > { %753 = vmatpush1.bf16.msra.mxu0 %v2297_v4  ;;  %2272 = vmatpush1.bf16.msra.mxu1 %v2297_v4  ;;  %v2321_v24 = vld [vmem:[%s2477_s5 + $0x110] ss:$8 sps:$4 sm:$0xff]   ;;  %v2324_v26 = vld [vmem:[%s2477_s5 + $0x124] ss:$8 sps:$4 sm:$0xff]   ;;  %v2327_v28 = vld [vmem:[%s2477_s5 + $0x120] ss:$8 sps:$4 sm:$0xff]  }
  0x14   : > { %754 = vmatprep.subr.bf16.mxu0 %v2414_v1  ;;  %2257 = vmatprep.subr.bf16.mxu1 %v2414_v1  ;;  %v2328_v29 = vld [vmem:[%s2477_s5 + $0x34] ss:$8 sps:$4 sm:$0xff]   ;;  %v2332_v31 = vld [vmem:[%s2477_s5 + $0x30] ss:$8 sps:$4 sm:$0xff]   ;;  %v2334_v33 = vld [vmem:[%s2477_s5 + $0x44] ss:$8 sps:$4 sm:$0xff]  }
  0x15   : > { %v2330_v30 = vld [vmem:[%s2477_s5 + $0x134] ss:$8 sps:$4 sm:$0xff]   ;;  %v2333_v32 = vld [vmem:[%s2477_s5 + $0x130] ss:$8 sps:$4 sm:$0xff]   ;;  %v2336_v34 = vld [vmem:[%s2477_s5 + $0x144] ss:$8 sps:$4 sm:$0xff]  }
  0x16   : > { %v2338_v35 = vld [vmem:[%s2477_s5 + $0x40] ss:$8 sps:$4 sm:$0xff]   ;;  %v2340_v37 = vld [vmem:[%s2477_s5 + $0x54] ss:$8 sps:$4 sm:$0xff]   ;;  %v2344_v39 = vld [vmem:[%s2477_s5 + $0x50] ss:$8 sps:$4 sm:$0xff]  }
  0x17   : > { %755 = vmatpush1.bf16.msra.mxu0 %v2298_v5  ;;  %2273 = vmatpush1.bf16.msra.mxu1 %v2298_v5  ;;  %v2339_v36 = vld [vmem:[%s2477_s5 + $0x140] ss:$8 sps:$4 sm:$0xff]   ;;  %v2342_v38 = vld [vmem:[%s2477_s5 + $0x154] ss:$8 sps:$4 sm:$0xff]   ;;  %v2345_v40 = vld [vmem:[%s2477_s5 + $0x150] ss:$8 sps:$4 sm:$0xff]  }
  0x18   : > { %756 = vmatprep.subr.bf16.mxu0 %v2414_v1  ;;  %2258 = vmatprep.subr.bf16.mxu1 %v2414_v1  ;;  %v2346_v41 = vld [vmem:[%s2477_s5 + $0x64] ss:$8 sps:$4 sm:$0xff]   ;;  %v2350_v43 = vld [vmem:[%s2477_s5 + $0x60] ss:$8 sps:$4 sm:$0xff]   ;;  %v2352_v45 = vld [vmem:[%s2477_s5 + $0x74] ss:$8 sps:$4 sm:$0xff]  }
  0x19   : > { %v2348_v42 = vld [vmem:[%s2477_s5 + $0x164] ss:$8 sps:$4 sm:$0xff]   ;;  %v2351_v44 = vld [vmem:[%s2477_s5 + $0x160] ss:$8 sps:$4 sm:$0xff]   ;;  %v2354_v46 = vld [vmem:[%s2477_s5 + $0x174] ss:$8 sps:$4 sm:$0xff]  }
  0x1a   : > { %v2356_v47 = vld [vmem:[%s2477_s5 + $0x70] ss:$8 sps:$4 sm:$0xff]   ;;  %v2358_v49 = vld [vmem:[%s2477_s5 + $0x84] ss:$8 sps:$4 sm:$0xff]   ;;  %v2362_v51 = vld [vmem:[%s2477_s5 + $0x80] ss:$8 sps:$4 sm:$0xff]  }
  0x1b   : > { %757 = vmatpush1.bf16.msra.mxu0 %v2299_v7  ;;  %2274 = vmatpush1.bf16.msra.mxu1 %v2299_v7  ;;  %v2357_v48 = vld [vmem:[%s2477_s5 + $0x170] ss:$8 sps:$4 sm:$0xff]   ;;  %v2360_v50 = vld [vmem:[%s2477_s5 + $0x184] ss:$8 sps:$4 sm:$0xff]   ;;  %v2363_v52 = vld [vmem:[%s2477_s5 + $0x180] ss:$8 sps:$4 sm:$0xff]  }
  0x1c   : > { %758 = vmatprep.subr.bf16.mxu0 %v2414_v1  ;;  %2259 = vmatprep.subr.bf16.mxu1 %v2414_v1  ;;  %v2364_v53 = vld [vmem:[%s2477_s5 + $0x94] ss:$8 sps:$4 sm:$0xff]   ;;  %v2368_v55 = vld [vmem:[%s2477_s5 + $0x90] ss:$8 sps:$4 sm:$0xff]   ;;  %v2370_v57 = vld [vmem:[%s2477_s5 + $0xa4] ss:$8 sps:$4 sm:$0xff]  }
  0x1d   : > { %v2366_v54 = vld [vmem:[%s2477_s5 + $0x194] ss:$8 sps:$4 sm:$0xff]   ;;  %v2369_v56 = vld [vmem:[%s2477_s5 + $0x190] ss:$8 sps:$4 sm:$0xff]   ;;  %v2372_v58 = vld [vmem:[%s2477_s5 + $0x1a4] ss:$8 sps:$4 sm:$0xff]  }
  0x1e   : > { %v2374_v59 = vld [vmem:[%s2477_s5 + $0xa0] ss:$8 sps:$4 sm:$0xff]   ;;  %v2376_v61 = vld [vmem:[%s2477_s5 + $0xb4] ss:$8 sps:$4 sm:$0xff]   ;;  %v2380_v63 = vld [vmem:[%s2477_s5 + $0xb0] ss:$8 sps:$4 sm:$0xff]  }
  0x1f   : > { %759 = vmatpush1.bf16.msra.mxu0 %v2300_v9  ;;  %2275 = vmatpush1.bf16.msra.mxu1 %v2300_v9  ;;  %v2375_v60 = vld [vmem:[%s2477_s5 + $0x1a0] ss:$8 sps:$4 sm:$0xff]   ;;  %v2378_v62 = vld [vmem:[%s2477_s5 + $0x1b4] ss:$8 sps:$4 sm:$0xff]   ;;  %v2381_v0 = vld [vmem:[%s2477_s5 + $0x1b0] ss:$8 sps:$4 sm:$0xff]  }
  0x20   : > { %760 = vmatprep.subr.bf16.mxu0 %v2414_v1  ;;  %2260 = vmatprep.subr.bf16.mxu1 %v2414_v1  ;;  %v2384_v2 = vld [vmem:[%s2477_s5 + $0x1c4] ss:$8 sps:$4 sm:$0xff]   ;;  %v2386_v3 = vld [vmem:[%s2477_s5 + $0xc0] ss:$8 sps:$4 sm:$0xff]   ;;  %v2388_v5 = vld [vmem:[%s2477_s5 + $0xd4] ss:$8 sps:$4 sm:$0xff]  }
  0x21   : > { %v2387_v4 = vld [vmem:[%s2477_s5 + $0x1c0] ss:$8 sps:$4 sm:$0xff]   ;;  %v2390_v6 = vld [vmem:[%s2477_s5 + $0x1d4] ss:$8 sps:$4 sm:$0xff]   ;;  %v2392_v7 = vld [vmem:[%s2477_s5 + $0xd0] ss:$8 sps:$4 sm:$0xff]  }
  0x22   : > { %v2393_v8 = vld [vmem:[%s2477_s5 + $0x1d0] ss:$8 sps:$4 sm:$0xff]   ;;  %v2394_v9 = vld [vmem:[%s2477_s5 + $0xe4] ss:$8 sps:$4 sm:$0xff]  }
  0x23   : > { %761 = vmatpush1.bf16.msra.mxu0 %v2301_v10  ;;  %2276 = vmatpush1.bf16.msra.mxu1 %v2301_v10  ;;  %v2396_v10 = vld [vmem:[%s2477_s5 + $0x1e4] ss:$8 sps:$4 sm:$0xff]  }
  0x24   : > { %762 = vmatprep.subr.bf16.mxu0 %v2414_v1  ;;  %2261 = vmatprep.subr.bf16.mxu1 %v2414_v1 }
  0x27   : > { %763 = vmatpush1.bf16.msra.mxu0 %v2302_v11  ;;  %2277 = vmatpush1.bf16.msra.mxu1 %v2302_v11  ;;  %v2398_v11 = vld [vmem:[%s2477_s5 + $0xe0] ss:$8 sps:$4 sm:$0xff]  }
  0x28   : > { %764 = vmatprep.subr.bf16.mxu0 %v2414_v1  ;;  %2262 = vmatprep.subr.bf16.mxu1 %v2414_v1 }
  0x2b   : > { %765 = vmatpush1.bf16.msra.mxu0 %v2303_v12  ;;  %2278 = vmatpush1.bf16.msra.mxu1 %v2303_v12  ;;  %v2399_v12 = vld [vmem:[%s2477_s5 + $0x1e0] ss:$8 sps:$4 sm:$0xff]  }
  0x2c   : > { %766 = vmatprep.subr.bf16.mxu0 %v2414_v1  ;;  %2263 = vmatprep.subr.bf16.mxu1 %v2414_v1 }
  0x2f   : > { %767 = vmatpush1.bf16.msra.mxu0 %v2304_v13  ;;  %2279 = vmatpush1.bf16.msra.mxu1 %v2304_v13  ;;  %v2400_v13 = vld [vmem:[%s2477_s5 + $0xf4] ss:$8 sps:$4 sm:$0xff]  }
  0x30   : > { %768 = vmatprep.subr.bf16.mxu0 %v2414_v1  ;;  %2264 = vmatprep.subr.bf16.mxu1 %v2414_v1 }
  0x33   : > { %769 = vmatpush1.bf16.msra.mxu0 %v2305_v14  ;;  %2280 = vmatpush1.bf16.msra.mxu1 %v2305_v14  ;;  %v2402_v14 = vld [vmem:[%s2477_s5 + $0x1f4] ss:$8 sps:$4 sm:$0xff]  }
  0x34   : > { %770 = vmatprep.subr.bf16.mxu0 %v2414_v1  ;;  %2265 = vmatprep.subr.bf16.mxu1 %v2414_v1 }
  0x37   : > { %771 = vmatpush1.bf16.msra.mxu0 %v2306_v15  ;;  %2281 = vmatpush1.bf16.msra.mxu1 %v2306_v15  ;;  %v2404_v15 = vld [vmem:[%s2477_s5 + $0xf0] ss:$8 sps:$4 sm:$0xff]  }
  0x38   : > { %772 = vmatprep.subr.bf16.mxu0 %v2414_v1  ;;  %2266 = vmatprep.subr.bf16.mxu1 %v2414_v1 }
  0x3b   : > { %773 = vmatpush1.bf16.msra.mxu0 %v2307_v16  ;;  %2282 = vmatpush1.bf16.msra.mxu1 %v2307_v16  ;;  %v2405_v16 = vld [vmem:[%s2477_s5 + $0x1f0] ss:$8 sps:$4 sm:$0xff]  }
  0x3c   : > { %774 = vmatprep.subr.bf16.mxu0 %v2414_v1  ;;  %2267 = vmatprep.subr.bf16.mxu1 %v2414_v1 }
  0x3f   : > { %775 = vmatpush1.bf16.msra.mxu0 %v2308_v17  ;;  %2283 = vmatpush1.bf16.msra.mxu1 %v2308_v17  ;;  %v1904_v17 = vld [vmem:[%s2606_s8] sm:$0xff]  }
  0x40   : > { %776 = vmatprep.subr.bf16.mxu0 %v2414_v1  ;;  %2268 = vmatprep.subr.bf16.mxu1 %v2414_v1  ;;  %v2382_v1 = vld [vmem:[%s2477_s5 + $0xc4] ss:$8 sps:$4 sm:$0xff]  }
  0x43   : > { %777 = vmatpush1.bf16.msra.mxu0 %v2309_v18  ;;  %2284 = vmatpush1.bf16.msra.mxu1 %v2309_v18  ;;  %v2206_v18 = vld [vmem:[%s2606_s8 + $0x80] sm:$0xff]  }
  0x46   : > { %779 = vmatmul.mubr.bf16.vlgmr.msra.gmra.mrb[0].mxu0 %v2310_v19  ;;  %907 = vmatmul.mubr.bf16.vlgmr.msra.gmra.mrb[0].mxu1 %v2313_v20  ;;  %v2613_v19 = vld [vmem:[%s2753_s2] ss:$0 sm:$0xff]  ;;  %v1905_v20 = vunpack.c.l.bf16 %v1904_v17 }
  0x47   : > { %786 = vmatprep.mubr.bf16.mxu0 %v2316_v21  ;;  %914 = vmatprep.mubr.bf16.mxu1 %v2318_v22  ;;  %v1969_v21 = vunpack.c.l.bf16 %v2206_v18 }
  0x4e   : > { %787 = vmatmul.mubr.bf16.gmra.mrb[4].mxu0 %v2320_v23  ;;  %915 = vmatmul.mubr.bf16.gmra.mrb[4].mxu1 %v2321_v24 }
  0x4f   : > { %794 = vmatprep.mubr.bf16.mxu0 %v2322_v25  ;;  %922 = vmatprep.mubr.bf16.mxu1 %v2324_v26 }
  0x56   : > { %795 = vmatmul.mubr.bf16.gmra.mrb[8].mxu0 %v2326_v27  ;;  %923 = vmatmul.mubr.bf16.gmra.mrb[8].mxu1 %v2327_v28  ;;  %v1906_v28 = vunpack.c.h.bf16 %v1904_v17 }
  0x57   : > { %802 = vmatprep.mubr.bf16.mxu0 %v2328_v29  ;;  %930 = vmatprep.mubr.bf16.mxu1 %v2330_v30  ;;  %v1970_v29 = vunpack.c.h.bf16 %v2206_v18 }
  0x5e   : > { %803 = vmatmul.mubr.bf16.gmra.mrb[12].mxu0 %v2332_v31  ;;  %931 = vmatmul.mubr.bf16.gmra.mrb[12].mxu1 %v2333_v32 }
  0x5f   : > { %810 = vmatprep.mubr.bf16.mxu0 %v2334_v33  ;;  %938 = vmatprep.mubr.bf16.mxu1 %v2336_v34 }
  0x66   : > { %811 = vmatmul.mubr.bf16.gmra.mrb[16].mxu0 %v2338_v35  ;;  %939 = vmatmul.mubr.bf16.gmra.mrb[16].mxu1 %v2339_v36 }
  0x67   : > { %818 = vmatprep.mubr.bf16.mxu0 %v2340_v37  ;;  %946 = vmatprep.mubr.bf16.mxu1 %v2342_v38  ;;  %v2191_v38 = vld [vmem:[%s2606_s8 + $0x8] sm:$0xff]  }
  0x6e   : > { %819 = vmatmul.mubr.bf16.gmra.mrb[20].mxu0 %v2344_v39  ;;  %947 = vmatmul.mubr.bf16.gmra.mrb[20].mxu1 %v2345_v40  ;;  %v2207_v39 = vld [vmem:[%s2606_s8 + $0x88] sm:$0xff]  }
  0x6f   : > { %826 = vmatprep.mubr.bf16.mxu0 %v2346_v41  ;;  %954 = vmatprep.mubr.bf16.mxu1 %v2348_v42  ;;  %v1909_v42 = vunpack.c.l.bf16 %v2191_v38 }
  0x76   : > { %827 = vmatmul.mubr.bf16.gmra.mrb[24].mxu0 %v2350_v43  ;;  %955 = vmatmul.mubr.bf16.gmra.mrb[24].mxu1 %v2351_v44  ;;  %v1973_v43 = vunpack.c.l.bf16 %v2207_v39 }
  0x77   : > { %834 = vmatprep.mubr.bf16.mxu0 %v2352_v45  ;;  %962 = vmatprep.mubr.bf16.mxu1 %v2354_v46 }
  0x7e   : > { %835 = vmatmul.mubr.bf16.gmra.mrb[28].mxu0 %v2356_v47  ;;  %963 = vmatmul.mubr.bf16.gmra.mrb[28].mxu1 %v2357_v48 }
  0x7f   : > { %842 = vmatprep.mubr.bf16.mxu0 %v2358_v49  ;;  %970 = vmatprep.mubr.bf16.mxu1 %v2360_v50  ;;  %v1910_v50 = vunpack.c.h.bf16 %v2191_v38 }
  0x86   : > { %843 = vmatmul.mubr.bf16.gmra.mrb[32].mxu0 %v2362_v51  ;;  %971 = vmatmul.mubr.bf16.gmra.mrb[32].mxu1 %v2363_v52  ;;  %v1974_v51 = vunpack.c.h.bf16 %v2207_v39 }
  0x87   : > { %850 = vmatprep.mubr.bf16.mxu0 %v2364_v53  ;;  %978 = vmatprep.mubr.bf16.mxu1 %v2366_v54 }
  0x8e   : > { %851 = vmatmul.mubr.bf16.gmra.mrb[36].mxu0 %v2368_v55  ;;  %979 = vmatmul.mubr.bf16.gmra.mrb[36].mxu1 %v2369_v56 }
  0x8f   : > { %858 = vmatprep.mubr.bf16.mxu0 %v2370_v57  ;;  %986 = vmatprep.mubr.bf16.mxu1 %v2372_v58 }
  0x96   : > { %859 = vmatmul.mubr.bf16.gmra.mrb[40].mxu0 %v2374_v59  ;;  %987 = vmatmul.mubr.bf16.gmra.mrb[40].mxu1 %v2375_v60 }
  0x97   : > { %866 = vmatprep.mubr.bf16.mxu0 %v2376_v61  ;;  %994 = vmatprep.mubr.bf16.mxu1 %v2378_v62 }
  0x9e   : > { %867 = vmatmul.mubr.bf16.gmra.mrb[44].mxu0 %v2380_v63  ;;  %995 = vmatmul.mubr.bf16.gmra.mrb[44].mxu1 %v2381_v0 }
  0x9f   : > { %874 = vmatprep.mubr.bf16.mxu0 %v2382_v1  ;;  %1002 = vmatprep.mubr.bf16.mxu1 %v2384_v2  ;;  %v2192_v2 = vld [vmem:[%s2606_s8 + $0x10] sm:$0xff]  }
  0xa6   : > { %875 = vmatmul.mubr.bf16.gmra.mrb[48].mxu0 %v2386_v3  ;;  %1003 = vmatmul.mubr.bf16.gmra.mrb[48].mxu1 %v2387_v4  ;;  %v2208_v3 = vld [vmem:[%s2606_s8 + $0x90] sm:$0xff]  }
  0xa7   : > { %882 = vmatprep.mubr.bf16.mxu0 %v2388_v5  ;;  %1010 = vmatprep.mubr.bf16.mxu1 %v2390_v6  ;;  %v1913_v6 = vunpack.c.l.bf16 %v2192_v2 }
  0xae   : > { %883 = vmatmul.mubr.bf16.gmra.mrb[52].mxu0 %v2392_v7  ;;  %1011 = vmatmul.mubr.bf16.gmra.mrb[52].mxu1 %v2393_v8  ;;  %v1977_v7 = vunpack.c.l.bf16 %v2208_v3 }
  0xaf   : > { %890 = vmatprep.mubr.bf16.mxu0 %v2394_v9  ;;  %1018 = vmatprep.mubr.bf16.mxu1 %v2396_v10 }
  0xb6   : > { %891 = vmatmul.mubr.bf16.gmra.mrb[56].mxu0 %v2398_v11  ;;  %1019 = vmatmul.mubr.bf16.gmra.mrb[56].mxu1 %v2399_v12 }
  0xb7   : > { %898 = vmatprep.mubr.bf16.mxu0 %v2400_v13  ;;  %1026 = vmatprep.mubr.bf16.mxu1 %v2402_v14  ;;  %v1914_v14 = vunpack.c.h.bf16 %v2192_v2 }
  0xbe   : > { %899 = vmatmul.mubr.bf16.gmra.mrb[60].mxu0 %v2404_v15  ;;  %1027 = vmatmul.mubr.bf16.gmra.mrb[60].mxu1 %v2405_v16  ;;  %v1978_v15 = vunpack.c.h.bf16 %v2208_v3 }
 0x119   : > { %v780_v22 = vpop.f32.mrb[0].mxu0  ;;  %v908_v23 = vpop.f32.mrb[0].mxu1 }
 0x11a   : > { %v781_v24 = vadd.f32 %v2613_v19, %v780_v22  ;;  %v909_v25 = vadd.f32 %v2613_v19, %v908_v23  ;;  %v782_v26 = vpop.f32.mrb[1].mxu0  ;;  %v910_v27 = vpop.f32.mrb[1].mxu1 }
 0x11b   : > { %v783_v30 = vpop.f32.mrb[2].mxu0  ;;  %v911_v31 = vpop.f32.mrb[2].mxu1 }
 0x11c   : > { %v1163_v32 = vadd.f32 %v1905_v20, %v781_v24  ;;  %v1195_v33 = vadd.f32 %v1969_v21, %v909_v25  ;;  %v784_v34 = vadd.f32 %v2613_v19, %v783_v30  ;;  %v912_v35 = vadd.f32 %v2613_v19, %v911_v31  ;;  %v785_v36 = vpop.f32.mrb[3].mxu0  ;;  %v913_v37 = vpop.f32.mrb[3].mxu1  ;;  %v2193_v31 = vld [vmem:[%s2606_s8 + $0x18] sm:$0xff]  }
 0x11e   : > { %v1164_v40 = vadd.f32 %v1906_v28, %v784_v34  ;;  %v1196_v41 = vadd.f32 %v1970_v29, %v912_v35  ;;  %v1227_v44 = vmax.f32 %v1163_v32, 0.0  ;;  %v1259_v45 = vmax.f32 %v1195_v33, 0.0  ;;  %v2209_v32 = vld [vmem:[%s2606_s8 + $0x98] sm:$0xff]  }
 0x11f   : > { %v1917_v35 = vunpack.c.l.bf16 %v2193_v31  ;;  %v1981_v36 = vunpack.c.l.bf16 %v2209_v32 }
 0x120   : > { %v1228_v46 = vmax.f32 %v1164_v40, 0.0  ;;  %v1260_v47 = vmax.f32 %v1196_v41, 0.0 }
 0x121   : > { %v788_v48 = vpop.f32.mrb[4].mxu0  ;;  %v916_v49 = vpop.f32.mrb[4].mxu1 }
 0x122   : > { %v2034_v52 = vpack.c.bf16 %v1228_v46, %v1227_v44  ;;  %v2114_v53 = vpack.c.bf16 %v1260_v47, %v1259_v45  ;;  %v789_v54 = vadd.f32 %v2613_v19, %v788_v48  ;;  %v917_v55 = vadd.f32 %v2613_v19, %v916_v49  ;;  %v790_v56 = vpop.f32.mrb[5].mxu0  ;;  %v918_v57 = vpop.f32.mrb[5].mxu1 }
 0x123   : > { %v791_v58 = vpop.f32.mrb[6].mxu0  ;;  %v919_v59 = vpop.f32.mrb[6].mxu1  ;;  %v1982_v44 = vunpack.c.h.bf16 %v2209_v32 }
 0x124   : > { %2035 = vst [vmem:[%s2626_s12] sm:$0xff] %v2034_v52   ;;  %2237 = vst [vmem:[%s2626_s12 + $0x80] sm:$0xff] %v2114_v53   ;;  %v1165_v60 = vadd.f32 %v1909_v42, %v789_v54  ;;  %v1197_v61 = vadd.f32 %v1973_v43, %v917_v55  ;;  %v792_v62 = vadd.f32 %v2613_v19, %v791_v58  ;;  %v793_v0 = vpop.f32.mrb[7].mxu0  ;;  %v921_v1 = vpop.f32.mrb[7].mxu1  ;;  %v1918_v43 = vunpack.c.h.bf16 %v2193_v31 }
 0x125   : > { %v920_v63 = vadd.f32 %v2613_v19, %v919_v59  ;;  %v2194_v59 = vld [vmem:[%s2606_s8 + $0x20] sm:$0xff]  }
 0x126   : > { %v1166_v4 = vadd.f32 %v1910_v50, %v792_v62  ;;  %v1229_v8 = vmax.f32 %v1165_v60, 0.0  ;;  %v1261_v9 = vmax.f32 %v1197_v61, 0.0  ;;  %v2210_v60 = vld [vmem:[%s2606_s8 + $0xa0] sm:$0xff]  }
 0x127   : > { %v1198_v5 = vadd.f32 %v1974_v51, %v920_v63  ;;  %v1921_v63 = vunpack.c.l.bf16 %v2194_v59  ;;  %v1985_v0 = vunpack.c.l.bf16 %v2210_v60 }
 0x128   : > { %v1230_v10 = vmax.f32 %v1166_v4, 0.0 }
 0x129   : > { %v1262_v11 = vmax.f32 %v1198_v5, 0.0  ;;  %v796_v12 = vpop.f32.mrb[8].mxu0  ;;  %v924_v13 = vpop.f32.mrb[8].mxu1 }
 0x12a   : > { %v2039_v16 = vpack.c.bf16 %v1230_v10, %v1229_v8  ;;  %v797_v18 = vadd.f32 %v2613_v19, %v796_v12  ;;  %v925_v20 = vadd.f32 %v2613_v19, %v924_v13  ;;  %v798_v21 = vpop.f32.mrb[9].mxu0  ;;  %v926_v22 = vpop.f32.mrb[9].mxu1  ;;  %v1986_v8 = vunpack.c.h.bf16 %v2210_v60 }
 0x12b   : > { %v2119_v17 = vpack.c.bf16 %v1262_v11, %v1261_v9  ;;  %v799_v23 = vpop.f32.mrb[10].mxu0  ;;  %v927_v24 = vpop.f32.mrb[10].mxu1 }
 0x12c   : > { %2222 = vst [vmem:[%s2626_s12 + $0x8] sm:$0xff] %v2039_v16   ;;  %v1167_v25 = vadd.f32 %v1913_v6, %v797_v18  ;;  %v1199_v26 = vadd.f32 %v1977_v7, %v925_v20  ;;  %v800_v27 = vadd.f32 %v2613_v19, %v799_v23  ;;  %v928_v28 = vadd.f32 %v2613_v19, %v927_v24  ;;  %v801_v29 = vpop.f32.mrb[11].mxu0  ;;  %v929_v30 = vpop.f32.mrb[11].mxu1  ;;  %v2195_v24 = vld [vmem:[%s2606_s8 + $0x28] sm:$0xff]  }
 0x12d   : > { %2238 = vst [vmem:[%s2626_s12 + $0x88] sm:$0xff] %v2119_v17   ;;  %v1922_v7 = vunpack.c.h.bf16 %v2194_v59 }
 0x12e   : > { %v1168_v33 = vadd.f32 %v1914_v14, %v800_v27  ;;  %v1200_v34 = vadd.f32 %v1978_v15, %v928_v28  ;;  %v1231_v37 = vmax.f32 %v1167_v25, 0.0  ;;  %v1263_v38 = vmax.f32 %v1199_v26, 0.0  ;;  %v2211_v25 = vld [vmem:[%s2606_s8 + $0xa8] sm:$0xff]  }
 0x12f   : > { %v1925_v28 = vunpack.c.l.bf16 %v2195_v24  ;;  %v1989_v29 = vunpack.c.l.bf16 %v2211_v25 }
 0x130   : > { %v1232_v39 = vmax.f32 %v1168_v33, 0.0  ;;  %v1264_v40 = vmax.f32 %v1200_v34, 0.0 }
 0x131   : > { %v804_v41 = vpop.f32.mrb[12].mxu0  ;;  %v932_v42 = vpop.f32.mrb[12].mxu1 }
 0x132   : > { %v2044_v45 = vpack.c.bf16 %v1232_v39, %v1231_v37  ;;  %v2124_v46 = vpack.c.bf16 %v1264_v40, %v1263_v38  ;;  %v805_v47 = vadd.f32 %v2613_v19, %v804_v41  ;;  %v933_v48 = vadd.f32 %v2613_v19, %v932_v42  ;;  %v806_v49 = vpop.f32.mrb[13].mxu0  ;;  %v934_v50 = vpop.f32.mrb[13].mxu1 }
 0x133   : > { %v807_v51 = vpop.f32.mrb[14].mxu0  ;;  %v935_v52 = vpop.f32.mrb[14].mxu1  ;;  %v1990_v37 = vunpack.c.h.bf16 %v2211_v25 }
 0x134   : > { %2223 = vst [vmem:[%s2626_s12 + $0x10] sm:$0xff] %v2044_v45   ;;  %2239 = vst [vmem:[%s2626_s12 + $0x90] sm:$0xff] %v2124_v46   ;;  %v1169_v53 = vadd.f32 %v1917_v35, %v805_v47  ;;  %v1201_v54 = vadd.f32 %v1981_v36, %v933_v48  ;;  %v808_v55 = vadd.f32 %v2613_v19, %v807_v51  ;;  %v809_v57 = vpop.f32.mrb[15].mxu0  ;;  %v937_v58 = vpop.f32.mrb[15].mxu1  ;;  %v1926_v36 = vunpack.c.h.bf16 %v2195_v24 }
 0x135   : > { %v936_v56 = vadd.f32 %v2613_v19, %v935_v52  ;;  %v2196_v52 = vld [vmem:[%s2606_s8 + $0x30] sm:$0xff]  }
 0x136   : > { %v1170_v61 = vadd.f32 %v1918_v43, %v808_v55  ;;  %v1233_v1 = vmax.f32 %v1169_v53, 0.0  ;;  %v1265_v2 = vmax.f32 %v1201_v54, 0.0  ;;  %v2212_v53 = vld [vmem:[%s2606_s8 + $0xb0] sm:$0xff]  }
 0x137   : > { %v1202_v62 = vadd.f32 %v1982_v44, %v936_v56  ;;  %v1929_v56 = vunpack.c.l.bf16 %v2196_v52  ;;  %v1993_v57 = vunpack.c.l.bf16 %v2212_v53 }
 0x138   : > { %v1234_v3 = vmax.f32 %v1170_v61, 0.0 }
 0x139   : > { %v1266_v4 = vmax.f32 %v1202_v62, 0.0  ;;  %v812_v5 = vpop.f32.mrb[16].mxu0  ;;  %v940_v6 = vpop.f32.mrb[16].mxu1 }
 0x13a   : > { %v2049_v9 = vpack.c.bf16 %v1234_v3, %v1233_v1  ;;  %v813_v11 = vadd.f32 %v2613_v19, %v812_v5  ;;  %v941_v12 = vadd.f32 %v2613_v19, %v940_v6  ;;  %v814_v13 = vpop.f32.mrb[17].mxu0  ;;  %v942_v14 = vpop.f32.mrb[17].mxu1  ;;  %v1994_v1 = vunpack.c.h.bf16 %v2212_v53 }
 0x13b   : > { %v2129_v10 = vpack.c.bf16 %v1266_v4, %v1265_v2  ;;  %v815_v15 = vpop.f32.mrb[18].mxu0  ;;  %v943_v16 = vpop.f32.mrb[18].mxu1 }
 0x13c   : > { %2224 = vst [vmem:[%s2626_s12 + $0x18] sm:$0xff] %v2049_v9   ;;  %v1171_v17 = vadd.f32 %v1921_v63, %v813_v11  ;;  %v1203_v18 = vadd.f32 %v1985_v0, %v941_v12  ;;  %v816_v20 = vadd.f32 %v2613_v19, %v815_v15  ;;  %v944_v21 = vadd.f32 %v2613_v19, %v943_v16  ;;  %v817_v22 = vpop.f32.mrb[19].mxu0  ;;  %v945_v23 = vpop.f32.mrb[19].mxu1  ;;  %v2197_v16 = vld [vmem:[%s2606_s8 + $0x38] sm:$0xff]  }
 0x13d   : > { %2240 = vst [vmem:[%s2626_s12 + $0x98] sm:$0xff] %v2129_v10   ;;  %v1930_v0 = vunpack.c.h.bf16 %v2196_v52 }
 0x13e   : > { %v1172_v26 = vadd.f32 %v1922_v7, %v816_v20  ;;  %v1204_v27 = vadd.f32 %v1986_v8, %v944_v21  ;;  %v1235_v30 = vmax.f32 %v1171_v17, 0.0  ;;  %v1267_v31 = vmax.f32 %v1203_v18, 0.0  ;;  %v2213_v17 = vld [vmem:[%s2606_s8 + $0xb8] sm:$0xff]  }
 0x13f   : > { %v1933_v21 = vunpack.c.l.bf16 %v2197_v16  ;;  %v1997_v22 = vunpack.c.l.bf16 %v2213_v17 }
 0x140   : > { %v1236_v32 = vmax.f32 %v1172_v26, 0.0  ;;  %v1268_v33 = vmax.f32 %v1204_v27, 0.0 }
 0x141   : > { %v820_v34 = vpop.f32.mrb[20].mxu0  ;;  %v948_v35 = vpop.f32.mrb[20].mxu1 }
 0x142   : > { %v2054_v38 = vpack.c.bf16 %v1236_v32, %v1235_v30  ;;  %v2134_v39 = vpack.c.bf16 %v1268_v33, %v1267_v31  ;;  %v821_v40 = vadd.f32 %v2613_v19, %v820_v34  ;;  %v949_v41 = vadd.f32 %v2613_v19, %v948_v35  ;;  %v822_v42 = vpop.f32.mrb[21].mxu0  ;;  %v950_v43 = vpop.f32.mrb[21].mxu1 }
 0x143   : > { %v823_v44 = vpop.f32.mrb[22].mxu0  ;;  %v951_v45 = vpop.f32.mrb[22].mxu1  ;;  %v1998_v30 = vunpack.c.h.bf16 %v2213_v17 }
 0x144   : > { %2225 = vst [vmem:[%s2626_s12 + $0x20] sm:$0xff] %v2054_v38   ;;  %2241 = vst [vmem:[%s2626_s12 + $0xa0] sm:$0xff] %v2134_v39   ;;  %v1173_v46 = vadd.f32 %v1925_v28, %v821_v40  ;;  %v1205_v47 = vadd.f32 %v1989_v29, %v949_v41  ;;  %v824_v48 = vadd.f32 %v2613_v19, %v823_v44  ;;  %v825_v50 = vpop.f32.mrb[23].mxu0  ;;  %v953_v51 = vpop.f32.mrb[23].mxu1  ;;  %v1934_v29 = vunpack.c.h.bf16 %v2197_v16 }
 0x145   : > { %v952_v49 = vadd.f32 %v2613_v19, %v951_v45  ;;  %v2198_v45 = vld [vmem:[%s2606_s8 + $0x40] sm:$0xff]  }
 0x146   : > { %v1174_v54 = vadd.f32 %v1926_v36, %v824_v48  ;;  %v1237_v58 = vmax.f32 %v1173_v46, 0.0  ;;  %v1269_v59 = vmax.f32 %v1205_v47, 0.0  ;;  %v2214_v46 = vld [vmem:[%s2606_s8 + $0xc0] sm:$0xff]  }
 0x147   : > { %v1206_v55 = vadd.f32 %v1990_v37, %v952_v49  ;;  %v1937_v49 = vunpack.c.l.bf16 %v2198_v45  ;;  %v2001_v50 = vunpack.c.l.bf16 %v2214_v46 }
 0x148   : > { %v1238_v60 = vmax.f32 %v1174_v54, 0.0 }
 0x149   : > { %v1270_v61 = vmax.f32 %v1206_v55, 0.0  ;;  %v828_v62 = vpop.f32.mrb[24].mxu0  ;;  %v956_v63 = vpop.f32.mrb[24].mxu1 }
 0x14a   : > { %v2059_v2 = vpack.c.bf16 %v1238_v60, %v1237_v58  ;;  %v829_v4 = vadd.f32 %v2613_v19, %v828_v62  ;;  %v957_v5 = vadd.f32 %v2613_v19, %v956_v63  ;;  %v830_v6 = vpop.f32.mrb[25].mxu0  ;;  %v958_v7 = vpop.f32.mrb[25].mxu1  ;;  %v2002_v58 = vunpack.c.h.bf16 %v2214_v46 }
 0x14b   : > { %v2139_v3 = vpack.c.bf16 %v1270_v61, %v1269_v59  ;;  %v831_v8 = vpop.f32.mrb[26].mxu0  ;;  %v959_v9 = vpop.f32.mrb[26].mxu1 }
 0x14c   : > { %2226 = vst [vmem:[%s2626_s12 + $0x28] sm:$0xff] %v2059_v2   ;;  %v1175_v10 = vadd.f32 %v1929_v56, %v829_v4  ;;  %v1207_v11 = vadd.f32 %v1993_v57, %v957_v5  ;;  %v832_v12 = vadd.f32 %v2613_v19, %v831_v8  ;;  %v960_v13 = vadd.f32 %v2613_v19, %v959_v9  ;;  %v833_v14 = vpop.f32.mrb[27].mxu0  ;;  %v961_v15 = vpop.f32.mrb[27].mxu1  ;;  %v2199_v9 = vld [vmem:[%s2606_s8 + $0x48] sm:$0xff]  }
 0x14d   : > { %2242 = vst [vmem:[%s2626_s12 + $0xa8] sm:$0xff] %v2139_v3   ;;  %v1938_v57 = vunpack.c.h.bf16 %v2198_v45 }
 0x14e   : > { %v1176_v18 = vadd.f32 %v1930_v0, %v832_v12  ;;  %v1208_v20 = vadd.f32 %v1994_v1, %v960_v13  ;;  %v1239_v23 = vmax.f32 %v1175_v10, 0.0  ;;  %v1271_v24 = vmax.f32 %v1207_v11, 0.0  ;;  %v2215_v10 = vld [vmem:[%s2606_s8 + $0xc8] sm:$0xff]  }
 0x14f   : > { %v1941_v13 = vunpack.c.l.bf16 %v2199_v9  ;;  %v2005_v14 = vunpack.c.l.bf16 %v2215_v10 }
 0x150   : > { %v1240_v25 = vmax.f32 %v1176_v18, 0.0  ;;  %v1272_v26 = vmax.f32 %v1208_v20, 0.0 }
 0x151   : > { %v836_v27 = vpop.f32.mrb[28].mxu0  ;;  %v964_v28 = vpop.f32.mrb[28].mxu1 }
 0x152   : > { %v2064_v31 = vpack.c.bf16 %v1240_v25, %v1239_v23  ;;  %v2144_v32 = vpack.c.bf16 %v1272_v26, %v1271_v24  ;;  %v837_v33 = vadd.f32 %v2613_v19, %v836_v27  ;;  %v965_v34 = vadd.f32 %v2613_v19, %v964_v28  ;;  %v838_v35 = vpop.f32.mrb[29].mxu0  ;;  %v966_v36 = vpop.f32.mrb[29].mxu1 }
 0x153   : > { %v839_v37 = vpop.f32.mrb[30].mxu0  ;;  %v967_v38 = vpop.f32.mrb[30].mxu1  ;;  %v2006_v23 = vunpack.c.h.bf16 %v2215_v10 }
 0x154   : > { %2227 = vst [vmem:[%s2626_s12 + $0x30] sm:$0xff] %v2064_v31   ;;  %2243 = vst [vmem:[%s2626_s12 + $0xb0] sm:$0xff] %v2144_v32   ;;  %v1177_v39 = vadd.f32 %v1933_v21, %v837_v33  ;;  %v1209_v40 = vadd.f32 %v1997_v22, %v965_v34  ;;  %v840_v41 = vadd.f32 %v2613_v19, %v839_v37  ;;  %v841_v43 = vpop.f32.mrb[31].mxu0  ;;  %v969_v44 = vpop.f32.mrb[31].mxu1  ;;  %v1942_v22 = vunpack.c.h.bf16 %v2199_v9 }
 0x155   : > { %v968_v42 = vadd.f32 %v2613_v19, %v967_v38  ;;  %v2200_v38 = vld [vmem:[%s2606_s8 + $0x50] sm:$0xff]  }
 0x156   : > { %v1178_v47 = vadd.f32 %v1934_v29, %v840_v41  ;;  %v1241_v51 = vmax.f32 %v1177_v39, 0.0  ;;  %v1273_v52 = vmax.f32 %v1209_v40, 0.0  ;;  %v2216_v39 = vld [vmem:[%s2606_s8 + $0xd0] sm:$0xff]  }
 0x157   : > { %v1210_v48 = vadd.f32 %v1998_v30, %v968_v42  ;;  %v1945_v42 = vunpack.c.l.bf16 %v2200_v38  ;;  %v2009_v43 = vunpack.c.l.bf16 %v2216_v39 }
 0x158   : > { %v1242_v53 = vmax.f32 %v1178_v47, 0.0 }
 0x159   : > { %v1274_v54 = vmax.f32 %v1210_v48, 0.0  ;;  %v844_v55 = vpop.f32.mrb[32].mxu0  ;;  %v972_v56 = vpop.f32.mrb[32].mxu1 }
 0x15a   : > { %v2069_v59 = vpack.c.bf16 %v1242_v53, %v1241_v51  ;;  %v845_v61 = vadd.f32 %v2613_v19, %v844_v55  ;;  %v973_v62 = vadd.f32 %v2613_v19, %v972_v56  ;;  %v846_v63 = vpop.f32.mrb[33].mxu0  ;;  %v974_v0 = vpop.f32.mrb[33].mxu1  ;;  %v2010_v51 = vunpack.c.h.bf16 %v2216_v39 }
 0x15b   : > { %v2149_v60 = vpack.c.bf16 %v1274_v54, %v1273_v52  ;;  %v847_v1 = vpop.f32.mrb[34].mxu0  ;;  %v975_v2 = vpop.f32.mrb[34].mxu1 }
 0x15c   : > { %2228 = vst [vmem:[%s2626_s12 + $0x38] sm:$0xff] %v2069_v59   ;;  %v1179_v3 = vadd.f32 %v1937_v49, %v845_v61  ;;  %v1211_v4 = vadd.f32 %v2001_v50, %v973_v62  ;;  %v848_v5 = vadd.f32 %v2613_v19, %v847_v1  ;;  %v976_v6 = vadd.f32 %v2613_v19, %v975_v2  ;;  %v849_v7 = vpop.f32.mrb[35].mxu0  ;;  %v977_v8 = vpop.f32.mrb[35].mxu1  ;;  %v2201_v2 = vld [vmem:[%s2606_s8 + $0x58] sm:$0xff]  }
 0x15d   : > { %2244 = vst [vmem:[%s2626_s12 + $0xb8] sm:$0xff] %v2149_v60   ;;  %v1946_v50 = vunpack.c.h.bf16 %v2200_v38 }
 0x15e   : > { %v1180_v11 = vadd.f32 %v1938_v57, %v848_v5  ;;  %v1212_v12 = vadd.f32 %v2002_v58, %v976_v6  ;;  %v1243_v15 = vmax.f32 %v1179_v3, 0.0  ;;  %v1275_v16 = vmax.f32 %v1211_v4, 0.0  ;;  %v2217_v3 = vld [vmem:[%s2606_s8 + $0xd8] sm:$0xff]  }
 0x15f   : > { %v1949_v6 = vunpack.c.l.bf16 %v2201_v2  ;;  %v2013_v7 = vunpack.c.l.bf16 %v2217_v3 }
 0x160   : > { %v1244_v17 = vmax.f32 %v1180_v11, 0.0  ;;  %v1276_v18 = vmax.f32 %v1212_v12, 0.0 }
 0x161   : > { %v852_v20 = vpop.f32.mrb[36].mxu0  ;;  %v980_v21 = vpop.f32.mrb[36].mxu1 }
 0x162   : > { %v2074_v24 = vpack.c.bf16 %v1244_v17, %v1243_v15  ;;  %v2154_v25 = vpack.c.bf16 %v1276_v18, %v1275_v16  ;;  %v853_v26 = vadd.f32 %v2613_v19, %v852_v20  ;;  %v981_v27 = vadd.f32 %v2613_v19, %v980_v21  ;;  %v854_v28 = vpop.f32.mrb[37].mxu0  ;;  %v982_v29 = vpop.f32.mrb[37].mxu1 }
 0x163   : > { %v855_v30 = vpop.f32.mrb[38].mxu0  ;;  %v983_v31 = vpop.f32.mrb[38].mxu1  ;;  %v2014_v15 = vunpack.c.h.bf16 %v2217_v3 }
 0x164   : > { %2229 = vst [vmem:[%s2626_s12 + $0x40] sm:$0xff] %v2074_v24   ;;  %2245 = vst [vmem:[%s2626_s12 + $0xc0] sm:$0xff] %v2154_v25   ;;  %v1181_v32 = vadd.f32 %v1941_v13, %v853_v26  ;;  %v1213_v33 = vadd.f32 %v2005_v14, %v981_v27  ;;  %v856_v34 = vadd.f32 %v2613_v19, %v855_v30  ;;  %v857_v36 = vpop.f32.mrb[39].mxu0  ;;  %v985_v37 = vpop.f32.mrb[39].mxu1  ;;  %v1950_v14 = vunpack.c.h.bf16 %v2201_v2 }
 0x165   : > { %v984_v35 = vadd.f32 %v2613_v19, %v983_v31  ;;  %v2202_v31 = vld [vmem:[%s2606_s8 + $0x60] sm:$0xff]  }
 0x166   : > { %v1182_v40 = vadd.f32 %v1942_v22, %v856_v34  ;;  %v1245_v44 = vmax.f32 %v1181_v32, 0.0  ;;  %v1277_v45 = vmax.f32 %v1213_v33, 0.0  ;;  %v2218_v32 = vld [vmem:[%s2606_s8 + $0xe0] sm:$0xff]  }
 0x167   : > { %v1214_v41 = vadd.f32 %v2006_v23, %v984_v35  ;;  %v1953_v35 = vunpack.c.l.bf16 %v2202_v31  ;;  %v2017_v36 = vunpack.c.l.bf16 %v2218_v32 }
 0x168   : > { %v1246_v46 = vmax.f32 %v1182_v40, 0.0 }
 0x169   : > { %v1278_v47 = vmax.f32 %v1214_v41, 0.0  ;;  %v860_v48 = vpop.f32.mrb[40].mxu0  ;;  %v988_v49 = vpop.f32.mrb[40].mxu1 }
 0x16a   : > { %v2079_v52 = vpack.c.bf16 %v1246_v46, %v1245_v44  ;;  %v861_v54 = vadd.f32 %v2613_v19, %v860_v48  ;;  %v989_v55 = vadd.f32 %v2613_v19, %v988_v49  ;;  %v862_v56 = vpop.f32.mrb[41].mxu0  ;;  %v990_v57 = vpop.f32.mrb[41].mxu1  ;;  %v2018_v44 = vunpack.c.h.bf16 %v2218_v32 }
 0x16b   : > { %v2159_v53 = vpack.c.bf16 %v1278_v47, %v1277_v45  ;;  %v863_v58 = vpop.f32.mrb[42].mxu0  ;;  %v991_v59 = vpop.f32.mrb[42].mxu1 }
 0x16c   : > { %2230 = vst [vmem:[%s2626_s12 + $0x48] sm:$0xff] %v2079_v52   ;;  %v1183_v60 = vadd.f32 %v1945_v42, %v861_v54  ;;  %v1215_v61 = vadd.f32 %v2009_v43, %v989_v55  ;;  %v864_v62 = vadd.f32 %v2613_v19, %v863_v58  ;;  %v992_v63 = vadd.f32 %v2613_v19, %v991_v59  ;;  %v865_v0 = vpop.f32.mrb[43].mxu0  ;;  %v993_v1 = vpop.f32.mrb[43].mxu1  ;;  %v2203_v59 = vld [vmem:[%s2606_s8 + $0x68] sm:$0xff]  }
 0x16d   : > { %2246 = vst [vmem:[%s2626_s12 + $0xc8] sm:$0xff] %v2159_v53   ;;  %v1954_v43 = vunpack.c.h.bf16 %v2202_v31 }
 0x16e   : > { %v1184_v4 = vadd.f32 %v1946_v50, %v864_v62  ;;  %v1216_v5 = vadd.f32 %v2010_v51, %v992_v63  ;;  %v1247_v8 = vmax.f32 %v1183_v60, 0.0  ;;  %v1279_v9 = vmax.f32 %v1215_v61, 0.0  ;;  %v2219_v60 = vld [vmem:[%s2606_s8 + $0xe8] sm:$0xff]  }
 0x16f   : > { %v1957_v63 = vunpack.c.l.bf16 %v2203_v59  ;;  %v2021_v0 = vunpack.c.l.bf16 %v2219_v60 }
 0x170   : > { %v1248_v10 = vmax.f32 %v1184_v4, 0.0  ;;  %v1280_v11 = vmax.f32 %v1216_v5, 0.0 }
 0x171   : > { %v868_v12 = vpop.f32.mrb[44].mxu0  ;;  %v996_v13 = vpop.f32.mrb[44].mxu1 }
 0x172   : > { %v2084_v16 = vpack.c.bf16 %v1248_v10, %v1247_v8  ;;  %v2164_v17 = vpack.c.bf16 %v1280_v11, %v1279_v9  ;;  %v869_v18 = vadd.f32 %v2613_v19, %v868_v12  ;;  %v997_v20 = vadd.f32 %v2613_v19, %v996_v13  ;;  %v870_v21 = vpop.f32.mrb[45].mxu0  ;;  %v998_v22 = vpop.f32.mrb[45].mxu1 }
 0x173   : > { %v871_v23 = vpop.f32.mrb[46].mxu0  ;;  %v999_v24 = vpop.f32.mrb[46].mxu1  ;;  %v2022_v8 = vunpack.c.h.bf16 %v2219_v60 }
 0x174   : > { %2231 = vst [vmem:[%s2626_s12 + $0x50] sm:$0xff] %v2084_v16   ;;  %2247 = vst [vmem:[%s2626_s12 + $0xd0] sm:$0xff] %v2164_v17   ;;  %v1185_v25 = vadd.f32 %v1949_v6, %v869_v18  ;;  %v1217_v26 = vadd.f32 %v2013_v7, %v997_v20  ;;  %v872_v27 = vadd.f32 %v2613_v19, %v871_v23  ;;  %v873_v29 = vpop.f32.mrb[47].mxu0  ;;  %v1001_v30 = vpop.f32.mrb[47].mxu1  ;;  %v1958_v7 = vunpack.c.h.bf16 %v2203_v59 }
 0x175   : > { %v1000_v28 = vadd.f32 %v2613_v19, %v999_v24  ;;  %v2204_v24 = vld [vmem:[%s2606_s8 + $0x70] sm:$0xff]  }
 0x176   : > { %v1186_v33 = vadd.f32 %v1950_v14, %v872_v27  ;;  %v1249_v37 = vmax.f32 %v1185_v25, 0.0  ;;  %v1281_v38 = vmax.f32 %v1217_v26, 0.0  ;;  %v2220_v25 = vld [vmem:[%s2606_s8 + $0xf0] sm:$0xff]  }
 0x177   : > { %v1218_v34 = vadd.f32 %v2014_v15, %v1000_v28  ;;  %v1961_v28 = vunpack.c.l.bf16 %v2204_v24  ;;  %v2025_v29 = vunpack.c.l.bf16 %v2220_v25 }
 0x178   : > { %v1250_v39 = vmax.f32 %v1186_v33, 0.0 }
 0x179   : > { %v1282_v40 = vmax.f32 %v1218_v34, 0.0  ;;  %v876_v41 = vpop.f32.mrb[48].mxu0  ;;  %v1004_v42 = vpop.f32.mrb[48].mxu1 }
 0x17a   : > { %v2089_v45 = vpack.c.bf16 %v1250_v39, %v1249_v37  ;;  %v877_v47 = vadd.f32 %v2613_v19, %v876_v41  ;;  %v1005_v48 = vadd.f32 %v2613_v19, %v1004_v42  ;;  %v878_v49 = vpop.f32.mrb[49].mxu0  ;;  %v1006_v50 = vpop.f32.mrb[49].mxu1  ;;  %v2026_v37 = vunpack.c.h.bf16 %v2220_v25 }
 0x17b   : > { %v2169_v46 = vpack.c.bf16 %v1282_v40, %v1281_v38  ;;  %v879_v51 = vpop.f32.mrb[50].mxu0  ;;  %v1007_v52 = vpop.f32.mrb[50].mxu1 }
 0x17c   : > { %2232 = vst [vmem:[%s2626_s12 + $0x58] sm:$0xff] %v2089_v45   ;;  %v1187_v53 = vadd.f32 %v1953_v35, %v877_v47  ;;  %v1219_v54 = vadd.f32 %v2017_v36, %v1005_v48  ;;  %v880_v55 = vadd.f32 %v2613_v19, %v879_v51  ;;  %v1008_v56 = vadd.f32 %v2613_v19, %v1007_v52  ;;  %v881_v57 = vpop.f32.mrb[51].mxu0  ;;  %v1009_v58 = vpop.f32.mrb[51].mxu1  ;;  %v2205_v52 = vld [vmem:[%s2606_s8 + $0x78] sm:$0xff]  }
 0x17d   : > { %2248 = vst [vmem:[%s2626_s12 + $0xd8] sm:$0xff] %v2169_v46   ;;  %v1962_v36 = vunpack.c.h.bf16 %v2204_v24 }
 0x17e   : > { %v1188_v61 = vadd.f32 %v1954_v43, %v880_v55  ;;  %v1220_v62 = vadd.f32 %v2018_v44, %v1008_v56  ;;  %v1251_v1 = vmax.f32 %v1187_v53, 0.0  ;;  %v1283_v2 = vmax.f32 %v1219_v54, 0.0  ;;  %v2221_v53 = vld [vmem:[%s2606_s8 + $0xf8] sm:$0xff]  }
 0x17f   : > { %v1965_v56 = vunpack.c.l.bf16 %v2205_v52  ;;  %v2029_v57 = vunpack.c.l.bf16 %v2221_v53 }
 0x180   : > { %v1252_v3 = vmax.f32 %v1188_v61, 0.0  ;;  %v1284_v4 = vmax.f32 %v1220_v62, 0.0 }
 0x181   : > { %v884_v5 = vpop.f32.mrb[52].mxu0  ;;  %v1012_v6 = vpop.f32.mrb[52].mxu1 }
 0x182   : > { %v2094_v9 = vpack.c.bf16 %v1252_v3, %v1251_v1  ;;  %v2174_v10 = vpack.c.bf16 %v1284_v4, %v1283_v2  ;;  %v885_v11 = vadd.f32 %v2613_v19, %v884_v5  ;;  %v1013_v12 = vadd.f32 %v2613_v19, %v1012_v6  ;;  %v886_v13 = vpop.f32.mrb[53].mxu0  ;;  %v1014_v14 = vpop.f32.mrb[53].mxu1 }
 0x183   : > { %v887_v15 = vpop.f32.mrb[54].mxu0  ;;  %v1015_v16 = vpop.f32.mrb[54].mxu1  ;;  %v2030_v1 = vunpack.c.h.bf16 %v2221_v53 }
 0x184   : > { %2233 = vst [vmem:[%s2626_s12 + $0x60] sm:$0xff] %v2094_v9   ;;  %2249 = vst [vmem:[%s2626_s12 + $0xe0] sm:$0xff] %v2174_v10   ;;  %v1189_v17 = vadd.f32 %v1957_v63, %v885_v11  ;;  %v1221_v18 = vadd.f32 %v2021_v0, %v1013_v12  ;;  %v888_v20 = vadd.f32 %v2613_v19, %v887_v15  ;;  %v889_v22 = vpop.f32.mrb[55].mxu0  ;;  %v1017_v23 = vpop.f32.mrb[55].mxu1  ;;  %v1966_v0 = vunpack.c.h.bf16 %v2205_v52 }
 0x185   : > { %v1016_v21 = vadd.f32 %v2613_v19, %v1015_v16 }
 0x186   : > { %v1190_v26 = vadd.f32 %v1958_v7, %v888_v20  ;;  %v1253_v30 = vmax.f32 %v1189_v17, 0.0  ;;  %v1285_v31 = vmax.f32 %v1221_v18, 0.0 }
 0x187   : > { %v1222_v27 = vadd.f32 %v2022_v8, %v1016_v21 }
 0x188   : > { %v1254_v32 = vmax.f32 %v1190_v26, 0.0 }
 0x189   : > { %v1286_v33 = vmax.f32 %v1222_v27, 0.0  ;;  %v892_v34 = vpop.f32.mrb[56].mxu0  ;;  %v1020_v35 = vpop.f32.mrb[56].mxu1 }
 0x18a   : > { %v2099_v38 = vpack.c.bf16 %v1254_v32, %v1253_v30  ;;  %v893_v40 = vadd.f32 %v2613_v19, %v892_v34  ;;  %v1021_v41 = vadd.f32 %v2613_v19, %v1020_v35  ;;  %v894_v42 = vpop.f32.mrb[57].mxu0  ;;  %v1022_v43 = vpop.f32.mrb[57].mxu1 }
 0x18b   : > { %v2179_v39 = vpack.c.bf16 %v1286_v33, %v1285_v31  ;;  %v895_v44 = vpop.f32.mrb[58].mxu0  ;;  %v1023_v45 = vpop.f32.mrb[58].mxu1 }
 0x18c   : > { %2234 = vst [vmem:[%s2626_s12 + $0x68] sm:$0xff] %v2099_v38   ;;  %v1191_v46 = vadd.f32 %v1961_v28, %v893_v40  ;;  %v1223_v47 = vadd.f32 %v2025_v29, %v1021_v41  ;;  %v896_v48 = vadd.f32 %v2613_v19, %v895_v44  ;;  %v1024_v49 = vadd.f32 %v2613_v19, %v1023_v45  ;;  %v897_v50 = vpop.f32.mrb[59].mxu0  ;;  %v1025_v51 = vpop.f32.mrb[59].mxu1 }
 0x18d   : > { %2250 = vst [vmem:[%s2626_s12 + $0xe8] sm:$0xff] %v2179_v39  }
 0x18e   : > { %v1192_v54 = vadd.f32 %v1962_v36, %v896_v48  ;;  %v1224_v55 = vadd.f32 %v2026_v37, %v1024_v49  ;;  %v1255_v58 = vmax.f32 %v1191_v46, 0.0  ;;  %v1287_v59 = vmax.f32 %v1223_v47, 0.0 }
 0x190   : > { %v1256_v60 = vmax.f32 %v1192_v54, 0.0  ;;  %v1288_v61 = vmax.f32 %v1224_v55, 0.0 }
 0x191   : > { %v900_v62 = vpop.f32.mrb[60].mxu0  ;;  %v1028_v63 = vpop.f32.mrb[60].mxu1 }
 0x192   : > { %v2104_v2 = vpack.c.bf16 %v1256_v60, %v1255_v58  ;;  %v2184_v3 = vpack.c.bf16 %v1288_v61, %v1287_v59  ;;  %v901_v4 = vadd.f32 %v2613_v19, %v900_v62  ;;  %v1029_v5 = vadd.f32 %v2613_v19, %v1028_v63  ;;  %v902_v6 = vpop.f32.mrb[61].mxu0  ;;  %v1030_v7 = vpop.f32.mrb[61].mxu1 }
 0x193   : > { %v903_v8 = vpop.f32.mrb[62].mxu0  ;;  %v1031_v9 = vpop.f32.mrb[62].mxu1 }
 0x194   : > { %2235 = vst [vmem:[%s2626_s12 + $0x70] sm:$0xff] %v2104_v2   ;;  %2251 = vst [vmem:[%s2626_s12 + $0xf0] sm:$0xff] %v2184_v3   ;;  %v1193_v10 = vadd.f32 %v1965_v56, %v901_v4  ;;  %v1225_v11 = vadd.f32 %v2029_v57, %v1029_v5  ;;  %v904_v12 = vadd.f32 %v2613_v19, %v903_v8  ;;  %v905_v14 = vpop.f32.mrb[63].mxu0  ;;  %v1033_v15 = vpop.f32.mrb[63].mxu1 }
 0x195   : > { %v1032_v13 = vadd.f32 %v2613_v19, %v1031_v9 }
 0x196   : > { %v1194_v16 = vadd.f32 %v1966_v0, %v904_v12  ;;  %v1257_v18 = vmax.f32 %v1193_v10, 0.0  ;;  %v1289_v20 = vmax.f32 %v1225_v11, 0.0 }
 0x197   : > { %v1226_v17 = vadd.f32 %v2030_v1, %v1032_v13 }
 0x198   : > { %v1258_v21 = vmax.f32 %v1194_v16, 0.0 }
 0x199   : > { %v1290_v22 = vmax.f32 %v1226_v17, 0.0 }
 0x19a   : > { %v2109_v23 = vpack.c.bf16 %v1258_v21, %v1257_v18 }
 0x19b   : > { %v2189_v24 = vpack.c.bf16 %v1290_v22, %v1289_v20 }
 0x19c   : > { %2236 = vst [vmem:[%s2626_s12 + $0x78] sm:$0xff] %v2109_v23  }
 0x19d   : > { %2252 = vst [vmem:[%s2626_s12 + $0xf8] sm:$0xff] %v2189_v24  }
 0x19e PF: > { %s14_s15 = sadd.s32 1, %s2412_s15  }
 0x19f   : > { %p11_p4 = scmp.ge.s32.totalorder %s14_s15, 6  }
 0x1a1   :  { %13 = sbr.rel (!%p11_p4) target bundleno = 1 (0x1), region = 69 }

// kernel: resnet_forward.18
= control target key start
LH: loop header
LB: loop body
LE: loop exit
PB: predicated region body
PF: predicated region fallthrough
CT: control target
= control target key end

     0   :  { %s1363_s12 = smov 0   ;;  %s1521_s0 = inlined_call_operand.vmem [shape: bf16[512,256], index: 0, kind: input, shape index: {}]   ;;  %s1522_s1 = inlined_call_operand.vmem [shape: bf16[256,128], index: 1, kind: input, shape index: {}]   ;;  %s1523_s2 = inlined_call_operand.vmem [shape: f32[1,128], index: 2, kind: input, shape index: {}]   ;;  %s1524_s3 = inlined_call_operand.vmem [shape: bf16[512,128], index: 3, kind: output, shape index: {}]  }
   0x1 LB: > { %s914_s13 = sadd.s32 4294967295, %s1341_s12   ;;  %p918_p0 = scmp.ge.s32.totalorder %s1341_s12, 1  ;;  %s1341_s12 = sphi %s1363_s12, %s13_s12  }
   0x2   : > { %p139_p1 = scmp.lt.s32.totalorder %s1341_s12, 3 }
   0x4   : > { %p140_p2 = pnand %p918_p0, %p139_p1 }
   0x5   : > { %v1271_v0 = vld [vmem:[%s1522_s1 + $0x40] sm:$0xff] (!%p140_p2)   ;;  %s919_s16 = sshll.u32 (!%p140_p2), %s914_s13, 5  ;;  %v1273_v2 = vld [vmem:[%s1522_s1 + $0x48] sm:$0xff] (!%p140_p2)   ;;  %v1275_v4 = vld [vmem:[%s1522_s1 + $0x50] sm:$0xff] (!%p140_p2)  }
   0x6   : > { %143 = sbr.rel (%p140_p2) target bundleno = 319 (0x13f), region = 32  ;;  %v1272_v1 = vld [vmem:[%s1522_s1] sm:$0xff] (!%p140_p2)   ;;  %1135 = vmatprep.subr.bf16.mxu0 (!%p140_p2), %v1271_v0  ;;  %1247 = vmatprep.subr.bf16.mxu1 (!%p140_p2), %v1271_v0  ;;  %v1274_v3 = vld [vmem:[%s1522_s1 + $0x8] sm:$0xff] (!%p140_p2)   ;;  %p165_p3 = scmp.lt.s32.totalorder (!%p140_p2), %s919_s16, 63  ;;  %v1276_v5 = vld [vmem:[%s1522_s1 + $0x10] sm:$0xff] (!%p140_p2)  }
   0x7   : > { %1136 = vmatpush3.bf16.msra.mxu0 (!%p140_p2), %v1272_v1  ;;  %1255 = vmatpush3.bf16.msra.mxu1 (!%p140_p2), %v1272_v1  ;;  %v1277_v6 = vld [vmem:[%s1522_s1 + $0x58] sm:$0xff] (!%p140_p2)   ;;  %v1279_v8 = vld [vmem:[%s1522_s1 + $0x60] sm:$0xff] (!%p140_p2)   ;;  %v1281_v10 = vld [vmem:[%s1522_s1 + $0x68] sm:$0xff] (!%p140_p2)  }
   0x8   : > { %1137 = vmatprep.subr.bf16.mxu0 (!%p140_p2), %v1273_v2  ;;  %1248 = vmatprep.subr.bf16.mxu1 (!%p140_p2), %v1273_v2  ;;  %v1278_v7 = vld [vmem:[%s1522_s1 + $0x18] sm:$0xff] (!%p140_p2)   ;;  %v1280_v9 = vld [vmem:[%s1522_s1 + $0x20] sm:$0xff] (!%p140_p2)   ;;  %v1282_v13 = vld [vmem:[%s1522_s1 + $0x28] sm:$0xff] (!%p140_p2)  }
   0x9   : > { %v1283_v14 = vld [vmem:[%s1522_s1 + $0x70] sm:$0xff] (!%p140_p2)   ;;  %v1285_v16 = vld [vmem:[%s1522_s1 + $0x78] sm:$0xff] (!%p140_p2)   ;;  %v1462_v50 = vld [vmem:[%s1523_s2] ss:$0 sm:$0xff] (!%p140_p2) }
   0xa   : > { %v1284_v15 = vld [vmem:[%s1522_s1 + $0x30] sm:$0xff] (!%p140_p2)   ;;  %v1286_v17 = vld [vmem:[%s1522_s1 + $0x38] sm:$0xff] (!%p140_p2)  }
   0xb   : > { %1138 = vmatpush3.bf16.msra.mxu0 (!%p140_p2), %v1274_v3  ;;  %1256 = vmatpush3.bf16.msra.mxu1 (!%p140_p2), %v1274_v3 }
   0xc   : > { %1139 = vmatprep.subr.bf16.mxu0 (!%p140_p2), %v1275_v4  ;;  %1249 = vmatprep.subr.bf16.mxu1 (!%p140_p2), %v1275_v4 }
   0xd   : > { %s1526_s16 = smov (!%p165_p3, %s919_s16), 63 }
   0xe   : > { %s1007_s4 = sshll.u32 %s1526_s16, 3  ;;  %s923_s28 = sshll.u32 %s1526_s16, 2 }
   0xf   : > { %1140 = vmatpush3.bf16.msra.mxu0 %v1276_v5  ;;  %1257 = vmatpush3.bf16.msra.mxu1 %v1276_v5  ;;  %s1404_s9 = scalar_lea.vmem %s1521_s0, %s1007_s4  ;;  %s1472_s4 = scalar_lea.vmem %s1524_s3, %s923_s28 }
  0x10   : > { %1141 = vmatprep.subr.bf16.mxu0 %v1277_v6  ;;  %1250 = vmatprep.subr.bf16.mxu1 %v1277_v6  ;;  %v1289_v11 = vld [vmem:[%s1404_s9 + $0x4] ss:$8 sps:$4 sm:$0xff]   ;;  %v1287_v18 = vld [vmem:[%s1404_s9] ss:$8 sps:$4 sm:$0xff]   ;;  %v1293_v20 = vld [vmem:[%s1404_s9 + $0x14] ss:$8 sps:$4 sm:$0xff]  }
  0x11   : > { %v1292_v12 = vld [vmem:[%s1404_s9 + $0x84] ss:$8 sps:$4 sm:$0xff]   ;;  %537 = vmatprep.mubr.bf16.mxu0 %v1289_v11  ;;  %v1290_v19 = vld [vmem:[%s1404_s9 + $0x80] ss:$8 sps:$4 sm:$0xff]   ;;  %v1295_v21 = vld [vmem:[%s1404_s9 + $0x94] ss:$8 sps:$4 sm:$0xff]  }
  0x12   : > { %601 = vmatprep.mubr.bf16.mxu1 %v1292_v12  ;;  %v1297_v22 = vld [vmem:[%s1404_s9 + $0x10] ss:$8 sps:$4 sm:$0xff]   ;;  %v1299_v24 = vld [vmem:[%s1404_s9 + $0x24] ss:$8 sps:$4 sm:$0xff]   ;;  %v1303_v26 = vld [vmem:[%s1404_s9 + $0x20] ss:$8 sps:$4 sm:$0xff]  }
  0x13   : > { %1142 = vmatpush3.bf16.msra.mxu0 %v1278_v7  ;;  %1258 = vmatpush3.bf16.msra.mxu1 %v1278_v7  ;;  %v1298_v23 = vld [vmem:[%s1404_s9 + $0x90] ss:$8 sps:$4 sm:$0xff]   ;;  %v1301_v25 = vld [vmem:[%s1404_s9 + $0xa4] ss:$8 sps:$4 sm:$0xff]   ;;  %v1304_v27 = vld [vmem:[%s1404_s9 + $0xa0] ss:$8 sps:$4 sm:$0xff]  }
  0x14   : > { %1143 = vmatprep.subr.bf16.mxu0 %v1279_v8  ;;  %1251 = vmatprep.subr.bf16.mxu1 %v1279_v8  ;;  %v1305_v28 = vld [vmem:[%s1404_s9 + $0x34] ss:$8 sps:$4 sm:$0xff]   ;;  %v1309_v30 = vld [vmem:[%s1404_s9 + $0x30] ss:$8 sps:$4 sm:$0xff]   ;;  %v1311_v32 = vld [vmem:[%s1404_s9 + $0x44] ss:$8 sps:$4 sm:$0xff]  }
  0x15   : > { %v1307_v29 = vld [vmem:[%s1404_s9 + $0xb4] ss:$8 sps:$4 sm:$0xff]   ;;  %v1310_v31 = vld [vmem:[%s1404_s9 + $0xb0] ss:$8 sps:$4 sm:$0xff]   ;;  %v1313_v33 = vld [vmem:[%s1404_s9 + $0xc4] ss:$8 sps:$4 sm:$0xff]  }
  0x16   : > { %v1315_v34 = vld [vmem:[%s1404_s9 + $0x40] ss:$8 sps:$4 sm:$0xff]   ;;  %v1317_v36 = vld [vmem:[%s1404_s9 + $0x54] ss:$8 sps:$4 sm:$0xff]   ;;  %v1321_v38 = vld [vmem:[%s1404_s9 + $0x50] ss:$8 sps:$4 sm:$0xff]  }
  0x17   : > { %1144 = vmatpush3.bf16.msra.mxu0 %v1280_v9  ;;  %1259 = vmatpush3.bf16.msra.mxu1 %v1280_v9  ;;  %v1316_v35 = vld [vmem:[%s1404_s9 + $0xc0] ss:$8 sps:$4 sm:$0xff]   ;;  %v1319_v37 = vld [vmem:[%s1404_s9 + $0xd4] ss:$8 sps:$4 sm:$0xff]   ;;  %v1322_v39 = vld [vmem:[%s1404_s9 + $0xd0] ss:$8 sps:$4 sm:$0xff]  }
  0x18   : > { %1145 = vmatprep.subr.bf16.mxu0 %v1281_v10  ;;  %1252 = vmatprep.subr.bf16.mxu1 %v1281_v10  ;;  %v1323_v40 = vld [vmem:[%s1404_s9 + $0x64] ss:$8 sps:$4 sm:$0xff]   ;;  %v1327_v42 = vld [vmem:[%s1404_s9 + $0x60] ss:$8 sps:$4 sm:$0xff]   ;;  %v1329_v44 = vld [vmem:[%s1404_s9 + $0x74] ss:$8 sps:$4 sm:$0xff]  }
  0x19   : > { %v1325_v41 = vld [vmem:[%s1404_s9 + $0xe4] ss:$8 sps:$4 sm:$0xff]   ;;  %v1328_v43 = vld [vmem:[%s1404_s9 + $0xe0] ss:$8 sps:$4 sm:$0xff]   ;;  %v1331_v45 = vld [vmem:[%s1404_s9 + $0xf4] ss:$8 sps:$4 sm:$0xff]  }
  0x1a   : > { %v1333_v46 = vld [vmem:[%s1404_s9 + $0x70] ss:$8 sps:$4 sm:$0xff]  }
  0x1b   : > { %1146 = vmatpush3.bf16.msra.mxu0 %v1282_v13  ;;  %1260 = vmatpush3.bf16.msra.mxu1 %v1282_v13  ;;  %v1334_v47 = vld [vmem:[%s1404_s9 + $0xf0] ss:$8 sps:$4 sm:$0xff]  }
  0x1c   : > { %1147 = vmatprep.subr.bf16.mxu0 %v1283_v14  ;;  %1253 = vmatprep.subr.bf16.mxu1 %v1283_v14 }
  0x1f   : > { %1148 = vmatpush3.bf16.msra.mxu0 %v1284_v15  ;;  %1261 = vmatpush3.bf16.msra.mxu1 %v1284_v15 }
  0x20   : > { %1149 = vmatprep.subr.bf16.mxu0 %v1285_v16  ;;  %1254 = vmatprep.subr.bf16.mxu1 %v1285_v16 }
  0x23   : > { %1150 = vmatpush3.bf16.msra.mxu0 %v1286_v17  ;;  %1262 = vmatpush3.bf16.msra.mxu1 %v1286_v17 }
  0x26   : > { %538 = vmatmul.mubr.bf16.vlgmr.msra.gmra.mrb[0].mxu0 %v1287_v18  ;;  %602 = vmatmul.mubr.bf16.vlgmr.msra.gmra.mrb[0].mxu1 %v1290_v19 }
  0x27   : > { %545 = vmatprep.mubr.bf16.mxu0 %v1293_v20  ;;  %609 = vmatprep.mubr.bf16.mxu1 %v1295_v21 }
  0x2e   : > { %546 = vmatmul.mubr.bf16.gmra.mrb[4].mxu0 %v1297_v22  ;;  %610 = vmatmul.mubr.bf16.gmra.mrb[4].mxu1 %v1298_v23 }
  0x2f   : > { %553 = vmatprep.mubr.bf16.mxu0 %v1299_v24  ;;  %617 = vmatprep.mubr.bf16.mxu1 %v1301_v25 }
  0x36   : > { %554 = vmatmul.mubr.bf16.gmra.mrb[8].mxu0 %v1303_v26  ;;  %618 = vmatmul.mubr.bf16.gmra.mrb[8].mxu1 %v1304_v27 }
  0x37   : > { %561 = vmatprep.mubr.bf16.mxu0 %v1305_v28  ;;  %625 = vmatprep.mubr.bf16.mxu1 %v1307_v29 }
  0x3e   : > { %562 = vmatmul.mubr.bf16.gmra.mrb[12].mxu0 %v1309_v30  ;;  %626 = vmatmul.mubr.bf16.gmra.mrb[12].mxu1 %v1310_v31 }
  0x3f   : > { %569 = vmatprep.mubr.bf16.mxu0 %v1311_v32  ;;  %633 = vmatprep.mubr.bf16.mxu1 %v1313_v33 }
  0x46   : > { %570 = vmatmul.mubr.bf16.gmra.mrb[16].mxu0 %v1315_v34  ;;  %634 = vmatmul.mubr.bf16.gmra.mrb[16].mxu1 %v1316_v35 }
  0x47   : > { %577 = vmatprep.mubr.bf16.mxu0 %v1317_v36  ;;  %641 = vmatprep.mubr.bf16.mxu1 %v1319_v37 }
  0x4e   : > { %578 = vmatmul.mubr.bf16.gmra.mrb[20].mxu0 %v1321_v38  ;;  %642 = vmatmul.mubr.bf16.gmra.mrb[20].mxu1 %v1322_v39 }
  0x4f   : > { %585 = vmatprep.mubr.bf16.mxu0 %v1323_v40  ;;  %649 = vmatprep.mubr.bf16.mxu1 %v1325_v41 }
  0x56   : > { %586 = vmatmul.mubr.bf16.gmra.mrb[24].mxu0 %v1327_v42  ;;  %650 = vmatmul.mubr.bf16.gmra.mrb[24].mxu1 %v1328_v43 }
  0x57   : > { %593 = vmatprep.mubr.bf16.mxu0 %v1329_v44  ;;  %657 = vmatprep.mubr.bf16.mxu1 %v1331_v45 }
  0x5e   : > { %594 = vmatmul.mubr.bf16.gmra.mrb[28].mxu0 %v1333_v46  ;;  %658 = vmatmul.mubr.bf16.gmra.mrb[28].mxu1 %v1334_v47 }
  0xf9   : > { %v1151_v48 = vpop.f32.mrb[0].mxu0  ;;  %v1199_v49 = vpop.f32.mrb[0].mxu1 }
  0xfa   : > { %v1152_v51 = vpop.f32.mrb[1].mxu0  ;;  %v1200_v52 = vpop.f32.mrb[1].mxu1 }
  0xfb   : > { %v1153_v53 = vadd.f32 %v1152_v51, %v1151_v48  ;;  %v1201_v54 = vadd.f32 %v1200_v52, %v1199_v49  ;;  %v1154_v55 = vpop.f32.mrb[2].mxu0  ;;  %v1202_v56 = vpop.f32.mrb[2].mxu1 }
  0xfc   : > { %v1155_v57 = vpop.f32.mrb[3].mxu0  ;;  %v1203_v58 = vpop.f32.mrb[3].mxu1 }
  0xfd   : > { %v540_v59 = vadd.f32 %v1153_v53, %v1462_v50  ;;  %v604_v60 = vadd.f32 %v1201_v54, %v1462_v50  ;;  %v1156_v61 = vadd.f32 %v1155_v57, %v1154_v55  ;;  %v1204_v62 = vadd.f32 %v1203_v58, %v1202_v56 }
  0xff   : > { %v543_v63 = vadd.f32 %v1156_v61, %v1462_v50  ;;  %v607_v0 = vadd.f32 %v1204_v62, %v1462_v50  ;;  %v666_v1 = vmax.f32 %v540_v59, 0.0  ;;  %v682_v2 = vmax.f32 %v604_v60, 0.0 }
 0x101   : > { %v667_v3 = vmax.f32 %v543_v63, 0.0  ;;  %v683_v4 = vmax.f32 %v607_v0, 0.0  ;;  %v1157_v5 = vpop.f32.mrb[4].mxu0  ;;  %v1205_v6 = vpop.f32.mrb[4].mxu1 }
 0x102   : > { %v1158_v7 = vpop.f32.mrb[5].mxu0  ;;  %v1206_v8 = vpop.f32.mrb[5].mxu1 }
 0x103   : > { %v1043_v9 = vpack.c.bf16 %v667_v3, %v666_v1  ;;  %v1083_v10 = vpack.c.bf16 %v683_v4, %v682_v2  ;;  %v1159_v11 = vadd.f32 %v1158_v7, %v1157_v5  ;;  %v1207_v12 = vadd.f32 %v1206_v8, %v1205_v6  ;;  %v1160_v13 = vpop.f32.mrb[6].mxu0  ;;  %v1208_v14 = vpop.f32.mrb[6].mxu1 }
 0x104   : > { %v1161_v15 = vpop.f32.mrb[7].mxu0  ;;  %v1209_v16 = vpop.f32.mrb[7].mxu1 }
 0x105   : > { %1044 = vst [vmem:[%s1472_s4] sm:$0xff] %v1043_v9   ;;  %1127 = vst [vmem:[%s1472_s4 + $0x40] sm:$0xff] %v1083_v10   ;;  %v548_v17 = vadd.f32 %v1159_v11, %v1462_v50  ;;  %v612_v18 = vadd.f32 %v1207_v12, %v1462_v50  ;;  %v1162_v19 = vadd.f32 %v1161_v15, %v1160_v13 }
 0x106   : > { %v1210_v20 = vadd.f32 %v1209_v16, %v1208_v14 }
 0x107   : > { %v551_v21 = vadd.f32 %v1162_v19, %v1462_v50  ;;  %v668_v23 = vmax.f32 %v548_v17, 0.0  ;;  %v684_v24 = vmax.f32 %v612_v18, 0.0 }
 0x108   : > { %v615_v22 = vadd.f32 %v1210_v20, %v1462_v50 }
 0x109   : > { %v669_v25 = vmax.f32 %v551_v21, 0.0  ;;  %v1163_v27 = vpop.f32.mrb[8].mxu0  ;;  %v1211_v28 = vpop.f32.mrb[8].mxu1 }
 0x10a   : > { %v685_v26 = vmax.f32 %v615_v22, 0.0  ;;  %v1164_v29 = vpop.f32.mrb[9].mxu0  ;;  %v1212_v30 = vpop.f32.mrb[9].mxu1 }
 0x10b   : > { %v1048_v31 = vpack.c.bf16 %v669_v25, %v668_v23  ;;  %v1165_v33 = vadd.f32 %v1164_v29, %v1163_v27  ;;  %v1213_v34 = vadd.f32 %v1212_v30, %v1211_v28  ;;  %v1166_v35 = vpop.f32.mrb[10].mxu0  ;;  %v1214_v36 = vpop.f32.mrb[10].mxu1 }
 0x10c   : > { %v1088_v32 = vpack.c.bf16 %v685_v26, %v684_v24  ;;  %v1167_v37 = vpop.f32.mrb[11].mxu0  ;;  %v1215_v38 = vpop.f32.mrb[11].mxu1 }
 0x10d   : > { %1120 = vst [vmem:[%s1472_s4 + $0x8] sm:$0xff] %v1048_v31   ;;  %v556_v39 = vadd.f32 %v1165_v33, %v1462_v50  ;;  %v620_v40 = vadd.f32 %v1213_v34, %v1462_v50  ;;  %v1168_v41 = vadd.f32 %v1167_v37, %v1166_v35  ;;  %v1216_v42 = vadd.f32 %v1215_v38, %v1214_v36 }
 0x10e   : > { %1128 = vst [vmem:[%s1472_s4 + $0x48] sm:$0xff] %v1088_v32  }
 0x10f   : > { %v559_v43 = vadd.f32 %v1168_v41, %v1462_v50  ;;  %v623_v44 = vadd.f32 %v1216_v42, %v1462_v50  ;;  %v670_v45 = vmax.f32 %v556_v39, 0.0  ;;  %v686_v46 = vmax.f32 %v620_v40, 0.0 }
 0x111   : > { %v671_v47 = vmax.f32 %v559_v43, 0.0  ;;  %v687_v48 = vmax.f32 %v623_v44, 0.0  ;;  %v1169_v49 = vpop.f32.mrb[12].mxu0  ;;  %v1217_v51 = vpop.f32.mrb[12].mxu1 }
 0x112   : > { %v1170_v52 = vpop.f32.mrb[13].mxu0  ;;  %v1218_v53 = vpop.f32.mrb[13].mxu1 }
 0x113   : > { %v1053_v54 = vpack.c.bf16 %v671_v47, %v670_v45  ;;  %v1093_v55 = vpack.c.bf16 %v687_v48, %v686_v46  ;;  %v1171_v56 = vadd.f32 %v1170_v52, %v1169_v49  ;;  %v1219_v57 = vadd.f32 %v1218_v53, %v1217_v51  ;;  %v1172_v58 = vpop.f32.mrb[14].mxu0  ;;  %v1220_v59 = vpop.f32.mrb[14].mxu1 }
 0x114   : > { %v1173_v60 = vpop.f32.mrb[15].mxu0  ;;  %v1221_v61 = vpop.f32.mrb[15].mxu1 }
 0x115   : > { %1121 = vst [vmem:[%s1472_s4 + $0x10] sm:$0xff] %v1053_v54   ;;  %1129 = vst [vmem:[%s1472_s4 + $0x50] sm:$0xff] %v1093_v55   ;;  %v564_v62 = vadd.f32 %v1171_v56, %v1462_v50  ;;  %v628_v63 = vadd.f32 %v1219_v57, %v1462_v50  ;;  %v1174_v0 = vadd.f32 %v1173_v60, %v1172_v58 }
 0x116   : > { %v1222_v1 = vadd.f32 %v1221_v61, %v1220_v59 }
 0x117   : > { %v567_v2 = vadd.f32 %v1174_v0, %v1462_v50  ;;  %v672_v4 = vmax.f32 %v564_v62, 0.0  ;;  %v688_v5 = vmax.f32 %v628_v63, 0.0 }
 0x118   : > { %v631_v3 = vadd.f32 %v1222_v1, %v1462_v50 }
 0x119   : > { %v673_v6 = vmax.f32 %v567_v2, 0.0  ;;  %v1175_v8 = vpop.f32.mrb[16].mxu0  ;;  %v1223_v9 = vpop.f32.mrb[16].mxu1 }
 0x11a   : > { %v689_v7 = vmax.f32 %v631_v3, 0.0  ;;  %v1176_v10 = vpop.f32.mrb[17].mxu0  ;;  %v1224_v11 = vpop.f32.mrb[17].mxu1 }
 0x11b   : > { %v1058_v12 = vpack.c.bf16 %v673_v6, %v672_v4  ;;  %v1177_v14 = vadd.f32 %v1176_v10, %v1175_v8  ;;  %v1225_v15 = vadd.f32 %v1224_v11, %v1223_v9  ;;  %v1178_v16 = vpop.f32.mrb[18].mxu0  ;;  %v1226_v17 = vpop.f32.mrb[18].mxu1 }
 0x11c   : > { %v1098_v13 = vpack.c.bf16 %v689_v7, %v688_v5  ;;  %v1179_v18 = vpop.f32.mrb[19].mxu0  ;;  %v1227_v19 = vpop.f32.mrb[19].mxu1 }
 0x11d   : > { %1122 = vst [vmem:[%s1472_s4 + $0x18] sm:$0xff] %v1058_v12   ;;  %v572_v20 = vadd.f32 %v1177_v14, %v1462_v50  ;;  %v636_v21 = vadd.f32 %v1225_v15, %v1462_v50  ;;  %v1180_v22 = vadd.f32 %v1179_v18, %v1178_v16  ;;  %v1228_v23 = vadd.f32 %v1227_v19, %v1226_v17 }
 0x11e   : > { %1130 = vst [vmem:[%s1472_s4 + $0x58] sm:$0xff] %v1098_v13  }
 0x11f   : > { %v575_v24 = vadd.f32 %v1180_v22, %v1462_v50  ;;  %v639_v25 = vadd.f32 %v1228_v23, %v1462_v50  ;;  %v674_v26 = vmax.f32 %v572_v20, 0.0  ;;  %v690_v27 = vmax.f32 %v636_v21, 0.0 }
 0x121   : > { %v675_v28 = vmax.f32 %v575_v24, 0.0  ;;  %v691_v29 = vmax.f32 %v639_v25, 0.0  ;;  %v1181_v30 = vpop.f32.mrb[20].mxu0  ;;  %v1229_v31 = vpop.f32.mrb[20].mxu1 }
 0x122   : > { %v1182_v32 = vpop.f32.mrb[21].mxu0  ;;  %v1230_v33 = vpop.f32.mrb[21].mxu1 }
 0x123   : > { %v1063_v34 = vpack.c.bf16 %v675_v28, %v674_v26  ;;  %v1103_v35 = vpack.c.bf16 %v691_v29, %v690_v27  ;;  %v1183_v36 = vadd.f32 %v1182_v32, %v1181_v30  ;;  %v1231_v37 = vadd.f32 %v1230_v33, %v1229_v31  ;;  %v1184_v38 = vpop.f32.mrb[22].mxu0  ;;  %v1232_v39 = vpop.f32.mrb[22].mxu1 }
 0x124   : > { %v1185_v40 = vpop.f32.mrb[23].mxu0  ;;  %v1233_v41 = vpop.f32.mrb[23].mxu1 }
 0x125   : > { %1123 = vst [vmem:[%s1472_s4 + $0x20] sm:$0xff] %v1063_v34   ;;  %1131 = vst [vmem:[%s1472_s4 + $0x60] sm:$0xff] %v1103_v35   ;;  %v580_v42 = vadd.f32 %v1183_v36, %v1462_v50  ;;  %v644_v43 = vadd.f32 %v1231_v37, %v1462_v50  ;;  %v1186_v44 = vadd.f32 %v1185_v40, %v1184_v38 }
 0x126   : > { %v1234_v45 = vadd.f32 %v1233_v41, %v1232_v39 }
 0x127   : > { %v583_v46 = vadd.f32 %v1186_v44, %v1462_v50  ;;  %v676_v48 = vmax.f32 %v580_v42, 0.0  ;;  %v692_v49 = vmax.f32 %v644_v43, 0.0 }
 0x128   : > { %v647_v47 = vadd.f32 %v1234_v45, %v1462_v50 }
 0x129   : > { %v677_v51 = vmax.f32 %v583_v46, 0.0  ;;  %v1187_v53 = vpop.f32.mrb[24].mxu0  ;;  %v1235_v54 = vpop.f32.mrb[24].mxu1 }
 0x12a   : > { %v693_v52 = vmax.f32 %v647_v47, 0.0  ;;  %v1188_v55 = vpop.f32.mrb[25].mxu0  ;;  %v1236_v56 = vpop.f32.mrb[25].mxu1 }
 0x12b   : > { %v1068_v57 = vpack.c.bf16 %v677_v51, %v676_v48  ;;  %v1189_v59 = vadd.f32 %v1188_v55, %v1187_v53  ;;  %v1237_v60 = vadd.f32 %v1236_v56, %v1235_v54  ;;  %v1190_v61 = vpop.f32.mrb[26].mxu0  ;;  %v1238_v62 = vpop.f32.mrb[26].mxu1 }
 0x12c   : > { %v1108_v58 = vpack.c.bf16 %v693_v52, %v692_v49  ;;  %v1191_v63 = vpop.f32.mrb[27].mxu0  ;;  %v1239_v0 = vpop.f32.mrb[27].mxu1 }
 0x12d   : > { %1124 = vst [vmem:[%s1472_s4 + $0x28] sm:$0xff] %v1068_v57   ;;  %v588_v1 = vadd.f32 %v1189_v59, %v1462_v50  ;;  %v652_v2 = vadd.f32 %v1237_v60, %v1462_v50  ;;  %v1192_v3 = vadd.f32 %v1191_v63, %v1190_v61  ;;  %v1240_v4 = vadd.f32 %v1239_v0, %v1238_v62 }
 0x12e   : > { %1132 = vst [vmem:[%s1472_s4 + $0x68] sm:$0xff] %v1108_v58  }
 0x12f   : > { %v591_v5 = vadd.f32 %v1192_v3, %v1462_v50  ;;  %v655_v6 = vadd.f32 %v1240_v4, %v1462_v50  ;;  %v678_v7 = vmax.f32 %v588_v1, 0.0  ;;  %v694_v8 = vmax.f32 %v652_v2, 0.0 }
 0x131   : > { %v679_v9 = vmax.f32 %v591_v5, 0.0  ;;  %v695_v10 = vmax.f32 %v655_v6, 0.0  ;;  %v1193_v11 = vpop.f32.mrb[28].mxu0  ;;  %v1241_v12 = vpop.f32.mrb[28].mxu1 }
 0x132   : > { %v1194_v13 = vpop.f32.mrb[29].mxu0  ;;  %v1242_v14 = vpop.f32.mrb[29].mxu1 }
 0x133   : > { %v1073_v15 = vpack.c.bf16 %v679_v9, %v678_v7  ;;  %v1113_v16 = vpack.c.bf16 %v695_v10, %v694_v8  ;;  %v1195_v17 = vadd.f32 %v1194_v13, %v1193_v11  ;;  %v1243_v18 = vadd.f32 %v1242_v14, %v1241_v12  ;;  %v1196_v19 = vpop.f32.mrb[30].mxu0  ;;  %v1244_v20 = vpop.f32.mrb[30].mxu1 }
 0x134   : > { %v1197_v21 = vpop.f32.mrb[31].mxu0  ;;  %v1245_v22 = vpop.f32.mrb[31].mxu1 }
 0x135   : > { %1125 = vst [vmem:[%s1472_s4 + $0x30] sm:$0xff] %v1073_v15   ;;  %1133 = vst [vmem:[%s1472_s4 + $0x70] sm:$0xff] %v1113_v16   ;;  %v596_v23 = vadd.f32 %v1195_v17, %v1462_v50  ;;  %v660_v24 = vadd.f32 %v1243_v18, %v1462_v50  ;;  %v1198_v25 = vadd.f32 %v1197_v21, %v1196_v19 }
 0x136   : > { %v1246_v26 = vadd.f32 %v1245_v22, %v1244_v20 }
 0x137   : > { %v599_v27 = vadd.f32 %v1198_v25, %v1462_v50  ;;  %v680_v29 = vmax.f32 %v596_v23, 0.0  ;;  %v696_v30 = vmax.f32 %v660_v24, 0.0 }
 0x138   : > { %v663_v28 = vadd.f32 %v1246_v26, %v1462_v50 }
 0x139   : > { %v681_v31 = vmax.f32 %v599_v27, 0.0 }
 0x13a   : > { %v697_v32 = vmax.f32 %v663_v28, 0.0 }
 0x13b   : > { %v1078_v33 = vpack.c.bf16 %v681_v31, %v680_v29 }
 0x13c   : > { %v1118_v34 = vpack.c.bf16 %v697_v32, %v696_v30 }
 0x13d   : > { %1126 = vst [vmem:[%s1472_s4 + $0x38] sm:$0xff] %v1078_v33  }
 0x13e   : > { %1134 = vst [vmem:[%s1472_s4 + $0x78] sm:$0xff] %v1118_v34  }
 0x13f PF: > { %s13_s12 = sadd.s32 1, %s1341_s12  }
 0x140   : > { %p10_p4 = scmp.ge.s32.totalorder %s13_s12, 4  }
 0x142   :  { %12 = sbr.rel (!%p10_p4) target bundleno = 1 (0x1), region = 62 }

// kernel: resnet_forward.19
= control target key start
LH: loop header
LB: loop body
LE: loop exit
PB: predicated region body
PF: predicated region fallthrough
CT: control target
= control target key end

     0   :  { %s1835_s12 = smov 0   ;;  %s2063_s0 = inlined_call_operand.vmem [shape: bf16[512,384], index: 0, kind: input, shape index: {}]   ;;  %s2064_s1 = inlined_call_operand.vmem [shape: bf16[384,128], index: 1, kind: input, shape index: {}]   ;;  %s2065_s2 = inlined_call_operand.vmem [shape: f32[1,128], index: 2, kind: input, shape index: {}]   ;;  %s2066_s3 = inlined_call_operand.vmem [shape: bf16[512,128], index: 3, kind: output, shape index: {}]  }
   0x1 LB: > { %s1267_s13 = sadd.s32 4294967295, %s1813_s12   ;;  %p1271_p0 = scmp.ge.s32.totalorder %s1813_s12, 1  ;;  %s1813_s12 = sphi %s1835_s12, %s13_s12  }
   0x2   : > { %p139_p1 = scmp.lt.s32.totalorder %s1813_s12, 3 }
   0x4   : > { %p140_p2 = pnand %p1271_p0, %p139_p1 }
   0x5   : > { %v1719_v0 = vld [vmem:[%s2064_s1 + $0x40] sm:$0xff] (!%p140_p2)   ;;  %s1272_s16 = sshll.u32 (!%p140_p2), %s1267_s13, 5  ;;  %v1721_v2 = vld [vmem:[%s2064_s1 + $0x48] sm:$0xff] (!%p140_p2)   ;;  %v1723_v4 = vld [vmem:[%s2064_s1 + $0x50] sm:$0xff] (!%p140_p2)  }
   0x6   : > { %143 = sbr.rel (%p140_p2) target bundleno = 352 (0x160), region = 32  ;;  %v1720_v1 = vld [vmem:[%s2064_s1] sm:$0xff] (!%p140_p2)   ;;  %1510 = vmatprep.subr.bf16.mxu0 (!%p140_p2), %v1719_v0  ;;  %1694 = vmatprep.subr.bf16.mxu1 (!%p140_p2), %v1719_v0  ;;  %p165_p3 = scmp.lt.s32.totalorder (!%p140_p2), %s1272_s16, 63  ;;  %v1722_v3 = vld [vmem:[%s2064_s1 + $0x8] sm:$0xff] (!%p140_p2)   ;;  %v1724_v5 = vld [vmem:[%s2064_s1 + $0x10] sm:$0xff] (!%p140_p2)  }
   0x7   : > { %1511 = vmatpush3.bf16.msra.mxu0 (!%p140_p2), %v1720_v1  ;;  %1702 = vmatpush3.bf16.msra.mxu1 (!%p140_p2), %v1720_v1  ;;  %v1725_v6 = vld [vmem:[%s2064_s1 + $0x58] sm:$0xff] (!%p140_p2)   ;;  %v1727_v8 = vld [vmem:[%s2064_s1 + $0x60] sm:$0xff] (!%p140_p2)   ;;  %v1729_v10 = vld [vmem:[%s2064_s1 + $0x68] sm:$0xff] (!%p140_p2)  }
   0x8   : > { %1512 = vmatprep.subr.bf16.mxu0 (!%p140_p2), %v1721_v2  ;;  %1695 = vmatprep.subr.bf16.mxu1 (!%p140_p2), %v1721_v2  ;;  %v1726_v7 = vld [vmem:[%s2064_s1 + $0x18] sm:$0xff] (!%p140_p2)   ;;  %v1728_v9 = vld [vmem:[%s2064_s1 + $0x20] sm:$0xff] (!%p140_p2)   ;;  %v1730_v13 = vld [vmem:[%s2064_s1 + $0x28] sm:$0xff] (!%p140_p2)  }
   0x9   : > { %v1731_v14 = vld [vmem:[%s2064_s1 + $0x70] sm:$0xff] (!%p140_p2)   ;;  %v1733_v16 = vld [vmem:[%s2064_s1 + $0x78] sm:$0xff] (!%p140_p2)   ;;  %v1741_v18 = vld [vmem:[%s2064_s1 + $0x80] sm:$0xff] (!%p140_p2)  }
   0xa   : > { %v1732_v15 = vld [vmem:[%s2064_s1 + $0x30] sm:$0xff] (!%p140_p2)   ;;  %v1734_v17 = vld [vmem:[%s2064_s1 + $0x38] sm:$0xff] (!%p140_p2)   ;;  %v1742_v22 = vld [vmem:[%s2064_s1 + $0x88] sm:$0xff] (!%p140_p2)  }
   0xb   : > { %1513 = vmatpush3.bf16.msra.mxu0 (!%p140_p2), %v1722_v3  ;;  %1703 = vmatpush3.bf16.msra.mxu1 (!%p140_p2), %v1722_v3  ;;  %v1749_v25 = vld [vmem:[%s2064_s1 + $0x90] sm:$0xff] (!%p140_p2)   ;;  %v1750_v27 = vld [vmem:[%s2064_s1 + $0x98] sm:$0xff] (!%p140_p2)   ;;  %v1757_v30 = vld [vmem:[%s2064_s1 + $0xa0] sm:$0xff] (!%p140_p2)  }
   0xc   : > { %1514 = vmatprep.subr.bf16.mxu0 (!%p140_p2), %v1723_v4  ;;  %1696 = vmatprep.subr.bf16.mxu1 (!%p140_p2), %v1723_v4  ;;  %v1758_v33 = vld [vmem:[%s2064_s1 + $0xa8] sm:$0xff] (!%p140_p2)   ;;  %v1765_v36 = vld [vmem:[%s2064_s1 + $0xb0] sm:$0xff] (!%p140_p2)   ;;  %v1766_v40 = vld [vmem:[%s2064_s1 + $0xb8] sm:$0xff] (!%p140_p2)  }
   0xd   : > { %s2068_s16 = smov (!%p165_p3, %s1272_s16), 63 }
   0xe   : > { %s1710_s29 = smul.u32 12, %s2068_s16  ;;  %s1275_s19 = sshll.u32 %s2068_s16, 2 }
   0xf   : > { %1515 = vmatpush3.bf16.msra.mxu0 %v1724_v5  ;;  %1704 = vmatpush3.bf16.msra.mxu1 %v1724_v5  ;;  %s2000_s22 = scalar_lea.vmem %s2066_s3, %s1275_s19 }
  0x10   : > { %1516 = vmatprep.subr.bf16.mxu0 %v1725_v6  ;;  %1697 = vmatprep.subr.bf16.mxu1 %v1725_v6  ;;  %s1876_s9 = scalar_lea.vmem %s2063_s0, %s1710_s29 }
  0x11   : > { %v1737_v11 = vld [vmem:[%s1876_s9 + $0x4] ss:$12 sps:$4 sm:$0xff]   ;;  %v1735_v19 = vld [vmem:[%s1876_s9] ss:$12 sps:$4 sm:$0xff]   ;;  %v1743_v21 = vld [vmem:[%s1876_s9 + $0x1c] ss:$12 sps:$4 sm:$0xff]  }
  0x12   : > { %v1740_v12 = vld [vmem:[%s1876_s9 + $0x124] ss:$12 sps:$4 sm:$0xff]   ;;  %729 = vmatprep.mubr.bf16.mxu0 %v1737_v11  ;;  %v1738_v20 = vld [vmem:[%s1876_s9 + $0x120] ss:$12 sps:$4 sm:$0xff]   ;;  %v1745_v23 = vld [vmem:[%s1876_s9 + $0x13c] ss:$12 sps:$4 sm:$0xff]  }
  0x13   : > { %1517 = vmatpush3.bf16.msra.mxu0 %v1726_v7  ;;  %1705 = vmatpush3.bf16.msra.mxu1 %v1726_v7  ;;  %v1747_v24 = vld [vmem:[%s1876_s9 + $0x18] ss:$12 sps:$4 sm:$0xff]   ;;  %v1751_v28 = vld [vmem:[%s1876_s9 + $0x34] ss:$12 sps:$4 sm:$0xff]   ;;  %v1755_v31 = vld [vmem:[%s1876_s9 + $0x30] ss:$12 sps:$4 sm:$0xff]  }
  0x14   : > { %1518 = vmatprep.subr.bf16.mxu0 %v1727_v8  ;;  %1698 = vmatprep.subr.bf16.mxu1 %v1727_v8  ;;  %v1748_v26 = vld [vmem:[%s1876_s9 + $0x138] ss:$12 sps:$4 sm:$0xff]   ;;  %v1753_v29 = vld [vmem:[%s1876_s9 + $0x154] ss:$12 sps:$4 sm:$0xff]   ;;  %v1756_v32 = vld [vmem:[%s1876_s9 + $0x150] ss:$12 sps:$4 sm:$0xff]  }
  0x15   : > { %825 = vmatprep.mubr.bf16.mxu1 %v1740_v12  ;;  %v1759_v34 = vld [vmem:[%s1876_s9 + $0x4c] ss:$12 sps:$4 sm:$0xff]   ;;  %v1763_v37 = vld [vmem:[%s1876_s9 + $0x48] ss:$12 sps:$4 sm:$0xff]   ;;  %v1767_v39 = vld [vmem:[%s1876_s9 + $0x64] ss:$12 sps:$4 sm:$0xff]  }
  0x16   : > { %v1761_v35 = vld [vmem:[%s1876_s9 + $0x16c] ss:$12 sps:$4 sm:$0xff]   ;;  %v1764_v38 = vld [vmem:[%s1876_s9 + $0x168] ss:$12 sps:$4 sm:$0xff]   ;;  %v1776_v47 = vld [vmem:[%s1876_s9 + $0x50] ss:$12 sps:$4 sm:$0xff]  }
  0x17   : > { %1519 = vmatpush3.bf16.msra.mxu0 %v1728_v9  ;;  %1706 = vmatpush3.bf16.msra.mxu1 %v1728_v9  ;;  %v1769_v41 = vld [vmem:[%s1876_s9 + $0x8] ss:$12 sps:$4 sm:$0xff]   ;;  %v1770_v42 = vld [vmem:[%s1876_s9 + $0x60] ss:$12 sps:$4 sm:$0xff]   ;;  %v1774_v45 = vld [vmem:[%s1876_s9 + $0x38] ss:$12 sps:$4 sm:$0xff]  }
  0x18   : > { %1520 = vmatprep.subr.bf16.mxu0 %v1729_v10  ;;  %1699 = vmatprep.subr.bf16.mxu1 %v1729_v10  ;;  %v1771_v43 = vld [vmem:[%s1876_s9 + $0x20] ss:$12 sps:$4 sm:$0xff]   ;;  %v1772_v44 = vld [vmem:[%s1876_s9 + $0x7c] ss:$12 sps:$4 sm:$0xff]   ;;  %v1775_v46 = vld [vmem:[%s1876_s9 + $0x78] ss:$12 sps:$4 sm:$0xff]  }
  0x19   : > { %v1777_v48 = vld [vmem:[%s1876_s9 + $0x94] ss:$12 sps:$4 sm:$0xff]   ;;  %v1780_v50 = vld [vmem:[%s1876_s9 + $0x90] ss:$12 sps:$4 sm:$0xff]   ;;  %v1782_v52 = vld [vmem:[%s1876_s9 + $0xac] ss:$12 sps:$4 sm:$0xff]  }
  0x1a   : > { %v1779_v49 = vld [vmem:[%s1876_s9 + $0x68] ss:$12 sps:$4 sm:$0xff]   ;;  %v1781_v51 = vld [vmem:[%s1876_s9 + $0x80] ss:$12 sps:$4 sm:$0xff]   ;;  %v1784_v53 = vld [vmem:[%s1876_s9 + $0x98] ss:$12 sps:$4 sm:$0xff]  }
  0x1b   : > { %1521 = vmatpush3.bf16.msra.mxu0 %v1730_v13  ;;  %1707 = vmatpush3.bf16.msra.mxu1 %v1730_v13  ;;  %v1785_v54 = vld [vmem:[%s1876_s9 + $0xa8] ss:$12 sps:$4 sm:$0xff]   ;;  %v1786_v55 = vld [vmem:[%s1876_s9 + $0xb0] ss:$12 sps:$4 sm:$0xff]   ;;  %v1790_v58 = vld [vmem:[%s1876_s9 + $0xc0] ss:$12 sps:$4 sm:$0xff]  }
  0x1c   : > { %1522 = vmatprep.subr.bf16.mxu0 %v1731_v14  ;;  %1700 = vmatprep.subr.bf16.mxu1 %v1731_v14  ;;  %v1787_v56 = vld [vmem:[%s1876_s9 + $0xc4] ss:$12 sps:$4 sm:$0xff]   ;;  %v1789_v57 = vld [vmem:[%s1876_s9 + $0xc8] ss:$12 sps:$4 sm:$0xff]   ;;  %v1791_v59 = vld [vmem:[%s1876_s9 + $0xe0] ss:$12 sps:$4 sm:$0xff]  }
  0x1d   : > { %v1792_v60 = vld [vmem:[%s1876_s9 + $0xdc] ss:$12 sps:$4 sm:$0xff]   ;;  %v1794_v61 = vld [vmem:[%s1876_s9 + $0xf8] ss:$12 sps:$4 sm:$0xff]   ;;  %v1797_v0 = vld [vmem:[%s1876_s9 + $0xf4] ss:$12 sps:$4 sm:$0xff]  }
  0x1e   : > { %v1795_v62 = vld [vmem:[%s1876_s9 + $0xd8] ss:$12 sps:$4 sm:$0xff]   ;;  %v1796_v63 = vld [vmem:[%s1876_s9 + $0x110] ss:$12 sps:$4 sm:$0xff]   ;;  %v1799_v1 = vld [vmem:[%s1876_s9 + $0x128] ss:$12 sps:$4 sm:$0xff]  }
  0x1f   : > { %1523 = vmatpush3.bf16.msra.mxu0 %v1732_v15  ;;  %1708 = vmatpush3.bf16.msra.mxu1 %v1732_v15  ;;  %v1800_v2 = vld [vmem:[%s1876_s9 + $0xf0] ss:$12 sps:$4 sm:$0xff]   ;;  %v1801_v3 = vld [vmem:[%s1876_s9 + $0x140] ss:$12 sps:$4 sm:$0xff]   ;;  %v1804_v5 = vld [vmem:[%s1876_s9 + $0x158] ss:$12 sps:$4 sm:$0xff]  }
  0x20   : > { %1524 = vmatprep.subr.bf16.mxu0 %v1733_v16  ;;  %1701 = vmatprep.subr.bf16.mxu1 %v1733_v16  ;;  %v1802_v4 = vld [vmem:[%s1876_s9 + $0x10c] ss:$12 sps:$4 sm:$0xff]   ;;  %v1805_v6 = vld [vmem:[%s1876_s9 + $0x108] ss:$12 sps:$4 sm:$0xff]   ;;  %v1806_v7 = vld [vmem:[%s1876_s9 + $0x170] ss:$12 sps:$4 sm:$0xff]  }
  0x23   : > { %1525 = vmatpush3.bf16.msra.mxu0 %v1734_v17  ;;  %1709 = vmatpush3.bf16.msra.mxu1 %v1734_v17 }
  0x24   : > { %1646 = vmatprep.subr.bf16.mxu1 %v1741_v18 }
  0x26   : > { %730 = vmatmul.mubr.bf16.vlgmr.msra.gmra.mrb[0].mxu0 %v1735_v19  ;;  %826 = vmatmul.mubr.bf16.vlgmr.msra.gmra.mrb[0].mxu1 %v1738_v20 }
  0x27   : > { %1647 = vmatpush3.bf16.msra.mxu1 %v1741_v18  ;;  %737 = vmatprep.mubr.bf16.mxu0 %v1743_v21 }
  0x28   : > { %1648 = vmatprep.subr.bf16.mxu1 %v1742_v22  ;;  %833 = vmatprep.mubr.bf16.mxu1 %v1745_v23 }
  0x2b   : > { %1649 = vmatpush3.bf16.msra.mxu1 %v1742_v22 }
  0x2c   : > { %1650 = vmatprep.subr.bf16.mxu1 %v1749_v25 }
  0x2e   : > { %738 = vmatmul.mubr.bf16.gmra.mrb[4].mxu0 %v1747_v24  ;;  %834 = vmatmul.mubr.bf16.gmra.mrb[4].mxu1 %v1748_v26 }
  0x2f   : > { %1651 = vmatpush3.bf16.msra.mxu1 %v1749_v25  ;;  %745 = vmatprep.mubr.bf16.mxu0 %v1751_v28 }
  0x30   : > { %1652 = vmatprep.subr.bf16.mxu1 %v1750_v27  ;;  %841 = vmatprep.mubr.bf16.mxu1 %v1753_v29 }
  0x33   : > { %1653 = vmatpush3.bf16.msra.mxu1 %v1750_v27 }
  0x34   : > { %1654 = vmatprep.subr.bf16.mxu1 %v1757_v30 }
  0x36   : > { %746 = vmatmul.mubr.bf16.gmra.mrb[8].mxu0 %v1755_v31  ;;  %842 = vmatmul.mubr.bf16.gmra.mrb[8].mxu1 %v1756_v32 }
  0x37   : > { %1655 = vmatpush3.bf16.msra.mxu1 %v1757_v30  ;;  %753 = vmatprep.mubr.bf16.mxu0 %v1759_v34 }
  0x38   : > { %1656 = vmatprep.subr.bf16.mxu1 %v1758_v33  ;;  %849 = vmatprep.mubr.bf16.mxu1 %v1761_v35 }
  0x3b   : > { %1657 = vmatpush3.bf16.msra.mxu1 %v1758_v33 }
  0x3c   : > { %1658 = vmatprep.subr.bf16.mxu1 %v1765_v36 }
  0x3e   : > { %754 = vmatmul.mubr.bf16.gmra.mrb[12].mxu0 %v1763_v37  ;;  %850 = vmatmul.mubr.bf16.gmra.mrb[12].mxu1 %v1764_v38 }
  0x3f   : > { %1659 = vmatpush3.bf16.msra.mxu1 %v1765_v36  ;;  %761 = vmatprep.mubr.bf16.mxu0 %v1767_v39 }
  0x40   : > { %1660 = vmatprep.subr.bf16.mxu1 %v1766_v40  ;;  %1662 = vmatprep.mubr.bf16.mxu1 %v1769_v41 }
  0x43   : > { %1661 = vmatpush3.bf16.msra.mxu1 %v1766_v40 }
  0x46   : > { %762 = vmatmul.mubr.bf16.gmra.mrb[16].mxu0 %v1770_v42  ;;  %1663 = vmatmul.mubr.bf16.vlgmr.msra.gmra.mrb[16].mxu1 %v1771_v43 }
  0x47   : > { %769 = vmatprep.mubr.bf16.mxu0 %v1772_v44  ;;  %1666 = vmatprep.mubr.bf16.mxu1 %v1774_v45 }
  0x4e   : > { %770 = vmatmul.mubr.bf16.gmra.mrb[20].mxu0 %v1775_v46  ;;  %1667 = vmatmul.mubr.bf16.gmra.mrb[20].mxu1 %v1776_v47 }
  0x4f   : > { %777 = vmatprep.mubr.bf16.mxu0 %v1777_v48  ;;  %1670 = vmatprep.mubr.bf16.mxu1 %v1779_v49 }
  0x56   : > { %778 = vmatmul.mubr.bf16.gmra.mrb[24].mxu0 %v1780_v50  ;;  %1671 = vmatmul.mubr.bf16.gmra.mrb[24].mxu1 %v1781_v51 }
  0x57   : > { %785 = vmatprep.mubr.bf16.mxu0 %v1782_v52  ;;  %1674 = vmatprep.mubr.bf16.mxu1 %v1784_v53 }
  0x5e   : > { %786 = vmatmul.mubr.bf16.gmra.mrb[28].mxu0 %v1785_v54  ;;  %1675 = vmatmul.mubr.bf16.gmra.mrb[28].mxu1 %v1786_v55 }
  0x5f   : > { %793 = vmatprep.mubr.bf16.mxu0 %v1787_v56  ;;  %1678 = vmatprep.mubr.bf16.mxu1 %v1789_v57  ;;  %v1990_v56 = vld [vmem:[%s2065_s2] ss:$0 sm:$0xff] }
  0x66   : > { %794 = vmatmul.mubr.bf16.gmra.mrb[32].mxu0 %v1790_v58  ;;  %1679 = vmatmul.mubr.bf16.gmra.mrb[32].mxu1 %v1791_v59 }
  0x67   : > { %801 = vmatprep.mubr.bf16.mxu0 %v1792_v60  ;;  %1682 = vmatprep.mubr.bf16.mxu1 %v1794_v61 }
  0x6e   : > { %802 = vmatmul.mubr.bf16.gmra.mrb[36].mxu0 %v1795_v62  ;;  %1683 = vmatmul.mubr.bf16.gmra.mrb[36].mxu1 %v1796_v63 }
  0x6f   : > { %809 = vmatprep.mubr.bf16.mxu0 %v1797_v0  ;;  %1686 = vmatprep.mubr.bf16.mxu1 %v1799_v1 }
  0x76   : > { %810 = vmatmul.mubr.bf16.gmra.mrb[40].mxu0 %v1800_v2  ;;  %1687 = vmatmul.mubr.bf16.gmra.mrb[40].mxu1 %v1801_v3 }
  0x77   : > { %817 = vmatprep.mubr.bf16.mxu0 %v1802_v4  ;;  %1690 = vmatprep.mubr.bf16.mxu1 %v1804_v5 }
  0x7e   : > { %818 = vmatmul.mubr.bf16.gmra.mrb[44].mxu0 %v1805_v6  ;;  %1691 = vmatmul.mubr.bf16.gmra.mrb[44].mxu1 %v1806_v7 }
  0xf9   : > { %v1526_v8 = vpop.f32.mrb[0].mxu0  ;;  %v1598_v9 = vpop.f32.mrb[0].mxu1 }
  0xfa   : > { %v1527_v10 = vpop.f32.mrb[1].mxu0  ;;  %v1599_v11 = vpop.f32.mrb[1].mxu1 }
  0xfb   : > { %v1528_v12 = vadd.f32 %v1527_v10, %v1526_v8  ;;  %v1529_v13 = vpop.f32.mrb[2].mxu0  ;;  %v1971_v14 = vadd.f32 %v1599_v11, %v1598_v9  ;;  %v1601_v15 = vpop.f32.mrb[2].mxu1 }
  0xfc   : > { %v1530_v16 = vpop.f32.mrb[3].mxu0  ;;  %v1602_v17 = vpop.f32.mrb[3].mxu1 }
  0xfd   : > { %v1531_v18 = vadd.f32 %v1530_v16, %v1529_v13  ;;  %v1973_v19 = vadd.f32 %v1602_v17, %v1601_v15  ;;  %v732_v60 = vadd.f32 %v1528_v12, %v1990_v56 }
  0xff   : > { %v735_v5 = vadd.f32 %v1531_v18, %v1990_v56 }
 0x101   : > { %v1532_v20 = vpop.f32.mrb[4].mxu0  ;;  %v1604_v21 = vpop.f32.mrb[4].mxu1 }
 0x102   : > { %v1533_v22 = vpop.f32.mrb[5].mxu0  ;;  %v1605_v23 = vpop.f32.mrb[5].mxu1 }
 0x103   : > { %v1534_v24 = vadd.f32 %v1533_v22, %v1532_v20  ;;  %v1535_v25 = vpop.f32.mrb[6].mxu0  ;;  %v1975_v26 = vadd.f32 %v1605_v23, %v1604_v21  ;;  %v1607_v27 = vpop.f32.mrb[6].mxu1 }
 0x104   : > { %v1536_v28 = vpop.f32.mrb[7].mxu0  ;;  %v1608_v29 = vpop.f32.mrb[7].mxu1 }
 0x105   : > { %v1537_v30 = vadd.f32 %v1536_v28, %v1535_v25  ;;  %v1977_v31 = vadd.f32 %v1608_v29, %v1607_v27  ;;  %v740_v57 = vadd.f32 %v1534_v24, %v1990_v56 }
 0x107   : > { %v743_v0 = vadd.f32 %v1537_v30, %v1990_v56 }
 0x109   : > { %v1538_v32 = vpop.f32.mrb[8].mxu0  ;;  %v1610_v33 = vpop.f32.mrb[8].mxu1 }
 0x10a   : > { %v1539_v34 = vpop.f32.mrb[9].mxu0  ;;  %v1611_v35 = vpop.f32.mrb[9].mxu1 }
 0x10b   : > { %v1540_v36 = vadd.f32 %v1539_v34, %v1538_v32  ;;  %v1541_v37 = vpop.f32.mrb[10].mxu0  ;;  %v1979_v38 = vadd.f32 %v1611_v35, %v1610_v33  ;;  %v1613_v39 = vpop.f32.mrb[10].mxu1 }
 0x10c   : > { %v1542_v40 = vpop.f32.mrb[11].mxu0  ;;  %v1614_v41 = vpop.f32.mrb[11].mxu1 }
 0x10d   : > { %v1543_v42 = vadd.f32 %v1542_v40, %v1541_v37  ;;  %v1981_v43 = vadd.f32 %v1614_v41, %v1613_v39  ;;  %v748_v22 = vadd.f32 %v1540_v36, %v1990_v56 }
 0x10f   : > { %v751_v33 = vadd.f32 %v1543_v42, %v1990_v56 }
 0x111   : > { %v1544_v44 = vpop.f32.mrb[12].mxu0  ;;  %v1616_v45 = vpop.f32.mrb[12].mxu1 }
 0x112   : > { %v1545_v46 = vpop.f32.mrb[13].mxu0  ;;  %v1617_v47 = vpop.f32.mrb[13].mxu1 }
 0x113   : > { %v1546_v48 = vadd.f32 %v1545_v46, %v1544_v44  ;;  %v1547_v49 = vpop.f32.mrb[14].mxu0  ;;  %v1983_v50 = vadd.f32 %v1617_v47, %v1616_v45  ;;  %v1619_v51 = vpop.f32.mrb[14].mxu1 }
 0x114   : > { %v1548_v52 = vpop.f32.mrb[15].mxu0  ;;  %v1620_v53 = vpop.f32.mrb[15].mxu1 }
 0x115   : > { %v1549_v54 = vadd.f32 %v1548_v52, %v1547_v49  ;;  %v1985_v55 = vadd.f32 %v1620_v53, %v1619_v51  ;;  %v756_v17 = vadd.f32 %v1546_v48, %v1990_v56 }
 0x117   : > { %v759_v27 = vadd.f32 %v1549_v54, %v1990_v56 }
 0x119   : > { %v1550_v58 = vpop.f32.mrb[16].mxu0  ;;  %v1664_v59 = vpop.f32.mrb[16].mxu1 }
 0x11a   : > { %v901_v61 = vadd.f32 %v1664_v59, %v740_v57  ;;  %v1551_v62 = vpop.f32.mrb[17].mxu0  ;;  %v892_v63 = vpop.f32.mrb[17].mxu1 }
 0x11b   : > { %v1552_v1 = vadd.f32 %v1551_v62, %v1550_v58  ;;  %v893_v2 = vadd.f32 %v892_v63, %v732_v60  ;;  %v1553_v3 = vpop.f32.mrb[18].mxu0  ;;  %v1665_v4 = vpop.f32.mrb[18].mxu1 }
 0x11c   : > { %v904_v6 = vadd.f32 %v1665_v4, %v743_v0  ;;  %v1554_v7 = vpop.f32.mrb[19].mxu0  ;;  %v895_v8 = vpop.f32.mrb[19].mxu1  ;;  %v1021_v11 = vmax.f32 %v901_v61, 0.0 }
 0x11d   : > { %v1555_v9 = vadd.f32 %v1554_v7, %v1553_v3  ;;  %v896_v10 = vadd.f32 %v895_v8, %v735_v5  ;;  %v1019_v12 = vmax.f32 %v893_v2, 0.0  ;;  %v764_v52 = vadd.f32 %v1552_v1, %v1990_v56 }
 0x11e   : > { %v1022_v13 = vmax.f32 %v904_v6, 0.0 }
 0x11f   : > { %v1020_v15 = vmax.f32 %v896_v10, 0.0  ;;  %v767_v62 = vadd.f32 %v1555_v9, %v1990_v56 }
 0x120   : > { %v1423_v16 = vpack.c.bf16 %v1022_v13, %v1021_v11 }
 0x121   : > { %v1418_v18 = vpack.c.bf16 %v1020_v15, %v1019_v12  ;;  %v1556_v20 = vpop.f32.mrb[20].mxu0  ;;  %v1668_v21 = vpop.f32.mrb[20].mxu1 }
 0x122   : > { %1495 = vst [vmem:[%s2000_s22 + $0x8] sm:$0xff] %v1423_v16   ;;  %v917_v23 = vadd.f32 %v1668_v21, %v756_v17  ;;  %v1557_v24 = vpop.f32.mrb[21].mxu0  ;;  %v908_v25 = vpop.f32.mrb[21].mxu1 }
 0x123   : > { %1419 = vst [vmem:[%s2000_s22] sm:$0xff] %v1418_v18   ;;  %v1558_v28 = vadd.f32 %v1557_v24, %v1556_v20  ;;  %v909_v29 = vadd.f32 %v908_v25, %v748_v22  ;;  %v1559_v30 = vpop.f32.mrb[22].mxu0  ;;  %v1669_v32 = vpop.f32.mrb[22].mxu1 }
 0x124   : > { %v920_v34 = vadd.f32 %v1669_v32, %v759_v27  ;;  %v1560_v35 = vpop.f32.mrb[23].mxu0  ;;  %v911_v37 = vpop.f32.mrb[23].mxu1  ;;  %v1025_v36 = vmax.f32 %v917_v23, 0.0 }
 0x125   : > { %v1561_v39 = vadd.f32 %v1560_v35, %v1559_v30  ;;  %v912_v40 = vadd.f32 %v911_v37, %v751_v33  ;;  %v1023_v44 = vmax.f32 %v909_v29, 0.0  ;;  %v772_v47 = vadd.f32 %v1558_v28, %v1990_v56 }
 0x126   : > { %v1026_v41 = vmax.f32 %v920_v34, 0.0 }
 0x127   : > { %v1024_v45 = vmax.f32 %v912_v40, 0.0  ;;  %v775_v57 = vadd.f32 %v1561_v39, %v1990_v56 }
 0x128   : > { %v1433_v46 = vpack.c.bf16 %v1026_v41, %v1025_v36 }
 0x129   : > { %v1428_v48 = vpack.c.bf16 %v1024_v45, %v1023_v44  ;;  %v1562_v49 = vpop.f32.mrb[24].mxu0  ;;  %v1672_v51 = vpop.f32.mrb[24].mxu1 }
 0x12a   : > { %1497 = vst [vmem:[%s2000_s22 + $0x18] sm:$0xff] %v1433_v46   ;;  %v933_v42 = vadd.f32 %v1672_v51, %v772_v47  ;;  %v1563_v53 = vpop.f32.mrb[25].mxu0  ;;  %v924_v54 = vpop.f32.mrb[25].mxu1 }
 0x12b   : > { %1496 = vst [vmem:[%s2000_s22 + $0x10] sm:$0xff] %v1428_v48   ;;  %v1564_v58 = vadd.f32 %v1563_v53, %v1562_v49  ;;  %v925_v59 = vadd.f32 %v924_v54, %v764_v52  ;;  %v1565_v60 = vpop.f32.mrb[26].mxu0  ;;  %v1673_v61 = vpop.f32.mrb[26].mxu1 }
 0x12c   : > { %v936_v63 = vadd.f32 %v1673_v61, %v775_v57  ;;  %v1566_v0 = vpop.f32.mrb[27].mxu0  ;;  %v927_v2 = vpop.f32.mrb[27].mxu1  ;;  %v1029_v4 = vmax.f32 %v933_v42, 0.0 }
 0x12d   : > { %v1567_v3 = vadd.f32 %v1566_v0, %v1565_v60  ;;  %v928_v1 = vadd.f32 %v927_v2, %v767_v62  ;;  %v1027_v6 = vmax.f32 %v925_v59, 0.0  ;;  %v780_v12 = vadd.f32 %v1564_v58, %v1990_v56 }
 0x12e   : > { %v1030_v5 = vmax.f32 %v936_v63, 0.0 }
 0x12f   : > { %v1028_v7 = vmax.f32 %v928_v1, 0.0  ;;  %v783_v21 = vadd.f32 %v1567_v3, %v1990_v56 }
 0x130   : > { %v1443_v8 = vpack.c.bf16 %v1030_v5, %v1029_v4 }
 0x131   : > { %v1438_v10 = vpack.c.bf16 %v1028_v7, %v1027_v6  ;;  %v1568_v11 = vpop.f32.mrb[28].mxu0  ;;  %v1676_v13 = vpop.f32.mrb[28].mxu1 }
 0x132   : > { %1499 = vst [vmem:[%s2000_s22 + $0x28] sm:$0xff] %v1443_v8   ;;  %v1569_v15 = vpop.f32.mrb[29].mxu0  ;;  %v940_v16 = vpop.f32.mrb[29].mxu1 }
 0x133   : > { %1498 = vst [vmem:[%s2000_s22 + $0x20] sm:$0xff] %v1438_v10   ;;  %v1570_v9 = vadd.f32 %v1569_v15, %v1568_v11  ;;  %v941_v17 = vadd.f32 %v940_v16, %v780_v12  ;;  %v1571_v18 = vpop.f32.mrb[30].mxu0  ;;  %v1677_v20 = vpop.f32.mrb[30].mxu1  ;;  %v836_v10 = vadd.f32 %v1975_v26, %v1990_v56  ;;  %v828_v15 = vadd.f32 %v1971_v14, %v1990_v56 }
 0x134   : > { %v1572_v22 = vpop.f32.mrb[31].mxu0  ;;  %v943_v23 = vpop.f32.mrb[31].mxu1 }
 0x135   : > { %v788_v24 = vadd.f32 %v1570_v9, %v1990_v56  ;;  %v1573_v25 = vadd.f32 %v1572_v22, %v1571_v18  ;;  %v944_v27 = vadd.f32 %v943_v23, %v783_v21  ;;  %v1031_v29 = vmax.f32 %v941_v17, 0.0 }
 0x136   : > { %v839_v18 = vadd.f32 %v1977_v31, %v1990_v56 }
 0x137   : > { %v949_v28 = vadd.f32 %v1676_v13, %v788_v24  ;;  %v791_v30 = vadd.f32 %v1573_v25, %v1990_v56  ;;  %v1032_v32 = vmax.f32 %v944_v27, 0.0 }
 0x139   : > { %v952_v33 = vadd.f32 %v1677_v20, %v791_v30  ;;  %v1448_v34 = vpack.c.bf16 %v1032_v32, %v1031_v29  ;;  %v1574_v35 = vpop.f32.mrb[32].mxu0  ;;  %v1680_v37 = vpop.f32.mrb[32].mxu1  ;;  %v1033_v36 = vmax.f32 %v949_v28, 0.0  ;;  %v831_v28 = vadd.f32 %v1973_v19, %v1990_v56 }
 0x13a   : > { %v1575_v39 = vpop.f32.mrb[33].mxu0  ;;  %v956_v40 = vpop.f32.mrb[33].mxu1 }
 0x13b   : > { %v1034_v41 = vmax.f32 %v952_v33, 0.0  ;;  %1500 = vst [vmem:[%s2000_s22 + $0x30] sm:$0xff] %v1448_v34   ;;  %v1576_v44 = vadd.f32 %v1575_v39, %v1574_v35  ;;  %v1577_v45 = vpop.f32.mrb[34].mxu0  ;;  %v1681_v46 = vpop.f32.mrb[34].mxu1 }
 0x13c   : > { %v1578_v47 = vpop.f32.mrb[35].mxu0  ;;  %v959_v48 = vpop.f32.mrb[35].mxu1 }
 0x13d   : > { %v1453_v49 = vpack.c.bf16 %v1034_v41, %v1033_v36  ;;  %v796_v51 = vadd.f32 %v1576_v44, %v1990_v56  ;;  %v1579_v52 = vadd.f32 %v1578_v47, %v1577_v45  ;;  %v852_v41 = vadd.f32 %v1983_v50, %v1990_v56 }
 0x13f   : > { %1501 = vst [vmem:[%s2000_s22 + $0x38] sm:$0xff] %v1453_v49   ;;  %v957_v42 = vadd.f32 %v956_v40, %v796_v51  ;;  %v799_v53 = vadd.f32 %v1579_v52, %v1990_v56  ;;  %v855_v52 = vadd.f32 %v1985_v55, %v1990_v56 }
 0x141   : > { %v960_v54 = vadd.f32 %v959_v48, %v799_v53  ;;  %v1580_v57 = vpop.f32.mrb[36].mxu0  ;;  %v2024_v58 = vpop.f32.mrb[36].mxu1  ;;  %v1035_v61 = vmax.f32 %v957_v42, 0.0 }
 0x142   : > { %v1581_v59 = vpop.f32.mrb[37].mxu0  ;;  %v972_v60 = vpop.f32.mrb[37].mxu1 }
 0x143   : > { %v1036_v62 = vmax.f32 %v960_v54, 0.0  ;;  %v1582_v63 = vadd.f32 %v1581_v59, %v1580_v57  ;;  %v1583_v0 = vpop.f32.mrb[38].mxu0  ;;  %v2026_v2 = vpop.f32.mrb[38].mxu1 }
 0x144   : > { %v1584_v3 = vpop.f32.mrb[39].mxu0  ;;  %v975_v1 = vpop.f32.mrb[39].mxu1 }
 0x145   : > { %v1458_v4 = vpack.c.bf16 %v1036_v62, %v1035_v61  ;;  %v804_v5 = vadd.f32 %v1582_v63, %v1990_v56  ;;  %v1585_v6 = vadd.f32 %v1584_v3, %v1583_v0 }
 0x147   : > { %1502 = vst [vmem:[%s2000_s22 + $0x40] sm:$0xff] %v1458_v4   ;;  %v965_v7 = vadd.f32 %v1680_v37, %v804_v5  ;;  %v807_v8 = vadd.f32 %v1585_v6, %v1990_v56 }
 0x149   : > { %v968_v11 = vadd.f32 %v1681_v46, %v807_v8  ;;  %v1586_v13 = vpop.f32.mrb[40].mxu0  ;;  %v1688_v12 = vpop.f32.mrb[40].mxu1  ;;  %v1037_v20 = vmax.f32 %v965_v7, 0.0  ;;  %v844_v46 = vadd.f32 %v1979_v38, %v1990_v56  ;;  %v847_v38 = vadd.f32 %v1981_v43, %v1990_v56 }
 0x14a   : > { %v997_v16 = vadd.f32 %v1688_v12, %v836_v10  ;;  %v1587_v9 = vpop.f32.mrb[41].mxu0  ;;  %v988_v17 = vpop.f32.mrb[41].mxu1 }
 0x14b   : > { %v1038_v21 = vmax.f32 %v968_v11, 0.0  ;;  %v1588_v22 = vadd.f32 %v1587_v9, %v1586_v13  ;;  %v989_v23 = vadd.f32 %v988_v17, %v828_v15  ;;  %v1589_v24 = vpop.f32.mrb[42].mxu0  ;;  %v1689_v25 = vpop.f32.mrb[42].mxu1 }
 0x14c   : > { %v1000_v26 = vadd.f32 %v1689_v25, %v839_v18  ;;  %v1590_v27 = vpop.f32.mrb[43].mxu0  ;;  %v991_v29 = vpop.f32.mrb[43].mxu1  ;;  %v1045_v33 = vmax.f32 %v997_v16, 0.0 }
 0x14d   : > { %v1463_v14 = vpack.c.bf16 %v1038_v21, %v1037_v20  ;;  %v812_v30 = vadd.f32 %v1588_v22, %v1990_v56  ;;  %v1591_v32 = vadd.f32 %v1590_v27, %v1589_v24  ;;  %v992_v34 = vadd.f32 %v991_v29, %v831_v28 }
 0x14e   : > { %v1046_v31 = vmax.f32 %v1000_v26, 0.0  ;;  %v1043_v39 = vmax.f32 %v989_v23, 0.0 }
 0x14f   : > { %1503 = vst [vmem:[%s2000_s22 + $0x48] sm:$0xff] %v1463_v14   ;;  %v973_v35 = vadd.f32 %v972_v60, %v812_v30  ;;  %v815_v37 = vadd.f32 %v1591_v32, %v1990_v56  ;;  %v1044_v36 = vmax.f32 %v992_v34, 0.0 }
 0x150   : > { %v1483_v40 = vpack.c.bf16 %v1046_v31, %v1045_v33 }
 0x151   : > { %v976_v19 = vadd.f32 %v975_v1, %v815_v37  ;;  %v1592_v44 = vpop.f32.mrb[44].mxu0  ;;  %v1692_v45 = vpop.f32.mrb[44].mxu1  ;;  %v1478_v47 = vpack.c.bf16 %v1044_v36, %v1043_v39  ;;  %v1039_v42 = vmax.f32 %v973_v35, 0.0 }
 0x152   : > { %1507 = vst [vmem:[%s2000_s22 + $0x68] sm:$0xff] %v1483_v40   ;;  %v1013_v48 = vadd.f32 %v1692_v45, %v852_v41  ;;  %v1593_v49 = vpop.f32.mrb[45].mxu0  ;;  %v1004_v51 = vpop.f32.mrb[45].mxu1 }
 0x153   : > { %v1040_v53 = vmax.f32 %v976_v19, 0.0  ;;  %v1594_v54 = vadd.f32 %v1593_v49, %v1592_v44  ;;  %v1005_v50 = vadd.f32 %v1004_v51, %v844_v46  ;;  %v1595_v57 = vpop.f32.mrb[46].mxu0  ;;  %v1693_v59 = vpop.f32.mrb[46].mxu1  ;;  %1506 = vst [vmem:[%s2000_s22 + $0x60] sm:$0xff] %v1478_v47  }
 0x154   : > { %v1016_v60 = vadd.f32 %v1693_v59, %v855_v52  ;;  %v1596_v61 = vpop.f32.mrb[47].mxu0  ;;  %v1007_v62 = vpop.f32.mrb[47].mxu1  ;;  %v1049_v3 = vmax.f32 %v1013_v48, 0.0 }
 0x155   : > { %v1468_v63 = vpack.c.bf16 %v1040_v53, %v1039_v42  ;;  %v820_v0 = vadd.f32 %v1594_v54, %v1990_v56  ;;  %v1597_v55 = vadd.f32 %v1596_v61, %v1595_v57  ;;  %v1008_v4 = vadd.f32 %v1007_v62, %v847_v38 }
 0x156   : > { %v1050_v1 = vmax.f32 %v1016_v60, 0.0  ;;  %v1047_v7 = vmax.f32 %v1005_v50, 0.0 }
 0x157   : > { %1504 = vst [vmem:[%s2000_s22 + $0x50] sm:$0xff] %v1468_v63   ;;  %v981_v5 = vadd.f32 %v2024_v58, %v820_v0  ;;  %v823_v6 = vadd.f32 %v1597_v55, %v1990_v56  ;;  %v1048_v10 = vmax.f32 %v1008_v4, 0.0 }
 0x158   : > { %v1493_v8 = vpack.c.bf16 %v1050_v1, %v1049_v3 }
 0x159   : > { %v984_v43 = vadd.f32 %v2026_v2, %v823_v6  ;;  %v1488_v11 = vpack.c.bf16 %v1048_v10, %v1047_v7  ;;  %v1041_v13 = vmax.f32 %v981_v5, 0.0 }
 0x15a   : > { %1509 = vst [vmem:[%s2000_s22 + $0x78] sm:$0xff] %v1493_v8  }
 0x15b   : > { %v1042_v12 = vmax.f32 %v984_v43, 0.0  ;;  %1508 = vst [vmem:[%s2000_s22 + $0x70] sm:$0xff] %v1488_v11  }
 0x15d   : > { %v1473_v15 = vpack.c.bf16 %v1042_v12, %v1041_v13 }
 0x15f   : > { %1505 = vst [vmem:[%s2000_s22 + $0x58] sm:$0xff] %v1473_v15  }
 0x160 PF: > { %s13_s12 = sadd.s32 1, %s1813_s12  }
 0x161   : > { %p10_p4 = scmp.ge.s32.totalorder %s13_s12, 4  }
 0x163   :  { %12 = sbr.rel (!%p10_p4) target bundleno = 1 (0x1), region = 62 }

// kernel: resnet_forward.21
= control target key start
LH: loop header
LB: loop body
LE: loop exit
PB: predicated region body
PF: predicated region fallthrough
CT: control target
= control target key end

     0   :  { %s2078_s15 = smov 0   ;;  %s2355_s0 = inlined_call_operand.vmem [shape: bf16[512,384], index: 0, kind: input, shape index: {}]   ;;  %s2356_s1 = inlined_call_operand.vmem [shape: bf16[384,128], index: 1, kind: input, shape index: {}]   ;;  %s2357_s2 = inlined_call_operand.vmem [shape: f32[1,128], index: 2, kind: input, shape index: {}]   ;;  %s2358_s3 = inlined_call_operand.vmem [shape: bf16[512,128], index: 3, kind: input, shape index: {}]   ;;  %s2359_s4 = inlined_call_operand.vmem [shape: bf16[512,128], index: 4, kind: output, shape index: {}]  }
   0x1 LB: > { %s1424_s16 = sadd.s32 4294967295, %s2051_s15   ;;  %p1428_p0 = scmp.ge.s32.totalorder %s2051_s15, 1  ;;  %s2051_s15 = sphi %s2078_s15, %s14_s15  }
   0x2   : > { %p175_p1 = scmp.lt.s32.totalorder %s2051_s15, 3 }
   0x4   : > { %p176_p2 = pnand %p1428_p0, %p175_p1 }
   0x5   : > { %v1957_v0 = vld [vmem:[%s2356_s1 + $0x40] sm:$0xff] (!%p176_p2)   ;;  %s1429_s19 = sshll.u32 (!%p176_p2), %s1424_s16, 5  ;;  %v1959_v2 = vld [vmem:[%s2356_s1 + $0x48] sm:$0xff] (!%p176_p2)   ;;  %v1961_v4 = vld [vmem:[%s2356_s1 + $0x50] sm:$0xff] (!%p176_p2)  }
   0x6   : > { %179 = sbr.rel (%p176_p2) target bundleno = 354 (0x162), region = 36  ;;  %v1958_v1 = vld [vmem:[%s2356_s1] sm:$0xff] (!%p176_p2)   ;;  %1748 = vmatprep.subr.bf16.mxu0 (!%p176_p2), %v1957_v0  ;;  %1932 = vmatprep.subr.bf16.mxu1 (!%p176_p2), %v1957_v0  ;;  %p208_p3 = scmp.lt.s32.totalorder (!%p176_p2), %s1429_s19, 63  ;;  %v1960_v3 = vld [vmem:[%s2356_s1 + $0x8] sm:$0xff] (!%p176_p2)   ;;  %v1962_v5 = vld [vmem:[%s2356_s1 + $0x10] sm:$0xff] (!%p176_p2)  }
   0x7   : > { %1749 = vmatpush3.bf16.msra.mxu0 (!%p176_p2), %v1958_v1  ;;  %1940 = vmatpush3.bf16.msra.mxu1 (!%p176_p2), %v1958_v1  ;;  %v1963_v6 = vld [vmem:[%s2356_s1 + $0x58] sm:$0xff] (!%p176_p2)   ;;  %v1965_v8 = vld [vmem:[%s2356_s1 + $0x60] sm:$0xff] (!%p176_p2)   ;;  %v1967_v10 = vld [vmem:[%s2356_s1 + $0x68] sm:$0xff] (!%p176_p2)  }
   0x8   : > { %1750 = vmatprep.subr.bf16.mxu0 (!%p176_p2), %v1959_v2  ;;  %1933 = vmatprep.subr.bf16.mxu1 (!%p176_p2), %v1959_v2  ;;  %v1964_v7 = vld [vmem:[%s2356_s1 + $0x18] sm:$0xff] (!%p176_p2)   ;;  %v1966_v9 = vld [vmem:[%s2356_s1 + $0x20] sm:$0xff] (!%p176_p2)   ;;  %v1968_v13 = vld [vmem:[%s2356_s1 + $0x28] sm:$0xff] (!%p176_p2)  }
   0x9   : > { %v1969_v14 = vld [vmem:[%s2356_s1 + $0x70] sm:$0xff] (!%p176_p2)   ;;  %v1971_v16 = vld [vmem:[%s2356_s1 + $0x78] sm:$0xff] (!%p176_p2)   ;;  %v1979_v18 = vld [vmem:[%s2356_s1 + $0x80] sm:$0xff] (!%p176_p2)  }
   0xa   : > { %v1970_v15 = vld [vmem:[%s2356_s1 + $0x30] sm:$0xff] (!%p176_p2)   ;;  %v1972_v17 = vld [vmem:[%s2356_s1 + $0x38] sm:$0xff] (!%p176_p2)   ;;  %v1980_v22 = vld [vmem:[%s2356_s1 + $0x88] sm:$0xff] (!%p176_p2)  }
   0xb   : > { %1751 = vmatpush3.bf16.msra.mxu0 (!%p176_p2), %v1960_v3  ;;  %1941 = vmatpush3.bf16.msra.mxu1 (!%p176_p2), %v1960_v3  ;;  %v1987_v25 = vld [vmem:[%s2356_s1 + $0x90] sm:$0xff] (!%p176_p2)   ;;  %v1988_v27 = vld [vmem:[%s2356_s1 + $0x98] sm:$0xff] (!%p176_p2)   ;;  %v1995_v30 = vld [vmem:[%s2356_s1 + $0xa0] sm:$0xff] (!%p176_p2)  }
   0xc   : > { %1752 = vmatprep.subr.bf16.mxu0 (!%p176_p2), %v1961_v4  ;;  %1934 = vmatprep.subr.bf16.mxu1 (!%p176_p2), %v1961_v4  ;;  %v1996_v33 = vld [vmem:[%s2356_s1 + $0xa8] sm:$0xff] (!%p176_p2)   ;;  %v2003_v36 = vld [vmem:[%s2356_s1 + $0xb0] sm:$0xff] (!%p176_p2)   ;;  %v2004_v40 = vld [vmem:[%s2356_s1 + $0xb8] sm:$0xff] (!%p176_p2)  }
   0xd   : > { %s2361_s19 = smov (!%p208_p3, %s1429_s19), 63 }
   0xe   : > { %s1948_s6 = smul.u32 12, %s2361_s19 }
   0xf   : > { %1753 = vmatpush3.bf16.msra.mxu0 %v1962_v5  ;;  %1942 = vmatpush3.bf16.msra.mxu1 %v1962_v5 }
  0x10   : > { %1754 = vmatprep.subr.bf16.mxu0 %v1963_v6  ;;  %1935 = vmatprep.subr.bf16.mxu1 %v1963_v6  ;;  %s2119_s13 = scalar_lea.vmem %s2355_s0, %s1948_s6 }
  0x11   : > { %v1975_v11 = vld [vmem:[%s2119_s13 + $0x4] ss:$12 sps:$4 sm:$0xff]   ;;  %v1973_v19 = vld [vmem:[%s2119_s13] ss:$12 sps:$4 sm:$0xff]   ;;  %v1981_v21 = vld [vmem:[%s2119_s13 + $0x1c] ss:$12 sps:$4 sm:$0xff]  }
  0x12   : > { %v1978_v12 = vld [vmem:[%s2119_s13 + $0x124] ss:$12 sps:$4 sm:$0xff]   ;;  %778 = vmatprep.mubr.bf16.mxu0 %v1975_v11  ;;  %v1976_v20 = vld [vmem:[%s2119_s13 + $0x120] ss:$12 sps:$4 sm:$0xff]   ;;  %v1983_v23 = vld [vmem:[%s2119_s13 + $0x13c] ss:$12 sps:$4 sm:$0xff]  }
  0x13   : > { %1755 = vmatpush3.bf16.msra.mxu0 %v1964_v7  ;;  %1943 = vmatpush3.bf16.msra.mxu1 %v1964_v7  ;;  %v1985_v24 = vld [vmem:[%s2119_s13 + $0x18] ss:$12 sps:$4 sm:$0xff]   ;;  %v1989_v28 = vld [vmem:[%s2119_s13 + $0x34] ss:$12 sps:$4 sm:$0xff]   ;;  %v1993_v31 = vld [vmem:[%s2119_s13 + $0x30] ss:$12 sps:$4 sm:$0xff]  }
  0x14   : > { %1756 = vmatprep.subr.bf16.mxu0 %v1965_v8  ;;  %1936 = vmatprep.subr.bf16.mxu1 %v1965_v8  ;;  %v1986_v26 = vld [vmem:[%s2119_s13 + $0x138] ss:$12 sps:$4 sm:$0xff]   ;;  %v1991_v29 = vld [vmem:[%s2119_s13 + $0x154] ss:$12 sps:$4 sm:$0xff]   ;;  %v1994_v32 = vld [vmem:[%s2119_s13 + $0x150] ss:$12 sps:$4 sm:$0xff]  }
  0x15   : > { %874 = vmatprep.mubr.bf16.mxu1 %v1978_v12  ;;  %v1997_v34 = vld [vmem:[%s2119_s13 + $0x4c] ss:$12 sps:$4 sm:$0xff]   ;;  %v2001_v37 = vld [vmem:[%s2119_s13 + $0x48] ss:$12 sps:$4 sm:$0xff]   ;;  %v2005_v39 = vld [vmem:[%s2119_s13 + $0x64] ss:$12 sps:$4 sm:$0xff]  }
  0x16   : > { %v1999_v35 = vld [vmem:[%s2119_s13 + $0x16c] ss:$12 sps:$4 sm:$0xff]   ;;  %v2002_v38 = vld [vmem:[%s2119_s13 + $0x168] ss:$12 sps:$4 sm:$0xff]   ;;  %v2014_v47 = vld [vmem:[%s2119_s13 + $0x50] ss:$12 sps:$4 sm:$0xff]  }
  0x17   : > { %1757 = vmatpush3.bf16.msra.mxu0 %v1966_v9  ;;  %1944 = vmatpush3.bf16.msra.mxu1 %v1966_v9  ;;  %v2007_v41 = vld [vmem:[%s2119_s13 + $0x8] ss:$12 sps:$4 sm:$0xff]   ;;  %v2008_v42 = vld [vmem:[%s2119_s13 + $0x60] ss:$12 sps:$4 sm:$0xff]   ;;  %v2012_v45 = vld [vmem:[%s2119_s13 + $0x38] ss:$12 sps:$4 sm:$0xff]  }
  0x18   : > { %1758 = vmatprep.subr.bf16.mxu0 %v1967_v10  ;;  %1937 = vmatprep.subr.bf16.mxu1 %v1967_v10  ;;  %v2009_v43 = vld [vmem:[%s2119_s13 + $0x20] ss:$12 sps:$4 sm:$0xff]   ;;  %v2010_v44 = vld [vmem:[%s2119_s13 + $0x7c] ss:$12 sps:$4 sm:$0xff]   ;;  %v2013_v46 = vld [vmem:[%s2119_s13 + $0x78] ss:$12 sps:$4 sm:$0xff]  }
  0x19   : > { %v2015_v48 = vld [vmem:[%s2119_s13 + $0x94] ss:$12 sps:$4 sm:$0xff]   ;;  %v2018_v50 = vld [vmem:[%s2119_s13 + $0x90] ss:$12 sps:$4 sm:$0xff]   ;;  %v2020_v52 = vld [vmem:[%s2119_s13 + $0xac] ss:$12 sps:$4 sm:$0xff]  }
  0x1a   : > { %v2017_v49 = vld [vmem:[%s2119_s13 + $0x68] ss:$12 sps:$4 sm:$0xff]   ;;  %v2019_v51 = vld [vmem:[%s2119_s13 + $0x80] ss:$12 sps:$4 sm:$0xff]   ;;  %v2022_v53 = vld [vmem:[%s2119_s13 + $0x98] ss:$12 sps:$4 sm:$0xff]  }
  0x1b   : > { %1759 = vmatpush3.bf16.msra.mxu0 %v1968_v13  ;;  %1945 = vmatpush3.bf16.msra.mxu1 %v1968_v13  ;;  %v2023_v54 = vld [vmem:[%s2119_s13 + $0xa8] ss:$12 sps:$4 sm:$0xff]   ;;  %v2024_v55 = vld [vmem:[%s2119_s13 + $0xb0] ss:$12 sps:$4 sm:$0xff]   ;;  %v2028_v58 = vld [vmem:[%s2119_s13 + $0xc0] ss:$12 sps:$4 sm:$0xff]  }
  0x1c   : > { %1760 = vmatprep.subr.bf16.mxu0 %v1969_v14  ;;  %1938 = vmatprep.subr.bf16.mxu1 %v1969_v14  ;;  %v2025_v56 = vld [vmem:[%s2119_s13 + $0xc4] ss:$12 sps:$4 sm:$0xff]   ;;  %v2027_v57 = vld [vmem:[%s2119_s13 + $0xc8] ss:$12 sps:$4 sm:$0xff]   ;;  %v2029_v59 = vld [vmem:[%s2119_s13 + $0xe0] ss:$12 sps:$4 sm:$0xff]  }
  0x1d   : > { %v2030_v60 = vld [vmem:[%s2119_s13 + $0xdc] ss:$12 sps:$4 sm:$0xff]   ;;  %v2032_v61 = vld [vmem:[%s2119_s13 + $0xf8] ss:$12 sps:$4 sm:$0xff]   ;;  %v2035_v0 = vld [vmem:[%s2119_s13 + $0xf4] ss:$12 sps:$4 sm:$0xff]  }
  0x1e   : > { %v2033_v62 = vld [vmem:[%s2119_s13 + $0xd8] ss:$12 sps:$4 sm:$0xff]   ;;  %v2034_v63 = vld [vmem:[%s2119_s13 + $0x110] ss:$12 sps:$4 sm:$0xff]   ;;  %v2037_v1 = vld [vmem:[%s2119_s13 + $0x128] ss:$12 sps:$4 sm:$0xff]  }
  0x1f   : > { %1761 = vmatpush3.bf16.msra.mxu0 %v1970_v15  ;;  %1946 = vmatpush3.bf16.msra.mxu1 %v1970_v15  ;;  %v2038_v2 = vld [vmem:[%s2119_s13 + $0xf0] ss:$12 sps:$4 sm:$0xff]   ;;  %v2039_v3 = vld [vmem:[%s2119_s13 + $0x140] ss:$12 sps:$4 sm:$0xff]   ;;  %v2042_v5 = vld [vmem:[%s2119_s13 + $0x158] ss:$12 sps:$4 sm:$0xff]  }
  0x20   : > { %1762 = vmatprep.subr.bf16.mxu0 %v1971_v16  ;;  %1939 = vmatprep.subr.bf16.mxu1 %v1971_v16  ;;  %v2040_v4 = vld [vmem:[%s2119_s13 + $0x10c] ss:$12 sps:$4 sm:$0xff]   ;;  %v2043_v6 = vld [vmem:[%s2119_s13 + $0x108] ss:$12 sps:$4 sm:$0xff]   ;;  %v2044_v7 = vld [vmem:[%s2119_s13 + $0x170] ss:$12 sps:$4 sm:$0xff]  }
  0x21   : > { %s1432_s13 = sshll.u32 %s2361_s19, 2 }
  0x22   : > { %s2236_s25 = scalar_lea.vmem %s2358_s3, %s1432_s13  ;;  %s2265_s30 = scalar_lea.vmem %s2359_s4, %s1432_s13 }
  0x23   : > { %1763 = vmatpush3.bf16.msra.mxu0 %v1972_v17  ;;  %1947 = vmatpush3.bf16.msra.mxu1 %v1972_v17 }
  0x24   : > { %1884 = vmatprep.subr.bf16.mxu1 %v1979_v18 }
  0x26   : > { %779 = vmatmul.mubr.bf16.vlgmr.msra.gmra.mrb[0].mxu0 %v1973_v19  ;;  %875 = vmatmul.mubr.bf16.vlgmr.msra.gmra.mrb[0].mxu1 %v1976_v20 }
  0x27   : > { %1885 = vmatpush3.bf16.msra.mxu1 %v1979_v18  ;;  %786 = vmatprep.mubr.bf16.mxu0 %v1981_v21 }
  0x28   : > { %1886 = vmatprep.subr.bf16.mxu1 %v1980_v22  ;;  %882 = vmatprep.mubr.bf16.mxu1 %v1983_v23 }
  0x2b   : > { %1887 = vmatpush3.bf16.msra.mxu1 %v1980_v22 }
  0x2c   : > { %1888 = vmatprep.subr.bf16.mxu1 %v1987_v25 }
  0x2e   : > { %787 = vmatmul.mubr.bf16.gmra.mrb[4].mxu0 %v1985_v24  ;;  %883 = vmatmul.mubr.bf16.gmra.mrb[4].mxu1 %v1986_v26 }
  0x2f   : > { %1889 = vmatpush3.bf16.msra.mxu1 %v1987_v25  ;;  %794 = vmatprep.mubr.bf16.mxu0 %v1989_v28 }
  0x30   : > { %1890 = vmatprep.subr.bf16.mxu1 %v1988_v27  ;;  %890 = vmatprep.mubr.bf16.mxu1 %v1991_v29 }
  0x33   : > { %1891 = vmatpush3.bf16.msra.mxu1 %v1988_v27 }
  0x34   : > { %1892 = vmatprep.subr.bf16.mxu1 %v1995_v30 }
  0x36   : > { %795 = vmatmul.mubr.bf16.gmra.mrb[8].mxu0 %v1993_v31  ;;  %891 = vmatmul.mubr.bf16.gmra.mrb[8].mxu1 %v1994_v32 }
  0x37   : > { %1893 = vmatpush3.bf16.msra.mxu1 %v1995_v30  ;;  %802 = vmatprep.mubr.bf16.mxu0 %v1997_v34 }
  0x38   : > { %1894 = vmatprep.subr.bf16.mxu1 %v1996_v33  ;;  %898 = vmatprep.mubr.bf16.mxu1 %v1999_v35 }
  0x3b   : > { %1895 = vmatpush3.bf16.msra.mxu1 %v1996_v33 }
  0x3c   : > { %1896 = vmatprep.subr.bf16.mxu1 %v2003_v36 }
  0x3e   : > { %803 = vmatmul.mubr.bf16.gmra.mrb[12].mxu0 %v2001_v37  ;;  %899 = vmatmul.mubr.bf16.gmra.mrb[12].mxu1 %v2002_v38 }
  0x3f   : > { %1897 = vmatpush3.bf16.msra.mxu1 %v2003_v36  ;;  %810 = vmatprep.mubr.bf16.mxu0 %v2005_v39 }
  0x40   : > { %1898 = vmatprep.subr.bf16.mxu1 %v2004_v40  ;;  %1900 = vmatprep.mubr.bf16.mxu1 %v2007_v41 }
  0x43   : > { %1899 = vmatpush3.bf16.msra.mxu1 %v2004_v40 }
  0x46   : > { %811 = vmatmul.mubr.bf16.gmra.mrb[16].mxu0 %v2008_v42  ;;  %1901 = vmatmul.mubr.bf16.vlgmr.msra.gmra.mrb[16].mxu1 %v2009_v43 }
  0x47   : > { %818 = vmatprep.mubr.bf16.mxu0 %v2010_v44  ;;  %1904 = vmatprep.mubr.bf16.mxu1 %v2012_v45 }
  0x4e   : > { %819 = vmatmul.mubr.bf16.gmra.mrb[20].mxu0 %v2013_v46  ;;  %1905 = vmatmul.mubr.bf16.gmra.mrb[20].mxu1 %v2014_v47 }
  0x4f   : > { %826 = vmatprep.mubr.bf16.mxu0 %v2015_v48  ;;  %1908 = vmatprep.mubr.bf16.mxu1 %v2017_v49 }
  0x56   : > { %827 = vmatmul.mubr.bf16.gmra.mrb[24].mxu0 %v2018_v50  ;;  %1909 = vmatmul.mubr.bf16.gmra.mrb[24].mxu1 %v2019_v51 }
  0x57   : > { %834 = vmatprep.mubr.bf16.mxu0 %v2020_v52  ;;  %1912 = vmatprep.mubr.bf16.mxu1 %v2022_v53 }
  0x5e   : > { %835 = vmatmul.mubr.bf16.gmra.mrb[28].mxu0 %v2023_v54  ;;  %1913 = vmatmul.mubr.bf16.gmra.mrb[28].mxu1 %v2024_v55 }
  0x5f   : > { %842 = vmatprep.mubr.bf16.mxu0 %v2025_v56  ;;  %1916 = vmatprep.mubr.bf16.mxu1 %v2027_v57  ;;  %v1718_v56 = vld [vmem:[%s2236_s25 + $0x8] sm:$0xff]   ;;  %v2246_v57 = vld [vmem:[%s2357_s2] ss:$0 sm:$0xff] }
  0x66   : > { %843 = vmatmul.mubr.bf16.gmra.mrb[32].mxu0 %v2028_v58  ;;  %1917 = vmatmul.mubr.bf16.gmra.mrb[32].mxu1 %v2029_v59  ;;  %v1575_v58 = vld [vmem:[%s2236_s25] sm:$0xff]  }
  0x67   : > { %850 = vmatprep.mubr.bf16.mxu0 %v2030_v60  ;;  %1920 = vmatprep.mubr.bf16.mxu1 %v2032_v61  ;;  %v1580_v60 = vunpack.c.l.bf16 %v1718_v56 }
  0x6e   : > { %851 = vmatmul.mubr.bf16.gmra.mrb[36].mxu0 %v2033_v62  ;;  %1921 = vmatmul.mubr.bf16.gmra.mrb[36].mxu1 %v2034_v63 }
  0x6f   : > { %858 = vmatprep.mubr.bf16.mxu0 %v2035_v0  ;;  %1924 = vmatprep.mubr.bf16.mxu1 %v2037_v1  ;;  %v1576_v0 = vunpack.c.l.bf16 %v1575_v58 }
  0x76   : > { %859 = vmatmul.mubr.bf16.gmra.mrb[40].mxu0 %v2038_v2  ;;  %1925 = vmatmul.mubr.bf16.gmra.mrb[40].mxu1 %v2039_v3 }
  0x77   : > { %866 = vmatprep.mubr.bf16.mxu0 %v2040_v4  ;;  %1928 = vmatprep.mubr.bf16.mxu1 %v2042_v5  ;;  %v1581_v5 = vunpack.c.h.bf16 %v1718_v56 }
  0x7e   : > { %867 = vmatmul.mubr.bf16.gmra.mrb[44].mxu0 %v2043_v6  ;;  %1929 = vmatmul.mubr.bf16.gmra.mrb[44].mxu1 %v2044_v7 }
  0xf9   : > { %v1764_v8 = vpop.f32.mrb[0].mxu0  ;;  %v1836_v9 = vpop.f32.mrb[0].mxu1 }
  0xfa   : > { %v1765_v10 = vpop.f32.mrb[1].mxu0  ;;  %v1837_v11 = vpop.f32.mrb[1].mxu1 }
  0xfb   : > { %v1766_v12 = vadd.f32 %v1765_v10, %v1764_v8  ;;  %v1767_v13 = vpop.f32.mrb[2].mxu0  ;;  %v2214_v14 = vadd.f32 %v1837_v11, %v1836_v9  ;;  %v1839_v15 = vpop.f32.mrb[2].mxu1  ;;  %v1577_v11 = vunpack.c.h.bf16 %v1575_v58 }
  0xfc   : > { %v1768_v16 = vpop.f32.mrb[3].mxu0  ;;  %v1840_v17 = vpop.f32.mrb[3].mxu1 }
  0xfd   : > { %v1769_v18 = vadd.f32 %v1768_v16, %v1767_v13  ;;  %v2216_v19 = vadd.f32 %v1840_v17, %v1839_v15  ;;  %v781_v63 = vadd.f32 %v1766_v12, %v2246_v57  ;;  %v1720_v17 = vld [vmem:[%s2236_s25 + $0x18] sm:$0xff]  }
  0xff   : > { %v784_v10 = vadd.f32 %v1769_v18, %v2246_v57 }
 0x101   : > { %v1770_v20 = vpop.f32.mrb[4].mxu0  ;;  %v1842_v21 = vpop.f32.mrb[4].mxu1 }
 0x102   : > { %v1771_v22 = vpop.f32.mrb[5].mxu0  ;;  %v1843_v23 = vpop.f32.mrb[5].mxu1 }
 0x103   : > { %v1772_v24 = vadd.f32 %v1771_v22, %v1770_v20  ;;  %v1773_v25 = vpop.f32.mrb[6].mxu0  ;;  %v2218_v26 = vadd.f32 %v1843_v23, %v1842_v21  ;;  %v1845_v27 = vpop.f32.mrb[6].mxu1  ;;  %v1719_v23 = vld [vmem:[%s2236_s25 + $0x10] sm:$0xff]  }
 0x104   : > { %v1774_v28 = vpop.f32.mrb[7].mxu0  ;;  %v1846_v29 = vpop.f32.mrb[7].mxu1  ;;  %v1584_v18 = vunpack.c.l.bf16 %v1719_v23 }
 0x105   : > { %v1775_v30 = vadd.f32 %v1774_v28, %v1773_v25  ;;  %v2220_v31 = vadd.f32 %v1846_v29, %v1845_v27  ;;  %v789_v59 = vadd.f32 %v1772_v24, %v2246_v57  ;;  %v1588_v27 = vunpack.c.l.bf16 %v1720_v17 }
 0x107   : > { %v792_v4 = vadd.f32 %v1775_v30, %v2246_v57 }
 0x109   : > { %v1776_v32 = vpop.f32.mrb[8].mxu0  ;;  %v1848_v33 = vpop.f32.mrb[8].mxu1 }
 0x10a   : > { %v1777_v34 = vpop.f32.mrb[9].mxu0  ;;  %v1849_v35 = vpop.f32.mrb[9].mxu1 }
 0x10b   : > { %v2222_v36 = vadd.f32 %v1777_v34, %v1776_v32  ;;  %v1779_v37 = vpop.f32.mrb[10].mxu0  ;;  %v2224_v38 = vadd.f32 %v1849_v35, %v1848_v33  ;;  %v1851_v39 = vpop.f32.mrb[10].mxu1 }
 0x10c   : > { %v1780_v40 = vpop.f32.mrb[11].mxu0  ;;  %v1852_v41 = vpop.f32.mrb[11].mxu1 }
 0x10d   : > { %v2226_v42 = vadd.f32 %v1780_v40, %v1779_v37  ;;  %v2228_v43 = vadd.f32 %v1852_v41, %v1851_v39  ;;  %v797_v37 = vadd.f32 %v2222_v36, %v2246_v57  ;;  %v1589_v39 = vunpack.c.h.bf16 %v1720_v17 }
 0x10f   : > { %v800_v56 = vadd.f32 %v2226_v42, %v2246_v57 }
 0x111   : > { %v1782_v44 = vpop.f32.mrb[12].mxu0  ;;  %v1854_v45 = vpop.f32.mrb[12].mxu1 }
 0x112   : > { %v1783_v46 = vpop.f32.mrb[13].mxu0  ;;  %v1855_v47 = vpop.f32.mrb[13].mxu1 }
 0x113   : > { %v1784_v48 = vadd.f32 %v1783_v46, %v1782_v44  ;;  %v1785_v49 = vpop.f32.mrb[14].mxu0  ;;  %v2238_v50 = vadd.f32 %v1855_v47, %v1854_v45  ;;  %v1857_v51 = vpop.f32.mrb[14].mxu1  ;;  %v1585_v47 = vunpack.c.h.bf16 %v1719_v23 }
 0x114   : > { %v1786_v52 = vpop.f32.mrb[15].mxu0  ;;  %v1858_v53 = vpop.f32.mrb[15].mxu1 }
 0x115   : > { %v1787_v54 = vadd.f32 %v1786_v52, %v1785_v49  ;;  %v2240_v55 = vadd.f32 %v1858_v53, %v1857_v51  ;;  %v805_v30 = vadd.f32 %v1784_v48, %v2246_v57 }
 0x117   : > { %v808_v46 = vadd.f32 %v1787_v54, %v2246_v57 }
 0x119   : > { %v1788_v61 = vpop.f32.mrb[16].mxu0  ;;  %v1902_v62 = vpop.f32.mrb[16].mxu1 }
 0x11a   : > { %v950_v1 = vadd.f32 %v1902_v62, %v789_v59  ;;  %v1789_v2 = vpop.f32.mrb[17].mxu0  ;;  %v941_v3 = vpop.f32.mrb[17].mxu1 }
 0x11b   : > { %v2252_v6 = vadd.f32 %v1789_v2, %v1788_v61  ;;  %v942_v7 = vadd.f32 %v941_v3, %v781_v63  ;;  %v1791_v8 = vpop.f32.mrb[18].mxu0  ;;  %v1903_v9 = vpop.f32.mrb[18].mxu1  ;;  %v1722_v61 = vld [vmem:[%s2236_s25 + $0x28] sm:$0xff]  }
 0x11c   : > { %v1134_v13 = vadd.f32 %v1580_v60, %v950_v1  ;;  %v953_v15 = vadd.f32 %v1903_v9, %v792_v4  ;;  %v1792_v12 = vpop.f32.mrb[19].mxu0  ;;  %v944_v16 = vpop.f32.mrb[19].mxu1  ;;  %v1596_v3 = vunpack.c.l.bf16 %v1722_v61 }
 0x11d   : > { %v1132_v20 = vadd.f32 %v1576_v0, %v942_v7  ;;  %v2256_v21 = vadd.f32 %v1792_v12, %v1791_v8  ;;  %v945_v22 = vadd.f32 %v944_v16, %v784_v10  ;;  %v1721_v0 = vld [vmem:[%s2236_s25 + $0x20] sm:$0xff]  }
 0x11e   : > { %v1135_v24 = vadd.f32 %v1581_v5, %v953_v15  ;;  %v1166_v28 = vmax.f32 %v1134_v13, 0.0  ;;  %v1592_v8 = vunpack.c.l.bf16 %v1721_v0  ;;  %v813_v13 = vadd.f32 %v2252_v6, %v2246_v57 }
 0x11f   : > { %v1133_v25 = vadd.f32 %v1577_v11, %v945_v22  ;;  %v1164_v32 = vmax.f32 %v1132_v20, 0.0  ;;  %v1597_v15 = vunpack.c.h.bf16 %v1722_v61  ;;  %v1593_v23 = vunpack.c.h.bf16 %v1721_v0 }
 0x120   : > { %v1167_v29 = vmax.f32 %v1135_v24, 0.0 }
 0x121   : > { %v1165_v33 = vmax.f32 %v1133_v25, 0.0  ;;  %v1794_v34 = vpop.f32.mrb[20].mxu0  ;;  %v1906_v35 = vpop.f32.mrb[20].mxu1 }
 0x122   : > { %v1646_v40 = vpack.c.bf16 %v1167_v29, %v1166_v28  ;;  %v966_v41 = vadd.f32 %v1906_v35, %v805_v30  ;;  %v1795_v44 = vpop.f32.mrb[21].mxu0  ;;  %v957_v45 = vpop.f32.mrb[21].mxu1  ;;  %v816_v30 = vadd.f32 %v2256_v21, %v2246_v57 }
 0x123   : > { %v1641_v48 = vpack.c.bf16 %v1165_v33, %v1164_v32  ;;  %v1796_v49 = vadd.f32 %v1795_v44, %v1794_v34  ;;  %v958_v51 = vadd.f32 %v957_v45, %v797_v37  ;;  %v1797_v52 = vpop.f32.mrb[22].mxu0  ;;  %v1907_v53 = vpop.f32.mrb[22].mxu1 }
 0x124   : > { %1733 = vst [vmem:[%s2265_s30 + $0x8] sm:$0xff] %v1646_v40   ;;  %v1138_v36 = vadd.f32 %v1588_v27, %v966_v41  ;;  %v969_v58 = vadd.f32 %v1907_v53, %v808_v46  ;;  %v1798_v59 = vpop.f32.mrb[23].mxu0  ;;  %v960_v60 = vpop.f32.mrb[23].mxu1  ;;  %v1723_v40 = vld [vmem:[%s2236_s25 + $0x30] sm:$0xff]  }
 0x125   : > { %1642 = vst [vmem:[%s2265_s30] sm:$0xff] %v1641_v48   ;;  %v1136_v62 = vadd.f32 %v1584_v18, %v958_v51  ;;  %v1799_v63 = vadd.f32 %v1798_v59, %v1797_v52  ;;  %v961_v54 = vadd.f32 %v960_v60, %v800_v56  ;;  %v821_v7 = vadd.f32 %v1796_v49, %v2246_v57  ;;  %v1724_v49 = vld [vmem:[%s2236_s25 + $0x38] sm:$0xff]  }
 0x126   : > { %v1139_v1 = vadd.f32 %v1589_v39, %v969_v58  ;;  %v1170_v4 = vmax.f32 %v1138_v36, 0.0  ;;  %v1600_v52 = vunpack.c.l.bf16 %v1723_v40  ;;  %v1601_v58 = vunpack.c.h.bf16 %v1723_v40 }
 0x127   : > { %v1137_v2 = vadd.f32 %v1585_v47, %v961_v54  ;;  %v1168_v42 = vmax.f32 %v1136_v62, 0.0  ;;  %v824_v22 = vadd.f32 %v1799_v63, %v2246_v57  ;;  %v1604_v0 = vunpack.c.l.bf16 %v1724_v49 }
 0x128   : > { %v1171_v5 = vmax.f32 %v1139_v1, 0.0 }
 0x129   : > { %v1169_v9 = vmax.f32 %v1137_v2, 0.0  ;;  %v1800_v10 = vpop.f32.mrb[24].mxu0  ;;  %v1910_v11 = vpop.f32.mrb[24].mxu1 }
 0x12a   : > { %v1656_v12 = vpack.c.bf16 %v1171_v5, %v1170_v4  ;;  %v982_v16 = vadd.f32 %v1910_v11, %v821_v7  ;;  %v1801_v17 = vpop.f32.mrb[25].mxu0  ;;  %v973_v20 = vpop.f32.mrb[25].mxu1 }
 0x12b   : > { %v1651_v24 = vpack.c.bf16 %v1169_v9, %v1168_v42  ;;  %v1802_v25 = vadd.f32 %v1801_v17, %v1800_v10  ;;  %v974_v27 = vadd.f32 %v973_v20, %v813_v13  ;;  %v1803_v28 = vpop.f32.mrb[26].mxu0  ;;  %v1911_v29 = vpop.f32.mrb[26].mxu1  ;;  %v1605_v9 = vunpack.c.h.bf16 %v1724_v49  ;;  %v1725_v20 = vld [vmem:[%s2236_s25 + $0x40] sm:$0xff]  }
 0x12c   : > { %1735 = vst [vmem:[%s2265_s30 + $0x18] sm:$0xff] %v1656_v12   ;;  %v1142_v6 = vadd.f32 %v1596_v3, %v982_v16  ;;  %v985_v18 = vadd.f32 %v1911_v29, %v824_v22  ;;  %v1804_v32 = vpop.f32.mrb[27].mxu0  ;;  %v976_v33 = vpop.f32.mrb[27].mxu1 }
 0x12d   : > { %1734 = vst [vmem:[%s2265_s30 + $0x10] sm:$0xff] %v1651_v24   ;;  %v1140_v34 = vadd.f32 %v1592_v8, %v974_v27  ;;  %v1805_v35 = vadd.f32 %v1804_v32, %v1803_v28  ;;  %v977_v37 = vadd.f32 %v976_v33, %v816_v30  ;;  %v829_v51 = vadd.f32 %v1802_v25, %v2246_v57 }
 0x12e   : > { %v1143_v39 = vadd.f32 %v1597_v15, %v985_v18  ;;  %v1174_v44 = vmax.f32 %v1142_v6, 0.0  ;;  %v1608_v30 = vunpack.c.l.bf16 %v1725_v20 }
 0x12f   : > { %v1141_v41 = vadd.f32 %v1593_v23, %v977_v37  ;;  %v1172_v46 = vmax.f32 %v1140_v34, 0.0  ;;  %v832_v54 = vadd.f32 %v1805_v35, %v2246_v57 }
 0x130   : > { %v1175_v45 = vmax.f32 %v1143_v39, 0.0 }
 0x131   : > { %v1173_v47 = vmax.f32 %v1141_v41, 0.0  ;;  %v1806_v48 = vpop.f32.mrb[28].mxu0  ;;  %v1914_v21 = vpop.f32.mrb[28].mxu1  ;;  %v1609_v41 = vunpack.c.h.bf16 %v1725_v20  ;;  %v2318_v20 = vld [vmem:[%s2236_s25 + $0x70] sm:$0xff]  }
 0x132   : > { %v1666_v53 = vpack.c.bf16 %v1175_v45, %v1174_v44  ;;  %v1807_v56 = vpop.f32.mrb[29].mxu0  ;;  %v989_v36 = vpop.f32.mrb[29].mxu1 }
 0x133   : > { %v1661_v59 = vpack.c.bf16 %v1173_v47, %v1172_v46  ;;  %v1808_v60 = vadd.f32 %v1807_v56, %v1806_v48  ;;  %v990_v61 = vadd.f32 %v989_v36, %v829_v51  ;;  %v1809_v62 = vpop.f32.mrb[30].mxu0  ;;  %v1915_v63 = vpop.f32.mrb[30].mxu1  ;;  %v1726_v47 = vld [vmem:[%s2236_s25 + $0x48] sm:$0xff]  }
 0x134   : > { %1737 = vst [vmem:[%s2265_s30 + $0x28] sm:$0xff] %v1666_v53   ;;  %v1810_v1 = vpop.f32.mrb[31].mxu0  ;;  %v992_v2 = vpop.f32.mrb[31].mxu1  ;;  %v1612_v36 = vunpack.c.l.bf16 %v1726_v47 }
 0x135   : > { %1736 = vst [vmem:[%s2265_s30 + $0x20] sm:$0xff] %v1661_v59   ;;  %v837_v3 = vadd.f32 %v1808_v60, %v2246_v57  ;;  %v1144_v4 = vadd.f32 %v1600_v52, %v990_v61  ;;  %v1811_v5 = vadd.f32 %v1810_v1, %v1809_v62  ;;  %v993_v7 = vadd.f32 %v992_v2, %v832_v54  ;;  %v1730_v54 = vld [vmem:[%s2236_s25 + $0x68] sm:$0xff]  }
 0x137   : > { %v998_v8 = vadd.f32 %v1914_v21, %v837_v3  ;;  %v840_v42 = vadd.f32 %v1811_v5, %v2246_v57  ;;  %v1145_v10 = vadd.f32 %v1601_v58, %v993_v7  ;;  %v1176_v13 = vmax.f32 %v1144_v4, 0.0  ;;  %v2307_v5 = vld [vmem:[%s2236_s25 + $0x50] sm:$0xff]  }
 0x138   : > { %v1613_v4 = vunpack.c.h.bf16 %v1726_v47  ;;  %v885_v7 = vadd.f32 %v2218_v26, %v2246_v57  ;;  %v1616_v26 = vunpack.c.l.bf16 %v2307_v5 }
 0x139   : > { %v1146_v11 = vadd.f32 %v1604_v0, %v998_v8  ;;  %v1001_v15 = vadd.f32 %v1915_v63, %v840_v42  ;;  %v1177_v12 = vmax.f32 %v1145_v10, 0.0  ;;  %v1812_v16 = vpop.f32.mrb[32].mxu0  ;;  %v1918_v17 = vpop.f32.mrb[32].mxu1  ;;  %v1729_v0 = vld [vmem:[%s2236_s25 + $0x60] sm:$0xff]   ;;  %v1628_v8 = vunpack.c.l.bf16 %v1730_v54  ;;  %v2312_v10 = vld [vmem:[%s2236_s25 + $0x78] sm:$0xff]  }
 0x13a   : > { %v1813_v22 = vpop.f32.mrb[33].mxu0  ;;  %v1005_v23 = vpop.f32.mrb[33].mxu1  ;;  %v1624_v42 = vunpack.c.l.bf16 %v1729_v0 }
 0x13b   : > { %v1147_v24 = vadd.f32 %v1605_v9, %v1001_v15  ;;  %v1671_v25 = vpack.c.bf16 %v1177_v12, %v1176_v13  ;;  %v1814_v27 = vadd.f32 %v1813_v22, %v1812_v16  ;;  %v1815_v28 = vpop.f32.mrb[34].mxu0  ;;  %v1919_v29 = vpop.f32.mrb[34].mxu1  ;;  %v1178_v32 = vmax.f32 %v1146_v11, 0.0 }
 0x13c   : > { %v1816_v6 = vpop.f32.mrb[35].mxu0  ;;  %v1008_v18 = vpop.f32.mrb[35].mxu1  ;;  %v1629_v9 = vunpack.c.h.bf16 %v1730_v54  ;;  %v877_v16 = vadd.f32 %v2214_v14, %v2246_v57  ;;  %v1636_v14 = vunpack.c.l.bf16 %v2312_v10 }
 0x13d   : > { %v1179_v33 = vmax.f32 %v1147_v24, 0.0  ;;  %1738 = vst [vmem:[%s2265_s30 + $0x30] sm:$0xff] %v1671_v25   ;;  %v845_v34 = vadd.f32 %v1814_v27, %v2246_v57  ;;  %v1817_v35 = vadd.f32 %v1816_v6, %v1815_v28  ;;  %v888_v25 = vadd.f32 %v2220_v31, %v2246_v57 }
 0x13e   : > { %v1617_v27 = vunpack.c.h.bf16 %v2307_v5 }
 0x13f   : > { %v1676_v37 = vpack.c.bf16 %v1179_v33, %v1178_v32  ;;  %v1006_v39 = vadd.f32 %v1005_v23, %v845_v34  ;;  %v848_v40 = vadd.f32 %v1817_v35, %v2246_v57  ;;  %v880_v35 = vadd.f32 %v2216_v19, %v2246_v57 }
 0x140   : > { %v1633_v19 = vunpack.c.h.bf16 %v2318_v20 }
 0x141   : > { %1739 = vst [vmem:[%s2265_s30 + $0x38] sm:$0xff] %v1676_v37   ;;  %v1148_v44 = vadd.f32 %v1608_v30, %v1006_v39  ;;  %v1009_v45 = vadd.f32 %v1008_v18, %v848_v40  ;;  %v1818_v46 = vpop.f32.mrb[36].mxu0  ;;  %v2298_v48 = vpop.f32.mrb[36].mxu1  ;;  %v1632_v39 = vunpack.c.l.bf16 %v2318_v20 }
 0x142   : > { %v1819_v21 = vpop.f32.mrb[37].mxu0  ;;  %v1021_v49 = vpop.f32.mrb[37].mxu1 }
 0x143   : > { %v1149_v51 = vadd.f32 %v1609_v41, %v1009_v45  ;;  %v1820_v52 = vadd.f32 %v1819_v21, %v1818_v46  ;;  %v1821_v53 = vpop.f32.mrb[38].mxu0  ;;  %v2300_v56 = vpop.f32.mrb[38].mxu1  ;;  %v1180_v60 = vmax.f32 %v1148_v44, 0.0  ;;  %v1637_v21 = vunpack.c.h.bf16 %v2312_v10 }
 0x144   : > { %v1822_v58 = vpop.f32.mrb[39].mxu0  ;;  %v1024_v59 = vpop.f32.mrb[39].mxu1 }
 0x145   : > { %v1181_v61 = vmax.f32 %v1149_v51, 0.0  ;;  %v853_v62 = vadd.f32 %v1820_v52, %v2246_v57  ;;  %v1823_v63 = vadd.f32 %v1822_v58, %v1821_v53 }
 0x147   : > { %v1681_v1 = vpack.c.bf16 %v1181_v61, %v1180_v60  ;;  %v1014_v2 = vadd.f32 %v1918_v17, %v853_v62  ;;  %v856_v3 = vadd.f32 %v1823_v63, %v2246_v57  ;;  %v1625_v17 = vunpack.c.h.bf16 %v1729_v0  ;;  %v1728_v62 = vld [vmem:[%s2236_s25 + $0x58] sm:$0xff]  }
 0x148   : > { %v901_v61 = vadd.f32 %v2238_v50, %v2246_v57  ;;  %v1620_v10 = vunpack.c.l.bf16 %v1728_v62 }
 0x149   : > { %1740 = vst [vmem:[%s2265_s30 + $0x40] sm:$0xff] %v1681_v1   ;;  %v1150_v11 = vadd.f32 %v1612_v36, %v1014_v2  ;;  %v1017_v13 = vadd.f32 %v1919_v29, %v856_v3  ;;  %v1824_v15 = vpop.f32.mrb[40].mxu0  ;;  %v1926_v12 = vpop.f32.mrb[40].mxu1  ;;  %v904_v2 = vadd.f32 %v2240_v55, %v2246_v57  ;;  %v896_v55 = vadd.f32 %v2228_v43, %v2246_v57 }
 0x14a   : > { %v1046_v22 = vadd.f32 %v1926_v12, %v885_v7  ;;  %v1825_v23 = vpop.f32.mrb[41].mxu0  ;;  %v1037_v24 = vpop.f32.mrb[41].mxu1 }
 0x14b   : > { %v1151_v28 = vadd.f32 %v1613_v4, %v1017_v13  ;;  %v1826_v29 = vadd.f32 %v1825_v23, %v1824_v15  ;;  %v1038_v30 = vadd.f32 %v1037_v24, %v877_v16  ;;  %v1827_v6 = vpop.f32.mrb[42].mxu0  ;;  %v1927_v18 = vpop.f32.mrb[42].mxu1  ;;  %v1182_v40 = vmax.f32 %v1150_v11, 0.0 }
 0x14c   : > { %v1158_v32 = vadd.f32 %v1628_v8, %v1046_v22  ;;  %v1049_v33 = vadd.f32 %v1927_v18, %v888_v25  ;;  %v1828_v34 = vpop.f32.mrb[43].mxu0  ;;  %v1040_v37 = vpop.f32.mrb[43].mxu1 }
 0x14d   : > { %v1183_v31 = vmax.f32 %v1151_v28, 0.0  ;;  %v861_v41 = vadd.f32 %v1826_v29, %v2246_v57  ;;  %v1829_v44 = vadd.f32 %v1828_v34, %v1827_v6  ;;  %v1156_v45 = vadd.f32 %v1624_v42, %v1038_v30 }
 0x14e   : > { %v1159_v46 = vadd.f32 %v1629_v9, %v1049_v33  ;;  %v1041_v47 = vadd.f32 %v1040_v37, %v880_v35  ;;  %v1190_v36 = vmax.f32 %v1158_v32, 0.0  ;;  %v1621_v6 = vunpack.c.h.bf16 %v1728_v62 }
 0x14f   : > { %v1686_v51 = vpack.c.bf16 %v1183_v31, %v1182_v40  ;;  %v1022_v52 = vadd.f32 %v1021_v49, %v861_v41  ;;  %v864_v53 = vadd.f32 %v1829_v44, %v2246_v57  ;;  %v893_v49 = vadd.f32 %v2224_v38, %v2246_v57 }
 0x150   : > { %v1191_v58 = vmax.f32 %v1159_v46, 0.0  ;;  %v1157_v60 = vadd.f32 %v1625_v17, %v1041_v47  ;;  %v1188_v3 = vmax.f32 %v1156_v45, 0.0 }
 0x151   : > { %1741 = vst [vmem:[%s2265_s30 + $0x48] sm:$0xff] %v1686_v51   ;;  %v1152_v63 = vadd.f32 %v1616_v26, %v1022_v52  ;;  %v1025_v54 = vadd.f32 %v1024_v59, %v864_v53  ;;  %v1830_v0 = vpop.f32.mrb[44].mxu0  ;;  %v1930_v1 = vpop.f32.mrb[44].mxu1 }
 0x152   : > { %v1706_v4 = vpack.c.bf16 %v1191_v58, %v1190_v36  ;;  %v1189_v5 = vmax.f32 %v1157_v60, 0.0  ;;  %v1062_v7 = vadd.f32 %v1930_v1, %v901_v61  ;;  %v1831_v8 = vpop.f32.mrb[45].mxu0  ;;  %v1053_v42 = vpop.f32.mrb[45].mxu1 }
 0x153   : > { %v1153_v50 = vadd.f32 %v1617_v27, %v1025_v54  ;;  %v1832_v9 = vadd.f32 %v1831_v8, %v1830_v0  ;;  %v1054_v59 = vadd.f32 %v1053_v42, %v893_v49  ;;  %v1833_v11 = vpop.f32.mrb[46].mxu0  ;;  %v1931_v13 = vpop.f32.mrb[46].mxu1  ;;  %v1184_v20 = vmax.f32 %v1152_v63, 0.0 }
 0x154   : > { %1745 = vst [vmem:[%s2265_s30 + $0x68] sm:$0xff] %v1706_v4   ;;  %v1701_v15 = vpack.c.bf16 %v1189_v5, %v1188_v3  ;;  %v1162_v12 = vadd.f32 %v1636_v14, %v1062_v7  ;;  %v1065_v38 = vadd.f32 %v1931_v13, %v904_v2  ;;  %v1834_v16 = vpop.f32.mrb[47].mxu0  ;;  %v1056_v17 = vpop.f32.mrb[47].mxu1 }
 0x155   : > { %v1185_v22 = vmax.f32 %v1153_v50, 0.0  ;;  %v869_v23 = vadd.f32 %v1832_v9, %v2246_v57  ;;  %v1835_v26 = vadd.f32 %v1834_v16, %v1833_v11  ;;  %v1160_v24 = vadd.f32 %v1632_v39, %v1054_v59 }
 0x156   : > { %1744 = vst [vmem:[%s2265_s30 + $0x60] sm:$0xff] %v1701_v15   ;;  %v1163_v25 = vadd.f32 %v1637_v21, %v1065_v38  ;;  %v1057_v27 = vadd.f32 %v1056_v17, %v896_v55  ;;  %v1194_v43 = vmax.f32 %v1162_v12, 0.0 }
 0x157   : > { %v1691_v28 = vpack.c.bf16 %v1185_v22, %v1184_v20  ;;  %v1030_v29 = vadd.f32 %v2298_v48, %v869_v23  ;;  %v872_v30 = vadd.f32 %v1835_v26, %v2246_v57  ;;  %v1192_v34 = vmax.f32 %v1160_v24, 0.0 }
 0x158   : > { %v1195_v18 = vmax.f32 %v1163_v25, 0.0  ;;  %v1161_v14 = vadd.f32 %v1633_v19, %v1057_v27 }
 0x159   : > { %1742 = vst [vmem:[%s2265_s30 + $0x50] sm:$0xff] %v1691_v28   ;;  %v1154_v32 = vadd.f32 %v1620_v10, %v1030_v29  ;;  %v1033_v33 = vadd.f32 %v2300_v56, %v872_v30 }
 0x15a   : > { %v1716_v35 = vpack.c.bf16 %v1195_v18, %v1194_v43  ;;  %v1193_v37 = vmax.f32 %v1161_v14, 0.0 }
 0x15b   : > { %v1155_v39 = vadd.f32 %v1621_v6, %v1033_v33  ;;  %v1186_v31 = vmax.f32 %v1154_v32, 0.0 }
 0x15c   : > { %1747 = vst [vmem:[%s2265_s30 + $0x78] sm:$0xff] %v1716_v35   ;;  %v1711_v40 = vpack.c.bf16 %v1193_v37, %v1192_v34 }
 0x15d   : > { %v1187_v48 = vmax.f32 %v1155_v39, 0.0 }
 0x15e   : > { %1746 = vst [vmem:[%s2265_s30 + $0x70] sm:$0xff] %v1711_v40  }
 0x15f   : > { %v1696_v57 = vpack.c.bf16 %v1187_v48, %v1186_v31 }
 0x161   : > { %1743 = vst [vmem:[%s2265_s30 + $0x58] sm:$0xff] %v1696_v57  }
 0x162 PF: > { %s14_s15 = sadd.s32 1, %s2051_s15  }
 0x163   : > { %p11_p4 = scmp.ge.s32.totalorder %s14_s15, 4  }
 0x165   :  { %13 = sbr.rel (!%p11_p4) target bundleno = 1 (0x1), region = 69 }

// kernel: resnet_forward.22
= control target key start
LH: loop header
LB: loop body
LE: loop exit
PB: predicated region body
PF: predicated region fallthrough
CT: control target
= control target key end

     0   :  { %s931_s12 = smov 0   ;;  %s1047_s0 = inlined_call_operand.vmem [shape: bf16[128,384], index: 0, kind: input, shape index: {}]   ;;  %s1048_s1 = inlined_call_operand.vmem [shape: bf16[384,128], index: 1, kind: input, shape index: {}]   ;;  %s1049_s2 = inlined_call_operand.vmem [shape: f32[1,128], index: 2, kind: input, shape index: {}]   ;;  %s1050_s3 = inlined_call_operand.vmem [shape: bf16[128,128], index: 3, kind: output, shape index: {}]  }
   0x1 LB: > { %s691_s13 = sadd.s32 4294967295, %s909_s12   ;;  %p695_p0 = scmp.ge.s32.totalorder %s909_s12, 1  ;;  %s909_s12 = sphi %s931_s12, %s13_s12  }
   0x2   : > { %p139_p1 = scmp.lt.s32.totalorder %s909_s12, 3 }
   0x4   : > { %p140_p2 = pnand %p695_p0, %p139_p1 }
   0x5   : > { %v863_v0 = vld [vmem:[%s1048_s1 + $0x40] sm:$0xff] (!%p140_p2)   ;;  %v865_v2 = vld [vmem:[%s1048_s1 + $0x48] sm:$0xff] (!%p140_p2)   ;;  %v868_v5 = vld [vmem:[%s1048_s1 + $0x50] sm:$0xff] (!%p140_p2)   ;;  %s696_s28 = sshll.u32 (!%p140_p2), %s691_s13, 3 }
   0x6   : > { %143 = sbr.rel (%p140_p2) target bundleno = 288 (0x120), region = 32  ;;  %v864_v1 = vld [vmem:[%s1048_s1] sm:$0xff] (!%p140_p2)   ;;  %778 = vmatprep.subr.bf16.mxu0 (!%p140_p2), %v863_v0  ;;  %v867_v4 = vld [vmem:[%s1048_s1 + $0x8] sm:$0xff] (!%p140_p2)   ;;  %v870_v7 = vld [vmem:[%s1048_s1 + $0x10] sm:$0xff] (!%p140_p2)   ;;  %p165_p3 = scmp.lt.s32.totalorder (!%p140_p2), %s696_s28, 15 }
   0x7   : > { %779 = vmatpush3.bf16.msra.mxu0 (!%p140_p2), %v864_v1  ;;  %v866_v3 = vld [vmem:[%s1048_s1 + $0x80] sm:$0xff] (!%p140_p2)   ;;  %v869_v6 = vld [vmem:[%s1048_s1 + $0x88] sm:$0xff] (!%p140_p2)   ;;  %v871_v8 = vld [vmem:[%s1048_s1 + $0x58] sm:$0xff] (!%p140_p2)  }
   0x8   : > { %780 = vmatprep.subr.bf16.mxu0 (!%p140_p2), %v865_v2  ;;  %830 = vmatprep.subr.bf16.mxu1 (!%p140_p2), %v866_v3  ;;  %v872_v9 = vld [vmem:[%s1048_s1 + $0x90] sm:$0xff] (!%p140_p2)   ;;  %v873_v10 = vld [vmem:[%s1048_s1 + $0x18] sm:$0xff] (!%p140_p2)   ;;  %v874_v11 = vld [vmem:[%s1048_s1 + $0x60] sm:$0xff] (!%p140_p2)  }
   0x9   : > { %831 = vmatpush3.bf16.msra.mxu1 (!%p140_p2), %v866_v3  ;;  %v875_v12 = vld [vmem:[%s1048_s1 + $0x98] sm:$0xff] (!%p140_p2)   ;;  %v876_v13 = vld [vmem:[%s1048_s1 + $0x20] sm:$0xff] (!%p140_p2)   ;;  %v877_v15 = vld [vmem:[%s1048_s1 + $0x68] sm:$0xff] (!%p140_p2)  }
   0xa   : > { %832 = vmatprep.subr.bf16.mxu1 (!%p140_p2), %v869_v6  ;;  %v878_v14 = vld [vmem:[%s1048_s1 + $0xa0] sm:$0xff] (!%p140_p2)   ;;  %v879_v16 = vld [vmem:[%s1048_s1 + $0x28] sm:$0xff] (!%p140_p2)   ;;  %v880_v18 = vld [vmem:[%s1048_s1 + $0x70] sm:$0xff] (!%p140_p2)  }
   0xb   : > { %781 = vmatpush3.bf16.msra.mxu0 (!%p140_p2), %v867_v4  ;;  %v881_v17 = vld [vmem:[%s1048_s1 + $0xa8] sm:$0xff] (!%p140_p2)   ;;  %v882_v19 = vld [vmem:[%s1048_s1 + $0x30] sm:$0xff] (!%p140_p2)   ;;  %v883_v20 = vld [vmem:[%s1048_s1 + $0x78] sm:$0xff] (!%p140_p2)  }
   0xc   : > { %782 = vmatprep.subr.bf16.mxu0 (!%p140_p2), %v868_v5  ;;  %v884_v21 = vld [vmem:[%s1048_s1 + $0xb0] sm:$0xff] (!%p140_p2)   ;;  %v885_v23 = vld [vmem:[%s1048_s1 + $0x38] sm:$0xff] (!%p140_p2)   ;;  %v700_v38 = vld [vmem:[%s1049_s2] ss:$0 sm:$0xff] (!%p140_p2) }
   0xd   : > { %833 = vmatpush3.bf16.msra.mxu1 %v869_v6  ;;  %s1052_s28 = smov (!%p165_p3, %s696_s28), 15  ;;  %v889_v25 = vld [vmem:[%s1048_s1 + $0xb8] sm:$0xff]  }
   0xe   : > { %834 = vmatprep.subr.bf16.mxu1 %v872_v9  ;;  %s854_s21 = smul.u32 12, %s1052_s28  ;;  %s699_s18 = sshll.u32 %s1052_s28, 2 }
   0xf   : > { %783 = vmatpush3.bf16.msra.mxu0 %v870_v7 }
  0x10   : > { %784 = vmatprep.subr.bf16.mxu0 %v871_v8  ;;  %s1005_s6 = scalar_lea.vmem %s1047_s0, %s854_s21  ;;  %s1038_s21 = scalar_lea.vmem %s1050_s3, %s699_s18 }
  0x11   : > { %835 = vmatpush3.bf16.msra.mxu1 %v872_v9  ;;  %v888_v22 = vld [vmem:[%s1005_s6 + $0x4] ss:$12 sps:$4 sm:$0xff]   ;;  %v890_v24 = vld [vmem:[%s1005_s6 + $0x8] ss:$12 sps:$4 sm:$0xff]   ;;  %v886_v26 = vld [vmem:[%s1005_s6] ss:$12 sps:$4 sm:$0xff]  }
  0x12   : > { %836 = vmatprep.subr.bf16.mxu1 %v875_v12  ;;  %489 = vmatprep.mubr.bf16.mxu0 %v888_v22  ;;  %v892_v27 = vld [vmem:[%s1005_s6 + $0x1c] ss:$12 sps:$4 sm:$0xff]   ;;  %v891_v28 = vld [vmem:[%s1005_s6 + $0x20] ss:$12 sps:$4 sm:$0xff]   ;;  %v898_v29 = vld [vmem:[%s1005_s6 + $0x38] ss:$12 sps:$4 sm:$0xff]  }
  0x13   : > { %785 = vmatpush3.bf16.msra.mxu0 %v873_v10  ;;  %846 = vmatprep.mubr.bf16.mxu1 %v890_v24  ;;  %v894_v30 = vld [vmem:[%s1005_s6 + $0x18] ss:$12 sps:$4 sm:$0xff]   ;;  %v895_v31 = vld [vmem:[%s1005_s6 + $0x34] ss:$12 sps:$4 sm:$0xff]   ;;  %v899_v32 = vld [vmem:[%s1005_s6 + $0x50] ss:$12 sps:$4 sm:$0xff]  }
  0x14   : > { %786 = vmatprep.subr.bf16.mxu0 %v874_v11  ;;  %v897_v33 = vld [vmem:[%s1005_s6 + $0x30] ss:$12 sps:$4 sm:$0xff]   ;;  %v900_v34 = vld [vmem:[%s1005_s6 + $0x4c] ss:$12 sps:$4 sm:$0xff]   ;;  %v902_v35 = vld [vmem:[%s1005_s6 + $0x48] ss:$12 sps:$4 sm:$0xff]  }
  0x15   : > { %837 = vmatpush3.bf16.msra.mxu1 %v875_v12 }
  0x16   : > { %838 = vmatprep.subr.bf16.mxu1 %v878_v14 }
  0x17   : > { %787 = vmatpush3.bf16.msra.mxu0 %v876_v13 }
  0x18   : > { %788 = vmatprep.subr.bf16.mxu0 %v877_v15 }
  0x19   : > { %839 = vmatpush3.bf16.msra.mxu1 %v878_v14 }
  0x1a   : > { %840 = vmatprep.subr.bf16.mxu1 %v881_v17 }
  0x1b   : > { %789 = vmatpush3.bf16.msra.mxu0 %v879_v16 }
  0x1c   : > { %790 = vmatprep.subr.bf16.mxu0 %v880_v18 }
  0x1d   : > { %841 = vmatpush3.bf16.msra.mxu1 %v881_v17 }
  0x1e   : > { %842 = vmatprep.subr.bf16.mxu1 %v884_v21 }
  0x1f   : > { %791 = vmatpush3.bf16.msra.mxu0 %v882_v19 }
  0x20   : > { %792 = vmatprep.subr.bf16.mxu0 %v883_v20 }
  0x21   : > { %843 = vmatpush3.bf16.msra.mxu1 %v884_v21 }
  0x22   : > { %844 = vmatprep.subr.bf16.mxu1 %v889_v25 }
  0x23   : > { %793 = vmatpush3.bf16.msra.mxu0 %v885_v23 }
  0x25   : > { %845 = vmatpush3.bf16.msra.mxu1 %v889_v25 }
  0x26   : > { %490 = vmatmul.mubr.bf16.vlgmr.msra.gmra.mrb[0].mxu0 %v886_v26 }
  0x27   : > { %497 = vmatprep.mubr.bf16.mxu0 %v892_v27 }
  0x28   : > { %847 = vmatmul.mubr.bf16.vlgmr.msra.gmra.mrb[0].mxu1 %v891_v28 }
  0x29   : > { %850 = vmatprep.mubr.bf16.mxu1 %v898_v29 }
  0x2e   : > { %498 = vmatmul.mubr.bf16.gmra.mrb[4].mxu0 %v894_v30 }
  0x2f   : > { %505 = vmatprep.mubr.bf16.mxu0 %v895_v31 }
  0x30   : > { %851 = vmatmul.mubr.bf16.gmra.mrb[4].mxu1 %v899_v32 }
  0x36   : > { %506 = vmatmul.mubr.bf16.gmra.mrb[8].mxu0 %v897_v33 }
  0x37   : > { %513 = vmatprep.mubr.bf16.mxu0 %v900_v34 }
  0x3e   : > { %514 = vmatmul.mubr.bf16.gmra.mrb[12].mxu0 %v902_v35 }
  0xf9   : > { %v794_v36 = vpop.f32.mrb[0].mxu0 }
  0xfa   : > { %v795_v37 = vpop.f32.mrb[1].mxu0 }
  0xfb   : > { %v796_v39 = vadd.f32 %v795_v37, %v794_v36  ;;  %v797_v40 = vpop.f32.mrb[2].mxu0  ;;  %v848_v42 = vpop.f32.mrb[0].mxu1 }
  0xfc   : > { %v798_v41 = vpop.f32.mrb[3].mxu0  ;;  %v556_v45 = vpop.f32.mrb[1].mxu1 }
  0xfd   : > { %v799_v43 = vadd.f32 %v798_v41, %v797_v40  ;;  %v492_v44 = vadd.f32 %v796_v39, %v700_v38  ;;  %v849_v46 = vpop.f32.mrb[2].mxu1 }
  0xfe   : > { %v559_v49 = vpop.f32.mrb[3].mxu1 }
  0xff   : > { %v557_v47 = vadd.f32 %v556_v45, %v492_v44  ;;  %v495_v48 = vadd.f32 %v799_v43, %v700_v38 }
 0x101   : > { %v560_v50 = vadd.f32 %v559_v49, %v495_v48  ;;  %v800_v51 = vpop.f32.mrb[4].mxu0  ;;  %v587_v53 = vmax.f32 %v557_v47, 0.0 }
 0x102   : > { %v801_v52 = vpop.f32.mrb[5].mxu0 }
 0x103   : > { %v588_v54 = vmax.f32 %v560_v50, 0.0  ;;  %v802_v55 = vadd.f32 %v801_v52, %v800_v51  ;;  %v803_v56 = vpop.f32.mrb[6].mxu0  ;;  %v852_v58 = vpop.f32.mrb[4].mxu1 }
 0x104   : > { %v804_v57 = vpop.f32.mrb[7].mxu0  ;;  %v572_v62 = vpop.f32.mrb[5].mxu1 }
 0x105   : > { %v758_v59 = vpack.c.bf16 %v588_v54, %v587_v53  ;;  %v500_v60 = vadd.f32 %v802_v55, %v700_v38  ;;  %v805_v61 = vadd.f32 %v804_v57, %v803_v56  ;;  %v853_v63 = vpop.f32.mrb[6].mxu1 }
 0x106   : > { %v575_v2 = vpop.f32.mrb[7].mxu1 }
 0x107   : > { %759 = vst [vmem:[%s1038_s21] sm:$0xff] %v758_v59   ;;  %v565_v0 = vadd.f32 %v848_v42, %v500_v60  ;;  %v503_v1 = vadd.f32 %v805_v61, %v700_v38 }
 0x109   : > { %v568_v3 = vadd.f32 %v849_v46, %v503_v1  ;;  %v806_v4 = vpop.f32.mrb[8].mxu0  ;;  %v589_v6 = vmax.f32 %v565_v0, 0.0 }
 0x10a   : > { %v807_v5 = vpop.f32.mrb[9].mxu0 }
 0x10b   : > { %v590_v7 = vmax.f32 %v568_v3, 0.0  ;;  %v808_v8 = vadd.f32 %v807_v5, %v806_v4  ;;  %v809_v9 = vpop.f32.mrb[10].mxu0 }
 0x10c   : > { %v810_v10 = vpop.f32.mrb[11].mxu0 }
 0x10d   : > { %v763_v11 = vpack.c.bf16 %v590_v7, %v589_v6  ;;  %v811_v12 = vadd.f32 %v810_v10, %v809_v9  ;;  %v508_v13 = vadd.f32 %v808_v8, %v700_v38 }
 0x10f   : > { %775 = vst [vmem:[%s1038_s21 + $0x8] sm:$0xff] %v763_v11   ;;  %v573_v14 = vadd.f32 %v572_v62, %v508_v13  ;;  %v511_v15 = vadd.f32 %v811_v12, %v700_v38 }
 0x111   : > { %v576_v16 = vadd.f32 %v575_v2, %v511_v15  ;;  %v812_v17 = vpop.f32.mrb[12].mxu0  ;;  %v591_v19 = vmax.f32 %v573_v14, 0.0 }
 0x112   : > { %v813_v18 = vpop.f32.mrb[13].mxu0 }
 0x113   : > { %v592_v20 = vmax.f32 %v576_v16, 0.0  ;;  %v814_v21 = vadd.f32 %v813_v18, %v812_v17  ;;  %v815_v22 = vpop.f32.mrb[14].mxu0 }
 0x114   : > { %v816_v23 = vpop.f32.mrb[15].mxu0 }
 0x115   : > { %v768_v24 = vpack.c.bf16 %v592_v20, %v591_v19  ;;  %v516_v25 = vadd.f32 %v814_v21, %v700_v38  ;;  %v817_v26 = vadd.f32 %v816_v23, %v815_v22 }
 0x117   : > { %776 = vst [vmem:[%s1038_s21 + $0x10] sm:$0xff] %v768_v24   ;;  %v581_v27 = vadd.f32 %v852_v58, %v516_v25  ;;  %v519_v28 = vadd.f32 %v817_v26, %v700_v38 }
 0x119   : > { %v584_v29 = vadd.f32 %v853_v63, %v519_v28  ;;  %v593_v30 = vmax.f32 %v581_v27, 0.0 }
 0x11b   : > { %v594_v31 = vmax.f32 %v584_v29, 0.0 }
 0x11d   : > { %v773_v32 = vpack.c.bf16 %v594_v31, %v593_v30 }
 0x11f   : > { %777 = vst [vmem:[%s1038_s21 + $0x18] sm:$0xff] %v773_v32  }
 0x120 PF: > { %s13_s12 = sadd.s32 1, %s909_s12  }
 0x121   : > { %p10_p4 = scmp.ge.s32.totalorder %s13_s12, 4  }
 0x123   :  { %12 = sbr.rel (!%p10_p4) target bundleno = 1 (0x1), region = 62 }

// kernel: resnet_forward.23
= control target key start
LH: loop header
LB: loop body
LE: loop exit
PB: predicated region body
PF: predicated region fallthrough
CT: control target
= control target key end

     0   :  { %s1280_s12 = smov 0   ;;  %s1448_s0 = inlined_call_operand.vmem [shape: bf16[128,640], index: 0, kind: input, shape index: {}]   ;;  %s1449_s1 = inlined_call_operand.vmem [shape: bf16[640,128], index: 1, kind: input, shape index: {}]   ;;  %s1450_s2 = inlined_call_operand.vmem [shape: f32[1,128], index: 2, kind: input, shape index: {}]   ;;  %s1451_s3 = inlined_call_operand.vmem [shape: bf16[128,128], index: 3, kind: output, shape index: {}]  }
   0x1 LB: > { %s932_s13 = sadd.s32 4294967295, %s1258_s12   ;;  %p936_p0 = scmp.ge.s32.totalorder %s1258_s12, 1  ;;  %s1258_s12 = sphi %s1280_s12, %s13_s12  }
   0x2   : > { %p139_p1 = scmp.lt.s32.totalorder %s1258_s12, 3 }
   0x4   : > { %p140_p2 = pnand %p936_p0, %p139_p1 }
   0x5   : > { %v1184_v0 = vld [vmem:[%s1449_s1 + $0x40] sm:$0xff] (!%p140_p2)   ;;  %v1188_v4 = vld [vmem:[%s1449_s1 + $0x48] sm:$0xff] (!%p140_p2)   ;;  %v1192_v8 = vld [vmem:[%s1449_s1 + $0x50] sm:$0xff] (!%p140_p2)   ;;  %s937_s19 = sshll.u32 (!%p140_p2), %s932_s13, 3 }
   0x6   : > { %143 = sbr.rel (%p140_p2) target bundleno = 295 (0x127), region = 32  ;;  %v1185_v1 = vld [vmem:[%s1449_s1 + $0xc0] sm:$0xff] (!%p140_p2)   ;;  %1043 = vmatprep.subr.bf16.mxu0 (!%p140_p2), %v1184_v0  ;;  %v1189_v5 = vld [vmem:[%s1449_s1 + $0xc8] sm:$0xff] (!%p140_p2)   ;;  %v1193_v9 = vld [vmem:[%s1449_s1 + $0xd0] sm:$0xff] (!%p140_p2)   ;;  %p165_p3 = scmp.lt.s32.totalorder (!%p140_p2), %s937_s19, 15 }
   0x7   : > { %v1186_v2 = vld [vmem:[%s1449_s1] sm:$0xff] (!%p140_p2)   ;;  %1083 = vmatprep.subr.bf16.mxu1 (!%p140_p2), %v1185_v1  ;;  %v1190_v6 = vld [vmem:[%s1449_s1 + $0x8] sm:$0xff] (!%p140_p2)   ;;  %v1194_v10 = vld [vmem:[%s1449_s1 + $0x10] sm:$0xff] (!%p140_p2)  }
   0x8   : > { %v1187_v3 = vld [vmem:[%s1449_s1 + $0x80] sm:$0xff] (!%p140_p2)   ;;  %1044 = vmatpush3.bf16.msra.mxu0 (!%p140_p2), %v1186_v2  ;;  %v1191_v7 = vld [vmem:[%s1449_s1 + $0x88] sm:$0xff] (!%p140_p2)   ;;  %v1195_v11 = vld [vmem:[%s1449_s1 + $0x90] sm:$0xff] (!%p140_p2)  }
   0x9   : > { %1084 = vmatpush3.bf16.msra.mxu1 (!%p140_p2), %v1187_v3  ;;  %1045 = vmatprep.subr.bf16.mxu0 (!%p140_p2), %v1188_v4  ;;  %v1196_v12 = vld [vmem:[%s1449_s1 + $0x58] sm:$0xff] (!%p140_p2)   ;;  %v1200_v16 = vld [vmem:[%s1449_s1 + $0x60] sm:$0xff] (!%p140_p2)   ;;  %v1204_v20 = vld [vmem:[%s1449_s1 + $0x68] sm:$0xff] (!%p140_p2)  }
   0xa   : > { %1085 = vmatprep.subr.bf16.mxu1 (!%p140_p2), %v1189_v5  ;;  %v1197_v13 = vld [vmem:[%s1449_s1 + $0xd8] sm:$0xff] (!%p140_p2)   ;;  %v1201_v17 = vld [vmem:[%s1449_s1 + $0xe0] sm:$0xff] (!%p140_p2)   ;;  %v1205_v21 = vld [vmem:[%s1449_s1 + $0xe8] sm:$0xff] (!%p140_p2)  }
   0xb   : > { %v1198_v14 = vld [vmem:[%s1449_s1 + $0x18] sm:$0xff] (!%p140_p2)   ;;  %v1202_v18 = vld [vmem:[%s1449_s1 + $0x20] sm:$0xff] (!%p140_p2)   ;;  %v1206_v22 = vld [vmem:[%s1449_s1 + $0x28] sm:$0xff] (!%p140_p2)  }
   0xc   : > { %1046 = vmatpush3.bf16.msra.mxu0 (!%p140_p2), %v1190_v6  ;;  %v1199_v15 = vld [vmem:[%s1449_s1 + $0x98] sm:$0xff] (!%p140_p2)   ;;  %v1203_v19 = vld [vmem:[%s1449_s1 + $0xa0] sm:$0xff] (!%p140_p2)   ;;  %v1207_v23 = vld [vmem:[%s1449_s1 + $0xa8] sm:$0xff] (!%p140_p2)  }
   0xd   : > { %1086 = vmatpush3.bf16.msra.mxu1 %v1191_v7  ;;  %1047 = vmatprep.subr.bf16.mxu0 %v1192_v8  ;;  %s1453_s19 = smov (!%p165_p3, %s937_s19), 15  ;;  %v1208_v24 = vld [vmem:[%s1449_s1 + $0x70] sm:$0xff]   ;;  %v1212_v28 = vld [vmem:[%s1449_s1 + $0x78] sm:$0xff]   ;;  %v1222_v36 = vld [vmem:[%s1449_s1 + $0x100] sm:$0xff]  }
   0xe   : > { %1087 = vmatprep.subr.bf16.mxu1 %v1193_v9  ;;  %v1209_v25 = vld [vmem:[%s1449_s1 + $0xf0] sm:$0xff]   ;;  %s1175_s16 = smul.u32 20, %s1453_s19  ;;  %v1213_v29 = vld [vmem:[%s1449_s1 + $0xf8] sm:$0xff]   ;;  %v1223_v37 = vld [vmem:[%s1449_s1 + $0x108] sm:$0xff]   ;;  %s940_s26 = sshll.u32 %s1453_s19, 2 }
   0xf   : > { %v1210_v26 = vld [vmem:[%s1449_s1 + $0x30] sm:$0xff]   ;;  %v1214_v30 = vld [vmem:[%s1449_s1 + $0x38] sm:$0xff]   ;;  %v1238_v46 = vld [vmem:[%s1449_s1 + $0x120] sm:$0xff]   ;;  %s175_s28 = scalar_lea.vmem %s1451_s3, %s940_s26 }
  0x10   : > { %1048 = vmatpush3.bf16.msra.mxu0 %v1194_v10  ;;  %v1211_v27 = vld [vmem:[%s1449_s1 + $0xb0] sm:$0xff]   ;;  %s1386_s13 = scalar_lea.vmem %s1448_s0, %s1175_s16  ;;  %v1215_v31 = vld [vmem:[%s1449_s1 + $0xb8] sm:$0xff]   ;;  %v1239_v51 = vld [vmem:[%s1449_s1 + $0x128] sm:$0xff]  }
  0x11   : > { %1088 = vmatpush3.bf16.msra.mxu1 %v1195_v11  ;;  %1049 = vmatprep.subr.bf16.mxu0 %v1196_v12  ;;  %v1216_v32 = vld [vmem:[%s1386_s13] ss:$20 sps:$4 sm:$0xff]   ;;  %v1218_v33 = vld [vmem:[%s1386_s13 + $0x4] ss:$20 sps:$4 sm:$0xff]   ;;  %v1219_v34 = vld [vmem:[%s1386_s13 + $0x8] ss:$20 sps:$4 sm:$0xff]  }
  0x12   : > { %1089 = vmatprep.subr.bf16.mxu1 %v1197_v13  ;;  %v1221_v35 = vld [vmem:[%s1386_s13 + $0xc] ss:$20 sps:$4 sm:$0xff]   ;;  %665 = vmatprep.mubr.bf16.mxu0 %v1218_v33  ;;  %v1226_v39 = vld [vmem:[%s1386_s13 + $0x34] ss:$20 sps:$4 sm:$0xff]   ;;  %v1229_v42 = vld [vmem:[%s1386_s13 + $0x30] ss:$20 sps:$4 sm:$0xff]  }
  0x13   : > { %730 = vmatprep.mubr.bf16.mxu1 %v1221_v35  ;;  %v1224_v38 = vld [vmem:[%s1386_s13 + $0x2c] ss:$20 sps:$4 sm:$0xff]   ;;  %v1228_v40 = vld [vmem:[%s1386_s13 + $0x28] ss:$20 sps:$4 sm:$0xff]   ;;  %v1230_v41 = vld [vmem:[%s1449_s1 + $0x110] sm:$0xff]  }
  0x14   : > { %1050 = vmatpush3.bf16.msra.mxu0 %v1198_v14  ;;  %v1232_v43 = vld [vmem:[%s1386_s13 + $0x54] ss:$20 sps:$4 sm:$0xff]   ;;  %v1231_v44 = vld [vmem:[%s1449_s1 + $0x118] sm:$0xff]   ;;  %v1236_v47 = vld [vmem:[%s1386_s13 + $0x50] ss:$20 sps:$4 sm:$0xff]  }
  0x15   : > { %1090 = vmatpush3.bf16.msra.mxu1 %v1199_v15  ;;  %1051 = vmatprep.subr.bf16.mxu0 %v1200_v16  ;;  %v1234_v45 = vld [vmem:[%s1386_s13 + $0x5c] ss:$20 sps:$4 sm:$0xff]   ;;  %v1237_v48 = vld [vmem:[%s1386_s13 + $0x58] ss:$20 sps:$4 sm:$0xff]   ;;  %v1245_v54 = vld [vmem:[%s1386_s13 + $0x80] ss:$20 sps:$4 sm:$0xff]  }
  0x16   : > { %1091 = vmatprep.subr.bf16.mxu1 %v1201_v17  ;;  %v1240_v49 = vld [vmem:[%s1386_s13 + $0x7c] ss:$20 sps:$4 sm:$0xff]   ;;  %v1242_v50 = vld [vmem:[%s1386_s13 + $0x84] ss:$20 sps:$4 sm:$0xff]   ;;  %v1249_v56 = vld [vmem:[%s1386_s13 + $0x60] ss:$20 sps:$4 sm:$0xff]  }
  0x17   : > { %v1246_v52 = vld [vmem:[%s1449_s1 + $0x130] sm:$0xff]   ;;  %v1244_v53 = vld [vmem:[%s1386_s13 + $0x78] ss:$20 sps:$4 sm:$0xff]   ;;  %v1251_v59 = vld [vmem:[%s1386_s13 + $0x88] ss:$20 sps:$4 sm:$0xff]  }
  0x18   : > { %1052 = vmatpush3.bf16.msra.mxu0 %v1202_v18  ;;  %v1248_v55 = vld [vmem:[%s1386_s13 + $0x10] ss:$20 sps:$4 sm:$0xff]   ;;  %v1247_v57 = vld [vmem:[%s1449_s1 + $0x138] sm:$0xff]   ;;  %v941_v62 = vld [vmem:[%s1450_s2] ss:$0 sm:$0xff] }
  0x19   : > { %1092 = vmatpush3.bf16.msra.mxu1 %v1203_v19  ;;  %1053 = vmatprep.subr.bf16.mxu0 %v1204_v20  ;;  %v1250_v58 = vld [vmem:[%s1386_s13 + $0x38] ss:$20 sps:$4 sm:$0xff]  }
  0x1a   : > { %1093 = vmatprep.subr.bf16.mxu1 %v1205_v21 }
  0x1c   : > { %1054 = vmatpush3.bf16.msra.mxu0 %v1206_v22 }
  0x1d   : > { %1094 = vmatpush3.bf16.msra.mxu1 %v1207_v23  ;;  %1055 = vmatprep.subr.bf16.mxu0 %v1208_v24 }
  0x1e   : > { %1095 = vmatprep.subr.bf16.mxu1 %v1209_v25 }
  0x20   : > { %1056 = vmatpush3.bf16.msra.mxu0 %v1210_v26 }
  0x21   : > { %1096 = vmatpush3.bf16.msra.mxu1 %v1211_v27  ;;  %1057 = vmatprep.subr.bf16.mxu0 %v1212_v28 }
  0x22   : > { %1097 = vmatprep.subr.bf16.mxu1 %v1213_v29 }
  0x24   : > { %1058 = vmatpush3.bf16.msra.mxu0 %v1214_v30 }
  0x25   : > { %1098 = vmatpush3.bf16.msra.mxu1 %v1215_v31  ;;  %1135 = vmatprep.subr.bf16.mxu0 %v1222_v36 }
  0x26   : > { %1159 = vmatprep.subr.bf16.mxu1 %v1222_v36 }
  0x27   : > { %666 = vmatmul.mubr.bf16.vlgmr.msra.gmra.mrb[0].mxu0 %v1216_v32 }
  0x28   : > { %731 = vmatmul.mubr.bf16.vlgmr.msra.gmra.mrb[0].mxu1 %v1219_v34  ;;  %1136 = vmatpush3.bf16.msra.mxu0 %v1222_v36 }
  0x29   : > { %1167 = vmatpush3.bf16.msra.mxu1 %v1222_v36  ;;  %1137 = vmatprep.subr.bf16.mxu0 %v1223_v37 }
  0x2a   : > { %1160 = vmatprep.subr.bf16.mxu1 %v1223_v37  ;;  %673 = vmatprep.mubr.bf16.mxu0 %v1224_v38 }
  0x2b   : > { %738 = vmatprep.mubr.bf16.mxu1 %v1226_v39 }
  0x2c   : > { %1138 = vmatpush3.bf16.msra.mxu0 %v1223_v37 }
  0x2d   : > { %1168 = vmatpush3.bf16.msra.mxu1 %v1223_v37  ;;  %1139 = vmatprep.subr.bf16.mxu0 %v1230_v41 }
  0x2e   : > { %1161 = vmatprep.subr.bf16.mxu1 %v1230_v41 }
  0x2f   : > { %674 = vmatmul.mubr.bf16.gmra.mrb[4].mxu0 %v1228_v40 }
  0x30   : > { %739 = vmatmul.mubr.bf16.gmra.mrb[4].mxu1 %v1229_v42  ;;  %681 = vmatprep.mubr.bf16.mxu0 %v1232_v43 }
  0x31   : > { %1140 = vmatpush3.bf16.msra.mxu0 %v1230_v41  ;;  %746 = vmatprep.mubr.bf16.mxu1 %v1234_v45 }
  0x32   : > { %1169 = vmatpush3.bf16.msra.mxu1 %v1230_v41  ;;  %1141 = vmatprep.subr.bf16.mxu0 %v1231_v44 }
  0x33   : > { %1162 = vmatprep.subr.bf16.mxu1 %v1231_v44 }
  0x35   : > { %1142 = vmatpush3.bf16.msra.mxu0 %v1231_v44 }
  0x36   : > { %1170 = vmatpush3.bf16.msra.mxu1 %v1231_v44  ;;  %1143 = vmatprep.subr.bf16.mxu0 %v1238_v46 }
  0x37   : > { %682 = vmatmul.mubr.bf16.gmra.mrb[8].mxu0 %v1236_v47  ;;  %1163 = vmatprep.subr.bf16.mxu1 %v1238_v46 }
  0x38   : > { %747 = vmatmul.mubr.bf16.gmra.mrb[8].mxu1 %v1237_v48  ;;  %689 = vmatprep.mubr.bf16.mxu0 %v1240_v49 }
  0x39   : > { %1144 = vmatpush3.bf16.msra.mxu0 %v1238_v46  ;;  %754 = vmatprep.mubr.bf16.mxu1 %v1242_v50 }
  0x3a   : > { %1171 = vmatpush3.bf16.msra.mxu1 %v1238_v46  ;;  %1145 = vmatprep.subr.bf16.mxu0 %v1239_v51 }
  0x3b   : > { %1164 = vmatprep.subr.bf16.mxu1 %v1239_v51 }
  0x3d   : > { %1146 = vmatpush3.bf16.msra.mxu0 %v1239_v51 }
  0x3e   : > { %1172 = vmatpush3.bf16.msra.mxu1 %v1239_v51  ;;  %1147 = vmatprep.subr.bf16.mxu0 %v1246_v52 }
  0x3f   : > { %690 = vmatmul.mubr.bf16.gmra.mrb[12].mxu0 %v1244_v53  ;;  %1165 = vmatprep.subr.bf16.mxu1 %v1246_v52 }
  0x40   : > { %755 = vmatmul.mubr.bf16.gmra.mrb[12].mxu1 %v1245_v54  ;;  %1151 = vmatprep.mubr.bf16.mxu0 %v1248_v55 }
  0x41   : > { %1148 = vmatpush3.bf16.msra.mxu0 %v1246_v52  ;;  %1155 = vmatprep.mubr.bf16.mxu1 %v1249_v56 }
  0x42   : > { %1173 = vmatpush3.bf16.msra.mxu1 %v1246_v52  ;;  %1149 = vmatprep.subr.bf16.mxu0 %v1247_v57 }
  0x43   : > { %1166 = vmatprep.subr.bf16.mxu1 %v1247_v57 }
  0x45   : > { %1150 = vmatpush3.bf16.msra.mxu0 %v1247_v57 }
  0x46   : > { %1174 = vmatpush3.bf16.msra.mxu1 %v1247_v57 }
  0x48   : > { %1152 = vmatmul.mubr.bf16.vlgmr.msra.gmra.mrb[16].mxu0 %v1250_v58 }
  0x49   : > { %1156 = vmatmul.mubr.bf16.vlgmr.msra.gmra.mrb[16].mxu1 %v1251_v59 }
  0xfa   : > { %v1059_v60 = vpop.f32.mrb[0].mxu0 }
  0xfb   : > { %v1099_v61 = vpop.f32.mrb[0].mxu1  ;;  %v1060_v63 = vpop.f32.mrb[1].mxu0 }
  0xfc   : > { %v1061_v0 = vadd.f32 %v1060_v63, %v1059_v60  ;;  %v1100_v1 = vpop.f32.mrb[1].mxu1  ;;  %v1062_v2 = vpop.f32.mrb[2].mxu0 }
  0xfd   : > { %v1101_v3 = vadd.f32 %v1100_v1, %v1099_v61  ;;  %v1102_v4 = vpop.f32.mrb[2].mxu1  ;;  %v1063_v5 = vpop.f32.mrb[3].mxu0 }
  0xfe   : > { %v668_v6 = vadd.f32 %v1061_v0, %v941_v62  ;;  %v1064_v7 = vadd.f32 %v1063_v5, %v1062_v2  ;;  %v1103_v8 = vpop.f32.mrb[3].mxu1 }
  0xff   : > { %v1104_v9 = vadd.f32 %v1103_v8, %v1102_v4 }
 0x100   : > { %v671_v10 = vadd.f32 %v1064_v7, %v941_v62  ;;  %v733_v11 = vadd.f32 %v1101_v3, %v668_v6 }
 0x102   : > { %v1065_v12 = vpop.f32.mrb[4].mxu0  ;;  %v736_v13 = vadd.f32 %v1104_v9, %v671_v10 }
 0x103   : > { %v1105_v14 = vpop.f32.mrb[4].mxu1  ;;  %v1066_v15 = vpop.f32.mrb[5].mxu0 }
 0x104   : > { %v1067_v16 = vadd.f32 %v1066_v15, %v1065_v12  ;;  %v1106_v17 = vpop.f32.mrb[5].mxu1  ;;  %v1068_v18 = vpop.f32.mrb[6].mxu0 }
 0x105   : > { %v1107_v19 = vadd.f32 %v1106_v17, %v1105_v14  ;;  %v1108_v20 = vpop.f32.mrb[6].mxu1  ;;  %v1069_v21 = vpop.f32.mrb[7].mxu0 }
 0x106   : > { %v676_v22 = vadd.f32 %v1067_v16, %v941_v62  ;;  %v1070_v23 = vadd.f32 %v1069_v21, %v1068_v18  ;;  %v1109_v24 = vpop.f32.mrb[7].mxu1 }
 0x107   : > { %v1110_v25 = vadd.f32 %v1109_v24, %v1108_v20 }
 0x108   : > { %v679_v26 = vadd.f32 %v1070_v23, %v941_v62  ;;  %v741_v27 = vadd.f32 %v1107_v19, %v676_v22 }
 0x10a   : > { %v1071_v28 = vpop.f32.mrb[8].mxu0  ;;  %v744_v29 = vadd.f32 %v1110_v25, %v679_v26 }
 0x10b   : > { %v1111_v30 = vpop.f32.mrb[8].mxu1  ;;  %v1072_v31 = vpop.f32.mrb[9].mxu0 }
 0x10c   : > { %v1073_v32 = vadd.f32 %v1072_v31, %v1071_v28  ;;  %v1112_v33 = vpop.f32.mrb[9].mxu1  ;;  %v1074_v34 = vpop.f32.mrb[10].mxu0 }
 0x10d   : > { %v1113_v35 = vadd.f32 %v1112_v33, %v1111_v30  ;;  %v1114_v36 = vpop.f32.mrb[10].mxu1  ;;  %v1075_v37 = vpop.f32.mrb[11].mxu0 }
 0x10e   : > { %v684_v38 = vadd.f32 %v1073_v32, %v941_v62  ;;  %v1076_v39 = vadd.f32 %v1075_v37, %v1074_v34  ;;  %v1115_v40 = vpop.f32.mrb[11].mxu1 }
 0x10f   : > { %v1116_v41 = vadd.f32 %v1115_v40, %v1114_v36 }
 0x110   : > { %v687_v42 = vadd.f32 %v1076_v39, %v941_v62  ;;  %v749_v43 = vadd.f32 %v1113_v35, %v684_v38 }
 0x112   : > { %v1077_v44 = vpop.f32.mrb[12].mxu0  ;;  %v752_v45 = vadd.f32 %v1116_v41, %v687_v42 }
 0x113   : > { %v1117_v46 = vpop.f32.mrb[12].mxu1  ;;  %v1078_v47 = vpop.f32.mrb[13].mxu0 }
 0x114   : > { %v1079_v48 = vadd.f32 %v1078_v47, %v1077_v44  ;;  %v1118_v49 = vpop.f32.mrb[13].mxu1  ;;  %v1080_v50 = vpop.f32.mrb[14].mxu0 }
 0x115   : > { %v1119_v51 = vadd.f32 %v1118_v49, %v1117_v46  ;;  %v1120_v52 = vpop.f32.mrb[14].mxu1  ;;  %v1081_v53 = vpop.f32.mrb[15].mxu0 }
 0x116   : > { %v692_v54 = vadd.f32 %v1079_v48, %v941_v62  ;;  %v1082_v55 = vadd.f32 %v1081_v53, %v1080_v50  ;;  %v1121_v56 = vpop.f32.mrb[15].mxu1 }
 0x117   : > { %v1122_v57 = vadd.f32 %v1121_v56, %v1120_v52 }
 0x118   : > { %v695_v58 = vadd.f32 %v1082_v55, %v941_v62  ;;  %v757_v59 = vadd.f32 %v1119_v51, %v692_v54 }
 0x11a   : > { %v760_v60 = vadd.f32 %v1122_v57, %v695_v58 }
 0x11b   : > { %v1153_v61 = vpop.f32.mrb[16].mxu0 }
 0x11c   : > { %v806_v63 = vadd.f32 %v1153_v61, %v741_v27  ;;  %v1157_v0 = vpop.f32.mrb[16].mxu1  ;;  %v797_v1 = vpop.f32.mrb[17].mxu0 }
 0x11d   : > { %v822_v2 = vadd.f32 %v1157_v0, %v757_v59  ;;  %v798_v3 = vadd.f32 %v797_v1, %v733_v11  ;;  %v813_v4 = vpop.f32.mrb[17].mxu1  ;;  %v1154_v5 = vpop.f32.mrb[18].mxu0 }
 0x11e   : > { %v814_v6 = vadd.f32 %v813_v4, %v749_v43  ;;  %v809_v7 = vadd.f32 %v1154_v5, %v744_v29  ;;  %v1158_v8 = vpop.f32.mrb[18].mxu1  ;;  %v800_v9 = vpop.f32.mrb[19].mxu0  ;;  %v830_v15 = vmax.f32 %v806_v63, 0.0 }
 0x11f   : > { %v825_v10 = vadd.f32 %v1158_v8, %v760_v60  ;;  %v801_v12 = vadd.f32 %v800_v9, %v736_v13  ;;  %v816_v14 = vpop.f32.mrb[19].mxu1  ;;  %v834_v17 = vmax.f32 %v822_v2, 0.0  ;;  %v828_v18 = vmax.f32 %v798_v3, 0.0 }
 0x120   : > { %v831_v62 = vmax.f32 %v809_v7, 0.0  ;;  %v817_v16 = vadd.f32 %v816_v14, %v752_v45  ;;  %v832_v20 = vmax.f32 %v814_v6, 0.0 }
 0x121   : > { %v835_v11 = vmax.f32 %v825_v10, 0.0  ;;  %v829_v19 = vmax.f32 %v801_v12, 0.0 }
 0x122   : > { %v1028_v21 = vpack.c.bf16 %v831_v62, %v830_v15  ;;  %v833_v22 = vmax.f32 %v817_v16, 0.0 }
 0x123   : > { %v1038_v23 = vpack.c.bf16 %v835_v11, %v834_v17  ;;  %v1023_v24 = vpack.c.bf16 %v829_v19, %v828_v18 }
 0x124   : > { %1040 = vst [vmem:[%s175_s28 + $0x8] sm:$0xff] %v1028_v21   ;;  %v1033_v25 = vpack.c.bf16 %v833_v22, %v832_v20 }
 0x125   : > { %1042 = vst [vmem:[%s175_s28 + $0x18] sm:$0xff] %v1038_v23   ;;  %1024 = vst [vmem:[%s175_s28] sm:$0xff] %v1023_v24  }
 0x126   : > { %1041 = vst [vmem:[%s175_s28 + $0x10] sm:$0xff] %v1033_v25  }
 0x127 PF: > { %s13_s12 = sadd.s32 1, %s1258_s12  }
 0x128   : > { %p10_p4 = scmp.ge.s32.totalorder %s13_s12, 4  }
 0x12a   :  { %12 = sbr.rel (!%p10_p4) target bundleno = 1 (0x1), region = 62 }

// kernel: resnet_forward.25
= control target key start
LH: loop header
LB: loop body
LE: loop exit
PB: predicated region body
PF: predicated region fallthrough
CT: control target
= control target key end

     0   :  { %s1391_s15 = smov 0   ;;  %s1582_s0 = inlined_call_operand.vmem [shape: bf16[128,640], index: 0, kind: input, shape index: {}]   ;;  %s1583_s1 = inlined_call_operand.vmem [shape: bf16[640,128], index: 1, kind: input, shape index: {}]   ;;  %s1584_s2 = inlined_call_operand.vmem [shape: f32[1,128], index: 2, kind: input, shape index: {}]   ;;  %s1585_s3 = inlined_call_operand.vmem [shape: bf16[128,128], index: 3, kind: input, shape index: {}]   ;;  %s1586_s4 = inlined_call_operand.vmem [shape: bf16[128,128], index: 4, kind: output, shape index: {}]  }
   0x1 LB: > { %s1017_s16 = sadd.s32 4294967295, %s1364_s15   ;;  %p1021_p0 = scmp.ge.s32.totalorder %s1364_s15, 1  ;;  %s1364_s15 = sphi %s1391_s15, %s14_s15  }
   0x2   : > { %p175_p1 = scmp.lt.s32.totalorder %s1364_s15, 3 }
   0x4   : > { %p176_p2 = pnand %p1021_p0, %p175_p1 }
   0x5   : > { %v1290_v0 = vld [vmem:[%s1583_s1 + $0x40] sm:$0xff] (!%p176_p2)   ;;  %v1294_v4 = vld [vmem:[%s1583_s1 + $0x48] sm:$0xff] (!%p176_p2)   ;;  %v1298_v8 = vld [vmem:[%s1583_s1 + $0x50] sm:$0xff] (!%p176_p2)   ;;  %s1022_s23 = sshll.u32 (!%p176_p2), %s1017_s16, 3 }
   0x6   : > { %179 = sbr.rel (%p176_p2) target bundleno = 297 (0x129), region = 36  ;;  %v1291_v1 = vld [vmem:[%s1583_s1 + $0xc0] sm:$0xff] (!%p176_p2)   ;;  %1149 = vmatprep.subr.bf16.mxu0 (!%p176_p2), %v1290_v0  ;;  %v1295_v5 = vld [vmem:[%s1583_s1 + $0xc8] sm:$0xff] (!%p176_p2)   ;;  %v1299_v9 = vld [vmem:[%s1583_s1 + $0xd0] sm:$0xff] (!%p176_p2)   ;;  %p208_p3 = scmp.lt.s32.totalorder (!%p176_p2), %s1022_s23, 15 }
   0x7   : > { %v1292_v2 = vld [vmem:[%s1583_s1] sm:$0xff] (!%p176_p2)   ;;  %1189 = vmatprep.subr.bf16.mxu1 (!%p176_p2), %v1291_v1  ;;  %v1296_v6 = vld [vmem:[%s1583_s1 + $0x8] sm:$0xff] (!%p176_p2)   ;;  %v1300_v10 = vld [vmem:[%s1583_s1 + $0x10] sm:$0xff] (!%p176_p2)  }
   0x8   : > { %v1293_v3 = vld [vmem:[%s1583_s1 + $0x80] sm:$0xff] (!%p176_p2)   ;;  %1150 = vmatpush3.bf16.msra.mxu0 (!%p176_p2), %v1292_v2  ;;  %v1297_v7 = vld [vmem:[%s1583_s1 + $0x88] sm:$0xff] (!%p176_p2)   ;;  %v1301_v11 = vld [vmem:[%s1583_s1 + $0x90] sm:$0xff] (!%p176_p2)  }
   0x9   : > { %1190 = vmatpush3.bf16.msra.mxu1 (!%p176_p2), %v1293_v3  ;;  %1151 = vmatprep.subr.bf16.mxu0 (!%p176_p2), %v1294_v4  ;;  %v1302_v12 = vld [vmem:[%s1583_s1 + $0x58] sm:$0xff] (!%p176_p2)   ;;  %v1306_v16 = vld [vmem:[%s1583_s1 + $0x60] sm:$0xff] (!%p176_p2)   ;;  %v1310_v20 = vld [vmem:[%s1583_s1 + $0x68] sm:$0xff] (!%p176_p2)  }
   0xa   : > { %1191 = vmatprep.subr.bf16.mxu1 (!%p176_p2), %v1295_v5  ;;  %v1303_v13 = vld [vmem:[%s1583_s1 + $0xd8] sm:$0xff] (!%p176_p2)   ;;  %v1307_v17 = vld [vmem:[%s1583_s1 + $0xe0] sm:$0xff] (!%p176_p2)   ;;  %v1311_v21 = vld [vmem:[%s1583_s1 + $0xe8] sm:$0xff] (!%p176_p2)  }
   0xb   : > { %v1304_v14 = vld [vmem:[%s1583_s1 + $0x18] sm:$0xff] (!%p176_p2)   ;;  %v1308_v18 = vld [vmem:[%s1583_s1 + $0x20] sm:$0xff] (!%p176_p2)   ;;  %v1312_v22 = vld [vmem:[%s1583_s1 + $0x28] sm:$0xff] (!%p176_p2)  }
   0xc   : > { %1152 = vmatpush3.bf16.msra.mxu0 (!%p176_p2), %v1296_v6  ;;  %v1305_v15 = vld [vmem:[%s1583_s1 + $0x98] sm:$0xff] (!%p176_p2)   ;;  %v1309_v19 = vld [vmem:[%s1583_s1 + $0xa0] sm:$0xff] (!%p176_p2)   ;;  %v1313_v23 = vld [vmem:[%s1583_s1 + $0xa8] sm:$0xff] (!%p176_p2)  }
   0xd   : > { %1192 = vmatpush3.bf16.msra.mxu1 %v1297_v7  ;;  %1153 = vmatprep.subr.bf16.mxu0 %v1298_v8  ;;  %s1588_s23 = smov (!%p208_p3, %s1022_s23), 15  ;;  %v1314_v24 = vld [vmem:[%s1583_s1 + $0x70] sm:$0xff]   ;;  %v1318_v28 = vld [vmem:[%s1583_s1 + $0x78] sm:$0xff]   ;;  %v1328_v36 = vld [vmem:[%s1583_s1 + $0x100] sm:$0xff]  }
   0xe   : > { %1193 = vmatprep.subr.bf16.mxu1 %v1299_v9  ;;  %v1315_v25 = vld [vmem:[%s1583_s1 + $0xf0] sm:$0xff]   ;;  %s1281_s21 = smul.u32 20, %s1588_s23  ;;  %v1319_v29 = vld [vmem:[%s1583_s1 + $0xf8] sm:$0xff]   ;;  %v1329_v37 = vld [vmem:[%s1583_s1 + $0x108] sm:$0xff]   ;;  %s1025_s16 = sshll.u32 %s1588_s23, 2 }
   0xf   : > { %v1316_v26 = vld [vmem:[%s1583_s1 + $0x30] sm:$0xff]   ;;  %v1320_v30 = vld [vmem:[%s1583_s1 + $0x38] sm:$0xff]   ;;  %v1344_v46 = vld [vmem:[%s1583_s1 + $0x120] sm:$0xff]   ;;  %s218_s8 = scalar_lea.vmem %s1585_s3, %s1025_s16  ;;  %s224_s11 = scalar_lea.vmem %s1586_s4, %s1025_s16 }
  0x10   : > { %1154 = vmatpush3.bf16.msra.mxu0 %v1300_v10  ;;  %v1317_v27 = vld [vmem:[%s1583_s1 + $0xb0] sm:$0xff]   ;;  %s1497_s6 = scalar_lea.vmem %s1582_s0, %s1281_s21  ;;  %v1321_v31 = vld [vmem:[%s1583_s1 + $0xb8] sm:$0xff]   ;;  %v1345_v51 = vld [vmem:[%s1583_s1 + $0x128] sm:$0xff]  }
  0x11   : > { %1194 = vmatpush3.bf16.msra.mxu1 %v1301_v11  ;;  %1155 = vmatprep.subr.bf16.mxu0 %v1302_v12  ;;  %v1322_v32 = vld [vmem:[%s1497_s6] ss:$20 sps:$4 sm:$0xff]   ;;  %v1324_v33 = vld [vmem:[%s1497_s6 + $0x4] ss:$20 sps:$4 sm:$0xff]   ;;  %v1325_v34 = vld [vmem:[%s1497_s6 + $0x8] ss:$20 sps:$4 sm:$0xff]  }
  0x12   : > { %1195 = vmatprep.subr.bf16.mxu1 %v1303_v13  ;;  %v1327_v35 = vld [vmem:[%s1497_s6 + $0xc] ss:$20 sps:$4 sm:$0xff]   ;;  %714 = vmatprep.mubr.bf16.mxu0 %v1324_v33  ;;  %v1332_v39 = vld [vmem:[%s1497_s6 + $0x34] ss:$20 sps:$4 sm:$0xff]   ;;  %v1335_v42 = vld [vmem:[%s1497_s6 + $0x30] ss:$20 sps:$4 sm:$0xff]  }
  0x13   : > { %779 = vmatprep.mubr.bf16.mxu1 %v1327_v35  ;;  %v1330_v38 = vld [vmem:[%s1497_s6 + $0x2c] ss:$20 sps:$4 sm:$0xff]   ;;  %v1334_v40 = vld [vmem:[%s1497_s6 + $0x28] ss:$20 sps:$4 sm:$0xff]   ;;  %v1336_v41 = vld [vmem:[%s1583_s1 + $0x110] sm:$0xff]  }
  0x14   : > { %1156 = vmatpush3.bf16.msra.mxu0 %v1304_v14  ;;  %v1338_v43 = vld [vmem:[%s1497_s6 + $0x54] ss:$20 sps:$4 sm:$0xff]   ;;  %v1337_v44 = vld [vmem:[%s1583_s1 + $0x118] sm:$0xff]   ;;  %v1342_v47 = vld [vmem:[%s1497_s6 + $0x50] ss:$20 sps:$4 sm:$0xff]  }
  0x15   : > { %1196 = vmatpush3.bf16.msra.mxu1 %v1305_v15  ;;  %1157 = vmatprep.subr.bf16.mxu0 %v1306_v16  ;;  %v1340_v45 = vld [vmem:[%s1497_s6 + $0x5c] ss:$20 sps:$4 sm:$0xff]   ;;  %v1343_v48 = vld [vmem:[%s1497_s6 + $0x58] ss:$20 sps:$4 sm:$0xff]   ;;  %v1351_v54 = vld [vmem:[%s1497_s6 + $0x80] ss:$20 sps:$4 sm:$0xff]  }
  0x16   : > { %1197 = vmatprep.subr.bf16.mxu1 %v1307_v17  ;;  %v1346_v49 = vld [vmem:[%s1497_s6 + $0x7c] ss:$20 sps:$4 sm:$0xff]   ;;  %v1348_v50 = vld [vmem:[%s1497_s6 + $0x84] ss:$20 sps:$4 sm:$0xff]   ;;  %v1355_v56 = vld [vmem:[%s1497_s6 + $0x60] ss:$20 sps:$4 sm:$0xff]  }
  0x17   : > { %v1352_v52 = vld [vmem:[%s1583_s1 + $0x130] sm:$0xff]   ;;  %v1350_v53 = vld [vmem:[%s1497_s6 + $0x78] ss:$20 sps:$4 sm:$0xff]   ;;  %v1357_v59 = vld [vmem:[%s1497_s6 + $0x88] ss:$20 sps:$4 sm:$0xff]  }
  0x18   : > { %1158 = vmatpush3.bf16.msra.mxu0 %v1308_v18  ;;  %v1354_v55 = vld [vmem:[%s1497_s6 + $0x10] ss:$20 sps:$4 sm:$0xff]   ;;  %v1353_v57 = vld [vmem:[%s1583_s1 + $0x138] sm:$0xff]   ;;  %v1552_v62 = vld [vmem:[%s1584_s2] ss:$0 sm:$0xff] }
  0x19   : > { %1198 = vmatpush3.bf16.msra.mxu1 %v1309_v19  ;;  %1159 = vmatprep.subr.bf16.mxu0 %v1310_v20  ;;  %v1356_v58 = vld [vmem:[%s1497_s6 + $0x38] ss:$20 sps:$4 sm:$0xff]  }
  0x1a   : > { %1199 = vmatprep.subr.bf16.mxu1 %v1311_v21 }
  0x1c   : > { %1160 = vmatpush3.bf16.msra.mxu0 %v1312_v22 }
  0x1d   : > { %1200 = vmatpush3.bf16.msra.mxu1 %v1313_v23  ;;  %1161 = vmatprep.subr.bf16.mxu0 %v1314_v24 }
  0x1e   : > { %1201 = vmatprep.subr.bf16.mxu1 %v1315_v25 }
  0x20   : > { %1162 = vmatpush3.bf16.msra.mxu0 %v1316_v26 }
  0x21   : > { %1202 = vmatpush3.bf16.msra.mxu1 %v1317_v27  ;;  %1163 = vmatprep.subr.bf16.mxu0 %v1318_v28 }
  0x22   : > { %1203 = vmatprep.subr.bf16.mxu1 %v1319_v29 }
  0x24   : > { %1164 = vmatpush3.bf16.msra.mxu0 %v1320_v30 }
  0x25   : > { %1204 = vmatpush3.bf16.msra.mxu1 %v1321_v31  ;;  %1241 = vmatprep.subr.bf16.mxu0 %v1328_v36 }
  0x26   : > { %1265 = vmatprep.subr.bf16.mxu1 %v1328_v36 }
  0x27   : > { %715 = vmatmul.mubr.bf16.vlgmr.msra.gmra.mrb[0].mxu0 %v1322_v32 }
  0x28   : > { %780 = vmatmul.mubr.bf16.vlgmr.msra.gmra.mrb[0].mxu1 %v1325_v34  ;;  %1242 = vmatpush3.bf16.msra.mxu0 %v1328_v36 }
  0x29   : > { %1273 = vmatpush3.bf16.msra.mxu1 %v1328_v36  ;;  %1243 = vmatprep.subr.bf16.mxu0 %v1329_v37 }
  0x2a   : > { %1266 = vmatprep.subr.bf16.mxu1 %v1329_v37  ;;  %722 = vmatprep.mubr.bf16.mxu0 %v1330_v38 }
  0x2b   : > { %787 = vmatprep.mubr.bf16.mxu1 %v1332_v39 }
  0x2c   : > { %1244 = vmatpush3.bf16.msra.mxu0 %v1329_v37 }
  0x2d   : > { %1274 = vmatpush3.bf16.msra.mxu1 %v1329_v37  ;;  %1245 = vmatprep.subr.bf16.mxu0 %v1336_v41 }
  0x2e   : > { %1267 = vmatprep.subr.bf16.mxu1 %v1336_v41 }
  0x2f   : > { %723 = vmatmul.mubr.bf16.gmra.mrb[4].mxu0 %v1334_v40 }
  0x30   : > { %788 = vmatmul.mubr.bf16.gmra.mrb[4].mxu1 %v1335_v42  ;;  %730 = vmatprep.mubr.bf16.mxu0 %v1338_v43 }
  0x31   : > { %1246 = vmatpush3.bf16.msra.mxu0 %v1336_v41  ;;  %795 = vmatprep.mubr.bf16.mxu1 %v1340_v45 }
  0x32   : > { %1275 = vmatpush3.bf16.msra.mxu1 %v1336_v41  ;;  %1247 = vmatprep.subr.bf16.mxu0 %v1337_v44 }
  0x33   : > { %1268 = vmatprep.subr.bf16.mxu1 %v1337_v44 }
  0x35   : > { %1248 = vmatpush3.bf16.msra.mxu0 %v1337_v44 }
  0x36   : > { %1276 = vmatpush3.bf16.msra.mxu1 %v1337_v44  ;;  %1249 = vmatprep.subr.bf16.mxu0 %v1344_v46 }
  0x37   : > { %731 = vmatmul.mubr.bf16.gmra.mrb[8].mxu0 %v1342_v47  ;;  %1269 = vmatprep.subr.bf16.mxu1 %v1344_v46 }
  0x38   : > { %796 = vmatmul.mubr.bf16.gmra.mrb[8].mxu1 %v1343_v48  ;;  %738 = vmatprep.mubr.bf16.mxu0 %v1346_v49 }
  0x39   : > { %1250 = vmatpush3.bf16.msra.mxu0 %v1344_v46  ;;  %803 = vmatprep.mubr.bf16.mxu1 %v1348_v50 }
  0x3a   : > { %1277 = vmatpush3.bf16.msra.mxu1 %v1344_v46  ;;  %1251 = vmatprep.subr.bf16.mxu0 %v1345_v51 }
  0x3b   : > { %1270 = vmatprep.subr.bf16.mxu1 %v1345_v51 }
  0x3d   : > { %1252 = vmatpush3.bf16.msra.mxu0 %v1345_v51 }
  0x3e   : > { %1278 = vmatpush3.bf16.msra.mxu1 %v1345_v51  ;;  %1253 = vmatprep.subr.bf16.mxu0 %v1352_v52 }
  0x3f   : > { %739 = vmatmul.mubr.bf16.gmra.mrb[12].mxu0 %v1350_v53  ;;  %1271 = vmatprep.subr.bf16.mxu1 %v1352_v52 }
  0x40   : > { %804 = vmatmul.mubr.bf16.gmra.mrb[12].mxu1 %v1351_v54  ;;  %1257 = vmatprep.mubr.bf16.mxu0 %v1354_v55 }
  0x41   : > { %1254 = vmatpush3.bf16.msra.mxu0 %v1352_v52  ;;  %1261 = vmatprep.mubr.bf16.mxu1 %v1355_v56 }
  0x42   : > { %1279 = vmatpush3.bf16.msra.mxu1 %v1352_v52  ;;  %1255 = vmatprep.subr.bf16.mxu0 %v1353_v57 }
  0x43   : > { %1272 = vmatprep.subr.bf16.mxu1 %v1353_v57 }
  0x45   : > { %1256 = vmatpush3.bf16.msra.mxu0 %v1353_v57 }
  0x46   : > { %1280 = vmatpush3.bf16.msra.mxu1 %v1353_v57 }
  0x48   : > { %1258 = vmatmul.mubr.bf16.vlgmr.msra.gmra.mrb[16].mxu0 %v1356_v58  ;;  %v1143_v58 = vld [vmem:[%s218_s8 + $0x8] sm:$0xff]  }
  0x49   : > { %1262 = vmatmul.mubr.bf16.vlgmr.msra.gmra.mrb[16].mxu1 %v1357_v59 }
  0xfa   : > { %v1165_v60 = vpop.f32.mrb[0].mxu0 }
  0xfb   : > { %v1205_v61 = vpop.f32.mrb[0].mxu1  ;;  %v1166_v63 = vpop.f32.mrb[1].mxu0 }
  0xfc   : > { %v1167_v0 = vadd.f32 %v1166_v63, %v1165_v60  ;;  %v1206_v1 = vpop.f32.mrb[1].mxu1  ;;  %v1168_v2 = vpop.f32.mrb[2].mxu0  ;;  %v1108_v63 = vld [vmem:[%s218_s8] sm:$0xff]  }
  0xfd   : > { %v1207_v3 = vadd.f32 %v1206_v1, %v1205_v61  ;;  %v1208_v4 = vpop.f32.mrb[2].mxu1  ;;  %v1169_v5 = vpop.f32.mrb[3].mxu0  ;;  %v1145_v61 = vld [vmem:[%s218_s8 + $0x18] sm:$0xff]   ;;  %v1113_v1 = vunpack.c.l.bf16 %v1143_v58 }
  0xfe   : > { %v717_v6 = vadd.f32 %v1167_v0, %v1552_v62  ;;  %v1170_v7 = vadd.f32 %v1169_v5, %v1168_v2  ;;  %v1209_v8 = vpop.f32.mrb[3].mxu1  ;;  %v1144_v0 = vld [vmem:[%s218_s8 + $0x10] sm:$0xff]   ;;  %v1109_v5 = vunpack.c.l.bf16 %v1108_v63 }
  0xff   : > { %v1210_v9 = vadd.f32 %v1209_v8, %v1208_v4  ;;  %v1121_v4 = vunpack.c.l.bf16 %v1145_v61 }
 0x100   : > { %v720_v10 = vadd.f32 %v1170_v7, %v1552_v62  ;;  %v1556_v11 = vadd.f32 %v1207_v3, %v717_v6 }
 0x102   : > { %v1171_v12 = vpop.f32.mrb[4].mxu0  ;;  %v1558_v13 = vadd.f32 %v1210_v9, %v720_v10  ;;  %v1117_v9 = vunpack.c.l.bf16 %v1144_v0  ;;  %v1114_v10 = vunpack.c.h.bf16 %v1143_v58 }
 0x103   : > { %v1211_v14 = vpop.f32.mrb[4].mxu1  ;;  %v1172_v15 = vpop.f32.mrb[5].mxu0 }
 0x104   : > { %v1173_v16 = vadd.f32 %v1172_v15, %v1171_v12  ;;  %v1212_v17 = vpop.f32.mrb[5].mxu1  ;;  %v1174_v18 = vpop.f32.mrb[6].mxu0 }
 0x105   : > { %v1213_v19 = vadd.f32 %v1212_v17, %v1211_v14  ;;  %v1214_v20 = vpop.f32.mrb[6].mxu1  ;;  %v1175_v21 = vpop.f32.mrb[7].mxu0  ;;  %v1110_v17 = vunpack.c.h.bf16 %v1108_v63 }
 0x106   : > { %v725_v22 = vadd.f32 %v1173_v16, %v1552_v62  ;;  %v1176_v23 = vadd.f32 %v1175_v21, %v1174_v18  ;;  %v1215_v24 = vpop.f32.mrb[7].mxu1 }
 0x107   : > { %v1216_v25 = vadd.f32 %v1215_v24, %v1214_v20 }
 0x108   : > { %v728_v26 = vadd.f32 %v1176_v23, %v1552_v62  ;;  %v790_v27 = vadd.f32 %v1213_v19, %v725_v22  ;;  %v1118_v23 = vunpack.c.h.bf16 %v1144_v0 }
 0x10a   : > { %v1177_v28 = vpop.f32.mrb[8].mxu0  ;;  %v793_v29 = vadd.f32 %v1216_v25, %v728_v26 }
 0x10b   : > { %v1217_v30 = vpop.f32.mrb[8].mxu1  ;;  %v1178_v31 = vpop.f32.mrb[9].mxu0 }
 0x10c   : > { %v1179_v32 = vadd.f32 %v1178_v31, %v1177_v28  ;;  %v1218_v33 = vpop.f32.mrb[9].mxu1  ;;  %v1180_v34 = vpop.f32.mrb[10].mxu0 }
 0x10d   : > { %v1219_v35 = vadd.f32 %v1218_v33, %v1217_v30  ;;  %v1220_v36 = vpop.f32.mrb[10].mxu1  ;;  %v1181_v37 = vpop.f32.mrb[11].mxu0 }
 0x10e   : > { %v733_v38 = vadd.f32 %v1179_v32, %v1552_v62  ;;  %v1182_v39 = vadd.f32 %v1181_v37, %v1180_v34  ;;  %v1221_v40 = vpop.f32.mrb[11].mxu1 }
 0x10f   : > { %v1222_v41 = vadd.f32 %v1221_v40, %v1220_v36 }
 0x110   : > { %v736_v42 = vadd.f32 %v1182_v39, %v1552_v62  ;;  %v798_v43 = vadd.f32 %v1219_v35, %v733_v38 }
 0x112   : > { %v1183_v44 = vpop.f32.mrb[12].mxu0  ;;  %v801_v45 = vadd.f32 %v1222_v41, %v736_v42 }
 0x113   : > { %v1223_v46 = vpop.f32.mrb[12].mxu1  ;;  %v1184_v47 = vpop.f32.mrb[13].mxu0 }
 0x114   : > { %v1185_v48 = vadd.f32 %v1184_v47, %v1183_v44  ;;  %v1224_v49 = vpop.f32.mrb[13].mxu1  ;;  %v1186_v50 = vpop.f32.mrb[14].mxu0 }
 0x115   : > { %v1225_v51 = vadd.f32 %v1224_v49, %v1223_v46  ;;  %v1226_v52 = vpop.f32.mrb[14].mxu1  ;;  %v1187_v53 = vpop.f32.mrb[15].mxu0 }
 0x116   : > { %v741_v54 = vadd.f32 %v1185_v48, %v1552_v62  ;;  %v1188_v55 = vadd.f32 %v1187_v53, %v1186_v50  ;;  %v1227_v56 = vpop.f32.mrb[15].mxu1 }
 0x117   : > { %v1228_v57 = vadd.f32 %v1227_v56, %v1226_v52 }
 0x118   : > { %v744_v59 = vadd.f32 %v1188_v55, %v1552_v62  ;;  %v806_v60 = vadd.f32 %v1225_v51, %v741_v54  ;;  %v1122_v62 = vunpack.c.h.bf16 %v1145_v61 }
 0x11a   : > { %v809_v2 = vadd.f32 %v1228_v57, %v744_v59 }
 0x11b   : > { %v1259_v3 = vpop.f32.mrb[16].mxu0 }
 0x11c   : > { %v855_v6 = vadd.f32 %v1259_v3, %v790_v27  ;;  %v1263_v7 = vpop.f32.mrb[16].mxu1  ;;  %v846_v8 = vpop.f32.mrb[17].mxu0 }
 0x11d   : > { %v871_v12 = vadd.f32 %v1263_v7, %v806_v60  ;;  %v847_v14 = vadd.f32 %v846_v8, %v1556_v11  ;;  %v862_v15 = vpop.f32.mrb[17].mxu1  ;;  %v1260_v16 = vpop.f32.mrb[18].mxu0 }
 0x11e   : > { %v895_v18 = vadd.f32 %v1113_v1, %v855_v6  ;;  %v863_v19 = vadd.f32 %v862_v15, %v798_v43  ;;  %v858_v20 = vadd.f32 %v1260_v16, %v793_v29  ;;  %v1264_v21 = vpop.f32.mrb[18].mxu1  ;;  %v849_v22 = vpop.f32.mrb[19].mxu0 }
 0x11f   : > { %v899_v24 = vadd.f32 %v1121_v4, %v871_v12  ;;  %v893_v25 = vadd.f32 %v1109_v5, %v847_v14  ;;  %v874_v26 = vadd.f32 %v1264_v21, %v809_v2  ;;  %v850_v27 = vadd.f32 %v849_v22, %v1558_v13  ;;  %v865_v28 = vpop.f32.mrb[19].mxu1 }
 0x120   : > { %v897_v30 = vadd.f32 %v1117_v9, %v863_v19  ;;  %v896_v31 = vadd.f32 %v1114_v10, %v858_v20  ;;  %v866_v11 = vadd.f32 %v865_v28, %v801_v45  ;;  %v903_v34 = vmax.f32 %v895_v18, 0.0 }
 0x121   : > { %v900_v32 = vadd.f32 %v1122_v62, %v874_v26  ;;  %v894_v33 = vadd.f32 %v1110_v17, %v850_v27  ;;  %v907_v37 = vmax.f32 %v899_v24, 0.0  ;;  %v901_v29 = vmax.f32 %v893_v25, 0.0 }
 0x122   : > { %v904_v35 = vmax.f32 %v896_v31, 0.0  ;;  %v898_v36 = vadd.f32 %v1118_v23, %v866_v11  ;;  %v905_v40 = vmax.f32 %v897_v30, 0.0 }
 0x123   : > { %v908_v38 = vmax.f32 %v900_v32, 0.0  ;;  %v902_v39 = vmax.f32 %v894_v33, 0.0 }
 0x124   : > { %v1131_v13 = vpack.c.bf16 %v904_v35, %v903_v34  ;;  %v906_v41 = vmax.f32 %v898_v36, 0.0 }
 0x125   : > { %v1141_v42 = vpack.c.bf16 %v908_v38, %v907_v37  ;;  %v1126_v43 = vpack.c.bf16 %v902_v39, %v901_v29 }
 0x126   : > { %1146 = vst [vmem:[%s224_s11 + $0x8] sm:$0xff] %v1131_v13   ;;  %v1136_v44 = vpack.c.bf16 %v906_v41, %v905_v40 }
 0x127   : > { %1148 = vst [vmem:[%s224_s11 + $0x18] sm:$0xff] %v1141_v42   ;;  %1127 = vst [vmem:[%s224_s11] sm:$0xff] %v1126_v43  }
 0x128   : > { %1147 = vst [vmem:[%s224_s11 + $0x10] sm:$0xff] %v1136_v44  }
 0x129 PF: > { %s14_s15 = sadd.s32 1, %s1364_s15  }
 0x12a   : > { %p11_p4 = scmp.ge.s32.totalorder %s14_s15, 4  }
 0x12c   :  { %13 = sbr.rel (!%p11_p4) target bundleno = 1 (0x1), region = 69 }

</bundles_post_ra>
